<compile_context>
chip_gen: v7x
topology: tpu7x:2x2x1
jax: 0.10.0
libtpu: 0.0.40
codegen_flags: <defaults>
</compile_context>

<pallas_src>
import functools

import jax
import jax.numpy as jnp
from jax.experimental import pallas as pl
from jax.experimental.pallas import tpu as pltpu


def _round_up(x, m):
    return ((x + m - 1) // m) * m


def _tensorcores_per_chip():
    """2 on v7x-class chips (2 TCs/chip), 1 otherwise (v5e/v6e)."""
    try:
        kind = jax.devices()[0].device_kind.lower()
    except Exception:
        return 1
    return 2 if "7" in kind else 1


def _vmem_capacity_bytes():
    """Physical VMEM per core; conservative 64 MiB (v7x) fallback."""
    try:
        info = pltpu.get_tpu_info()
        v = getattr(info, "vmem_capacity_bytes", None)
        if v:
            return int(v)
    except Exception:
        pass
    return 64 * 1024 * 1024


# ---------------------------------------------------------------------------
# Kernel: grid = (batch_tiles, time_chunks); hidden state carried in VMEM.
# ---------------------------------------------------------------------------
def _gru_chunk_kernel(x_ref,      # [Bt, Tc, D]   f32 features tile
                      w_i_ref,    # [D, 3Hp]      bf16 fused input weights (r|z|n)
                      b_i_ref,    # [1, 3Hp]      f32 fused biases (b_i?+b_h? per gate)
                      w_h_ref,    # [Hp, 3Hp]     bf16 fused hidden weights
                      b_hn_ref,   # [1, Hp]       f32 hidden bias of n gate
                      ci_ref,     # [1, Hp]       f32 learned context_init
                      out_ref,    # [Bt, Tc, Hp]  f32 output (one-step shifted)
                      gi_scr,     # VMEM [Bt, Tc, 3Hp] f32  per-chunk gi staging
                      h_scr):     # VMEM [Bt, Hp] f32       recurrent carry
    c = pl.program_id(1)                    # time-chunk index (serial axis)
    Bt, Tc, _ = x_ref.shape
    Hp = b_hn_ref.shape[-1]

    @pl.when(c == 0)
    def _():
        h_scr[...] = jnp.zeros_like(h_scr)  # PyTorch default h_0 = 0

    # ---- chunk-level input projection (off the per-step serial path) -------
    w_i = w_i_ref[...]                      # bf16, loop invariant
    b_i = b_i_ref[...]                      # f32
    # TODO(synk): for very large batch tiles collapse this into one
    # (Bt*Tc, D) @ (D, 3Hp) matmul instead of one rank-2 matmul per batch row.
    for b in range(Bt):
        gi_scr[b] = jnp.dot(x_ref[b].astype(jnp.bfloat16), w_i,
                            preferred_element_type=jnp.float32) + b_i

    # ---- serial recurrence over the resident chunk --------------------------
    w_h = w_h_ref[...]                      # bf16, loop invariant
    b_hn = b_hn_ref[...]                    # f32 [1, Hp]
    h = h_scr[...]                          # f32 [Bt, Hp] carry from prev chunk
    # Value stored at local position 0: context_init on the very first chunk,
    # otherwise the carry-in hidden state (== h at the end of the prev chunk).
    out0 = jnp.where(c == 0, jnp.broadcast_to(ci_ref[...], (Bt, Hp)), h)

    # TODO(synk): for very long chunks switch to a partially unrolled
    # lax.fori_loop (dynamic pl.ds time index) and interleave two independent
    # batch sub-tiles to hide the matmul->EUP->VPU dependency latency; kept as
    # a static unroll with static indices for lowering robustness.
    for t in range(Tc):
        # Store the carry-in state at position t: this one-step shift realizes
        # the context_init prepend and the remove_last slicing in-kernel.
        src = out0 if t == 0 else h
        out_ref[:, t:t + 1, :] = src[:, None, :]

        gi = gi_scr[:, t, :]                                        # [Bt, 3Hp]
        gh = jnp.dot(h.astype(jnp.bfloat16), w_h,
                     preferred_element_type=jnp.float32)            # [Bt, 3Hp]
        r = jax.nn.sigmoid(gi[:, 0:Hp] + gh[:, 0:Hp])          # b_ir+b_hr in gi
        z = jax.nn.sigmoid(gi[:, Hp:2 * Hp] + gh[:, Hp:2 * Hp])  # b_iz+b_hz in gi
        n = jnp.tanh(gi[:, 2 * Hp:] + r * (gh[:, 2 * Hp:] + b_hn))
        h = (1.0 - z) * n + z * h

    h_scr[...] = h


def gru_pallas(features, params, *, time_block=128):
    """features: [B, T, D] f32 -> [Bp, Tp, Hp] f32 where
    out[:, 0] = context_init and out[:, p] = GRU output for input p-1 (p >= 1)."""
    B, T, D = features.shape
    w_i, w_h = params["w_i"], params["w_h"]          # bf16, gate-padded
    b_i, b_hn = params["b_i"], params["b_hn"]        # f32 [1, 3Hp], [1, Hp]
    ci = params["context_init_pad"]                  # f32 [1, Hp]
    Hp = w_h.shape[0]
    GHp = 3 * Hp

    # ---- batch padding / tiling --------------------------------------------
    Bp = max(8, _round_up(B, 8))
    if Bp != B:
        features = jnp.pad(features, ((0, Bp - B), (0, 0), (0, 0)))
    nb, Bt = 1, Bp
    # Split the batch only when a second TensorCore exists to run it.
    if _tensorcores_per_chip() >= 2 and Bp >= 16 and (Bp // 2) % 8 == 0:
        nb, Bt = 2, Bp // 2

    # ---- time chunking: always pad up, VMEM-budgeted -------------------------
    t_need = T + 1                       # position T must hold h_T (last output)
    vmem_cap = _vmem_capacity_bytes()

    def est_bytes(tc):
        x_blk = 2 * Bt * tc * D * 4                      # double-buffered input
        out_blk = 2 * Bt * tc * Hp * 4                   # double-buffered output
        gi_scr = Bt * tc * GHp * 4
        h_scr = Bt * Hp * 4
        weights = 2 * (D * GHp * 2 + Hp * GHp * 2 + GHp * 4 + 2 * Hp * 4)
        return x_blk + out_blk + gi_scr + h_scr + weights

    Tc = max(8, _round_up(min(time_block, t_need), 8))
    while Tc > 8 and est_bytes(Tc) > int(0.75 * vmem_cap):
        Tc = max(8, _round_up(Tc // 2, 8))
    nc = -(-t_need // Tc)
    Tc = _round_up(-(-t_need // nc), 8)   # rebalance: same #chunks, less padding
    Tp = Tc * nc
    features = jnp.pad(features, ((0, 0), (0, Tp - T), (0, 0)))

    vmem_limit = int(min(vmem_cap, max(est_bytes(Tc) + (8 << 20), 32 << 20)))

    out = pl.pallas_call(
        _gru_chunk_kernel,
        out_shape=jax.ShapeDtypeStruct((Bp, Tp, Hp), jnp.float32),
        grid_spec=pltpu.PrefetchScalarGridSpec(
            num_scalar_prefetch=0,
            grid=(nb, nc),
            in_specs=[
                pl.BlockSpec((Bt, Tc, D), lambda b, c: (b, c, 0)),   # features
                pl.BlockSpec((D, GHp), lambda b, c: (0, 0)),         # W_i  (bf16)
                pl.BlockSpec((1, GHp), lambda b, c: (0, 0)),         # b_i
                pl.BlockSpec((Hp, GHp), lambda b, c: (0, 0)),        # W_h  (bf16)
                pl.BlockSpec((1, Hp), lambda b, c: (0, 0)),          # b_hn
                pl.BlockSpec((1, Hp), lambda b, c: (0, 0)),          # context_init
            ],
            out_specs=pl.BlockSpec((Bt, Tc, Hp), lambda b, c: (b, c, 0)),
            scratch_shapes=[
                pltpu.VMEM((Bt, Tc, GHp), jnp.float32),   # per-chunk gi staging
                pltpu.VMEM((Bt, Hp), jnp.float32),        # recurrent h carry
            ],
        ),
        compiler_params=pltpu.CompilerParams(
            dimension_semantics=("parallel", "arbitrary"),
            vmem_limit_bytes=vmem_limit),
    )(features, w_i, b_i, w_h, b_hn, ci)
    return out


# ---------------------------------------------------------------------------
# Module-level forward (matches RNN.forward). The kernel already produces
# [context_init, out_0, ..., out_{T-1}] so only a slice remains here.
# ---------------------------------------------------------------------------
def rnn_forward(features, params, remove_last: bool, *, time_block=128):
    B, T, _ = features.shape
    H = params["context_init"].shape[0]
    out = gru_pallas(features, params, time_block=time_block)  # [Bp, Tp, Hp]
    L = T if remove_last else T + 1
    return out[:B, :L, :H]


# ---------------------------------------------------------------------------
# Parameter init (mirrors nn.GRU uniform(-1/sqrt(H), 1/sqrt(H))) + fusion,
# 128-lane gate padding, and bf16 weight casting.
# ---------------------------------------------------------------------------
def init_params(key, input_size, hidden_size):
    k = 1.0 / jnp.sqrt(jnp.float32(hidden_size))
    shapes = {
        "w_ir": (input_size, hidden_size), "w_iz": (input_size, hidden_size),
        "w_in": (input_size, hidden_size),
        "w_hr": (hidden_size, hidden_size), "w_hz": (hidden_size, hidden_size),
        "w_hn": (hidden_size, hidden_size),
        "b_ir": (hidden_size,), "b_iz": (hidden_size,), "b_in": (hidden_size,),
        "b_hr": (hidden_size,), "b_hz": (hidden_size,), "b_hn": (hidden_size,),
    }
    raw = {}
    keys = jax.random.split(key, len(shapes))
    for sub, (name, shape) in zip(keys, shapes.items()):
        raw[name] = jax.random.uniform(sub, shape, jnp.float32, minval=-k, maxval=k)
    # nn.Parameter(torch.zeros(hidden_size * context_multiply)), unidirectional -> H
    raw["context_init"] = jnp.zeros((hidden_size,), jnp.float32)
    return raw


def fuse_params(raw):
    H = raw["w_hr"].shape[0]
    Hp = _round_up(max(H, 128), 128)     # lane-align each gate block

    def pc(w):  # pad gate columns H -> Hp with zeros
        return jnp.pad(w, ((0, 0), (0, Hp - H)))

    def pv(b):  # pad gate vector H -> Hp with zeros
        return jnp.pad(b, (0, Hp - H))

    w_i = jnp.concatenate([pc(raw["w_ir"]), pc(raw["w_iz"]), pc(raw["w_in"])], axis=1)
    w_h = jnp.concatenate([pc(raw["w_hr"]), pc(raw["w_hz"]), pc(raw["w_hn"])], axis=1)
    w_h = jnp.pad(w_h, ((0, Hp - H), (0, 0)))   # zero rows: padded h lanes stay 0
    # b_ir+b_hr and b_iz+b_hz pre-summed; b_hn stays separate (r multiplies it).
    b_i = jnp.concatenate([pv(raw["b_ir"] + raw["b_hr"]),
                           pv(raw["b_iz"] + raw["b_hz"]),
                           pv(raw["b_in"])])
    return {
        "w_i": w_i.astype(jnp.bfloat16),                        # [D, 3Hp]
        "w_h": w_h.astype(jnp.bfloat16),                        # [Hp, 3Hp]
        "b_i": b_i[None, :],                                    # [1, 3Hp] f32
        "b_hn": pv(raw["b_hn"])[None, :],                       # [1, Hp]  f32
        "context_init_pad": pv(raw["context_init"])[None, :],   # [1, Hp]  f32
        "context_init": raw["context_init"],                    # [H] (carries H)
    }


# ---------------------------------------------------------------------------
# Pure-JAX f32 reference (lax.scan GRU on the UNfused params).
# ---------------------------------------------------------------------------
def gru_ref(features, p):
    B, _, _ = features.shape
    H = p["w_hr"].shape[0]

    def step(h, x_t):
        r = jax.nn.sigmoid(x_t @ p["w_ir"] + p["b_ir"] + h @ p["w_hr"] + p["b_hr"])
        z = jax.nn.sigmoid(x_t @ p["w_iz"] + p["b_iz"] + h @ p["w_hz"] + p["b_hz"])
        n = jnp.tanh(x_t @ p["w_in"] + p["b_in"] + r * (h @ p["w_hn"] + p["b_hn"]))
        h_new = (1.0 - z) * n + z * h
        return h_new, h_new

    h0 = jnp.zeros((B, H), jnp.float32)
    _, hs = jax.lax.scan(step, h0, jnp.transpose(features, (1, 0, 2)))
    return jnp.transpose(hs, (1, 0, 2))


def rnn_forward_ref(features, raw, remove_last):
    context = gru_ref(features, raw)
    B = features.shape[0]
    H = raw["context_init"].shape[0]
    ci = jnp.broadcast_to(raw["context_init"][None, None, :], (B, 1, H))
    if remove_last:
        context = context[:, :-1, :]
    return jnp.concatenate([ci, context], axis=1)


# ---------------------------------------------------------------------------
# Tests
# ---------------------------------------------------------------------------
def _run_case(key, B, T, D, H, time_block):
    k_param, k_feat, k_ci = jax.random.split(key, 3)
    raw = init_params(k_param, input_size=D, hidden_size=H)
    # Use a non-zero context_init so the in-kernel prepend is actually checked.
    raw["context_init"] = 0.1 * jax.random.normal(k_ci, (H,), jnp.float32)
    params = fuse_params(raw)
    features = jax.random.normal(k_feat, (B, T, D), jnp.float32)

    for remove_last in (False, True):
        fwd = jax.jit(functools.partial(rnn_forward, remove_last=remove_last,
                                        time_block=time_block))
        out = jax.block_until_ready(fwd(features, params))
        ref = rnn_forward_ref(features, raw, remove_last)
        assert out.shape == ref.shape, (out.shape, ref.shape)
        err = float(jnp.max(jnp.abs(out - ref)))
        # bf16 recurrent matmuls -> small drift vs the f32 reference.
        assert err < 5e-2, f"max abs err {err} (remove_last={remove_last})"


if __name__ == "__main__":
    key = jax.random.PRNGKey(0)
    k1, k2 = jax.random.split(key)
    # Small shapes consistent with the module: batch=2, seq=8, input=4, hidden=32.
    _run_case(k1, B=2, T=8, D=4, H=32, time_block=128)
    # Exercises batch/time/hidden padding and the multi-chunk carry path
    # (time_block=16 -> 3 sequential time chunks).
    _run_case(k2, B=3, T=40, D=6, H=48, time_block=16)
    print("KERNEL_OK")
</pallas_src>

<mosaic_0001>
module attributes {stable_mosaic.version = 11 : i64} {
  func.func @_gru_chunk_kernel(%arg0: i32, %arg1: i32, %arg2: memref<8x16x4xf32, #tpu.memory_space<vmem>>, %arg3: memref<4x384xbf16, #tpu.memory_space<vmem>>, %arg4: memref<1x384xf32, #tpu.memory_space<vmem>>, %arg5: memref<128x384xbf16, #tpu.memory_space<vmem>>, %arg6: memref<1x128xf32, #tpu.memory_space<vmem>>, %arg7: memref<1x128xf32, #tpu.memory_space<vmem>>, %arg8: memref<8x16x128xf32, #tpu.memory_space<vmem>>, %arg9: memref<8x16x384xf32, #tpu.memory_space<vmem>>, %arg10: memref<8x128xf32, #tpu.memory_space<vmem>>) attributes {dimension_semantics = [#tpu.dimension_semantics<parallel>, #tpu.dimension_semantics<arbitrary>], iteration_bounds = array<i64: 1, 1>, scalar_prefetch = 0 : i64, scratch_operands = 2 : i64, tpu.core_type = #tpu.core_type<tc>, window_params = [{transform_indices = @transform_0, window_bounds = array<i64: 8, 16, 4>}, {pipeline_mode = #tpu.pipeline_mode<synchronous>, transform_indices = @transform_1, window_bounds = array<i64: 4, 384>}, {pipeline_mode = #tpu.pipeline_mode<synchronous>, transform_indices = @transform_2, window_bounds = array<i64: 1, 384>}, {pipeline_mode = #tpu.pipeline_mode<synchronous>, transform_indices = @transform_3, window_bounds = array<i64: 128, 384>}, {pipeline_mode = #tpu.pipeline_mode<synchronous>, transform_indices = @transform_4, window_bounds = array<i64: 1, 128>}, {pipeline_mode = #tpu.pipeline_mode<synchronous>, transform_indices = @transform_5, window_bounds = array<i64: 1, 128>}, {transform_indices = @transform_6, window_bounds = array<i64: 8, 16, 128>}]} {
    %c0_i32 = arith.constant 0 : i32
    %0 = arith.cmpi eq, %arg1, %c0_i32 : i32
    %1 = arith.extui %0 : i1 to i32
    %c0_i32_0 = arith.constant 0 : i32
    %2 = arith.cmpi ne, %1, %c0_i32_0 : i32
    scf.if %2 {
      %cst_215 = arith.constant 0.000000e+00 : f32
      %630 = vector.broadcast %cst_215 : f32 to vector<8x128xf32>
      %c0_216 = arith.constant 0 : index
      %c0_217 = arith.constant 0 : index
      %631 = vector.load %arg10[%c0_216, %c0_217] : memref<8x128xf32, #tpu.memory_space<vmem>>, vector<8x128xf32>
      tpu.vector_store %arg10[%c0_216, %c0_217], %630 {strides = array<i32>} : memref<8x128xf32, #tpu.memory_space<vmem>>, vector<8x128xf32>,
    } else {
    }
    %c0 = arith.constant 0 : index
    %c0_1 = arith.constant 0 : index
    %3 = vector.load %arg3[%c0, %c0_1] : memref<4x384xbf16, #tpu.memory_space<vmem>>, vector<4x384xbf16>
    %c0_2 = arith.constant 0 : index
    %c0_3 = arith.constant 0 : index
    %4 = vector.load %arg4[%c0_2, %c0_3] : memref<1x384xf32, #tpu.memory_space<vmem>>, vector<1x384xf32>
    %c0_4 = arith.constant 0 : index
    %c0_5 = arith.constant 0 : index
    %c0_6 = arith.constant 0 : index
    %5 = vector.load %arg2[%c0_4, %c0_5, %c0_6] : memref<8x16x4xf32, #tpu.memory_space<vmem>>, vector<1x16x4xf32>
    %6 = vector.shape_cast %5 : vector<1x16x4xf32> to vector<16x4xf32>
    %7 = arith.truncf %6 : vector<16x4xf32> to vector<16x4xbf16>
    %cst = arith.constant dense<0.000000e+00> : vector<16x384xf32>
    %8 = tpu.matmul %7, %3, %cst {dimension_numbers = #tpu.dot_dimension_numbers<[1], [0], [0], [1], [0, 0, 1, 1], [], []>} : vector<16x4xbf16>, vector<4x384xbf16>, vector<16x384xf32> -> vector<16x384xf32>
    %9 = vector.broadcast %4 : vector<1x384xf32> to vector<16x384xf32>
    %10 = arith.addf %8, %9 : vector<16x384xf32>
    %c0_7 = arith.constant 0 : index
    %c0_8 = arith.constant 0 : index
    %c0_9 = arith.constant 0 : index
    %11 = vector.load %arg9[%c0_7, %c0_8, %c0_9] : memref<8x16x384xf32, #tpu.memory_space<vmem>>, vector<1x16x384xf32>
    %12 = vector.shape_cast %11 : vector<1x16x384xf32> to vector<16x384xf32>
    %13 = vector.shape_cast %10 : vector<16x384xf32> to vector<1x16x384xf32>
    tpu.vector_store %arg9[%c0_7, %c0_8, %c0_9], %13 {strides = array<i32>} : memref<8x16x384xf32, #tpu.memory_space<vmem>>, vector<1x16x384xf32>,
    %c1 = arith.constant 1 : index
    %c0_10 = arith.constant 0 : index
    %c0_11 = arith.constant 0 : index
    %14 = vector.load %arg2[%c1, %c0_10, %c0_11] : memref<8x16x4xf32, #tpu.memory_space<vmem>>, vector<1x16x4xf32>
    %15 = vector.shape_cast %14 : vector<1x16x4xf32> to vector<16x4xf32>
    %16 = arith.truncf %15 : vector<16x4xf32> to vector<16x4xbf16>
    %cst_12 = arith.constant dense<0.000000e+00> : vector<16x384xf32>
    %17 = tpu.matmul %16, %3, %cst_12 {dimension_numbers = #tpu.dot_dimension_numbers<[1], [0], [0], [1], [0, 0, 1, 1], [], []>} : vector<16x4xbf16>, vector<4x384xbf16>, vector<16x384xf32> -> vector<16x384xf32>
    %18 = vector.broadcast %4 : vector<1x384xf32> to vector<16x384xf32>
    %19 = arith.addf %17, %18 : vector<16x384xf32>
    %c1_13 = arith.constant 1 : index
    %c0_14 = arith.constant 0 : index
    %c0_15 = arith.constant 0 : index
    %20 = vector.load %arg9[%c1_13, %c0_14, %c0_15] : memref<8x16x384xf32, #tpu.memory_space<vmem>>, vector<1x16x384xf32>
    %21 = vector.shape_cast %20 : vector<1x16x384xf32> to vector<16x384xf32>
    %22 = vector.shape_cast %19 : vector<16x384xf32> to vector<1x16x384xf32>
    tpu.vector_store %arg9[%c1_13, %c0_14, %c0_15], %22 {strides = array<i32>} : memref<8x16x384xf32, #tpu.memory_space<vmem>>, vector<1x16x384xf32>,
    %c2 = arith.constant 2 : index
    %c0_16 = arith.constant 0 : index
    %c0_17 = arith.constant 0 : index
    %23 = vector.load %arg2[%c2, %c0_16, %c0_17] : memref<8x16x4xf32, #tpu.memory_space<vmem>>, vector<1x16x4xf32>
    %24 = vector.shape_cast %23 : vector<1x16x4xf32> to vector<16x4xf32>
    %25 = arith.truncf %24 : vector<16x4xf32> to vector<16x4xbf16>
    %cst_18 = arith.constant dense<0.000000e+00> : vector<16x384xf32>
    %26 = tpu.matmul %25, %3, %cst_18 {dimension_numbers = #tpu.dot_dimension_numbers<[1], [0], [0], [1], [0, 0, 1, 1], [], []>} : vector<16x4xbf16>, vector<4x384xbf16>, vector<16x384xf32> -> vector<16x384xf32>
    %27 = vector.broadcast %4 : vector<1x384xf32> to vector<16x384xf32>
    %28 = arith.addf %26, %27 : vector<16x384xf32>
    %c2_19 = arith.constant 2 : index
    %c0_20 = arith.constant 0 : index
    %c0_21 = arith.constant 0 : index
    %29 = vector.load %arg9[%c2_19, %c0_20, %c0_21] : memref<8x16x384xf32, #tpu.memory_space<vmem>>, vector<1x16x384xf32>
    %30 = vector.shape_cast %29 : vector<1x16x384xf32> to vector<16x384xf32>
    %31 = vector.shape_cast %28 : vector<16x384xf32> to vector<1x16x384xf32>
    tpu.vector_store %arg9[%c2_19, %c0_20, %c0_21], %31 {strides = array<i32>} : memref<8x16x384xf32, #tpu.memory_space<vmem>>, vector<1x16x384xf32>,
    %c3 = arith.constant 3 : index
    %c0_22 = arith.constant 0 : index
    %c0_23 = arith.constant 0 : index
    %32 = vector.load %arg2[%c3, %c0_22, %c0_23] : memref<8x16x4xf32, #tpu.memory_space<vmem>>, vector<1x16x4xf32>
    %33 = vector.shape_cast %32 : vector<1x16x4xf32> to vector<16x4xf32>
    %34 = arith.truncf %33 : vector<16x4xf32> to vector<16x4xbf16>
    %cst_24 = arith.constant dense<0.000000e+00> : vector<16x384xf32>
    %35 = tpu.matmul %34, %3, %cst_24 {dimension_numbers = #tpu.dot_dimension_numbers<[1], [0], [0], [1], [0, 0, 1, 1], [], []>} : vector<16x4xbf16>, vector<4x384xbf16>, vector<16x384xf32> -> vector<16x384xf32>
    %36 = vector.broadcast %4 : vector<1x384xf32> to vector<16x384xf32>
    %37 = arith.addf %35, %36 : vector<16x384xf32>
    %c3_25 = arith.constant 3 : index
    %c0_26 = arith.constant 0 : index
    %c0_27 = arith.constant 0 : index
    %38 = vector.load %arg9[%c3_25, %c0_26, %c0_27] : memref<8x16x384xf32, #tpu.memory_space<vmem>>, vector<1x16x384xf32>
    %39 = vector.shape_cast %38 : vector<1x16x384xf32> to vector<16x384xf32>
    %40 = vector.shape_cast %37 : vector<16x384xf32> to vector<1x16x384xf32>
    tpu.vector_store %arg9[%c3_25, %c0_26, %c0_27], %40 {strides = array<i32>} : memref<8x16x384xf32, #tpu.memory_space<vmem>>, vector<1x16x384xf32>,
    %c4 = arith.constant 4 : index
    %c0_28 = arith.constant 0 : index
    %c0_29 = arith.constant 0 : index
    %41 = vector.load %arg2[%c4, %c0_28, %c0_29] : memref<8x16x4xf32, #tpu.memory_space<vmem>>, vector<1x16x4xf32>
    %42 = vector.shape_cast %41 : vector<1x16x4xf32> to vector<16x4xf32>
    %43 = arith.truncf %42 : vector<16x4xf32> to vector<16x4xbf16>
    %cst_30 = arith.constant dense<0.000000e+00> : vector<16x384xf32>
    %44 = tpu.matmul %43, %3, %cst_30 {dimension_numbers = #tpu.dot_dimension_numbers<[1], [0], [0], [1], [0, 0, 1, 1], [], []>} : vector<16x4xbf16>, vector<4x384xbf16>, vector<16x384xf32> -> vector<16x384xf32>
    %45 = vector.broadcast %4 : vector<1x384xf32> to vector<16x384xf32>
    %46 = arith.addf %44, %45 : vector<16x384xf32>
    %c4_31 = arith.constant 4 : index
    %c0_32 = arith.constant 0 : index
    %c0_33 = arith.constant 0 : index
    %47 = vector.load %arg9[%c4_31, %c0_32, %c0_33] : memref<8x16x384xf32, #tpu.memory_space<vmem>>, vector<1x16x384xf32>
    %48 = vector.shape_cast %47 : vector<1x16x384xf32> to vector<16x384xf32>
    %49 = vector.shape_cast %46 : vector<16x384xf32> to vector<1x16x384xf32>
    tpu.vector_store %arg9[%c4_31, %c0_32, %c0_33], %49 {strides = array<i32>} : memref<8x16x384xf32, #tpu.memory_space<vmem>>, vector<1x16x384xf32>,
    %c5 = arith.constant 5 : index
    %c0_34 = arith.constant 0 : index
    %c0_35 = arith.constant 0 : index
    %50 = vector.load %arg2[%c5, %c0_34, %c0_35] : memref<8x16x4xf32, #tpu.memory_space<vmem>>, vector<1x16x4xf32>
    %51 = vector.shape_cast %50 : vector<1x16x4xf32> to vector<16x4xf32>
    %52 = arith.truncf %51 : vector<16x4xf32> to vector<16x4xbf16>
    %cst_36 = arith.constant dense<0.000000e+00> : vector<16x384xf32>
    %53 = tpu.matmul %52, %3, %cst_36 {dimension_numbers = #tpu.dot_dimension_numbers<[1], [0], [0], [1], [0, 0, 1, 1], [], []>} : vector<16x4xbf16>, vector<4x384xbf16>, vector<16x384xf32> -> vector<16x384xf32>
    %54 = vector.broadcast %4 : vector<1x384xf32> to vector<16x384xf32>
    %55 = arith.addf %53, %54 : vector<16x384xf32>
    %c5_37 = arith.constant 5 : index
    %c0_38 = arith.constant 0 : index
    %c0_39 = arith.constant 0 : index
    %56 = vector.load %arg9[%c5_37, %c0_38, %c0_39] : memref<8x16x384xf32, #tpu.memory_space<vmem>>, vector<1x16x384xf32>
    %57 = vector.shape_cast %56 : vector<1x16x384xf32> to vector<16x384xf32>
    %58 = vector.shape_cast %55 : vector<16x384xf32> to vector<1x16x384xf32>
    tpu.vector_store %arg9[%c5_37, %c0_38, %c0_39], %58 {strides = array<i32>} : memref<8x16x384xf32, #tpu.memory_space<vmem>>, vector<1x16x384xf32>,
    %c6 = arith.constant 6 : index
    %c0_40 = arith.constant 0 : index
    %c0_41 = arith.constant 0 : index
    %59 = vector.load %arg2[%c6, %c0_40, %c0_41] : memref<8x16x4xf32, #tpu.memory_space<vmem>>, vector<1x16x4xf32>
    %60 = vector.shape_cast %59 : vector<1x16x4xf32> to vector<16x4xf32>
    %61 = arith.truncf %60 : vector<16x4xf32> to vector<16x4xbf16>
    %cst_42 = arith.constant dense<0.000000e+00> : vector<16x384xf32>
    %62 = tpu.matmul %61, %3, %cst_42 {dimension_numbers = #tpu.dot_dimension_numbers<[1], [0], [0], [1], [0, 0, 1, 1], [], []>} : vector<16x4xbf16>, vector<4x384xbf16>, vector<16x384xf32> -> vector<16x384xf32>
    %63 = vector.broadcast %4 : vector<1x384xf32> to vector<16x384xf32>
    %64 = arith.addf %62, %63 : vector<16x384xf32>
    %c6_43 = arith.constant 6 : index
    %c0_44 = arith.constant 0 : index
    %c0_45 = arith.constant 0 : index
    %65 = vector.load %arg9[%c6_43, %c0_44, %c0_45] : memref<8x16x384xf32, #tpu.memory_space<vmem>>, vector<1x16x384xf32>
    %66 = vector.shape_cast %65 : vector<1x16x384xf32> to vector<16x384xf32>
    %67 = vector.shape_cast %64 : vector<16x384xf32> to vector<1x16x384xf32>
    tpu.vector_store %arg9[%c6_43, %c0_44, %c0_45], %67 {strides = array<i32>} : memref<8x16x384xf32, #tpu.memory_space<vmem>>, vector<1x16x384xf32>,
    %c7 = arith.constant 7 : index
    %c0_46 = arith.constant 0 : index
    %c0_47 = arith.constant 0 : index
    %68 = vector.load %arg2[%c7, %c0_46, %c0_47] : memref<8x16x4xf32, #tpu.memory_space<vmem>>, vector<1x16x4xf32>
    %69 = vector.shape_cast %68 : vector<1x16x4xf32> to vector<16x4xf32>
    %70 = arith.truncf %69 : vector<16x4xf32> to vector<16x4xbf16>
    %cst_48 = arith.constant dense<0.000000e+00> : vector<16x384xf32>
    %71 = tpu.matmul %70, %3, %cst_48 {dimension_numbers = #tpu.dot_dimension_numbers<[1], [0], [0], [1], [0, 0, 1, 1], [], []>} : vector<16x4xbf16>, vector<4x384xbf16>, vector<16x384xf32> -> vector<16x384xf32>
    %72 = vector.broadcast %4 : vector<1x384xf32> to vector<16x384xf32>
    %73 = arith.addf %71, %72 : vector<16x384xf32>
    %c7_49 = arith.constant 7 : index
    %c0_50 = arith.constant 0 : index
    %c0_51 = arith.constant 0 : index
    %74 = vector.load %arg9[%c7_49, %c0_50, %c0_51] : memref<8x16x384xf32, #tpu.memory_space<vmem>>, vector<1x16x384xf32>
    %75 = vector.shape_cast %74 : vector<1x16x384xf32> to vector<16x384xf32>
    %76 = vector.shape_cast %73 : vector<16x384xf32> to vector<1x16x384xf32>
    tpu.vector_store %arg9[%c7_49, %c0_50, %c0_51], %76 {strides = array<i32>} : memref<8x16x384xf32, #tpu.memory_space<vmem>>, vector<1x16x384xf32>,
    %c0_52 = arith.constant 0 : index
    %c0_53 = arith.constant 0 : index
    %77 = vector.load %arg5[%c0_52, %c0_53] : memref<128x384xbf16, #tpu.memory_space<vmem>>, vector<128x384xbf16>
    %c0_54 = arith.constant 0 : index
    %c0_55 = arith.constant 0 : index
    %78 = vector.load %arg6[%c0_54, %c0_55] : memref<1x128xf32, #tpu.memory_space<vmem>>, vector<1x128xf32>
    %c0_56 = arith.constant 0 : index
    %c0_57 = arith.constant 0 : index
    %79 = vector.load %arg10[%c0_56, %c0_57] : memref<8x128xf32, #tpu.memory_space<vmem>>, vector<8x128xf32>
    %c0_i32_58 = arith.constant 0 : i32
    %80 = arith.cmpi eq, %arg1, %c0_i32_58 : i32
    %c0_59 = arith.constant 0 : index
    %c0_60 = arith.constant 0 : index
    %81 = vector.load %arg7[%c0_59, %c0_60] : memref<1x128xf32, #tpu.memory_space<vmem>>, vector<1x128xf32>
    %82 = vector.shape_cast %81 : vector<1x128xf32> to vector<1x128xf32>
    %83 = vector.broadcast %82 : vector<1x128xf32> to vector<8x128xf32>
    %84 = arith.select %80, %83, %79 : vector<8x128xf32>
    %85 = vector.shape_cast %84 : vector<8x128xf32> to vector<8x1x128xf32>
    %c0_61 = arith.constant 0 : index
    %c0_62 = arith.constant 0 : index
    %c0_63 = arith.constant 0 : index
    %86 = vector.load %arg8[%c0_61, %c0_62, %c0_63] : memref<8x16x128xf32, #tpu.memory_space<vmem>>, vector<8x1x128xf32>
    tpu.vector_store %arg8[%c0_61, %c0_62, %c0_63], %85 {strides = array<i32>} : memref<8x16x128xf32, #tpu.memory_space<vmem>>, vector<8x1x128xf32>,
    %c0_64 = arith.constant 0 : index
    %c0_65 = arith.constant 0 : index
    %c0_66 = arith.constant 0 : index
    %87 = vector.load %arg9[%c0_64, %c0_65, %c0_66] : memref<8x16x384xf32, #tpu.memory_space<vmem>>, vector<8x1x384xf32>
    %88 = vector.shape_cast %87 : vector<8x1x384xf32> to vector<8x384xf32>
    %89 = arith.truncf %79 : vector<8x128xf32> to vector<8x128xbf16>
    %cst_67 = arith.constant dense<0.000000e+00> : vector<8x384xf32>
    %90 = tpu.matmul %89, %77, %cst_67 {dimension_numbers = #tpu.dot_dimension_numbers<[1], [0], [0], [1], [0, 0, 1, 1], [], []>} : vector<8x128xbf16>, vector<128x384xbf16>, vector<8x384xf32> -> vector<8x384xf32>
    %91 = vector.extract_strided_slice %88 {offsets = [0, 0], sizes = [8, 128], strides = [1, 1]} : vector<8x384xf32> to vector<8x128xf32>
    %92 = vector.extract_strided_slice %90 {offsets = [0, 0], sizes = [8, 128], strides = [1, 1]} : vector<8x384xf32> to vector<8x128xf32>
    %93 = arith.addf %91, %92 : vector<8x128xf32>
    %94 = arith.negf %93 : vector<8x128xf32>
    %95 = math.exp %94 : vector<8x128xf32>
    %cst_68 = arith.constant 1.000000e+00 : f32
    %96 = vector.broadcast %cst_68 : f32 to vector<8x128xf32>
    %97 = arith.addf %96, %95 : vector<8x128xf32>
    %98 = arith.divf %96, %97 : vector<8x128xf32>
    %99 = vector.extract_strided_slice %88 {offsets = [0, 128], sizes = [8, 128], strides = [1, 1]} : vector<8x384xf32> to vector<8x128xf32>
    %100 = vector.extract_strided_slice %90 {offsets = [0, 128], sizes = [8, 128], strides = [1, 1]} : vector<8x384xf32> to vector<8x128xf32>
    %101 = arith.addf %99, %100 : vector<8x128xf32>
    %102 = arith.negf %101 : vector<8x128xf32>
    %103 = math.exp %102 : vector<8x128xf32>
    %cst_69 = arith.constant 1.000000e+00 : f32
    %104 = vector.broadcast %cst_69 : f32 to vector<8x128xf32>
    %105 = arith.addf %104, %103 : vector<8x128xf32>
    %106 = arith.divf %104, %105 : vector<8x128xf32>
    %107 = vector.extract_strided_slice %88 {offsets = [0, 256], sizes = [8, 128], strides = [1, 1]} : vector<8x384xf32> to vector<8x128xf32>
    %108 = vector.extract_strided_slice %90 {offsets = [0, 256], sizes = [8, 128], strides = [1, 1]} : vector<8x384xf32> to vector<8x128xf32>
    %109 = vector.broadcast %78 : vector<1x128xf32> to vector<8x128xf32>
    %110 = arith.addf %108, %109 : vector<8x128xf32>
    %111 = arith.mulf %98, %110 : vector<8x128xf32>
    %112 = arith.addf %107, %111 : vector<8x128xf32>
    %113 = math.tanh %112 : vector<8x128xf32>
    %cst_70 = arith.constant 1.000000e+00 : f32
    %114 = vector.broadcast %cst_70 : f32 to vector<8x128xf32>
    %115 = arith.subf %114, %106 : vector<8x128xf32>
    %116 = arith.mulf %115, %113 : vector<8x128xf32>
    %117 = arith.mulf %106, %79 : vector<8x128xf32>
    %118 = arith.addf %116, %117 : vector<8x128xf32>
    %119 = vector.shape_cast %118 : vector<8x128xf32> to vector<8x1x128xf32>
    %c0_71 = arith.constant 0 : index
    %c1_72 = arith.constant 1 : index
    %c0_73 = arith.constant 0 : index
    %120 = vector.load %arg8[%c0_71, %c1_72, %c0_73] : memref<8x16x128xf32, #tpu.memory_space<vmem>>, vector<8x1x128xf32>
    tpu.vector_store %arg8[%c0_71, %c1_72, %c0_73], %119 {strides = array<i32>} : memref<8x16x128xf32, #tpu.memory_space<vmem>>, vector<8x1x128xf32>,
    %c0_74 = arith.constant 0 : index
    %c1_75 = arith.constant 1 : index
    %c0_76 = arith.constant 0 : index
    %121 = vector.load %arg9[%c0_74, %c1_75, %c0_76] : memref<8x16x384xf32, #tpu.memory_space<vmem>>, vector<8x1x384xf32>
    %122 = vector.shape_cast %121 : vector<8x1x384xf32> to vector<8x384xf32>
    %123 = arith.truncf %118 : vector<8x128xf32> to vector<8x128xbf16>
    %cst_77 = arith.constant dense<0.000000e+00> : vector<8x384xf32>
    %124 = tpu.matmul %123, %77, %cst_77 {dimension_numbers = #tpu.dot_dimension_numbers<[1], [0], [0], [1], [0, 0, 1, 1], [], []>} : vector<8x128xbf16>, vector<128x384xbf16>, vector<8x384xf32> -> vector<8x384xf32>
    %125 = vector.extract_strided_slice %122 {offsets = [0, 0], sizes = [8, 128], strides = [1, 1]} : vector<8x384xf32> to vector<8x128xf32>
    %126 = vector.extract_strided_slice %124 {offsets = [0, 0], sizes = [8, 128], strides = [1, 1]} : vector<8x384xf32> to vector<8x128xf32>
    %127 = arith.addf %125, %126 : vector<8x128xf32>
    %128 = arith.negf %127 : vector<8x128xf32>
    %129 = math.exp %128 : vector<8x128xf32>
    %cst_78 = arith.constant 1.000000e+00 : f32
    %130 = vector.broadcast %cst_78 : f32 to vector<8x128xf32>
    %131 = arith.addf %130, %129 : vector<8x128xf32>
    %132 = arith.divf %130, %131 : vector<8x128xf32>
    %133 = vector.extract_strided_slice %122 {offsets = [0, 128], sizes = [8, 128], strides = [1, 1]} : vector<8x384xf32> to vector<8x128xf32>
    %134 = vector.extract_strided_slice %124 {offsets = [0, 128], sizes = [8, 128], strides = [1, 1]} : vector<8x384xf32> to vector<8x128xf32>
    %135 = arith.addf %133, %134 : vector<8x128xf32>
    %136 = arith.negf %135 : vector<8x128xf32>
    %137 = math.exp %136 : vector<8x128xf32>
    %cst_79 = arith.constant 1.000000e+00 : f32
    %138 = vector.broadcast %cst_79 : f32 to vector<8x128xf32>
    %139 = arith.addf %138, %137 : vector<8x128xf32>
    %140 = arith.divf %138, %139 : vector<8x128xf32>
    %141 = vector.extract_strided_slice %122 {offsets = [0, 256], sizes = [8, 128], strides = [1, 1]} : vector<8x384xf32> to vector<8x128xf32>
    %142 = vector.extract_strided_slice %124 {offsets = [0, 256], sizes = [8, 128], strides = [1, 1]} : vector<8x384xf32> to vector<8x128xf32>
    %143 = vector.broadcast %78 : vector<1x128xf32> to vector<8x128xf32>
    %144 = arith.addf %142, %143 : vector<8x128xf32>
    %145 = arith.mulf %132, %144 : vector<8x128xf32>
    %146 = arith.addf %141, %145 : vector<8x128xf32>
    %147 = math.tanh %146 : vector<8x128xf32>
    %cst_80 = arith.constant 1.000000e+00 : f32
    %148 = vector.broadcast %cst_80 : f32 to vector<8x128xf32>
    %149 = arith.subf %148, %140 : vector<8x128xf32>
    %150 = arith.mulf %149, %147 : vector<8x128xf32>
    %151 = arith.mulf %140, %118 : vector<8x128xf32>
    %152 = arith.addf %150, %151 : vector<8x128xf32>
    %153 = vector.shape_cast %152 : vector<8x128xf32> to vector<8x1x128xf32>
    %c0_81 = arith.constant 0 : index
    %c2_82 = arith.constant 2 : index
    %c0_83 = arith.constant 0 : index
    %154 = vector.load %arg8[%c0_81, %c2_82, %c0_83] : memref<8x16x128xf32, #tpu.memory_space<vmem>>, vector<8x1x128xf32>
    tpu.vector_store %arg8[%c0_81, %c2_82, %c0_83], %153 {strides = array<i32>} : memref<8x16x128xf32, #tpu.memory_space<vmem>>, vector<8x1x128xf32>,
    %c0_84 = arith.constant 0 : index
    %c2_85 = arith.constant 2 : index
    %c0_86 = arith.constant 0 : index
    %155 = vector.load %arg9[%c0_84, %c2_85, %c0_86] : memref<8x16x384xf32, #tpu.memory_space<vmem>>, vector<8x1x384xf32>
    %156 = vector.shape_cast %155 : vector<8x1x384xf32> to vector<8x384xf32>
    %157 = arith.truncf %152 : vector<8x128xf32> to vector<8x128xbf16>
    %cst_87 = arith.constant dense<0.000000e+00> : vector<8x384xf32>
    %158 = tpu.matmul %157, %77, %cst_87 {dimension_numbers = #tpu.dot_dimension_numbers<[1], [0], [0], [1], [0, 0, 1, 1], [], []>} : vector<8x128xbf16>, vector<128x384xbf16>, vector<8x384xf32> -> vector<8x384xf32>
    %159 = vector.extract_strided_slice %156 {offsets = [0, 0], sizes = [8, 128], strides = [1, 1]} : vector<8x384xf32> to vector<8x128xf32>
    %160 = vector.extract_strided_slice %158 {offsets = [0, 0], sizes = [8, 128], strides = [1, 1]} : vector<8x384xf32> to vector<8x128xf32>
    %161 = arith.addf %159, %160 : vector<8x128xf32>
    %162 = arith.negf %161 : vector<8x128xf32>
    %163 = math.exp %162 : vector<8x128xf32>
    %cst_88 = arith.constant 1.000000e+00 : f32
    %164 = vector.broadcast %cst_88 : f32 to vector<8x128xf32>
    %165 = arith.addf %164, %163 : vector<8x128xf32>
    %166 = arith.divf %164, %165 : vector<8x128xf32>
    %167 = vector.extract_strided_slice %156 {offsets = [0, 128], sizes = [8, 128], strides = [1, 1]} : vector<8x384xf32> to vector<8x128xf32>
    %168 = vector.extract_strided_slice %158 {offsets = [0, 128], sizes = [8, 128], strides = [1, 1]} : vector<8x384xf32> to vector<8x128xf32>
    %169 = arith.addf %167, %168 : vector<8x128xf32>
    %170 = arith.negf %169 : vector<8x128xf32>
    %171 = math.exp %170 : vector<8x128xf32>
    %cst_89 = arith.constant 1.000000e+00 : f32
    %172 = vector.broadcast %cst_89 : f32 to vector<8x128xf32>
    %173 = arith.addf %172, %171 : vector<8x128xf32>
    %174 = arith.divf %172, %173 : vector<8x128xf32>
    %175 = vector.extract_strided_slice %156 {offsets = [0, 256], sizes = [8, 128], strides = [1, 1]} : vector<8x384xf32> to vector<8x128xf32>
    %176 = vector.extract_strided_slice %158 {offsets = [0, 256], sizes = [8, 128], strides = [1, 1]} : vector<8x384xf32> to vector<8x128xf32>
    %177 = vector.broadcast %78 : vector<1x128xf32> to vector<8x128xf32>
    %178 = arith.addf %176, %177 : vector<8x128xf32>
    %179 = arith.mulf %166, %178 : vector<8x128xf32>
    %180 = arith.addf %175, %179 : vector<8x128xf32>
    %181 = math.tanh %180 : vector<8x128xf32>
    %cst_90 = arith.constant 1.000000e+00 : f32
    %182 = vector.broadcast %cst_90 : f32 to vector<8x128xf32>
    %183 = arith.subf %182, %174 : vector<8x128xf32>
    %184 = arith.mulf %183, %181 : vector<8x128xf32>
    %185 = arith.mulf %174, %152 : vector<8x128xf32>
    %186 = arith.addf %184, %185 : vector<8x128xf32>
    %187 = vector.shape_cast %186 : vector<8x128xf32> to vector<8x1x128xf32>
    %c0_91 = arith.constant 0 : index
    %c3_92 = arith.constant 3 : index
    %c0_93 = arith.constant 0 : index
    %188 = vector.load %arg8[%c0_91, %c3_92, %c0_93] : memref<8x16x128xf32, #tpu.memory_space<vmem>>, vector<8x1x128xf32>
    tpu.vector_store %arg8[%c0_91, %c3_92, %c0_93], %187 {strides = array<i32>} : memref<8x16x128xf32, #tpu.memory_space<vmem>>, vector<8x1x128xf32>,
    %c0_94 = arith.constant 0 : index
    %c3_95 = arith.constant 3 : index
    %c0_96 = arith.constant 0 : index
    %189 = vector.load %arg9[%c0_94, %c3_95, %c0_96] : memref<8x16x384xf32, #tpu.memory_space<vmem>>, vector<8x1x384xf32>
    %190 = vector.shape_cast %189 : vector<8x1x384xf32> to vector<8x384xf32>
    %191 = arith.truncf %186 : vector<8x128xf32> to vector<8x128xbf16>
    %cst_97 = arith.constant dense<0.000000e+00> : vector<8x384xf32>
    %192 = tpu.matmul %191, %77, %cst_97 {dimension_numbers = #tpu.dot_dimension_numbers<[1], [0], [0], [1], [0, 0, 1, 1], [], []>} : vector<8x128xbf16>, vector<128x384xbf16>, vector<8x384xf32> -> vector<8x384xf32>
    %193 = vector.extract_strided_slice %190 {offsets = [0, 0], sizes = [8, 128], strides = [1, 1]} : vector<8x384xf32> to vector<8x128xf32>
    %194 = vector.extract_strided_slice %192 {offsets = [0, 0], sizes = [8, 128], strides = [1, 1]} : vector<8x384xf32> to vector<8x128xf32>
    %195 = arith.addf %193, %194 : vector<8x128xf32>
    %196 = arith.negf %195 : vector<8x128xf32>
    %197 = math.exp %196 : vector<8x128xf32>
    %cst_98 = arith.constant 1.000000e+00 : f32
    %198 = vector.broadcast %cst_98 : f32 to vector<8x128xf32>
    %199 = arith.addf %198, %197 : vector<8x128xf32>
    %200 = arith.divf %198, %199 : vector<8x128xf32>
    %201 = vector.extract_strided_slice %190 {offsets = [0, 128], sizes = [8, 128], strides = [1, 1]} : vector<8x384xf32> to vector<8x128xf32>
    %202 = vector.extract_strided_slice %192 {offsets = [0, 128], sizes = [8, 128], strides = [1, 1]} : vector<8x384xf32> to vector<8x128xf32>
    %203 = arith.addf %201, %202 : vector<8x128xf32>
    %204 = arith.negf %203 : vector<8x128xf32>
    %205 = math.exp %204 : vector<8x128xf32>
    %cst_99 = arith.constant 1.000000e+00 : f32
    %206 = vector.broadcast %cst_99 : f32 to vector<8x128xf32>
    %207 = arith.addf %206, %205 : vector<8x128xf32>
    %208 = arith.divf %206, %207 : vector<8x128xf32>
    %209 = vector.extract_strided_slice %190 {offsets = [0, 256], sizes = [8, 128], strides = [1, 1]} : vector<8x384xf32> to vector<8x128xf32>
    %210 = vector.extract_strided_slice %192 {offsets = [0, 256], sizes = [8, 128], strides = [1, 1]} : vector<8x384xf32> to vector<8x128xf32>
    %211 = vector.broadcast %78 : vector<1x128xf32> to vector<8x128xf32>
    %212 = arith.addf %210, %211 : vector<8x128xf32>
    %213 = arith.mulf %200, %212 : vector<8x128xf32>
    %214 = arith.addf %209, %213 : vector<8x128xf32>
    %215 = math.tanh %214 : vector<8x128xf32>
    %cst_100 = arith.constant 1.000000e+00 : f32
    %216 = vector.broadcast %cst_100 : f32 to vector<8x128xf32>
    %217 = arith.subf %216, %208 : vector<8x128xf32>
    %218 = arith.mulf %217, %215 : vector<8x128xf32>
    %219 = arith.mulf %208, %186 : vector<8x128xf32>
    %220 = arith.addf %218, %219 : vector<8x128xf32>
    %221 = vector.shape_cast %220 : vector<8x128xf32> to vector<8x1x128xf32>
    %c0_101 = arith.constant 0 : index
    %c4_102 = arith.constant 4 : index
    %c0_103 = arith.constant 0 : index
    %222 = vector.load %arg8[%c0_101, %c4_102, %c0_103] : memref<8x16x128xf32, #tpu.memory_space<vmem>>, vector<8x1x128xf32>
    tpu.vector_store %arg8[%c0_101, %c4_102, %c0_103], %221 {strides = array<i32>} : memref<8x16x128xf32, #tpu.memory_space<vmem>>, vector<8x1x128xf32>,
    %c0_104 = arith.constant 0 : index
    %c4_105 = arith.constant 4 : index
    %c0_106 = arith.constant 0 : index
    %223 = vector.load %arg9[%c0_104, %c4_105, %c0_106] : memref<8x16x384xf32, #tpu.memory_space<vmem>>, vector<8x1x384xf32>
    %224 = vector.shape_cast %223 : vector<8x1x384xf32> to vector<8x384xf32>
    %225 = arith.truncf %220 : vector<8x128xf32> to vector<8x128xbf16>
    %cst_107 = arith.constant dense<0.000000e+00> : vector<8x384xf32>
    %226 = tpu.matmul %225, %77, %cst_107 {dimension_numbers = #tpu.dot_dimension_numbers<[1], [0], [0], [1], [0, 0, 1, 1], [], []>} : vector<8x128xbf16>, vector<128x384xbf16>, vector<8x384xf32> -> vector<8x384xf32>
    %227 = vector.extract_strided_slice %224 {offsets = [0, 0], sizes = [8, 128], strides = [1, 1]} : vector<8x384xf32> to vector<8x128xf32>
    %228 = vector.extract_strided_slice %226 {offsets = [0, 0], sizes = [8, 128], strides = [1, 1]} : vector<8x384xf32> to vector<8x128xf32>
    %229 = arith.addf %227, %228 : vector<8x128xf32>
    %230 = arith.negf %229 : vector<8x128xf32>
    %231 = math.exp %230 : vector<8x128xf32>
    %cst_108 = arith.constant 1.000000e+00 : f32
    %232 = vector.broadcast %cst_108 : f32 to vector<8x128xf32>
    %233 = arith.addf %232, %231 : vector<8x128xf32>
    %234 = arith.divf %232, %233 : vector<8x128xf32>
    %235 = vector.extract_strided_slice %224 {offsets = [0, 128], sizes = [8, 128], strides = [1, 1]} : vector<8x384xf32> to vector<8x128xf32>
    %236 = vector.extract_strided_slice %226 {offsets = [0, 128], sizes = [8, 128], strides = [1, 1]} : vector<8x384xf32> to vector<8x128xf32>
    %237 = arith.addf %235, %236 : vector<8x128xf32>
    %238 = arith.negf %237 : vector<8x128xf32>
    %239 = math.exp %238 : vector<8x128xf32>
    %cst_109 = arith.constant 1.000000e+00 : f32
    %240 = vector.broadcast %cst_109 : f32 to vector<8x128xf32>
    %241 = arith.addf %240, %239 : vector<8x128xf32>
    %242 = arith.divf %240, %241 : vector<8x128xf32>
    %243 = vector.extract_strided_slice %224 {offsets = [0, 256], sizes = [8, 128], strides = [1, 1]} : vector<8x384xf32> to vector<8x128xf32>
    %244 = vector.extract_strided_slice %226 {offsets = [0, 256], sizes = [8, 128], strides = [1, 1]} : vector<8x384xf32> to vector<8x128xf32>
    %245 = vector.broadcast %78 : vector<1x128xf32> to vector<8x128xf32>
    %246 = arith.addf %244, %245 : vector<8x128xf32>
    %247 = arith.mulf %234, %246 : vector<8x128xf32>
    %248 = arith.addf %243, %247 : vector<8x128xf32>
    %249 = math.tanh %248 : vector<8x128xf32>
    %cst_110 = arith.constant 1.000000e+00 : f32
    %250 = vector.broadcast %cst_110 : f32 to vector<8x128xf32>
    %251 = arith.subf %250, %242 : vector<8x128xf32>
    %252 = arith.mulf %251, %249 : vector<8x128xf32>
    %253 = arith.mulf %242, %220 : vector<8x128xf32>
    %254 = arith.addf %252, %253 : vector<8x128xf32>
    %255 = vector.shape_cast %254 : vector<8x128xf32> to vector<8x1x128xf32>
    %c0_111 = arith.constant 0 : index
    %c5_112 = arith.constant 5 : index
    %c0_113 = arith.constant 0 : index
    %256 = vector.load %arg8[%c0_111, %c5_112, %c0_113] : memref<8x16x128xf32, #tpu.memory_space<vmem>>, vector<8x1x128xf32>
    tpu.vector_store %arg8[%c0_111, %c5_112, %c0_113], %255 {strides = array<i32>} : memref<8x16x128xf32, #tpu.memory_space<vmem>>, vector<8x1x128xf32>,
    %c0_114 = arith.constant 0 : index
    %c5_115 = arith.constant 5 : index
    %c0_116 = arith.constant 0 : index
    %257 = vector.load %arg9[%c0_114, %c5_115, %c0_116] : memref<8x16x384xf32, #tpu.memory_space<vmem>>, vector<8x1x384xf32>
    %258 = vector.shape_cast %257 : vector<8x1x384xf32> to vector<8x384xf32>
    %259 = arith.truncf %254 : vector<8x128xf32> to vector<8x128xbf16>
    %cst_117 = arith.constant dense<0.000000e+00> : vector<8x384xf32>
    %260 = tpu.matmul %259, %77, %cst_117 {dimension_numbers = #tpu.dot_dimension_numbers<[1], [0], [0], [1], [0, 0, 1, 1], [], []>} : vector<8x128xbf16>, vector<128x384xbf16>, vector<8x384xf32> -> vector<8x384xf32>
    %261 = vector.extract_strided_slice %258 {offsets = [0, 0], sizes = [8, 128], strides = [1, 1]} : vector<8x384xf32> to vector<8x128xf32>
    %262 = vector.extract_strided_slice %260 {offsets = [0, 0], sizes = [8, 128], strides = [1, 1]} : vector<8x384xf32> to vector<8x128xf32>
    %263 = arith.addf %261, %262 : vector<8x128xf32>
    %264 = arith.negf %263 : vector<8x128xf32>
    %265 = math.exp %264 : vector<8x128xf32>
    %cst_118 = arith.constant 1.000000e+00 : f32
    %266 = vector.broadcast %cst_118 : f32 to vector<8x128xf32>
    %267 = arith.addf %266, %265 : vector<8x128xf32>
    %268 = arith.divf %266, %267 : vector<8x128xf32>
    %269 = vector.extract_strided_slice %258 {offsets = [0, 128], sizes = [8, 128], strides = [1, 1]} : vector<8x384xf32> to vector<8x128xf32>
    %270 = vector.extract_strided_slice %260 {offsets = [0, 128], sizes = [8, 128], strides = [1, 1]} : vector<8x384xf32> to vector<8x128xf32>
    %271 = arith.addf %269, %270 : vector<8x128xf32>
    %272 = arith.negf %271 : vector<8x128xf32>
    %273 = math.exp %272 : vector<8x128xf32>
    %cst_119 = arith.constant 1.000000e+00 : f32
    %274 = vector.broadcast %cst_119 : f32 to vector<8x128xf32>
    %275 = arith.addf %274, %273 : vector<8x128xf32>
    %276 = arith.divf %274, %275 : vector<8x128xf32>
    %277 = vector.extract_strided_slice %258 {offsets = [0, 256], sizes = [8, 128], strides = [1, 1]} : vector<8x384xf32> to vector<8x128xf32>
    %278 = vector.extract_strided_slice %260 {offsets = [0, 256], sizes = [8, 128], strides = [1, 1]} : vector<8x384xf32> to vector<8x128xf32>
    %279 = vector.broadcast %78 : vector<1x128xf32> to vector<8x128xf32>
    %280 = arith.addf %278, %279 : vector<8x128xf32>
    %281 = arith.mulf %268, %280 : vector<8x128xf32>
    %282 = arith.addf %277, %281 : vector<8x128xf32>
    %283 = math.tanh %282 : vector<8x128xf32>
    %cst_120 = arith.constant 1.000000e+00 : f32
    %284 = vector.broadcast %cst_120 : f32 to vector<8x128xf32>
    %285 = arith.subf %284, %276 : vector<8x128xf32>
    %286 = arith.mulf %285, %283 : vector<8x128xf32>
    %287 = arith.mulf %276, %254 : vector<8x128xf32>
    %288 = arith.addf %286, %287 : vector<8x128xf32>
    %289 = vector.shape_cast %288 : vector<8x128xf32> to vector<8x1x128xf32>
    %c0_121 = arith.constant 0 : index
    %c6_122 = arith.constant 6 : index
    %c0_123 = arith.constant 0 : index
    %290 = vector.load %arg8[%c0_121, %c6_122, %c0_123] : memref<8x16x128xf32, #tpu.memory_space<vmem>>, vector<8x1x128xf32>
    tpu.vector_store %arg8[%c0_121, %c6_122, %c0_123], %289 {strides = array<i32>} : memref<8x16x128xf32, #tpu.memory_space<vmem>>, vector<8x1x128xf32>,
    %c0_124 = arith.constant 0 : index
    %c6_125 = arith.constant 6 : index
    %c0_126 = arith.constant 0 : index
    %291 = vector.load %arg9[%c0_124, %c6_125, %c0_126] : memref<8x16x384xf32, #tpu.memory_space<vmem>>, vector<8x1x384xf32>
    %292 = vector.shape_cast %291 : vector<8x1x384xf32> to vector<8x384xf32>
    %293 = arith.truncf %288 : vector<8x128xf32> to vector<8x128xbf16>
    %cst_127 = arith.constant dense<0.000000e+00> : vector<8x384xf32>
    %294 = tpu.matmul %293, %77, %cst_127 {dimension_numbers = #tpu.dot_dimension_numbers<[1], [0], [0], [1], [0, 0, 1, 1], [], []>} : vector<8x128xbf16>, vector<128x384xbf16>, vector<8x384xf32> -> vector<8x384xf32>
    %295 = vector.extract_strided_slice %292 {offsets = [0, 0], sizes = [8, 128], strides = [1, 1]} : vector<8x384xf32> to vector<8x128xf32>
    %296 = vector.extract_strided_slice %294 {offsets = [0, 0], sizes = [8, 128], strides = [1, 1]} : vector<8x384xf32> to vector<8x128xf32>
    %297 = arith.addf %295, %296 : vector<8x128xf32>
    %298 = arith.negf %297 : vector<8x128xf32>
    %299 = math.exp %298 : vector<8x128xf32>
    %cst_128 = arith.constant 1.000000e+00 : f32
    %300 = vector.broadcast %cst_128 : f32 to vector<8x128xf32>
    %301 = arith.addf %300, %299 : vector<8x128xf32>
    %302 = arith.divf %300, %301 : vector<8x128xf32>
    %303 = vector.extract_strided_slice %292 {offsets = [0, 128], sizes = [8, 128], strides = [1, 1]} : vector<8x384xf32> to vector<8x128xf32>
    %304 = vector.extract_strided_slice %294 {offsets = [0, 128], sizes = [8, 128], strides = [1, 1]} : vector<8x384xf32> to vector<8x128xf32>
    %305 = arith.addf %303, %304 : vector<8x128xf32>
    %306 = arith.negf %305 : vector<8x128xf32>
    %307 = math.exp %306 : vector<8x128xf32>
    %cst_129 = arith.constant 1.000000e+00 : f32
    %308 = vector.broadcast %cst_129 : f32 to vector<8x128xf32>
    %309 = arith.addf %308, %307 : vector<8x128xf32>
    %310 = arith.divf %308, %309 : vector<8x128xf32>
    %311 = vector.extract_strided_slice %292 {offsets = [0, 256], sizes = [8, 128], strides = [1, 1]} : vector<8x384xf32> to vector<8x128xf32>
    %312 = vector.extract_strided_slice %294 {offsets = [0, 256], sizes = [8, 128], strides = [1, 1]} : vector<8x384xf32> to vector<8x128xf32>
    %313 = vector.broadcast %78 : vector<1x128xf32> to vector<8x128xf32>
    %314 = arith.addf %312, %313 : vector<8x128xf32>
    %315 = arith.mulf %302, %314 : vector<8x128xf32>
    %316 = arith.addf %311, %315 : vector<8x128xf32>
    %317 = math.tanh %316 : vector<8x128xf32>
    %cst_130 = arith.constant 1.000000e+00 : f32
    %318 = vector.broadcast %cst_130 : f32 to vector<8x128xf32>
    %319 = arith.subf %318, %310 : vector<8x128xf32>
    %320 = arith.mulf %319, %317 : vector<8x128xf32>
    %321 = arith.mulf %310, %288 : vector<8x128xf32>
    %322 = arith.addf %320, %321 : vector<8x128xf32>
    %323 = vector.shape_cast %322 : vector<8x128xf32> to vector<8x1x128xf32>
    %c0_131 = arith.constant 0 : index
    %c7_132 = arith.constant 7 : index
    %c0_133 = arith.constant 0 : index
    %324 = vector.load %arg8[%c0_131, %c7_132, %c0_133] : memref<8x16x128xf32, #tpu.memory_space<vmem>>, vector<8x1x128xf32>
    tpu.vector_store %arg8[%c0_131, %c7_132, %c0_133], %323 {strides = array<i32>} : memref<8x16x128xf32, #tpu.memory_space<vmem>>, vector<8x1x128xf32>,
    %c0_134 = arith.constant 0 : index
    %c7_135 = arith.constant 7 : index
    %c0_136 = arith.constant 0 : index
    %325 = vector.load %arg9[%c0_134, %c7_135, %c0_136] : memref<8x16x384xf32, #tpu.memory_space<vmem>>, vector<8x1x384xf32>
    %326 = vector.shape_cast %325 : vector<8x1x384xf32> to vector<8x384xf32>
    %327 = arith.truncf %322 : vector<8x128xf32> to vector<8x128xbf16>
    %cst_137 = arith.constant dense<0.000000e+00> : vector<8x384xf32>
    %328 = tpu.matmul %327, %77, %cst_137 {dimension_numbers = #tpu.dot_dimension_numbers<[1], [0], [0], [1], [0, 0, 1, 1], [], []>} : vector<8x128xbf16>, vector<128x384xbf16>, vector<8x384xf32> -> vector<8x384xf32>
    %329 = vector.extract_strided_slice %326 {offsets = [0, 0], sizes = [8, 128], strides = [1, 1]} : vector<8x384xf32> to vector<8x128xf32>
    %330 = vector.extract_strided_slice %328 {offsets = [0, 0], sizes = [8, 128], strides = [1, 1]} : vector<8x384xf32> to vector<8x128xf32>
    %331 = arith.addf %329, %330 : vector<8x128xf32>
    %332 = arith.negf %331 : vector<8x128xf32>
    %333 = math.exp %332 : vector<8x128xf32>
    %cst_138 = arith.constant 1.000000e+00 : f32
    %334 = vector.broadcast %cst_138 : f32 to vector<8x128xf32>
    %335 = arith.addf %334, %333 : vector<8x128xf32>
    %336 = arith.divf %334, %335 : vector<8x128xf32>
    %337 = vector.extract_strided_slice %326 {offsets = [0, 128], sizes = [8, 128], strides = [1, 1]} : vector<8x384xf32> to vector<8x128xf32>
    %338 = vector.extract_strided_slice %328 {offsets = [0, 128], sizes = [8, 128], strides = [1, 1]} : vector<8x384xf32> to vector<8x128xf32>
    %339 = arith.addf %337, %338 : vector<8x128xf32>
    %340 = arith.negf %339 : vector<8x128xf32>
    %341 = math.exp %340 : vector<8x128xf32>
    %cst_139 = arith.constant 1.000000e+00 : f32
    %342 = vector.broadcast %cst_139 : f32 to vector<8x128xf32>
    %343 = arith.addf %342, %341 : vector<8x128xf32>
    %344 = arith.divf %342, %343 : vector<8x128xf32>
    %345 = vector.extract_strided_slice %326 {offsets = [0, 256], sizes = [8, 128], strides = [1, 1]} : vector<8x384xf32> to vector<8x128xf32>
    %346 = vector.extract_strided_slice %328 {offsets = [0, 256], sizes = [8, 128], strides = [1, 1]} : vector<8x384xf32> to vector<8x128xf32>
    %347 = vector.broadcast %78 : vector<1x128xf32> to vector<8x128xf32>
    %348 = arith.addf %346, %347 : vector<8x128xf32>
    %349 = arith.mulf %336, %348 : vector<8x128xf32>
    %350 = arith.addf %345, %349 : vector<8x128xf32>
    %351 = math.tanh %350 : vector<8x128xf32>
    %cst_140 = arith.constant 1.000000e+00 : f32
    %352 = vector.broadcast %cst_140 : f32 to vector<8x128xf32>
    %353 = arith.subf %352, %344 : vector<8x128xf32>
    %354 = arith.mulf %353, %351 : vector<8x128xf32>
    %355 = arith.mulf %344, %322 : vector<8x128xf32>
    %356 = arith.addf %354, %355 : vector<8x128xf32>
    %357 = vector.shape_cast %356 : vector<8x128xf32> to vector<8x1x128xf32>
    %c0_141 = arith.constant 0 : index
    %c8 = arith.constant 8 : index
    %c0_142 = arith.constant 0 : index
    %358 = vector.load %arg8[%c0_141, %c8, %c0_142] : memref<8x16x128xf32, #tpu.memory_space<vmem>>, vector<8x1x128xf32>
    tpu.vector_store %arg8[%c0_141, %c8, %c0_142], %357 {strides = array<i32>} : memref<8x16x128xf32, #tpu.memory_space<vmem>>, vector<8x1x128xf32>,
    %c0_143 = arith.constant 0 : index
    %c8_144 = arith.constant 8 : index
    %c0_145 = arith.constant 0 : index
    %359 = vector.load %arg9[%c0_143, %c8_144, %c0_145] : memref<8x16x384xf32, #tpu.memory_space<vmem>>, vector<8x1x384xf32>
    %360 = vector.shape_cast %359 : vector<8x1x384xf32> to vector<8x384xf32>
    %361 = arith.truncf %356 : vector<8x128xf32> to vector<8x128xbf16>
    %cst_146 = arith.constant dense<0.000000e+00> : vector<8x384xf32>
    %362 = tpu.matmul %361, %77, %cst_146 {dimension_numbers = #tpu.dot_dimension_numbers<[1], [0], [0], [1], [0, 0, 1, 1], [], []>} : vector<8x128xbf16>, vector<128x384xbf16>, vector<8x384xf32> -> vector<8x384xf32>
    %363 = vector.extract_strided_slice %360 {offsets = [0, 0], sizes = [8, 128], strides = [1, 1]} : vector<8x384xf32> to vector<8x128xf32>
    %364 = vector.extract_strided_slice %362 {offsets = [0, 0], sizes = [8, 128], strides = [1, 1]} : vector<8x384xf32> to vector<8x128xf32>
    %365 = arith.addf %363, %364 : vector<8x128xf32>
    %366 = arith.negf %365 : vector<8x128xf32>
    %367 = math.exp %366 : vector<8x128xf32>
    %cst_147 = arith.constant 1.000000e+00 : f32
    %368 = vector.broadcast %cst_147 : f32 to vector<8x128xf32>
    %369 = arith.addf %368, %367 : vector<8x128xf32>
    %370 = arith.divf %368, %369 : vector<8x128xf32>
    %371 = vector.extract_strided_slice %360 {offsets = [0, 128], sizes = [8, 128], strides = [1, 1]} : vector<8x384xf32> to vector<8x128xf32>
    %372 = vector.extract_strided_slice %362 {offsets = [0, 128], sizes = [8, 128], strides = [1, 1]} : vector<8x384xf32> to vector<8x128xf32>
    %373 = arith.addf %371, %372 : vector<8x128xf32>
    %374 = arith.negf %373 : vector<8x128xf32>
    %375 = math.exp %374 : vector<8x128xf32>
    %cst_148 = arith.constant 1.000000e+00 : f32
    %376 = vector.broadcast %cst_148 : f32 to vector<8x128xf32>
    %377 = arith.addf %376, %375 : vector<8x128xf32>
    %378 = arith.divf %376, %377 : vector<8x128xf32>
    %379 = vector.extract_strided_slice %360 {offsets = [0, 256], sizes = [8, 128], strides = [1, 1]} : vector<8x384xf32> to vector<8x128xf32>
    %380 = vector.extract_strided_slice %362 {offsets = [0, 256], sizes = [8, 128], strides = [1, 1]} : vector<8x384xf32> to vector<8x128xf32>
    %381 = vector.broadcast %78 : vector<1x128xf32> to vector<8x128xf32>
    %382 = arith.addf %380, %381 : vector<8x128xf32>
    %383 = arith.mulf %370, %382 : vector<8x128xf32>
    %384 = arith.addf %379, %383 : vector<8x128xf32>
    %385 = math.tanh %384 : vector<8x128xf32>
    %cst_149 = arith.constant 1.000000e+00 : f32
    %386 = vector.broadcast %cst_149 : f32 to vector<8x128xf32>
    %387 = arith.subf %386, %378 : vector<8x128xf32>
    %388 = arith.mulf %387, %385 : vector<8x128xf32>
    %389 = arith.mulf %378, %356 : vector<8x128xf32>
    %390 = arith.addf %388, %389 : vector<8x128xf32>
    %391 = vector.shape_cast %390 : vector<8x128xf32> to vector<8x1x128xf32>
    %c0_150 = arith.constant 0 : index
    %c9 = arith.constant 9 : index
    %c0_151 = arith.constant 0 : index
    %392 = vector.load %arg8[%c0_150, %c9, %c0_151] : memref<8x16x128xf32, #tpu.memory_space<vmem>>, vector<8x1x128xf32>
    tpu.vector_store %arg8[%c0_150, %c9, %c0_151], %391 {strides = array<i32>} : memref<8x16x128xf32, #tpu.memory_space<vmem>>, vector<8x1x128xf32>,
    %c0_152 = arith.constant 0 : index
    %c9_153 = arith.constant 9 : index
    %c0_154 = arith.constant 0 : index
    %393 = vector.load %arg9[%c0_152, %c9_153, %c0_154] : memref<8x16x384xf32, #tpu.memory_space<vmem>>, vector<8x1x384xf32>
    %394 = vector.shape_cast %393 : vector<8x1x384xf32> to vector<8x384xf32>
    %395 = arith.truncf %390 : vector<8x128xf32> to vector<8x128xbf16>
    %cst_155 = arith.constant dense<0.000000e+00> : vector<8x384xf32>
    %396 = tpu.matmul %395, %77, %cst_155 {dimension_numbers = #tpu.dot_dimension_numbers<[1], [0], [0], [1], [0, 0, 1, 1], [], []>} : vector<8x128xbf16>, vector<128x384xbf16>, vector<8x384xf32> -> vector<8x384xf32>
    %397 = vector.extract_strided_slice %394 {offsets = [0, 0], sizes = [8, 128], strides = [1, 1]} : vector<8x384xf32> to vector<8x128xf32>
    %398 = vector.extract_strided_slice %396 {offsets = [0, 0], sizes = [8, 128], strides = [1, 1]} : vector<8x384xf32> to vector<8x128xf32>
    %399 = arith.addf %397, %398 : vector<8x128xf32>
    %400 = arith.negf %399 : vector<8x128xf32>
    %401 = math.exp %400 : vector<8x128xf32>
    %cst_156 = arith.constant 1.000000e+00 : f32
    %402 = vector.broadcast %cst_156 : f32 to vector<8x128xf32>
    %403 = arith.addf %402, %401 : vector<8x128xf32>
    %404 = arith.divf %402, %403 : vector<8x128xf32>
    %405 = vector.extract_strided_slice %394 {offsets = [0, 128], sizes = [8, 128], strides = [1, 1]} : vector<8x384xf32> to vector<8x128xf32>
    %406 = vector.extract_strided_slice %396 {offsets = [0, 128], sizes = [8, 128], strides = [1, 1]} : vector<8x384xf32> to vector<8x128xf32>
    %407 = arith.addf %405, %406 : vector<8x128xf32>
    %408 = arith.negf %407 : vector<8x128xf32>
    %409 = math.exp %408 : vector<8x128xf32>
    %cst_157 = arith.constant 1.000000e+00 : f32
    %410 = vector.broadcast %cst_157 : f32 to vector<8x128xf32>
    %411 = arith.addf %410, %409 : vector<8x128xf32>
    %412 = arith.divf %410, %411 : vector<8x128xf32>
    %413 = vector.extract_strided_slice %394 {offsets = [0, 256], sizes = [8, 128], strides = [1, 1]} : vector<8x384xf32> to vector<8x128xf32>
    %414 = vector.extract_strided_slice %396 {offsets = [0, 256], sizes = [8, 128], strides = [1, 1]} : vector<8x384xf32> to vector<8x128xf32>
    %415 = vector.broadcast %78 : vector<1x128xf32> to vector<8x128xf32>
    %416 = arith.addf %414, %415 : vector<8x128xf32>
    %417 = arith.mulf %404, %416 : vector<8x128xf32>
    %418 = arith.addf %413, %417 : vector<8x128xf32>
    %419 = math.tanh %418 : vector<8x128xf32>
    %cst_158 = arith.constant 1.000000e+00 : f32
    %420 = vector.broadcast %cst_158 : f32 to vector<8x128xf32>
    %421 = arith.subf %420, %412 : vector<8x128xf32>
    %422 = arith.mulf %421, %419 : vector<8x128xf32>
    %423 = arith.mulf %412, %390 : vector<8x128xf32>
    %424 = arith.addf %422, %423 : vector<8x128xf32>
    %425 = vector.shape_cast %424 : vector<8x128xf32> to vector<8x1x128xf32>
    %c0_159 = arith.constant 0 : index
    %c10 = arith.constant 10 : index
    %c0_160 = arith.constant 0 : index
    %426 = vector.load %arg8[%c0_159, %c10, %c0_160] : memref<8x16x128xf32, #tpu.memory_space<vmem>>, vector<8x1x128xf32>
    tpu.vector_store %arg8[%c0_159, %c10, %c0_160], %425 {strides = array<i32>} : memref<8x16x128xf32, #tpu.memory_space<vmem>>, vector<8x1x128xf32>,
    %c0_161 = arith.constant 0 : index
    %c10_162 = arith.constant 10 : index
    %c0_163 = arith.constant 0 : index
    %427 = vector.load %arg9[%c0_161, %c10_162, %c0_163] : memref<8x16x384xf32, #tpu.memory_space<vmem>>, vector<8x1x384xf32>
    %428 = vector.shape_cast %427 : vector<8x1x384xf32> to vector<8x384xf32>
    %429 = arith.truncf %424 : vector<8x128xf32> to vector<8x128xbf16>
    %cst_164 = arith.constant dense<0.000000e+00> : vector<8x384xf32>
    %430 = tpu.matmul %429, %77, %cst_164 {dimension_numbers = #tpu.dot_dimension_numbers<[1], [0], [0], [1], [0, 0, 1, 1], [], []>} : vector<8x128xbf16>, vector<128x384xbf16>, vector<8x384xf32> -> vector<8x384xf32>
    %431 = vector.extract_strided_slice %428 {offsets = [0, 0], sizes = [8, 128], strides = [1, 1]} : vector<8x384xf32> to vector<8x128xf32>
    %432 = vector.extract_strided_slice %430 {offsets = [0, 0], sizes = [8, 128], strides = [1, 1]} : vector<8x384xf32> to vector<8x128xf32>
    %433 = arith.addf %431, %432 : vector<8x128xf32>
    %434 = arith.negf %433 : vector<8x128xf32>
    %435 = math.exp %434 : vector<8x128xf32>
    %cst_165 = arith.constant 1.000000e+00 : f32
    %436 = vector.broadcast %cst_165 : f32 to vector<8x128xf32>
    %437 = arith.addf %436, %435 : vector<8x128xf32>
    %438 = arith.divf %436, %437 : vector<8x128xf32>
    %439 = vector.extract_strided_slice %428 {offsets = [0, 128], sizes = [8, 128], strides = [1, 1]} : vector<8x384xf32> to vector<8x128xf32>
    %440 = vector.extract_strided_slice %430 {offsets = [0, 128], sizes = [8, 128], strides = [1, 1]} : vector<8x384xf32> to vector<8x128xf32>
    %441 = arith.addf %439, %440 : vector<8x128xf32>
    %442 = arith.negf %441 : vector<8x128xf32>
    %443 = math.exp %442 : vector<8x128xf32>
    %cst_166 = arith.constant 1.000000e+00 : f32
    %444 = vector.broadcast %cst_166 : f32 to vector<8x128xf32>
    %445 = arith.addf %444, %443 : vector<8x128xf32>
    %446 = arith.divf %444, %445 : vector<8x128xf32>
    %447 = vector.extract_strided_slice %428 {offsets = [0, 256], sizes = [8, 128], strides = [1, 1]} : vector<8x384xf32> to vector<8x128xf32>
    %448 = vector.extract_strided_slice %430 {offsets = [0, 256], sizes = [8, 128], strides = [1, 1]} : vector<8x384xf32> to vector<8x128xf32>
    %449 = vector.broadcast %78 : vector<1x128xf32> to vector<8x128xf32>
    %450 = arith.addf %448, %449 : vector<8x128xf32>
    %451 = arith.mulf %438, %450 : vector<8x128xf32>
    %452 = arith.addf %447, %451 : vector<8x128xf32>
    %453 = math.tanh %452 : vector<8x128xf32>
    %cst_167 = arith.constant 1.000000e+00 : f32
    %454 = vector.broadcast %cst_167 : f32 to vector<8x128xf32>
    %455 = arith.subf %454, %446 : vector<8x128xf32>
    %456 = arith.mulf %455, %453 : vector<8x128xf32>
    %457 = arith.mulf %446, %424 : vector<8x128xf32>
    %458 = arith.addf %456, %457 : vector<8x128xf32>
    %459 = vector.shape_cast %458 : vector<8x128xf32> to vector<8x1x128xf32>
    %c0_168 = arith.constant 0 : index
    %c11 = arith.constant 11 : index
    %c0_169 = arith.constant 0 : index
    %460 = vector.load %arg8[%c0_168, %c11, %c0_169] : memref<8x16x128xf32, #tpu.memory_space<vmem>>, vector<8x1x128xf32>
    tpu.vector_store %arg8[%c0_168, %c11, %c0_169], %459 {strides = array<i32>} : memref<8x16x128xf32, #tpu.memory_space<vmem>>, vector<8x1x128xf32>,
    %c0_170 = arith.constant 0 : index
    %c11_171 = arith.constant 11 : index
    %c0_172 = arith.constant 0 : index
    %461 = vector.load %arg9[%c0_170, %c11_171, %c0_172] : memref<8x16x384xf32, #tpu.memory_space<vmem>>, vector<8x1x384xf32>
    %462 = vector.shape_cast %461 : vector<8x1x384xf32> to vector<8x384xf32>
    %463 = arith.truncf %458 : vector<8x128xf32> to vector<8x128xbf16>
    %cst_173 = arith.constant dense<0.000000e+00> : vector<8x384xf32>
    %464 = tpu.matmul %463, %77, %cst_173 {dimension_numbers = #tpu.dot_dimension_numbers<[1], [0], [0], [1], [0, 0, 1, 1], [], []>} : vector<8x128xbf16>, vector<128x384xbf16>, vector<8x384xf32> -> vector<8x384xf32>
    %465 = vector.extract_strided_slice %462 {offsets = [0, 0], sizes = [8, 128], strides = [1, 1]} : vector<8x384xf32> to vector<8x128xf32>
    %466 = vector.extract_strided_slice %464 {offsets = [0, 0], sizes = [8, 128], strides = [1, 1]} : vector<8x384xf32> to vector<8x128xf32>
    %467 = arith.addf %465, %466 : vector<8x128xf32>
    %468 = arith.negf %467 : vector<8x128xf32>
    %469 = math.exp %468 : vector<8x128xf32>
    %cst_174 = arith.constant 1.000000e+00 : f32
    %470 = vector.broadcast %cst_174 : f32 to vector<8x128xf32>
    %471 = arith.addf %470, %469 : vector<8x128xf32>
    %472 = arith.divf %470, %471 : vector<8x128xf32>
    %473 = vector.extract_strided_slice %462 {offsets = [0, 128], sizes = [8, 128], strides = [1, 1]} : vector<8x384xf32> to vector<8x128xf32>
    %474 = vector.extract_strided_slice %464 {offsets = [0, 128], sizes = [8, 128], strides = [1, 1]} : vector<8x384xf32> to vector<8x128xf32>
    %475 = arith.addf %473, %474 : vector<8x128xf32>
    %476 = arith.negf %475 : vector<8x128xf32>
    %477 = math.exp %476 : vector<8x128xf32>
    %cst_175 = arith.constant 1.000000e+00 : f32
    %478 = vector.broadcast %cst_175 : f32 to vector<8x128xf32>
    %479 = arith.addf %478, %477 : vector<8x128xf32>
    %480 = arith.divf %478, %479 : vector<8x128xf32>
    %481 = vector.extract_strided_slice %462 {offsets = [0, 256], sizes = [8, 128], strides = [1, 1]} : vector<8x384xf32> to vector<8x128xf32>
    %482 = vector.extract_strided_slice %464 {offsets = [0, 256], sizes = [8, 128], strides = [1, 1]} : vector<8x384xf32> to vector<8x128xf32>
    %483 = vector.broadcast %78 : vector<1x128xf32> to vector<8x128xf32>
    %484 = arith.addf %482, %483 : vector<8x128xf32>
    %485 = arith.mulf %472, %484 : vector<8x128xf32>
    %486 = arith.addf %481, %485 : vector<8x128xf32>
    %487 = math.tanh %486 : vector<8x128xf32>
    %cst_176 = arith.constant 1.000000e+00 : f32
    %488 = vector.broadcast %cst_176 : f32 to vector<8x128xf32>
    %489 = arith.subf %488, %480 : vector<8x128xf32>
    %490 = arith.mulf %489, %487 : vector<8x128xf32>
    %491 = arith.mulf %480, %458 : vector<8x128xf32>
    %492 = arith.addf %490, %491 : vector<8x128xf32>
    %493 = vector.shape_cast %492 : vector<8x128xf32> to vector<8x1x128xf32>
    %c0_177 = arith.constant 0 : index
    %c12 = arith.constant 12 : index
    %c0_178 = arith.constant 0 : index
    %494 = vector.load %arg8[%c0_177, %c12, %c0_178] : memref<8x16x128xf32, #tpu.memory_space<vmem>>, vector<8x1x128xf32>
    tpu.vector_store %arg8[%c0_177, %c12, %c0_178], %493 {strides = array<i32>} : memref<8x16x128xf32, #tpu.memory_space<vmem>>, vector<8x1x128xf32>,
    %c0_179 = arith.constant 0 : index
    %c12_180 = arith.constant 12 : index
    %c0_181 = arith.constant 0 : index
    %495 = vector.load %arg9[%c0_179, %c12_180, %c0_181] : memref<8x16x384xf32, #tpu.memory_space<vmem>>, vector<8x1x384xf32>
    %496 = vector.shape_cast %495 : vector<8x1x384xf32> to vector<8x384xf32>
    %497 = arith.truncf %492 : vector<8x128xf32> to vector<8x128xbf16>
    %cst_182 = arith.constant dense<0.000000e+00> : vector<8x384xf32>
    %498 = tpu.matmul %497, %77, %cst_182 {dimension_numbers = #tpu.dot_dimension_numbers<[1], [0], [0], [1], [0, 0, 1, 1], [], []>} : vector<8x128xbf16>, vector<128x384xbf16>, vector<8x384xf32> -> vector<8x384xf32>
    %499 = vector.extract_strided_slice %496 {offsets = [0, 0], sizes = [8, 128], strides = [1, 1]} : vector<8x384xf32> to vector<8x128xf32>
    %500 = vector.extract_strided_slice %498 {offsets = [0, 0], sizes = [8, 128], strides = [1, 1]} : vector<8x384xf32> to vector<8x128xf32>
    %501 = arith.addf %499, %500 : vector<8x128xf32>
    %502 = arith.negf %501 : vector<8x128xf32>
    %503 = math.exp %502 : vector<8x128xf32>
    %cst_183 = arith.constant 1.000000e+00 : f32
    %504 = vector.broadcast %cst_183 : f32 to vector<8x128xf32>
    %505 = arith.addf %504, %503 : vector<8x128xf32>
    %506 = arith.divf %504, %505 : vector<8x128xf32>
    %507 = vector.extract_strided_slice %496 {offsets = [0, 128], sizes = [8, 128], strides = [1, 1]} : vector<8x384xf32> to vector<8x128xf32>
    %508 = vector.extract_strided_slice %498 {offsets = [0, 128], sizes = [8, 128], strides = [1, 1]} : vector<8x384xf32> to vector<8x128xf32>
    %509 = arith.addf %507, %508 : vector<8x128xf32>
    %510 = arith.negf %509 : vector<8x128xf32>
    %511 = math.exp %510 : vector<8x128xf32>
    %cst_184 = arith.constant 1.000000e+00 : f32
    %512 = vector.broadcast %cst_184 : f32 to vector<8x128xf32>
    %513 = arith.addf %512, %511 : vector<8x128xf32>
    %514 = arith.divf %512, %513 : vector<8x128xf32>
    %515 = vector.extract_strided_slice %496 {offsets = [0, 256], sizes = [8, 128], strides = [1, 1]} : vector<8x384xf32> to vector<8x128xf32>
    %516 = vector.extract_strided_slice %498 {offsets = [0, 256], sizes = [8, 128], strides = [1, 1]} : vector<8x384xf32> to vector<8x128xf32>
    %517 = vector.broadcast %78 : vector<1x128xf32> to vector<8x128xf32>
    %518 = arith.addf %516, %517 : vector<8x128xf32>
    %519 = arith.mulf %506, %518 : vector<8x128xf32>
    %520 = arith.addf %515, %519 : vector<8x128xf32>
    %521 = math.tanh %520 : vector<8x128xf32>
    %cst_185 = arith.constant 1.000000e+00 : f32
    %522 = vector.broadcast %cst_185 : f32 to vector<8x128xf32>
    %523 = arith.subf %522, %514 : vector<8x128xf32>
    %524 = arith.mulf %523, %521 : vector<8x128xf32>
    %525 = arith.mulf %514, %492 : vector<8x128xf32>
    %526 = arith.addf %524, %525 : vector<8x128xf32>
    %527 = vector.shape_cast %526 : vector<8x128xf32> to vector<8x1x128xf32>
    %c0_186 = arith.constant 0 : index
    %c13 = arith.constant 13 : index
    %c0_187 = arith.constant 0 : index
    %528 = vector.load %arg8[%c0_186, %c13, %c0_187] : memref<8x16x128xf32, #tpu.memory_space<vmem>>, vector<8x1x128xf32>
    tpu.vector_store %arg8[%c0_186, %c13, %c0_187], %527 {strides = array<i32>} : memref<8x16x128xf32, #tpu.memory_space<vmem>>, vector<8x1x128xf32>,
    %c0_188 = arith.constant 0 : index
    %c13_189 = arith.constant 13 : index
    %c0_190 = arith.constant 0 : index
    %529 = vector.load %arg9[%c0_188, %c13_189, %c0_190] : memref<8x16x384xf32, #tpu.memory_space<vmem>>, vector<8x1x384xf32>
    %530 = vector.shape_cast %529 : vector<8x1x384xf32> to vector<8x384xf32>
    %531 = arith.truncf %526 : vector<8x128xf32> to vector<8x128xbf16>
    %cst_191 = arith.constant dense<0.000000e+00> : vector<8x384xf32>
    %532 = tpu.matmul %531, %77, %cst_191 {dimension_numbers = #tpu.dot_dimension_numbers<[1], [0], [0], [1], [0, 0, 1, 1], [], []>} : vector<8x128xbf16>, vector<128x384xbf16>, vector<8x384xf32> -> vector<8x384xf32>
    %533 = vector.extract_strided_slice %530 {offsets = [0, 0], sizes = [8, 128], strides = [1, 1]} : vector<8x384xf32> to vector<8x128xf32>
    %534 = vector.extract_strided_slice %532 {offsets = [0, 0], sizes = [8, 128], strides = [1, 1]} : vector<8x384xf32> to vector<8x128xf32>
    %535 = arith.addf %533, %534 : vector<8x128xf32>
    %536 = arith.negf %535 : vector<8x128xf32>
    %537 = math.exp %536 : vector<8x128xf32>
    %cst_192 = arith.constant 1.000000e+00 : f32
    %538 = vector.broadcast %cst_192 : f32 to vector<8x128xf32>
    %539 = arith.addf %538, %537 : vector<8x128xf32>
    %540 = arith.divf %538, %539 : vector<8x128xf32>
    %541 = vector.extract_strided_slice %530 {offsets = [0, 128], sizes = [8, 128], strides = [1, 1]} : vector<8x384xf32> to vector<8x128xf32>
    %542 = vector.extract_strided_slice %532 {offsets = [0, 128], sizes = [8, 128], strides = [1, 1]} : vector<8x384xf32> to vector<8x128xf32>
    %543 = arith.addf %541, %542 : vector<8x128xf32>
    %544 = arith.negf %543 : vector<8x128xf32>
    %545 = math.exp %544 : vector<8x128xf32>
    %cst_193 = arith.constant 1.000000e+00 : f32
    %546 = vector.broadcast %cst_193 : f32 to vector<8x128xf32>
    %547 = arith.addf %546, %545 : vector<8x128xf32>
    %548 = arith.divf %546, %547 : vector<8x128xf32>
    %549 = vector.extract_strided_slice %530 {offsets = [0, 256], sizes = [8, 128], strides = [1, 1]} : vector<8x384xf32> to vector<8x128xf32>
    %550 = vector.extract_strided_slice %532 {offsets = [0, 256], sizes = [8, 128], strides = [1, 1]} : vector<8x384xf32> to vector<8x128xf32>
    %551 = vector.broadcast %78 : vector<1x128xf32> to vector<8x128xf32>
    %552 = arith.addf %550, %551 : vector<8x128xf32>
    %553 = arith.mulf %540, %552 : vector<8x128xf32>
    %554 = arith.addf %549, %553 : vector<8x128xf32>
    %555 = math.tanh %554 : vector<8x128xf32>
    %cst_194 = arith.constant 1.000000e+00 : f32
    %556 = vector.broadcast %cst_194 : f32 to vector<8x128xf32>
    %557 = arith.subf %556, %548 : vector<8x128xf32>
    %558 = arith.mulf %557, %555 : vector<8x128xf32>
    %559 = arith.mulf %548, %526 : vector<8x128xf32>
    %560 = arith.addf %558, %559 : vector<8x128xf32>
    %561 = vector.shape_cast %560 : vector<8x128xf32> to vector<8x1x128xf32>
    %c0_195 = arith.constant 0 : index
    %c14 = arith.constant 14 : index
    %c0_196 = arith.constant 0 : index
    %562 = vector.load %arg8[%c0_195, %c14, %c0_196] : memref<8x16x128xf32, #tpu.memory_space<vmem>>, vector<8x1x128xf32>
    tpu.vector_store %arg8[%c0_195, %c14, %c0_196], %561 {strides = array<i32>} : memref<8x16x128xf32, #tpu.memory_space<vmem>>, vector<8x1x128xf32>,
    %c0_197 = arith.constant 0 : index
    %c14_198 = arith.constant 14 : index
    %c0_199 = arith.constant 0 : index
    %563 = vector.load %arg9[%c0_197, %c14_198, %c0_199] : memref<8x16x384xf32, #tpu.memory_space<vmem>>, vector<8x1x384xf32>
    %564 = vector.shape_cast %563 : vector<8x1x384xf32> to vector<8x384xf32>
    %565 = arith.truncf %560 : vector<8x128xf32> to vector<8x128xbf16>
    %cst_200 = arith.constant dense<0.000000e+00> : vector<8x384xf32>
    %566 = tpu.matmul %565, %77, %cst_200 {dimension_numbers = #tpu.dot_dimension_numbers<[1], [0], [0], [1], [0, 0, 1, 1], [], []>} : vector<8x128xbf16>, vector<128x384xbf16>, vector<8x384xf32> -> vector<8x384xf32>
    %567 = vector.extract_strided_slice %564 {offsets = [0, 0], sizes = [8, 128], strides = [1, 1]} : vector<8x384xf32> to vector<8x128xf32>
    %568 = vector.extract_strided_slice %566 {offsets = [0, 0], sizes = [8, 128], strides = [1, 1]} : vector<8x384xf32> to vector<8x128xf32>
    %569 = arith.addf %567, %568 : vector<8x128xf32>
    %570 = arith.negf %569 : vector<8x128xf32>
    %571 = math.exp %570 : vector<8x128xf32>
    %cst_201 = arith.constant 1.000000e+00 : f32
    %572 = vector.broadcast %cst_201 : f32 to vector<8x128xf32>
    %573 = arith.addf %572, %571 : vector<8x128xf32>
    %574 = arith.divf %572, %573 : vector<8x128xf32>
    %575 = vector.extract_strided_slice %564 {offsets = [0, 128], sizes = [8, 128], strides = [1, 1]} : vector<8x384xf32> to vector<8x128xf32>
    %576 = vector.extract_strided_slice %566 {offsets = [0, 128], sizes = [8, 128], strides = [1, 1]} : vector<8x384xf32> to vector<8x128xf32>
    %577 = arith.addf %575, %576 : vector<8x128xf32>
    %578 = arith.negf %577 : vector<8x128xf32>
    %579 = math.exp %578 : vector<8x128xf32>
    %cst_202 = arith.constant 1.000000e+00 : f32
    %580 = vector.broadcast %cst_202 : f32 to vector<8x128xf32>
    %581 = arith.addf %580, %579 : vector<8x128xf32>
    %582 = arith.divf %580, %581 : vector<8x128xf32>
    %583 = vector.extract_strided_slice %564 {offsets = [0, 256], sizes = [8, 128], strides = [1, 1]} : vector<8x384xf32> to vector<8x128xf32>
    %584 = vector.extract_strided_slice %566 {offsets = [0, 256], sizes = [8, 128], strides = [1, 1]} : vector<8x384xf32> to vector<8x128xf32>
    %585 = vector.broadcast %78 : vector<1x128xf32> to vector<8x128xf32>
    %586 = arith.addf %584, %585 : vector<8x128xf32>
    %587 = arith.mulf %574, %586 : vector<8x128xf32>
    %588 = arith.addf %583, %587 : vector<8x128xf32>
    %589 = math.tanh %588 : vector<8x128xf32>
    %cst_203 = arith.constant 1.000000e+00 : f32
    %590 = vector.broadcast %cst_203 : f32 to vector<8x128xf32>
    %591 = arith.subf %590, %582 : vector<8x128xf32>
    %592 = arith.mulf %591, %589 : vector<8x128xf32>
    %593 = arith.mulf %582, %560 : vector<8x128xf32>
    %594 = arith.addf %592, %593 : vector<8x128xf32>
    %595 = vector.shape_cast %594 : vector<8x128xf32> to vector<8x1x128xf32>
    %c0_204 = arith.constant 0 : index
    %c15 = arith.constant 15 : index
    %c0_205 = arith.constant 0 : index
    %596 = vector.load %arg8[%c0_204, %c15, %c0_205] : memref<8x16x128xf32, #tpu.memory_space<vmem>>, vector<8x1x128xf32>
    tpu.vector_store %arg8[%c0_204, %c15, %c0_205], %595 {strides = array<i32>} : memref<8x16x128xf32, #tpu.memory_space<vmem>>, vector<8x1x128xf32>,
    %c0_206 = arith.constant 0 : index
    %c15_207 = arith.constant 15 : index
    %c0_208 = arith.constant 0 : index
    %597 = vector.load %arg9[%c0_206, %c15_207, %c0_208] : memref<8x16x384xf32, #tpu.memory_space<vmem>>, vector<8x1x384xf32>
    %598 = vector.shape_cast %597 : vector<8x1x384xf32> to vector<8x384xf32>
    %599 = arith.truncf %594 : vector<8x128xf32> to vector<8x128xbf16>
    %cst_209 = arith.constant dense<0.000000e+00> : vector<8x384xf32>
    %600 = tpu.matmul %599, %77, %cst_209 {dimension_numbers = #tpu.dot_dimension_numbers<[1], [0], [0], [1], [0, 0, 1, 1], [], []>} : vector<8x128xbf16>, vector<128x384xbf16>, vector<8x384xf32> -> vector<8x384xf32>
    %601 = vector.extract_strided_slice %598 {offsets = [0, 0], sizes = [8, 128], strides = [1, 1]} : vector<8x384xf32> to vector<8x128xf32>
    %602 = vector.extract_strided_slice %600 {offsets = [0, 0], sizes = [8, 128], strides = [1, 1]} : vector<8x384xf32> to vector<8x128xf32>
    %603 = arith.addf %601, %602 : vector<8x128xf32>
    %604 = arith.negf %603 : vector<8x128xf32>
    %605 = math.exp %604 : vector<8x128xf32>
    %cst_210 = arith.constant 1.000000e+00 : f32
    %606 = vector.broadcast %cst_210 : f32 to vector<8x128xf32>
    %607 = arith.addf %606, %605 : vector<8x128xf32>
    %608 = arith.divf %606, %607 : vector<8x128xf32>
    %609 = vector.extract_strided_slice %598 {offsets = [0, 128], sizes = [8, 128], strides = [1, 1]} : vector<8x384xf32> to vector<8x128xf32>
    %610 = vector.extract_strided_slice %600 {offsets = [0, 128], sizes = [8, 128], strides = [1, 1]} : vector<8x384xf32> to vector<8x128xf32>
    %611 = arith.addf %609, %610 : vector<8x128xf32>
    %612 = arith.negf %611 : vector<8x128xf32>
    %613 = math.exp %612 : vector<8x128xf32>
    %cst_211 = arith.constant 1.000000e+00 : f32
    %614 = vector.broadcast %cst_211 : f32 to vector<8x128xf32>
    %615 = arith.addf %614, %613 : vector<8x128xf32>
    %616 = arith.divf %614, %615 : vector<8x128xf32>
    %617 = vector.extract_strided_slice %598 {offsets = [0, 256], sizes = [8, 128], strides = [1, 1]} : vector<8x384xf32> to vector<8x128xf32>
    %618 = vector.extract_strided_slice %600 {offsets = [0, 256], sizes = [8, 128], strides = [1, 1]} : vector<8x384xf32> to vector<8x128xf32>
    %619 = vector.broadcast %78 : vector<1x128xf32> to vector<8x128xf32>
    %620 = arith.addf %618, %619 : vector<8x128xf32>
    %621 = arith.mulf %608, %620 : vector<8x128xf32>
    %622 = arith.addf %617, %621 : vector<8x128xf32>
    %623 = math.tanh %622 : vector<8x128xf32>
    %cst_212 = arith.constant 1.000000e+00 : f32
    %624 = vector.broadcast %cst_212 : f32 to vector<8x128xf32>
    %625 = arith.subf %624, %616 : vector<8x128xf32>
    %626 = arith.mulf %625, %623 : vector<8x128xf32>
    %627 = arith.mulf %616, %594 : vector<8x128xf32>
    %628 = arith.addf %626, %627 : vector<8x128xf32>
    %c0_213 = arith.constant 0 : index
    %c0_214 = arith.constant 0 : index
    %629 = vector.load %arg10[%c0_213, %c0_214] : memref<8x128xf32, #tpu.memory_space<vmem>>, vector<8x128xf32>
    tpu.vector_store %arg10[%c0_213, %c0_214], %628 {strides = array<i32>} : memref<8x128xf32, #tpu.memory_space<vmem>>, vector<8x128xf32>,
    return
  }
  func.func @transform_0(%arg0: i32, %arg1: i32) -> (i32, i32, i32) {
    %c0_i32 = arith.constant 0 : i32
    %c0_i32_0 = arith.constant 0 : i32
    return %arg0, %arg1, %c0_i32 : i32, i32, i32
  }
  func.func @transform_1(%arg0: i32, %arg1: i32) -> (i32, i32) {
    %c0_i32 = arith.constant 0 : i32
    %c0_i32_0 = arith.constant 0 : i32
    %c0_i32_1 = arith.constant 0 : i32
    return %c0_i32, %c0_i32_0 : i32, i32
  }
  func.func @transform_2(%arg0: i32, %arg1: i32) -> (i32, i32) {
    %c0_i32 = arith.constant 0 : i32
    %c0_i32_0 = arith.constant 0 : i32
    %c0_i32_1 = arith.constant 0 : i32
    return %c0_i32, %c0_i32_0 : i32, i32
  }
  func.func @transform_3(%arg0: i32, %arg1: i32) -> (i32, i32) {
    %c0_i32 = arith.constant 0 : i32
    %c0_i32_0 = arith.constant 0 : i32
    %c0_i32_1 = arith.constant 0 : i32
    return %c0_i32, %c0_i32_0 : i32, i32
  }
  func.func @transform_4(%arg0: i32, %arg1: i32) -> (i32, i32) {
    %c0_i32 = arith.constant 0 : i32
    %c0_i32_0 = arith.constant 0 : i32
    %c0_i32_1 = arith.constant 0 : i32
    return %c0_i32, %c0_i32_0 : i32, i32
  }
  func.func @transform_5(%arg0: i32, %arg1: i32) -> (i32, i32) {
    %c0_i32 = arith.constant 0 : i32
    %c0_i32_0 = arith.constant 0 : i32
    %c0_i32_1 = arith.constant 0 : i32
    return %c0_i32, %c0_i32_0 : i32, i32
  }
  func.func @transform_6(%arg0: i32, %arg1: i32) -> (i32, i32, i32) {
    %c0_i32 = arith.constant 0 : i32
    %c0_i32_0 = arith.constant 0 : i32
    return %arg0, %arg1, %c0_i32 : i32, i32, i32
  }
}

</mosaic_0001>

<bundles_post_ra>
// kernel: rnn_forward.1
= control target key start
LH: loop header
LB: loop body
LE: loop exit
PB: predicated region body
PF: predicated region fallthrough
CT: control target
= control target key end

     0   :  { %11 = vsyncpa [#allocation5], 0  ;;  %s11938_s21 = smov [#allocation4]   ;;  %s15173_s0 = inlined_call_operand.vmem [shape: f32[8,16,4], index: 0, kind: input, shape index: {}]   ;;  %s15174_s1 = inlined_call_operand.vmem [shape: bf16[4,384], index: 1, kind: input, shape index: {}]   ;;  %s15175_s2 = inlined_call_operand.vmem [shape: f32[1,384], index: 2, kind: input, shape index: {}]   ;;  %s15176_s3 = inlined_call_operand.hbm [shape: bf16[128,384], index: 3, kind: input, shape index: {}]   ;;  %s15177_s4 = inlined_call_operand.vmem [shape: f32[1,128], index: 4, kind: input, shape index: {}]   ;;  %s15178_s5 = inlined_call_operand.vmem [shape: f32[1,128], index: 5, kind: input, shape index: {}]   ;;  %s15179_s6 = inlined_call_operand.vmem [shape: f32[8,16,128], index: 6, kind: output, shape index: {}]  }
   0x1   :  { %s23_s22 = sshll.u32 %s11938_s21, 4  ;;  %s11914_s25 = scalar_lea.hbm %s15176_s3, 3072  ;;  %s24_s22 = int_to_ptr.vmem [resolvable:$true] %s23_s22 }
   0x2   :  { %p11915_p0 = scmp.ne.s32.totalorder %s15176_s3, %s11914_s25  ;;  %p11918_p1 = scmp.lt.u32.totalorder %s11914_s25, %s15176_s3 }
   0x4   :  { %p11920_p2 = pnand %p11918_p1, %p11915_p0 }
   0x6   :  { %11923 = shalt.err (!%p11920_p2)
}
   0x7   :  { %s11924_s30 = scalar_lea.vmem %s24_s22, 3072  ;;  %p11929_p4 = scmp.lt.s32.totalorder %s24_s22, %s24_s22 }
   0x8   :  { %p11925_p3 = scmp.ne.s32.totalorder %s24_s22, %s11924_s30  ;;  %p11930_p5 = scmp.lt.s32.totalorder %s11924_s30, %s11924_s30 }
   0xa   :  { %p11931_p6 = por %p11930_p5, %p11929_p4 }
   0xc   :  { %p11932_p7 = pnand %p11931_p6, %p11925_p3 }
   0xe   :  { %11935 = shalt.err (!%p11932_p7)
}
   0xf   :  { %s11939_s7 = smov 192   ;;  %s11940_s8 = smov 12  }
  0x10   :  { %29 = dma.hbm_to_vmem [thread:$0]  %s15176_s3, 3072, %s24_s22, [#allocation5], %s11939_s7, %s11939_s7, %s11940_s8  }
  0x11   :  { %11936 = dma.done.wait [#allocation5], 3072  }
  0x12   :  { %11937 = vsyncadd [#allocation5], 4294964224  ;;  %v49_v0 = vlaneseq  ;;  %v11941_v1 = vmov 1966171168   ;;  %v11942_v3 = vmov 1983009808  }
  0x13   :  { %v919_v2 = vunpack.c.l.s4 %v11941_v1  ;;  %v67_v4 = vunpack.c.l.s4 %v11942_v3  ;;  %v15182_v6 = vmov 0.0   ;;  %v15180_v9 = vmov 0   ;;  %v9683_v12 = vld [vmem:[%s15178_s5] ss:$0 sm:$0xff]  ;;  %v46_v19 = vld [vmem:[%s15173_s0 + $0x8] sm:$0xff]  ;;  %v9648_v36 = vld [vmem:[%s15173_s0 + $0x10] sm:$0xff] }
  0x14   :  { %v11994_v5 = vshrl.u32 %v49_v0, 7  ;;  %10129 = vmatprep.subr.bf16.mxu1 %v15182_v6  ;;  %127 = vmatprep.mubr.bf16.mxu0 %v15180_v9  ;;  %vm11945_vm0 = vmmov 0   ;;  %v43_v13 = vld [vmem:[%s15174_s1] sm:$0x3f]  ;;  %vm85_vm1 = vcmask 1041408   ;;  %v917_v14 = vcombine.high %v9683_v12, %v9683_v12  ;;  %v9649_v37 = vld [vmem:[%s15173_s0 + $0x18] sm:$0xff] }
  0x15   :  { %v920_v7 = vunpack.c.0.s8 %v919_v2  ;;  %v68_v8 = vunpack.c.0.s8 %v67_v4  ;;  %10131 = vmatprep.mubr.msk.bf16.mxu1 %vm11945_vm0, %v15182_v6  ;;  %v65_v17 = vcombine.high %v43_v13, %v43_v13  ;;  %v45_v18 = vld [vmem:[%s15173_s0] sm:$0xff]  ;;  %vm81_vm2 = vcmask 31744   ;;  %v9654_v40 = vld [vmem:[%s15173_s0 + $0x28] sm:$0xff]  ;;  %v9658_v42 = vld [vmem:[%s15173_s0 + $0x30] sm:$0xff] }
  0x16   :  { %v47_v26 = vpack.c.bf16 %v46_v19, %v45_v18  ;;  %v188_v38 = vpack.c.bf16 %v9649_v37, %v9648_v36  ;;  %v9653_v39 = vld [vmem:[%s15173_s0 + $0x20] sm:$0xff]  ;;  %v9659_v43 = vld [vmem:[%s15173_s0 + $0x38] sm:$0xff]  ;;  %v9664_v46 = vld [vmem:[%s15173_s0 + $0x48] sm:$0xff]  ;;  %vm1703_vm3 = vcmask 1041409   ;;  %vm1706_vm4 = vcmask 1042434  }
  0x17   :  { %v71_v10 = vsub.s32 %v68_v8, %v11994_v5  ;;  %v12002_v11 = vsub.s32 %v920_v7, %v11994_v5  ;;  %v286_v41 = vpack.c.bf16 %v9654_v40, %v9653_v39  ;;  %v384_v44 = vpack.c.bf16 %v9659_v43, %v9658_v42  ;;  %v9663_v45 = vld [vmem:[%s15173_s0 + $0x40] sm:$0xff]  ;;  %v9668_v48 = vld [vmem:[%s15173_s0 + $0x50] sm:$0xff]  ;;  %v9669_v49 = vld [vmem:[%s15173_s0 + $0x58] sm:$0xff] }
  0x18   :  { %v482_v47 = vpack.c.bf16 %v9664_v46, %v9663_v45  ;;  %v580_v50 = vpack.c.bf16 %v9669_v49, %v9668_v48  ;;  %v9673_v51 = vld [vmem:[%s15173_s0 + $0x60] sm:$0xff]  ;;  %v9674_v52 = vld [vmem:[%s15173_s0 + $0x68] sm:$0xff]  ;;  %v9678_v55 = vld [vmem:[%s15173_s0 + $0x70] sm:$0xff]  ;;  %vm1709_vm5 = vcmask 1043459   ;;  %vm1712_vm6 = vcmask 1044484  }
  0x19   :  { %v924_v15 = vrot.slane %v9683_v12, %v12002_v11  ;;  %v72_v16 = vrot.slane %v43_v13, %v71_v10  ;;  %v931_v20 = vrot.slane %v917_v14, %v12002_v11  ;;  %v79_v25 = vrot.slane %v65_v17, %v71_v10  ;;  %v12157_v54 = vld [vmem:[#allocation4 + $0x4] ss:$12 sps:$4 sm:$0xff]   ;;  %v9679_v56 = vld [vmem:[%s15173_s0 + $0x78] sm:$0xff]  ;;  %v10509_v58 = vld [vmem:[#allocation4] ss:$12 sps:$4 sm:$0xff]  }
  0x1a   :  { %v678_v53 = vpack.c.bf16 %v9674_v52, %v9673_v51  ;;  %v776_v57 = vpack.c.bf16 %v9679_v56, %v9678_v55  ;;  %v10510_v59 = vld [vmem:[#allocation4 + $0x1c] ss:$12 sps:$4 sm:$0xff]   ;;  %v10512_v61 = vld [vmem:[#allocation4 + $0x18] ss:$12 sps:$4 sm:$0xff]   ;;  %v10513_v62 = vld [vmem:[#allocation4 + $0x34] ss:$12 sps:$4 sm:$0xff]  }
  0x1b   :  { %v932_v21 = vcombine.high %v924_v15, %v924_v15  ;;  %v940_v22 = vrot.slane %v924_v15, %v12002_v11  ;;  %9684 = vst.sshfl [vmem:[%s15179_s6] sm:$0x1 pattern:$0x73625140] %v924_v15  ;;  %v12022_v23 = vcombine.high %v72_v16, %v72_v16  ;;  %v12025_v24 = vsel %vm85_vm1, %v72_v16, 0  ;;  %v10528_v60 = vld [vmem:[#allocation4 + $0x8] ss:$12 sps:$4 sm:$0xff]  }
  0x1c   :  { %v933_v27 = vcombine.high %v931_v20, %v931_v20  ;;  %v947_v28 = vrot.slane %v931_v20, %v12002_v11  ;;  %9686 = vst.sshfl [vmem:[%s15179_s6 + $0x40] sm:$0x1 pattern:$0x73625140] %v931_v20  ;;  %v12039_v31 = vsel %vm85_vm1, %v79_v25, 0  ;;  %v59_v25 = vsub.s32 2, %v11994_v5 }
  0x1d   :  { %v954_v29 = vrot.slane %v932_v21, %v12002_v11  ;;  %v962_v30 = vcombine.high %v940_v22, %v940_v22  ;;  %9685 = vst.sshfl [vmem:[%s15179_s6 + $0x10] sm:$0x1 pattern:$0x73625140] %v932_v21  ;;  %9645 = vmatprep.subr.msk.bf16.mxu0 %vm85_vm1, %v12022_v23  ;;  %10130 = vmatpush3.bf16.msra.mxu1 %v12039_v31  ;;  %v10532_v63 = vld [vmem:[#allocation4 + $0x20] ss:$12 sps:$4 sm:$0xff]  }
  0x1e   :  { %96 = vmatpush1.bf16.msra.mxu0 %v12025_v24  ;;  %v961_v32 = vrot.slane %v933_v27, %v12002_v11  ;;  %v963_v33 = vcombine.high %v947_v28, %v947_v28  ;;  %9687 = vst.sshfl [vmem:[%s15179_s6 + $0x50] sm:$0x1 pattern:$0x73625140] %v933_v27  ;;  %10135 = vmatprep.subr.bf16.mxu1 %v15182_v6  ;;  %v10515_v0 = vld [vmem:[#allocation4 + $0x30] ss:$12 sps:$4 sm:$0xff]  }
  0x1f   :  { %v964_v34 = vcombine.high %v954_v29, %v954_v29  ;;  %976 = vst [vmem:[%s15179_s6 + $0x20] sm:$0x1] %v962_v30  ;;  %9650 = vmatprep.subr.msk.bf16.mxu0 %vm85_vm1, %v12022_v23  ;;  %v10516_v1 = vld [vmem:[#allocation4 + $0x4c] ss:$12 sps:$4 sm:$0xff]   ;;  %v10518_v3 = vld [vmem:[#allocation4 + $0x48] ss:$12 sps:$4 sm:$0xff]  }
  0x20   :  { %v965_v35 = vcombine.high %v961_v32, %v961_v32  ;;  %980 = vst [vmem:[%s15179_s6 + $0x60] sm:$0x1] %v963_v33  ;;  %10132 = vmatmul.mubr.msk.bf16.vlgmr.msra.gmra.mrb[0].mxu1 %vm81_vm2, %v47_v26  ;;  %v10533_v2 = vld [vmem:[#allocation4 + $0x38] ss:$12 sps:$4 sm:$0xff]   ;;  %v10534_v7 = vld [vmem:[#allocation4 + $0x50] ss:$12 sps:$4 sm:$0xff]  }
  0x21   :  { %977 = vst [vmem:[%s15179_s6 + $0x30] sm:$0x1] %v964_v34  ;;  %9646 = vmatmul.mubr.msk.bf16.vlgmr.msra.gmra.mrb[0].mxu0 %vm81_vm2, %v47_v26  ;;  %10136 = vmatpush3.bf16.msra.mxu1 %v12039_v31  ;;  %v10519_v4 = vld [vmem:[#allocation4 + $0x64] ss:$12 sps:$4 sm:$0xff]   ;;  %v10521_v8 = vld [vmem:[#allocation4 + $0x60] ss:$12 sps:$4 sm:$0xff]  }
  0x22   :  { %193 = vmatpush1.bf16.msra.mxu0 %v12025_v24  ;;  %981 = vst [vmem:[%s15179_s6 + $0x70] sm:$0x1] %v965_v35  ;;  %224 = vmatprep.mubr.bf16.mxu0 %v15180_v9  ;;  %v10522_v10 = vld [vmem:[#allocation4 + $0x7c] ss:$12 sps:$4 sm:$0xff]   ;;  %v10524_v13 = vld [vmem:[#allocation4 + $0x78] ss:$12 sps:$4 sm:$0xff]  }
  0x23   :  { %10137 = vmatprep.mubr.msk.bf16.mxu1 %vm11945_vm0, %v15182_v6  ;;  %9655 = vmatprep.subr.msk.bf16.mxu0 %vm85_vm1, %v12022_v23  ;;  %v10535_v12 = vld [vmem:[#allocation4 + $0x68] ss:$12 sps:$4 sm:$0xff]   ;;  %v10536_v15 = vld [vmem:[#allocation4 + $0x80] ss:$12 sps:$4 sm:$0xff]   ;;  %v10527_v16 = vld [vmem:[#allocation4 + $0x90] ss:$12 sps:$4 sm:$0xff]  }
  0x24   :  { %10141 = vmatprep.subr.bf16.mxu1 %v15182_v6  ;;  %v10525_v14 = vld [vmem:[#allocation4 + $0x94] ss:$12 sps:$4 sm:$0xff]   ;;  %v10529_v17 = vld [vmem:[#allocation4 + $0xac] ss:$12 sps:$4 sm:$0xff]   ;;  %v10538_v20 = vld [vmem:[#allocation4 + $0xb0] ss:$12 sps:$4 sm:$0xff]  }
  0x25   :  { %v10537_v18 = vld [vmem:[#allocation4 + $0x98] ss:$12 sps:$4 sm:$0xff]   ;;  %v10531_v19 = vld [vmem:[#allocation4 + $0xa8] ss:$12 sps:$4 sm:$0xff]   ;;  %v11946_v21 = vmov 0.0|0.0   ;;  %v51_v22 = vsub.s32 0, %v11994_v5 }
  0x26   :  { %vm1715_vm7 = vcmask 1045509   ;;  %vm1718_vm8 = vcmask 1046534   ;;  %vm1721_vm9 = vcmask 1047559  }
  0x28   :  { %10138 = vmatmul.mubr.msk.bf16.vlgmr.msra.gmra.mrb[4].mxu1 %vm81_vm2, %v188_v38 }
  0x29   :  { %9651 = vmatmul.mubr.msk.bf16.vlgmr.msra.gmra.mrb[4].mxu0 %vm81_vm2, %v188_v38  ;;  %10142 = vmatpush3.bf16.msra.mxu1 %v12039_v31 }
  0x2a   :  { %291 = vmatpush1.bf16.msra.mxu0 %v12025_v24  ;;  %322 = vmatprep.mubr.bf16.mxu0 %v15180_v9 }
  0x2b   :  { %10143 = vmatprep.mubr.msk.bf16.mxu1 %vm11945_vm0, %v15182_v6  ;;  %9660 = vmatprep.subr.msk.bf16.mxu0 %vm85_vm1, %v12022_v23 }
  0x2c   :  { %10147 = vmatprep.subr.bf16.mxu1 %v15182_v6 }
  0x30   :  { %10144 = vmatmul.mubr.msk.bf16.vlgmr.msra.gmra.mrb[8].mxu1 %vm81_vm2, %v286_v41 }
  0x31   :  { %9656 = vmatmul.mubr.msk.bf16.vlgmr.msra.gmra.mrb[8].mxu0 %vm81_vm2, %v286_v41  ;;  %10148 = vmatpush3.bf16.msra.mxu1 %v12039_v31 }
  0x32   :  { %389 = vmatpush1.bf16.msra.mxu0 %v12025_v24  ;;  %420 = vmatprep.mubr.bf16.mxu0 %v15180_v9 }
  0x33   :  { %10149 = vmatprep.mubr.msk.bf16.mxu1 %vm11945_vm0, %v15182_v6  ;;  %9665 = vmatprep.subr.msk.bf16.mxu0 %vm85_vm1, %v12022_v23 }
  0x34   :  { %10153 = vmatprep.subr.bf16.mxu1 %v15182_v6 }
  0x38   :  { %10150 = vmatmul.mubr.msk.bf16.vlgmr.msra.gmra.mrb[12].mxu1 %vm81_vm2, %v384_v44 }
  0x39   :  { %9661 = vmatmul.mubr.msk.bf16.vlgmr.msra.gmra.mrb[12].mxu0 %vm81_vm2, %v384_v44  ;;  %10154 = vmatpush3.bf16.msra.mxu1 %v12039_v31 }
  0x3a   :  { %487 = vmatpush1.bf16.msra.mxu0 %v12025_v24  ;;  %518 = vmatprep.mubr.bf16.mxu0 %v15180_v9 }
  0x3b   :  { %10155 = vmatprep.mubr.msk.bf16.mxu1 %vm11945_vm0, %v15182_v6  ;;  %9670 = vmatprep.subr.msk.bf16.mxu0 %vm85_vm1, %v12022_v23 }
  0x3c   :  { %10159 = vmatprep.subr.bf16.mxu1 %v15182_v6 }
  0x40   :  { %10156 = vmatmul.mubr.msk.bf16.vlgmr.msra.gmra.mrb[16].mxu1 %vm81_vm2, %v482_v47 }
  0x41   :  { %9666 = vmatmul.mubr.msk.bf16.vlgmr.msra.gmra.mrb[16].mxu0 %vm81_vm2, %v482_v47  ;;  %10160 = vmatpush3.bf16.msra.mxu1 %v12039_v31 }
  0x42   :  { %585 = vmatpush1.bf16.msra.mxu0 %v12025_v24  ;;  %616 = vmatprep.mubr.bf16.mxu0 %v15180_v9 }
  0x43   :  { %10161 = vmatprep.mubr.msk.bf16.mxu1 %vm11945_vm0, %v15182_v6  ;;  %9675 = vmatprep.subr.msk.bf16.mxu0 %vm85_vm1, %v12022_v23 }
  0x44   :  { %10165 = vmatprep.subr.bf16.mxu1 %v15182_v6 }
  0x48   :  { %10162 = vmatmul.mubr.msk.bf16.vlgmr.msra.gmra.mrb[20].mxu1 %vm81_vm2, %v580_v50 }
  0x49   :  { %9671 = vmatmul.mubr.msk.bf16.vlgmr.msra.gmra.mrb[20].mxu0 %vm81_vm2, %v580_v50  ;;  %10166 = vmatpush3.bf16.msra.mxu1 %v12039_v31 }
  0x4a   :  { %683 = vmatpush1.bf16.msra.mxu0 %v12025_v24  ;;  %714 = vmatprep.mubr.bf16.mxu0 %v15180_v9 }
  0x4b   :  { %10167 = vmatprep.mubr.msk.bf16.mxu1 %vm11945_vm0, %v15182_v6  ;;  %9680 = vmatprep.subr.msk.bf16.mxu0 %vm85_vm1, %v12022_v23  ;;  %v44_v23 = vld [vmem:[%s15175_s2] sm:$0x7] }
  0x4c   :  { %10171 = vmatprep.subr.bf16.mxu1 %v15182_v6  ;;  %v12206_v26 = vrot.slane %v44_v23, %v51_v22  ;;  %v12210_v28 = vrot.slane %v44_v23, %v59_v25 }
  0x50   :  { %10168 = vmatmul.mubr.msk.bf16.vlgmr.msra.gmra.mrb[24].mxu1 %vm81_vm2, %v678_v53 }
  0x51   :  { %9676 = vmatmul.mubr.msk.bf16.vlgmr.msra.gmra.mrb[24].mxu0 %vm81_vm2, %v678_v53  ;;  %10172 = vmatpush3.bf16.msra.mxu1 %v12039_v31 }
  0x52   :  { %781 = vmatpush1.bf16.msra.mxu0 %v12025_v24  ;;  %812 = vmatprep.mubr.bf16.mxu0 %v15180_v9  ;;  %v55_v24 = vsub.s32 1, %v11994_v5 }
  0x53   :  { %1126 = vmatprep.subr.bf16.mxu0 %v12157_v54  ;;  %10173 = vmatprep.mubr.msk.bf16.mxu1 %vm11945_vm0, %v15182_v6 }
  0x54   :  { %10177 = vmatprep.subr.bf16.mxu1 %v15182_v6  ;;  %v12208_v27 = vrot.slane %v44_v23, %v55_v24 }
  0x58   :  { %10174 = vmatmul.mubr.msk.bf16.vlgmr.msra.gmra.mrb[28].mxu1 %vm81_vm2, %v776_v57 }
  0x59   :  { %9681 = vmatmul.mubr.msk.bf16.vlgmr.msra.gmra.mrb[28].mxu0 %vm81_vm2, %v776_v57  ;;  %10178 = vmatpush3.bf16.msra.mxu1 %v10528_v60 }
  0x5a   :  { %1127 = vmatpush1.bf16.msra.mxu0 %v10509_v58  ;;  %10179 = vmatprep.subr.bf16.mxu1 %v15182_v6 }
  0x5b   :  { %1128 = vmatprep.subr.bf16.mxu0 %v10510_v59  ;;  %1158 = vmatprep.mubr.bf16.mxu0 %v15180_v9 }
  0x5c   :  { %10193 = vmatprep.mubr.msk.bf16.mxu1 %vm11945_vm0, %v15182_v6 }
  0x5d   :  { %10180 = vmatpush3.bf16.msra.mxu1 %v10532_v63 }
  0x5e   :  { %1129 = vmatpush1.bf16.msra.mxu0 %v10512_v61  ;;  %10181 = vmatprep.subr.bf16.mxu1 %v15182_v6 }
  0x5f   :  { %1130 = vmatprep.subr.bf16.mxu0 %v10513_v62 }
  0x61   :  { %10182 = vmatpush3.bf16.msra.mxu1 %v10533_v2 }
  0x62   :  { %1131 = vmatpush1.bf16.msra.mxu0 %v10515_v0  ;;  %10183 = vmatprep.subr.bf16.mxu1 %v15182_v6 }
  0x63   :  { %1132 = vmatprep.subr.bf16.mxu0 %v10516_v1 }
  0x65   :  { %10184 = vmatpush3.bf16.msra.mxu1 %v10534_v7 }
  0x66   :  { %1133 = vmatpush1.bf16.msra.mxu0 %v10518_v3  ;;  %10185 = vmatprep.subr.bf16.mxu1 %v15182_v6 }
  0x67   :  { %1134 = vmatprep.subr.bf16.mxu0 %v10519_v4 }
  0x69   :  { %10186 = vmatpush3.bf16.msra.mxu1 %v10535_v12 }
  0x6a   :  { %1135 = vmatpush1.bf16.msra.mxu0 %v10521_v8  ;;  %10187 = vmatprep.subr.bf16.mxu1 %v15182_v6 }
  0x6b   :  { %1136 = vmatprep.subr.bf16.mxu0 %v10522_v10 }
  0x6d   :  { %10188 = vmatpush3.bf16.msra.mxu1 %v10536_v15 }
  0x6e   :  { %1137 = vmatpush1.bf16.msra.mxu0 %v10524_v13  ;;  %10189 = vmatprep.subr.bf16.mxu1 %v15182_v6 }
  0x6f   :  { %1138 = vmatprep.subr.bf16.mxu0 %v10525_v14 }
  0x71   :  { %10190 = vmatpush3.bf16.msra.mxu1 %v10537_v18 }
  0x72   :  { %1139 = vmatpush1.bf16.msra.mxu0 %v10527_v16  ;;  %10191 = vmatprep.subr.bf16.mxu1 %v15182_v6 }
  0x73   :  { %1140 = vmatprep.subr.bf16.mxu0 %v10529_v17 }
  0x75   :  { %10192 = vmatpush3.bf16.msra.mxu1 %v10538_v20 }
  0x76   :  { %1141 = vmatpush1.bf16.msra.mxu0 %v10531_v19  ;;  %10197 = vmatprep.subr.bf16.mxu1 %v15182_v6 }
  0x77   :  { %1725 = vmatprep.subr.bf16.mxu0 %v12157_v54 }
  0x78   :  { %10194 = vmatmul.mubr.bf16.vlgmr.msra.gmra.mrb[32].mxu1 %v11946_v21 }
  0x79   :  { %1159 = vmatmul.mubr.bf16.vlgmr.msra.gmra.mrb[32].mxu0 %v11946_v21  ;;  %10198 = vmatpush3.bf16.msra.mxu1 %v10528_v60 }
  0x7a   :  { %1726 = vmatpush1.bf16.msra.mxu0 %v10509_v58  ;;  %10199 = vmatprep.subr.bf16.mxu1 %v15182_v6 }
  0x7b   :  { %1727 = vmatprep.subr.bf16.mxu0 %v10510_v59  ;;  %1757 = vmatprep.mubr.bf16.mxu0 %v15180_v9 }
  0x7c   :  { %10213 = vmatprep.mubr.msk.bf16.mxu1 %vm11945_vm0, %v15182_v6 }
  0x7d   :  { %10200 = vmatpush3.bf16.msra.mxu1 %v10532_v63 }
  0x7e   :  { %1728 = vmatpush1.bf16.msra.mxu0 %v10512_v61  ;;  %10201 = vmatprep.subr.bf16.mxu1 %v15182_v6 }
  0x7f   :  { %1729 = vmatprep.subr.bf16.mxu0 %v10513_v62 }
  0x81   :  { %10202 = vmatpush3.bf16.msra.mxu1 %v10533_v2 }
  0x82   :  { %1730 = vmatpush1.bf16.msra.mxu0 %v10515_v0  ;;  %10203 = vmatprep.subr.bf16.mxu1 %v15182_v6 }
  0x83   :  { %1731 = vmatprep.subr.bf16.mxu0 %v10516_v1 }
  0x85   :  { %10204 = vmatpush3.bf16.msra.mxu1 %v10534_v7 }
  0x86   :  { %1732 = vmatpush1.bf16.msra.mxu0 %v10518_v3  ;;  %10205 = vmatprep.subr.bf16.mxu1 %v15182_v6 }
  0x87   :  { %1733 = vmatprep.subr.bf16.mxu0 %v10519_v4 }
  0x89   :  { %10206 = vmatpush3.bf16.msra.mxu1 %v10535_v12 }
  0x8a   :  { %1734 = vmatpush1.bf16.msra.mxu0 %v10521_v8  ;;  %10207 = vmatprep.subr.bf16.mxu1 %v15182_v6 }
  0x8b   :  { %1735 = vmatprep.subr.bf16.mxu0 %v10522_v10 }
  0x8d   :  { %10208 = vmatpush3.bf16.msra.mxu1 %v10536_v15 }
  0x8e   :  { %1736 = vmatpush1.bf16.msra.mxu0 %v10524_v13  ;;  %10209 = vmatprep.subr.bf16.mxu1 %v15182_v6 }
  0x8f   :  { %1737 = vmatprep.subr.bf16.mxu0 %v10525_v14 }
  0x91   :  { %10210 = vmatpush3.bf16.msra.mxu1 %v10537_v18 }
  0x92   :  { %1738 = vmatpush1.bf16.msra.mxu0 %v10527_v16  ;;  %10211 = vmatprep.subr.bf16.mxu1 %v15182_v6 }
  0x93   :  { %1739 = vmatprep.subr.bf16.mxu0 %v10529_v17 }
  0x95   :  { %10212 = vmatpush3.bf16.msra.mxu1 %v10538_v20 }
  0x96   :  { %1740 = vmatpush1.bf16.msra.mxu0 %v10531_v19  ;;  %10217 = vmatprep.subr.bf16.mxu1 %v15182_v6 }
  0x97   :  { %2253 = vmatprep.subr.bf16.mxu0 %v12157_v54 }
  0xf3   :  { %v172_v32 = vpop.f32.mrb[0].mxu1 }
  0xf4   :  { %v129_v29 = vpop.f32.mrb[0].mxu0  ;;  %v173_v34 = vadd.f32 %v172_v32, %v12210_v28  ;;  %v10133_v36 = vpop.f32.mrb[1].mxu1 }
  0xf5   :  { %v130_v30 = vadd.f32 %v129_v29, %v12206_v26  ;;  %v131_v31 = vpop.f32.mrb[1].mxu0  ;;  %v175_v38 = vpop.f32.mrb[2].mxu1 }
  0xf6   :  { %v132_v33 = vadd.f32 %v131_v31, %v12208_v27  ;;  %v133_v35 = vpop.f32.mrb[2].mxu0  ;;  %181 = vst [vmem:[#allocation2 + $0x10] sm:$0xff] %v173_v34  ;;  %v176_v40 = vadd.f32 %v175_v38, %v12210_v28  ;;  %v10134_v41 = vpop.f32.mrb[3].mxu1 }
  0xf7   :  { %179 = vst [vmem:[#allocation2] sm:$0xff] %v130_v30  ;;  %v134_v5 = vadd.f32 %v133_v35, %v12206_v26  ;;  %v135_v37 = vpop.f32.mrb[3].mxu0 }
  0xf8   :  { %180 = vst [vmem:[#allocation2 + $0x8] sm:$0xff] %v132_v33  ;;  %v136_v39 = vadd.f32 %v135_v37, %v12208_v27  ;;  %184 = vst [vmem:[#allocation2 + $0x28] sm:$0xff] %v176_v40 }
  0xf9   :  { %182 = vst [vmem:[#allocation2 + $0x18] sm:$0xff] %v134_v5 }
  0xfa   :  { %183 = vst [vmem:[#allocation2 + $0x20] sm:$0xff] %v136_v39 }
  0xfb   :  { %v269_v45 = vpop.f32.mrb[4].mxu1 }
  0xfc   :  { %v226_v42 = vpop.f32.mrb[4].mxu0  ;;  %v270_v47 = vadd.f32 %v269_v45, %v12210_v28  ;;  %v10139_v49 = vpop.f32.mrb[5].mxu1 }
  0xfd   :  { %v227_v43 = vadd.f32 %v226_v42, %v12206_v26  ;;  %v228_v44 = vpop.f32.mrb[5].mxu0  ;;  %v272_v52 = vpop.f32.mrb[6].mxu1 }
  0xfe   :  { %v229_v46 = vadd.f32 %v228_v44, %v12208_v27  ;;  %v230_v48 = vpop.f32.mrb[6].mxu0  ;;  %279 = vst [vmem:[#allocation2 + $0x40] sm:$0xff] %v270_v47  ;;  %v273_v54 = vadd.f32 %v272_v52, %v12210_v28  ;;  %v10140_v55 = vpop.f32.mrb[7].mxu1 }
  0xff   :  { %277 = vst [vmem:[#allocation2 + $0x30] sm:$0xff] %v227_v43  ;;  %v231_v50 = vadd.f32 %v230_v48, %v12206_v26  ;;  %v232_v51 = vpop.f32.mrb[7].mxu0 }
 0x100   :  { %278 = vst [vmem:[#allocation2 + $0x38] sm:$0xff] %v229_v46  ;;  %v233_v53 = vadd.f32 %v232_v51, %v12208_v27  ;;  %282 = vst [vmem:[#allocation2 + $0x58] sm:$0xff] %v273_v54 }
 0x101   :  { %280 = vst [vmem:[#allocation2 + $0x48] sm:$0xff] %v231_v50 }
 0x102   :  { %281 = vst [vmem:[#allocation2 + $0x50] sm:$0xff] %v233_v53 }
 0x103   :  { %v367_v59 = vpop.f32.mrb[8].mxu1 }
 0x104   :  { %v324_v56 = vpop.f32.mrb[8].mxu0  ;;  %v368_v61 = vadd.f32 %v367_v59, %v12210_v28  ;;  %v10145_v63 = vpop.f32.mrb[9].mxu1 }
 0x105   :  { %v325_v57 = vadd.f32 %v324_v56, %v12206_v26  ;;  %v326_v58 = vpop.f32.mrb[9].mxu0  ;;  %v370_v2 = vpop.f32.mrb[10].mxu1 }
 0x106   :  { %v327_v60 = vadd.f32 %v326_v58, %v12208_v27  ;;  %v328_v62 = vpop.f32.mrb[10].mxu0  ;;  %377 = vst [vmem:[#allocation2 + $0x70] sm:$0xff] %v368_v61  ;;  %v371_v4 = vadd.f32 %v370_v2, %v12210_v28  ;;  %v10146_v7 = vpop.f32.mrb[11].mxu1 }
 0x107   :  { %375 = vst [vmem:[#allocation2 + $0x60] sm:$0xff] %v325_v57  ;;  %v329_v0 = vadd.f32 %v328_v62, %v12206_v26  ;;  %v330_v1 = vpop.f32.mrb[11].mxu0 }
 0x108   :  { %376 = vst [vmem:[#allocation2 + $0x68] sm:$0xff] %v327_v60  ;;  %v331_v3 = vadd.f32 %v330_v1, %v12208_v27  ;;  %380 = vst [vmem:[#allocation2 + $0x88] sm:$0xff] %v371_v4 }
 0x109   :  { %378 = vst [vmem:[#allocation2 + $0x78] sm:$0xff] %v329_v0 }
 0x10a   :  { %379 = vst [vmem:[#allocation2 + $0x80] sm:$0xff] %v331_v3 }
 0x10b   :  { %v465_v13 = vpop.f32.mrb[12].mxu1 }
 0x10c   :  { %v422_v8 = vpop.f32.mrb[12].mxu0  ;;  %v466_v15 = vadd.f32 %v465_v13, %v12210_v28  ;;  %v10151_v17 = vpop.f32.mrb[13].mxu1 }
 0x10d   :  { %v423_v10 = vadd.f32 %v422_v8, %v12206_v26  ;;  %v424_v12 = vpop.f32.mrb[13].mxu0  ;;  %v468_v20 = vpop.f32.mrb[14].mxu1 }
 0x10e   :  { %v425_v14 = vadd.f32 %v424_v12, %v12208_v27  ;;  %v426_v16 = vpop.f32.mrb[14].mxu0  ;;  %475 = vst [vmem:[#allocation2 + $0xa0] sm:$0xff] %v466_v15  ;;  %v469_v22 = vadd.f32 %v468_v20, %v12210_v28  ;;  %v10152_v23 = vpop.f32.mrb[15].mxu1 }
 0x10f   :  { %473 = vst [vmem:[#allocation2 + $0x90] sm:$0xff] %v423_v10  ;;  %v427_v18 = vadd.f32 %v426_v16, %v12206_v26  ;;  %v428_v19 = vpop.f32.mrb[15].mxu0  ;;  %v12262_v23 = vld [vmem:[#allocation2 + $0x30] ss:$8 sm:$0x7] }
 0x110   :  { %474 = vst [vmem:[#allocation2 + $0x98] sm:$0xff] %v425_v14  ;;  %v429_v21 = vadd.f32 %v428_v19, %v12208_v27  ;;  %478 = vst [vmem:[#allocation2 + $0xb8] sm:$0xff] %v469_v22  ;;  %v12260_v22 = vld [vmem:[#allocation2] ss:$8 sm:$0x7] }
 0x111   :  { %476 = vst [vmem:[#allocation2 + $0xa8] sm:$0xff] %v427_v18 }
 0x112   :  { %477 = vst [vmem:[#allocation2 + $0xb0] sm:$0xff] %v429_v21 }
 0x113   :  { %v563_v30 = vpop.f32.mrb[16].mxu1 }
 0x114   :  { %v520_v24 = vpop.f32.mrb[16].mxu0  ;;  %v564_v32 = vadd.f32 %v563_v30, %v12210_v28  ;;  %v10157_v34 = vpop.f32.mrb[17].mxu1 }
 0x115   :  { %v521_v25 = vadd.f32 %v520_v24, %v12206_v26  ;;  %v522_v29 = vpop.f32.mrb[17].mxu0  ;;  %v566_v5 = vpop.f32.mrb[18].mxu1  ;;  %v12264_v24 = vld [vmem:[#allocation2 + $0x60] ss:$8 sm:$0x7] }
 0x116   :  { %v523_v31 = vadd.f32 %v522_v29, %v12208_v27  ;;  %v524_v33 = vpop.f32.mrb[18].mxu0  ;;  %573 = vst [vmem:[#allocation2 + $0xd0] sm:$0xff] %v564_v32  ;;  %v567_v38 = vadd.f32 %v566_v5, %v12210_v28  ;;  %v10158_v39 = vpop.f32.mrb[19].mxu1 }
 0x117   :  { %571 = vst [vmem:[#allocation2 + $0xc0] sm:$0xff] %v521_v25  ;;  %v525_v35 = vadd.f32 %v524_v33, %v12206_v26  ;;  %v526_v36 = vpop.f32.mrb[19].mxu0 }
 0x118   :  { %572 = vst [vmem:[#allocation2 + $0xc8] sm:$0xff] %v523_v31  ;;  %v527_v37 = vadd.f32 %v526_v36, %v12208_v27  ;;  %576 = vst [vmem:[#allocation2 + $0xe8] sm:$0xff] %v567_v38  ;;  %v1329_v38 = vrot.slane %v12260_v22, 1 }
 0x119   :  { %574 = vst [vmem:[#allocation2 + $0xd8] sm:$0xff] %v525_v35 }
 0x11a   :  { %575 = vst [vmem:[#allocation2 + $0xe0] sm:$0xff] %v527_v37 }
 0x11b   :  { %v661_v43 = vpop.f32.mrb[20].mxu1 }
 0x11c   :  { %v618_v40 = vpop.f32.mrb[20].mxu0  ;;  %v662_v45 = vadd.f32 %v661_v43, %v12210_v28  ;;  %v10163_v47 = vpop.f32.mrb[21].mxu1 }
 0x11d   :  { %v619_v41 = vadd.f32 %v618_v40, %v12206_v26  ;;  %v620_v42 = vpop.f32.mrb[21].mxu0  ;;  %v664_v50 = vpop.f32.mrb[22].mxu1 }
 0x11e   :  { %v621_v44 = vadd.f32 %v620_v42, %v12208_v27  ;;  %v622_v46 = vpop.f32.mrb[22].mxu0  ;;  %671 = vst [vmem:[#allocation2 + $0x100] sm:$0xff] %v662_v45  ;;  %v665_v52 = vadd.f32 %v664_v50, %v12210_v28  ;;  %v10164_v53 = vpop.f32.mrb[23].mxu1  ;;  %v1331_v42 = vrot.slane %v12264_v24, 1 }
 0x11f   :  { %669 = vst [vmem:[#allocation2 + $0xf0] sm:$0xff] %v619_v41  ;;  %v623_v48 = vadd.f32 %v622_v46, %v12206_v26  ;;  %v624_v49 = vpop.f32.mrb[23].mxu0  ;;  %v12272_v35 = vld [vmem:[#allocation2 + $0xc0] ss:$8 sm:$0x7]  ;;  %v1330_v41 = vrot.slane %v12262_v23, 1 }
 0x120   :  { %670 = vst [vmem:[#allocation2 + $0xf8] sm:$0xff] %v621_v44  ;;  %v625_v51 = vadd.f32 %v624_v49, %v12208_v27  ;;  %674 = vst [vmem:[#allocation2 + $0x118] sm:$0xff] %v665_v52 }
 0x121   :  { %672 = vst [vmem:[#allocation2 + $0x108] sm:$0xff] %v623_v48 }
 0x122   :  { %673 = vst [vmem:[#allocation2 + $0x110] sm:$0xff] %v625_v51  ;;  %v1333_v51 = vrot.slane %v12272_v35, 1 }
 0x123   :  { %v759_v57 = vpop.f32.mrb[24].mxu1 }
 0x124   :  { %v716_v54 = vpop.f32.mrb[24].mxu0  ;;  %v760_v59 = vadd.f32 %v759_v57, %v12210_v28  ;;  %v10169_v61 = vpop.f32.mrb[25].mxu1 }
 0x125   :  { %v717_v55 = vadd.f32 %v716_v54, %v12206_v26  ;;  %v718_v56 = vpop.f32.mrb[25].mxu0  ;;  %v762_v0 = vpop.f32.mrb[26].mxu1 }
 0x126   :  { %v719_v58 = vadd.f32 %v718_v56, %v12208_v27  ;;  %v720_v60 = vpop.f32.mrb[26].mxu0  ;;  %769 = vst [vmem:[#allocation2 + $0x130] sm:$0xff] %v760_v59  ;;  %v763_v2 = vadd.f32 %v762_v0, %v12210_v28  ;;  %v10170_v3 = vpop.f32.mrb[27].mxu1 }
 0x127   :  { %767 = vst [vmem:[#allocation2 + $0x120] sm:$0xff] %v717_v55  ;;  %v721_v62 = vadd.f32 %v720_v60, %v12206_v26  ;;  %v722_v63 = vpop.f32.mrb[27].mxu0  ;;  %v12286_v54 = vld [vmem:[#allocation2 + $0xf0] ss:$8 sm:$0x7] }
 0x128   :  { %768 = vst [vmem:[#allocation2 + $0x128] sm:$0xff] %v719_v58  ;;  %v723_v1 = vadd.f32 %v722_v63, %v12208_v27  ;;  %772 = vst [vmem:[#allocation2 + $0x148] sm:$0xff] %v763_v2 }
 0x129   :  { %770 = vst [vmem:[#allocation2 + $0x138] sm:$0xff] %v721_v62 }
 0x12a   :  { %771 = vst [vmem:[#allocation2 + $0x140] sm:$0xff] %v723_v1 }
 0x12b   :  { %v857_v10 = vpop.f32.mrb[28].mxu1 }
 0x12c   :  { %v814_v4 = vpop.f32.mrb[28].mxu0  ;;  %v858_v13 = vadd.f32 %v857_v10, %v12210_v28  ;;  %v10175_v15 = vpop.f32.mrb[29].mxu1 }
 0x12d   :  { %v815_v7 = vadd.f32 %v814_v4, %v12206_v26  ;;  %v816_v8 = vpop.f32.mrb[29].mxu0  ;;  %v860_v18 = vpop.f32.mrb[30].mxu1 }
 0x12e   :  { %v817_v12 = vadd.f32 %v816_v8, %v12208_v27  ;;  %v818_v14 = vpop.f32.mrb[30].mxu0  ;;  %867 = vst [vmem:[#allocation2 + $0x160] sm:$0xff] %v858_v13  ;;  %v861_v20 = vadd.f32 %v860_v18, %v12210_v28  ;;  %v10176_v21 = vpop.f32.mrb[31].mxu1 }
 0x12f   :  { %865 = vst [vmem:[#allocation2 + $0x150] sm:$0xff] %v815_v7  ;;  %v819_v16 = vadd.f32 %v818_v14, %v12206_v26  ;;  %v820_v17 = vpop.f32.mrb[31].mxu0  ;;  %v12266_v26 = vld [vmem:[#allocation2 + $0x90] ss:$8 sm:$0x7] }
 0x130   :  { %866 = vst [vmem:[#allocation2 + $0x158] sm:$0xff] %v817_v12  ;;  %v821_v19 = vadd.f32 %v820_v17, %v12208_v27  ;;  %870 = vst [vmem:[#allocation2 + $0x178] sm:$0xff] %v861_v20  ;;  %v1332_v43 = vrot.slane %v12266_v26, 1  ;;  %v12290_v59 = vld [vmem:[#allocation2 + $0x120] ss:$8 sm:$0x7] }
 0x131   :  { %868 = vst [vmem:[#allocation2 + $0x168] sm:$0xff] %v819_v16 }
 0x132   :  { %869 = vst [vmem:[#allocation2 + $0x170] sm:$0xff] %v821_v19 }
 0x137   :  { %v12295_v0 = vld [vmem:[#allocation2 + $0x150] ss:$8 sm:$0x7] }
 0x14b   :  { %v12269_v27 = vpop.f32.mrb[32].mxu1 }
 0x14c   :  { %v1160_v25 = vpop.f32.mrb[32].mxu0  ;;  %v10195_v34 = vpop.f32.mrb[33].mxu1 }
 0x14d   :  { %v1208_v29 = vcombine.high %v1160_v25, %v1160_v25  ;;  %v1215_v30 = vrot.slane %v1160_v25, %v12002_v11  ;;  %v1162_v31 = vpop.f32.mrb[33].mxu0  ;;  %v1204_v40 = vpop.f32.mrb[34].mxu1 }
 0x14e   :  { %v1346_v28 = vcombine.high %v1162_v31, %v1162_v31  ;;  %v1353_v32 = vrot.slane %v1162_v31, %v12002_v11  ;;  %v1164_v33 = vpop.f32.mrb[34].mxu0  ;;  %v10196_v45 = vpop.f32.mrb[35].mxu1  ;;  %v12305_v31 = vld [vmem:[%s15177_s4] ss:$0 sm:$0xff] }
 0x14f   :  { %v1222_v36 = vrot.slane %v1208_v29, %v12002_v11  ;;  %v1223_v5 = vcombine.high %v1215_v30, %v1215_v30  ;;  %v1231_v37 = vrot.slane %v1215_v30, %v12002_v11  ;;  %v1165_v39 = vpop.f32.mrb[35].mxu0  ;;  %v1335_v45 = vrot.slane %v12290_v59, 1 }
 0x150   :  { %v1361_v44 = vcombine.high %v1353_v32, %v1353_v32  ;;  %v1360_v52 = vrot.slane %v1346_v28, %v12002_v11  ;;  %v1369_v53 = vrot.slane %v1353_v32, %v12002_v11 }
 0x151   :  { %v1224_v46 = vcombine.high %v1222_v36, %v1222_v36  ;;  %v1238_v47 = vrot.slane %v1222_v36, %v12002_v11  ;;  %v1245_v48 = vrot.slane %v1223_v5, %v12002_v11  ;;  %v1253_v49 = vcombine.high %v1231_v37, %v1231_v37 }
 0x152   :  { %v1265_v50 = vadd.f32 %v1231_v37, %v12260_v22  ;;  %v1383_v63 = vrot.slane %v1361_v44, %v12002_v11  ;;  %v1362_v10 = vcombine.high %v1360_v52, %v1360_v52  ;;  %v1376_v15 = vrot.slane %v1360_v52, %v12002_v11 }
 0x153   :  { %v1252_v55 = vrot.slane %v1224_v46, %v12002_v11  ;;  %v1254_v56 = vcombine.high %v1238_v47, %v1238_v47  ;;  %v1255_v57 = vcombine.high %v1245_v48, %v1245_v48  ;;  %v1266_v58 = vadd.f32 %v1245_v48, %v12262_v23 }
 0x154   :  { %v1267_v60 = vadd.f32 %v1253_v49, %v12264_v24  ;;  %v1269_v61 = vadd.f32 %v1238_v47, %v12272_v35  ;;  %v9712_v62 = vmul.f32 -1.442695, %v1265_v50  ;;  %v1391_v17 = vcombine.high %v1369_v53, %v1369_v53 }
 0x155   :  { %v1256_v1 = vcombine.high %v1252_v55, %v1252_v55  ;;  %v1268_v2 = vadd.f32 %v1255_v57, %v12266_v26  ;;  %v1270_v3 = vadd.f32 %v1252_v55, %v12286_v54  ;;  %v1271_v4 = vadd.f32 %v1254_v56, %v12290_v59 }
 0x156   :  { %10539 = vpow2.f32 %v9712_v62  ;;  %v9713_v7 = vmul.f32 -1.442695, %v1266_v58  ;;  %v9714_v8 = vmul.f32 -1.442695, %v1267_v60  ;;  %v9716_v14 = vmul.f32 -1.442695, %v1269_v61 }
 0x157   :  { %v1272_v12 = vadd.f32 %v1256_v1, %v12295_v0  ;;  %v9715_v13 = vmul.f32 -1.442695, %v1268_v2  ;;  %v9717_v16 = vmul.f32 -1.442695, %v1270_v3  ;;  %v1393_v18 = vcombine.high %v1383_v63, %v1383_v63 }
 0x158   :  { %10541 = vpow2.f32 %v9713_v7  ;;  %v9718_v19 = vmul.f32 -1.442695, %v1271_v4  ;;  %v1403_v21 = vadd.f32 %v1369_v53, %v1329_v38  ;;  %v1404_v25 = vadd.f32 %v1383_v63, %v1330_v41 }
 0x159   :  { %10543 = vpow2.f32 %v9714_v8  ;;  %v9719_v20 = vmul.f32 -1.442695, %v1272_v12  ;;  %v1405_v29 = vadd.f32 %v1391_v17, %v1331_v42  ;;  %v1406_v30 = vadd.f32 %v1393_v18, %v1332_v43 }
 0x15a   :  { %10545 = vpow2.f32 %v9715_v13  ;;  %v1407_v28 = vadd.f32 %v1376_v15, %v1333_v51  ;;  %v9720_v32 = vmul.f32 -1.442695, %v1403_v21  ;;  %v9721_v33 = vmul.f32 -1.442695, %v1404_v25 }
 0x15b   :  { %10547 = vpow2.f32 %v9716_v14  ;;  %v9722_v34 = vmul.f32 -1.442695, %v1405_v29  ;;  %v1465_v36 = vadd.f32 %v12305_v31, %v12269_v27  ;;  %v1390_v5 = vrot.slane %v1362_v10, %v12002_v11 }
 0x15c   :  { %10549 = vpow2.f32 %v9717_v16  ;;  %v9723_v37 = vmul.f32 -1.442695, %v1406_v30  ;;  %v1392_v39 = vcombine.high %v1376_v15, %v1376_v15  ;;  %v9724_v40 = vmul.f32 -1.442695, %v1407_v28 }
 0x15d   :  { %10551 = vpow2.f32 %v9718_v19  ;;  %v1334_v42 = vrot.slane %v12286_v54, 1  ;;  %v1467_v43 = vcombine.high %v1465_v36, %v1465_v36  ;;  %v1394_v46 = vcombine.high %v1390_v5, %v1390_v5 }
 0x15e   :  { %10553 = vpow2.f32 %v9719_v20  ;;  %v1474_v27 = vrot.slane %v1465_v36, %v12002_v11  ;;  %v1336_v49 = vrot.slane %v12295_v0, 1  ;;  %v1409_v53 = vadd.f32 %v1392_v39, %v1335_v45 }
 0x15f   :  { %10555 = vpow2.f32 %v9720_v32  ;;  %v1408_v52 = vadd.f32 %v1390_v5, %v1334_v42  ;;  %v1481_v57 = vrot.slane %v1467_v43, %v12002_v11  ;;  %v1581_v19 = vcombine.high %v15182_v6, %v15182_v6 }
 0x160   :  { %v10540_v38 = vpop.eup %10539  ;;  %10557 = vpow2.f32 %v9721_v33  ;;  %v1410_v61 = vadd.f32 %v1394_v46, %v1336_v49  ;;  %v1482_v62 = vcombine.high %v1474_v27, %v1474_v27  ;;  %v9726_v7 = vmul.f32 -1.442695, %v1409_v53 }
 0x161   :  { %v1297_v41 = vadd.f32 1.0, %v10540_v38  ;;  %10559 = vpow2.f32 %v9722_v34  ;;  %v9725_v4 = vmul.f32 -1.442695, %v1408_v52  ;;  %v1483_v12 = vcombine.high %v1481_v57, %v1481_v57 }
 0x162   :  { %v10542_v44 = vpop.eup %10541  ;;  %10561 = vpow2.f32 %v9723_v37  ;;  %v1490_v13 = vrot.slane %v1474_v27, %v12002_v11  ;;  %v9727_v15 = vmul.f32 -1.442695, %v1410_v61  ;;  %v1504_v16 = vrot.slane %v1482_v62, %v12002_v11 }
 0x163   :  { %v10544_v47 = vpop.eup %10543  ;;  %v1298_v48 = vadd.f32 1.0, %v10542_v44  ;;  %10563 = vrcp.f32 %v1297_v41  ;;  %v1532_v21 = vrot.slane %v12260_v22, 2  ;;  %v1497_v29 = vrot.slane %v1481_v57, %v12002_v11 }
 0x164   :  { %v10546_v50 = vpop.eup %10545  ;;  %v1299_v51 = vadd.f32 1.0, %v10544_v47  ;;  %10565 = vpow2.f32 %v9724_v40  ;;  %v1511_v32 = vrot.slane %v1483_v12, %v12002_v11  ;;  %v1512_v33 = vcombine.high %v1490_v13, %v1490_v13 }
 0x165   :  { %v10548_v55 = vpop.eup %10547  ;;  %v1300_v56 = vadd.f32 1.0, %v10546_v50  ;;  %10567 = vrcp.f32 %v1298_v48  ;;  %v1514_v5 = vcombine.high %v1504_v16, %v1504_v16  ;;  %v1533_v39 = vrot.slane %v12262_v23, 2 }
 0x166   :  { %v10550_v58 = vpop.eup %10549  ;;  %v1301_v60 = vadd.f32 1.0, %v10548_v55  ;;  %10569 = vrcp.f32 %v1299_v51  ;;  %v1588_v22 = vrot.slane %v15182_v6, %v12002_v11  ;;  %v1534_v42 = vrot.slane %v12264_v24, 2 }
 0x167   :  { %v10552_v63 = vpop.eup %10551  ;;  %v1302_v1 = vadd.f32 1.0, %v10550_v58  ;;  %10571 = vrcp.f32 %v1300_v56  ;;  %v1535_v46 = vrot.slane %v12266_v26, 2  ;;  %v1513_v27 = vcombine.high %v1497_v29, %v1497_v29 }
 0x168   :  { %v10554_v2 = vpop.eup %10553  ;;  %v1303_v3 = vadd.f32 1.0, %v10552_v63  ;;  %10573 = vrcp.f32 %v1301_v60  ;;  %v1515_v23 = vcombine.high %v1511_v32, %v1511_v32  ;;  %v1536_v52 = vrot.slane %v12272_v35, 2 }
 0x169   :  { %v10556_v8 = vpop.eup %10555  ;;  %v1304_v10 = vadd.f32 1.0, %v10554_v2  ;;  %10575 = vrcp.f32 %v1302_v1  ;;  %v1595_v26 = vrot.slane %v1581_v19, %v12002_v11  ;;  %v1537_v63 = vrot.slane %v12286_v54, 2 }
 0x16a   :  { %v10558_v14 = vpop.eup %10557  ;;  %10577 = vrcp.f32 %v1303_v3  ;;  %v1435_v18 = vadd.f32 1.0, %v10556_v8  ;;  %v1596_v1 = vcombine.high %v1588_v22, %v1588_v22  ;;  %v1538_v3 = vrot.slane %v12290_v59, 2 }
 0x16b   :  { %v10560_v17 = vpop.eup %10559  ;;  %10579 = vrcp.f32 %v1304_v10  ;;  %v1436_v25 = vadd.f32 1.0, %v10558_v14  ;;  %v1539_v8 = vrot.slane %v12295_v0, 2  ;;  %v1597_v59 = vcombine.high %v1595_v26, %v1595_v26 }
 0x16c   :  { %v10562_v20 = vpop.eup %10561  ;;  %10581 = vpow2.f32 %v9725_v4  ;;  %v1437_v28 = vadd.f32 1.0, %v10560_v17  ;;  %v1618_v17 = vrot.slane %v1596_v1, %v12002_v11  ;;  %v1611_v0 = vrot.slane %v1595_v26, %v12002_v11 }
 0x16d   :  { %v10564_v30 = vpop.eup %10563  ;;  %10583 = vpow2.f32 %v9726_v7  ;;  %v1438_v36 = vadd.f32 1.0, %v10562_v20 }
 0x16e   :  { %v10566_v34 = vpop.eup %10565  ;;  %10585 = vpow2.f32 %v9727_v15  ;;  %v1524_v37 = vmul.f32 %v10564_v30, %v1490_v13  ;;  %v1604_v15 = vrot.slane %v1588_v22, %v12002_v11 }
 0x16f   :  { %v10568_v38 = vpop.eup %10567  ;;  %v1439_v40 = vadd.f32 1.0, %v10566_v34  ;;  %10587 = vrcp.f32 %v1435_v18 }
 0x170   :  { %v10570_v41 = vpop.eup %10569  ;;  %10589 = vrcp.f32 %v1436_v25  ;;  %v1525_v43 = vmul.f32 %v10568_v38, %v1504_v16  ;;  %v1548_v44 = vadd.f32 %v1532_v21, %v1524_v37 }
 0x171   :  { %v10572_v45 = vpop.eup %10571  ;;  %10591 = vrcp.f32 %v1437_v28  ;;  %v1526_v47 = vmul.f32 %v10570_v41, %v1512_v33  ;;  %v1625_v33 = vrot.slane %v1597_v59, %v12002_v11  ;;  %v1627_v41 = vcombine.high %v1611_v0, %v1611_v0 }
 0x172   :  { %v10574_v48 = vpop.eup %10573  ;;  %10593 = vrcp.f32 %v1438_v36  ;;  %v1527_v49 = vmul.f32 %v10572_v45, %v1514_v5  ;;  %v1549_v50 = vadd.f32 %v1533_v39, %v1525_v43 }
 0x173   :  { %v10576_v51 = vpop.eup %10575  ;;  %10595 = vrcp.f32 %v1439_v40  ;;  %v1528_v53 = vmul.f32 %v10574_v48, %v1497_v29  ;;  %v1550_v24 = vadd.f32 %v1534_v42, %v1526_v47  ;;  %v1626_v29 = vcombine.high %v1604_v15, %v1604_v15 }
 0x174   :  { %v10578_v55 = vpop.eup %10577  ;;  %v1529_v56 = vmul.f32 %v10576_v51, %v1511_v32  ;;  %v1551_v57 = vadd.f32 %v1535_v46, %v1527_v49  ;;  %10597 = vtanh.f32 %v1548_v44  ;;  %v1628_v32 = vcombine.high %v1618_v17, %v1618_v17 }
 0x175   :  { %v10580_v58 = vpop.eup %10579  ;;  %v1530_v60 = vmul.f32 %v10578_v55, %v1513_v27  ;;  %v1552_v61 = vadd.f32 %v1536_v52, %v1528_v53  ;;  %10599 = vtanh.f32 %v1549_v50  ;;  %v1629_v49 = vcombine.high %v1625_v33, %v1625_v33 }
 0x176   :  { %v10582_v62 = vpop.eup %10581  ;;  %v1531_v2 = vmul.f32 %v10580_v58, %v1515_v23  ;;  %10601 = vtanh.f32 %v1550_v24  ;;  %v1553_v12 = vadd.f32 %v1537_v63, %v1529_v56 }
 0x177   :  { %v10584_v35 = vpop.eup %10583  ;;  %v1440_v4 = vadd.f32 1.0, %v10582_v62  ;;  %10603 = vtanh.f32 %v1551_v57  ;;  %v1554_v54 = vadd.f32 %v1538_v3, %v1530_v60 }
 0x178   :  { %v10586_v7 = vpop.eup %10585  ;;  %v1441_v10 = vadd.f32 1.0, %v10584_v35  ;;  %10605 = vtanh.f32 %v1552_v61  ;;  %v1555_v18 = vadd.f32 %v1539_v8, %v1531_v2 }
 0x179   :  { %v10588_v13 = vpop.eup %10587  ;;  %v1442_v14 = vadd.f32 1.0, %v10586_v7  ;;  %10607 = vrcp.f32 %v1440_v4 }
 0x17a   :  { %v10590_v16 = vpop.eup %10589  ;;  %10609 = vrcp.f32 %v1441_v10  ;;  %v1564_v25 = vsub.f32 1.0, %v10588_v13  ;;  %v1638_v5 = vmul.f32 %v10588_v13, %v1604_v15 }
 0x17b   :  { %v10592_v19 = vpop.eup %10591  ;;  %10611 = vrcp.f32 %v1442_v14  ;;  %v1565_v28 = vsub.f32 1.0, %v10590_v16  ;;  %v1639_v40 = vmul.f32 %v10590_v16, %v1618_v17 }
 0x17c   :  { %v10594_v20 = vpop.eup %10593  ;;  %10613 = vtanh.f32 %v1553_v12  ;;  %v1566_v36 = vsub.f32 1.0, %v10592_v19  ;;  %v1640_v44 = vmul.f32 %v10592_v19, %v1626_v29 }
 0x17d   :  { %v10596_v21 = vpop.eup %10595  ;;  %10615 = vtanh.f32 %v1554_v54  ;;  %v1567_v39 = vsub.f32 1.0, %v10594_v20  ;;  %v1641_v47 = vmul.f32 %v10594_v20, %v1628_v32 }
 0x17e   :  { %v10598_v30 = vpop.eup %10597  ;;  %10617 = vtanh.f32 %v1555_v18  ;;  %v1568_v43 = vsub.f32 1.0, %v10596_v21  ;;  %v1642_v51 = vmul.f32 %v10596_v21, %v1611_v0 }
 0x17f   :  { %v10600_v34 = vpop.eup %10599  ;;  %v1572_v37 = vmul.f32 %v10598_v30, %v1564_v25 }
 0x180   :  { %v10602_v38 = vpop.eup %10601  ;;  %v1573_v22 = vmul.f32 %v10600_v34, %v1565_v28 }
 0x181   :  { %v10604_v42 = vpop.eup %10603  ;;  %v1574_v45 = vmul.f32 %v10602_v38, %v1566_v36  ;;  %v12336_v46 = vadd.f32 %v1638_v5, %v1572_v37 }
 0x182   :  { %v10606_v27 = vpop.eup %10605  ;;  %v1575_v48 = vmul.f32 %v10604_v42, %v1567_v39  ;;  %v12338_v23 = vadd.f32 %v1639_v40, %v1573_v22 }
 0x183   :  { %v10608_v50 = vpop.eup %10607  ;;  %v1576_v52 = vmul.f32 %v10606_v27, %v1568_v43  ;;  %v12340_v53 = vadd.f32 %v1640_v44, %v1574_v45  ;;  %1654 = vst [vmem:[%s15179_s6 + $0x1] sm:$0x1] %v12336_v46  ;;  %v1678_v56 = vpack.c.bf16 %v12336_v46, %v12336_v46  ;;  %v12407_v27 = vld [vmem:[#allocation4] ss:$12 sps:$4 sm:$0xff]  }
 0x184   :  { %v10610_v24 = vpop.eup %10609  ;;  %v12346_v55 = vadd.f32 %v1641_v47, %v1575_v48  ;;  %1655 = vst [vmem:[%s15179_s6 + $0x11] sm:$0x1] %v12338_v23  ;;  %v1679_v57 = vpack.c.bf16 %v12338_v23, %v12338_v23  ;;  %v1569_v26 = vsub.f32 1.0, %v10608_v50  ;;  %v1643_v61 = vmul.f32 %v10608_v50, %v1625_v33  ;;  %v12410_v47 = vld [vmem:[#allocation4 + $0x8] ss:$12 sps:$4 sm:$0xff]  }
 0x185   :  { %v10612_v58 = vpop.eup %10611  ;;  %v12356_v60 = vadd.f32 %v1642_v51, %v1576_v52  ;;  %1656 = vst [vmem:[%s15179_s6 + $0x21] sm:$0x1] %v12340_v53  ;;  %v1680_v62 = vpack.c.bf16 %v12340_v53, %v12340_v53  ;;  %v1570_v1 = vsub.f32 1.0, %v10610_v24  ;;  %v1644_v35 = vmul.f32 %v10610_v24, %v1627_v41  ;;  %v12413_v48 = vld [vmem:[#allocation4 + $0x1c] ss:$12 sps:$4 sm:$0xff]  }
 0x186   :  { %v10614_v63 = vpop.eup %10613  ;;  %1657 = vst [vmem:[%s15179_s6 + $0x31] sm:$0x1] %v12346_v55  ;;  %v1571_v2 = vsub.f32 1.0, %v10612_v58  ;;  %v1681_v3 = vpack.c.bf16 %v12346_v55, %v12346_v55  ;;  %v1695_v10 = vunpack.c.l.b16 %v1679_v57  ;;  %v1645_v15 = vmul.f32 %v10612_v58, %v1629_v49  ;;  %v12420_v49 = vld [vmem:[#allocation4 + $0x18] ss:$12 sps:$4 sm:$0xff]  }
 0x187   :  { %v10616_v4 = vpop.eup %10615  ;;  %v1577_v7 = vmul.f32 %v10614_v63, %v1569_v26  ;;  %1658 = vst [vmem:[%s15179_s6 + $0x41] sm:$0x1] %v12356_v60  ;;  %v1682_v8 = vpack.c.bf16 %v12356_v60, %v12356_v60  ;;  %v1696_v12 = vunpack.c.l.b16 %v1680_v62  ;;  %v1694_v54 = vunpack.c.l.b16 %v1678_v56  ;;  %v12423_v50 = vld [vmem:[#allocation4 + $0x20] ss:$12 sps:$4 sm:$0xff]   ;;  %v12430_v52 = vld [vmem:[#allocation4 + $0x30] ss:$12 sps:$4 sm:$0xff]  }
 0x188   :  { %v10618_v13 = vpop.eup %10617  ;;  %v1578_v14 = vmul.f32 %v10616_v4, %v1570_v1  ;;  %v1697_v16 = vunpack.c.l.b16 %v1681_v3  ;;  %v1702_v19 = vrot.slane %v1695_v10, 7  ;;  %v12426_v51 = vld [vmem:[#allocation4 + $0x34] ss:$12 sps:$4 sm:$0xff]   ;;  %v12433_v24 = vld [vmem:[#allocation4 + $0x38] ss:$12 sps:$4 sm:$0xff]  }
 0x189   :  { %v1579_v17 = vmul.f32 %v10618_v13, %v1571_v2  ;;  %v12376_v18 = vadd.f32 %v1643_v61, %v1577_v7  ;;  %v1698_v59 = vunpack.c.l.b16 %v1682_v8  ;;  %v1705_v0 = vrot.slane %v1696_v12, 6  ;;  %v12436_v56 = vld [vmem:[#allocation4 + $0x4c] ss:$12 sps:$4 sm:$0xff]   ;;  %v12440_v57 = vld [vmem:[#allocation4 + $0x48] ss:$12 sps:$4 sm:$0xff]  }
 0x18a   :  { %v12378_v20 = vadd.f32 %v1644_v35, %v1578_v14  ;;  %v1708_v21 = vrot.slane %v1697_v16, 5  ;;  %v1704_v30 = vsel %vm1703_vm3, %v1702_v19, %v1694_v54  ;;  %v12443_v58 = vld [vmem:[#allocation4 + $0x50] ss:$12 sps:$4 sm:$0xff]   ;;  %v12450_v61 = vld [vmem:[#allocation4 + $0x60] ss:$12 sps:$4 sm:$0xff]  }
 0x18b   :  { %v12380_v25 = vadd.f32 %v1645_v15, %v1579_v17  ;;  %1659 = vst [vmem:[%s15179_s6 + $0x51] sm:$0x1] %v12376_v18  ;;  %v1683_v29 = vpack.c.bf16 %v12376_v18, %v12376_v18  ;;  %v1707_v32 = vsel %vm1706_vm4, %v1705_v0, %v1704_v30  ;;  %v1711_v33 = vrot.slane %v1698_v59, 4  ;;  %v12446_v26 = vld [vmem:[#allocation4 + $0x64] ss:$12 sps:$4 sm:$0xff]  }
 0x18c   :  { %1660 = vst [vmem:[%s15179_s6 + $0x61] sm:$0x1] %v12378_v20  ;;  %v1684_v28 = vpack.c.bf16 %v12378_v20, %v12378_v20  ;;  %v1710_v5 = vsel %vm1709_vm5, %v1708_v21, %v1707_v32  ;;  %v12453_v62 = vld [vmem:[#allocation4 + $0x68] ss:$12 sps:$4 sm:$0xff]   ;;  %v12460_v1 = vld [vmem:[#allocation4 + $0x78] ss:$12 sps:$4 sm:$0xff]  }
 0x18d   :  { %1661 = vst [vmem:[%s15179_s6 + $0x71] sm:$0x1] %v12380_v25  ;;  %v1685_v34 = vpack.c.bf16 %v12380_v25, %v12380_v25  ;;  %v1699_v36 = vunpack.c.l.b16 %v1683_v29  ;;  %v1713_v38 = vsel %vm1712_vm6, %v1711_v33, %v1710_v5  ;;  %v12456_v63 = vld [vmem:[#allocation4 + $0x7c] ss:$12 sps:$4 sm:$0xff]   ;;  %15258 = vst [vmem:[#allocation7_spill] sm:$0xff] %v12460_v1 }
 0x18e   :  { %v1700_v37 = vunpack.c.l.b16 %v1684_v28  ;;  %v12463_v2 = vld [vmem:[#allocation4 + $0x80] ss:$12 sps:$4 sm:$0xff]   ;;  %v12470_v3 = vld [vmem:[#allocation4 + $0x90] ss:$12 sps:$4 sm:$0xff]   ;;  %v12473_v4 = vld [vmem:[#allocation4 + $0x98] ss:$12 sps:$4 sm:$0xff]  }
 0x18f   :  { %v1701_v39 = vunpack.c.l.b16 %v1685_v34  ;;  %v1714_v40 = vrot.slane %v1699_v36, 3  ;;  %15259 = vst [vmem:[#allocation8_spill] sm:$0xff] %v12463_v2  ;;  %v12466_v35 = vld [vmem:[#allocation4 + $0x94] ss:$12 sps:$4 sm:$0xff]   ;;  %15261 = vst [vmem:[#allocation10_spill] sm:$0xff] %v12470_v3 }
 0x190   :  { %v1717_v22 = vrot.slane %v1700_v37, 2  ;;  %15260 = vst [vmem:[#allocation9_spill] sm:$0xff] %v12466_v35  ;;  %15262 = vst [vmem:[#allocation11_spill] sm:$0xff] %v12473_v4  ;;  %v12476_v7 = vld [vmem:[#allocation4 + $0xac] ss:$12 sps:$4 sm:$0xff]  }
 0x191   :  { %v1716_v41 = vsel %vm1715_vm7, %v1714_v40, %v1713_v38  ;;  %v1720_v42 = vrot.slane %v1701_v39, 1  ;;  %15263 = vst [vmem:[#allocation12_spill] sm:$0xff] %v12476_v7  ;;  %v12480_v8 = vld [vmem:[#allocation4 + $0xa8] ss:$12 sps:$4 sm:$0xff]   ;;  %v12483_v10 = vld [vmem:[#allocation4 + $0xb0] ss:$12 sps:$4 sm:$0xff]  }
 0x192   :  { %v1719_v43 = vsel %vm1718_vm8, %v1717_v22, %v1716_v41  ;;  %15264 = vst [vmem:[#allocation13_spill] sm:$0xff] %v12480_v8  ;;  %15265 = vst [vmem:[#allocation14_spill] sm:$0xff] %v12483_v10  ;;  %v12486_v12 = vld [vmem:[#allocation4 + $0x4] ss:$12 sps:$4 sm:$0xff]  }
 0x193   :  { %v1722_v44 = vsel %vm1721_vm9, %v1720_v42, %v1719_v43  ;;  %15266 = vst [vmem:[#allocation15_spill] sm:$0xff] %v12486_v12  ;;  %v12493_v32 = vld [vmem:[#allocation2 + $0x1] ss:$8 sm:$0x7] }
 0x194   :  { %v1723_v45 = vpack.c.b16 %v1722_v44, %v1722_v44  ;;  %v12495_v33 = vld [vmem:[#allocation2 + $0x31] ss:$8 sm:$0x7] }
 0x195   :  { %v12499_v38 = vld [vmem:[#allocation2 + $0x61] ss:$8 sm:$0x7] }
 0x196   :  { %1758 = vmatmul.mubr.bf16.vlgmr.msra.gmra.mrb[36].mxu0 %v1723_v45  ;;  %10214 = vmatmul.mubr.bf16.vlgmr.msra.gmra.mrb[36].mxu1 %v1723_v45  ;;  %v12501_v39 = vld [vmem:[#allocation2 + $0x91] ss:$8 sm:$0x7] }
 0x197   :  { %2254 = vmatpush1.bf16.msra.mxu0 %v12407_v27  ;;  %10218 = vmatpush3.bf16.msra.mxu1 %v12410_v47  ;;  %v12505_v41 = vld [vmem:[#allocation2 + $0xc1] ss:$8 sm:$0x7] }
 0x198   :  { %2255 = vmatprep.subr.bf16.mxu0 %v12413_v48  ;;  %10219 = vmatprep.subr.bf16.mxu1 %v15182_v6  ;;  %v12507_v42 = vld [vmem:[#allocation2 + $0xf1] ss:$8 sm:$0x7] }
 0x199   :  { %2285 = vmatprep.mubr.bf16.mxu0 %v15180_v9  ;;  %10233 = vmatprep.mubr.msk.bf16.mxu1 %vm11945_vm0, %v15182_v6 }
 0x19b   :  { %2256 = vmatpush1.bf16.msra.mxu0 %v12420_v49  ;;  %10220 = vmatpush3.bf16.msra.mxu1 %v12423_v50 }
 0x19c   :  { %2257 = vmatprep.subr.bf16.mxu0 %v12426_v51  ;;  %10221 = vmatprep.subr.bf16.mxu1 %v15182_v6 }
 0x19f   :  { %2258 = vmatpush1.bf16.msra.mxu0 %v12430_v52  ;;  %10222 = vmatpush3.bf16.msra.mxu1 %v12433_v24 }
 0x1a0   :  { %2259 = vmatprep.subr.bf16.mxu0 %v12436_v56  ;;  %10223 = vmatprep.subr.bf16.mxu1 %v15182_v6 }
 0x1a3   :  { %2260 = vmatpush1.bf16.msra.mxu0 %v12440_v57  ;;  %10224 = vmatpush3.bf16.msra.mxu1 %v12443_v58 }
 0x1a4   :  { %2261 = vmatprep.subr.bf16.mxu0 %v12446_v26  ;;  %10225 = vmatprep.subr.bf16.mxu1 %v15182_v6 }
 0x1a7   :  { %2262 = vmatpush1.bf16.msra.mxu0 %v12450_v61  ;;  %10226 = vmatpush3.bf16.msra.mxu1 %v12453_v62 }
 0x1a8   :  { %2263 = vmatprep.subr.bf16.mxu0 %v12456_v63  ;;  %10227 = vmatprep.subr.bf16.mxu1 %v15182_v6 }
 0x1ab   :  { %2264 = vmatpush1.bf16.msra.mxu0 %v12460_v1  ;;  %10228 = vmatpush3.bf16.msra.mxu1 %v12463_v2 }
 0x1ac   :  { %2265 = vmatprep.subr.bf16.mxu0 %v12466_v35  ;;  %10229 = vmatprep.subr.bf16.mxu1 %v15182_v6 }
 0x1af   :  { %2266 = vmatpush1.bf16.msra.mxu0 %v12470_v3  ;;  %10230 = vmatpush3.bf16.msra.mxu1 %v12473_v4 }
 0x1b0   :  { %2267 = vmatprep.subr.bf16.mxu0 %v12476_v7  ;;  %10231 = vmatprep.subr.bf16.mxu1 %v15182_v6 }
 0x1b3   :  { %2268 = vmatpush1.bf16.msra.mxu0 %v12480_v8  ;;  %10232 = vmatpush3.bf16.msra.mxu1 %v12483_v10 }
 0x1b4   :  { %2781 = vmatprep.subr.bf16.mxu0 %v12486_v12  ;;  %10237 = vmatprep.subr.bf16.mxu1 %v15182_v6 }
 0x269   :  { %v1759_v13 = vpop.f32.mrb[36].mxu0  ;;  %v1800_v14 = vpop.f32.mrb[36].mxu1 }
 0x26a   :  { %v1807_v15 = vcombine.high %v1759_v13, %v1759_v13  ;;  %v1814_v54 = vrot.slane %v1759_v13, %v12002_v11  ;;  %v1761_v16 = vpop.f32.mrb[37].mxu0  ;;  %v10215_v17 = vpop.f32.mrb[37].mxu1 }
 0x26b   :  { %v1763_v59 = vpop.f32.mrb[38].mxu0  ;;  %v1803_v19 = vpop.f32.mrb[38].mxu1  ;;  %v1952_v22 = vrot.slane %v1761_v16, %v12002_v11 }
 0x26c   :  { %v1821_v0 = vrot.slane %v1807_v15, %v12002_v11  ;;  %v1822_v21 = vcombine.high %v1814_v54, %v1814_v54  ;;  %v1830_v29 = vrot.slane %v1814_v54, %v12002_v11  ;;  %v1764_v30 = vpop.f32.mrb[39].mxu0  ;;  %v10216_v28 = vpop.f32.mrb[39].mxu1  ;;  %v12511_v15 = vld [vmem:[#allocation2 + $0x121] ss:$8 sm:$0x7]  ;;  %v1945_v19 = vcombine.high %v1761_v16, %v1761_v16 }
 0x26d   :  { %v1960_v12 = vcombine.high %v1952_v22, %v1952_v22  ;;  %v1968_v16 = vrot.slane %v1952_v22, %v12002_v11  ;;  %v2058_v22 = vadd.f32 %v12305_v31, %v1800_v14  ;;  %v1933_v31 = vrot.slane %v12507_v42, 1 }
 0x26e   :  { %v1823_v34 = vcombine.high %v1821_v0, %v1821_v0  ;;  %v1837_v36 = vrot.slane %v1821_v0, %v12002_v11  ;;  %v1844_v5 = vrot.slane %v1822_v21, %v12002_v11  ;;  %v1852_v37 = vcombine.high %v1830_v29, %v1830_v29  ;;  %v12515_v0 = vld [vmem:[#allocation2 + $0x151] ss:$8 sm:$0x7] }
 0x26f   :  { %v1864_v40 = vadd.f32 %v1830_v29, %v12493_v32  ;;  %v1934_v14 = vrot.slane %v12511_v15, 1 }
 0x270   :  { %v1851_v43 = vrot.slane %v1823_v34, %v12002_v11  ;;  %v1853_v44 = vcombine.high %v1837_v36, %v1837_v36  ;;  %v1854_v45 = vcombine.high %v1844_v5, %v1844_v5  ;;  %v1865_v13 = vadd.f32 %v1844_v5, %v12495_v33 }
 0x271   :  { %v1866_v54 = vadd.f32 %v1852_v37, %v12499_v38  ;;  %v1868_v17 = vadd.f32 %v1837_v36, %v12505_v41  ;;  %v9729_v59 = vmul.f32 -1.442695, %v1864_v40 }
 0x272   :  { %v1855_v21 = vcombine.high %v1851_v43, %v1851_v43  ;;  %v1867_v29 = vadd.f32 %v1854_v45, %v12501_v39  ;;  %v1869_v30 = vadd.f32 %v1851_v43, %v12507_v42  ;;  %v1870_v28 = vadd.f32 %v1853_v44, %v12511_v15 }
 0x273   :  { %10619 = vpow2.f32 %v9729_v59  ;;  %v9730_v34 = vmul.f32 -1.442695, %v1865_v13  ;;  %v9731_v5 = vmul.f32 -1.442695, %v1866_v54  ;;  %v9733_v37 = vmul.f32 -1.442695, %v1868_v17 }
 0x274   :  { %v1871_v9 = vadd.f32 %v1855_v21, %v12515_v0  ;;  %v9732_v6 = vmul.f32 -1.442695, %v1867_v29  ;;  %v9734_v36 = vmul.f32 -1.442695, %v1869_v30  ;;  %v9735_v40 = vmul.f32 -1.442695, %v1870_v28 }
 0x275   :  { %10621 = vpow2.f32 %v9730_v34  ;;  %v1959_v45 = vrot.slane %v1945_v19, %v12002_v11  ;;  %v1928_v44 = vrot.slane %v12493_v32, 1  ;;  %v1982_v13 = vrot.slane %v1960_v12, %v12002_v11 }
 0x276   :  { %10623 = vpow2.f32 %v9731_v5  ;;  %v9736_v43 = vmul.f32 -1.442695, %v1871_v9  ;;  %v1929_v54 = vrot.slane %v12495_v33, 1  ;;  %v1930_v29 = vrot.slane %v12499_v38, 1 }
 0x277   :  { %10625 = vpow2.f32 %v9732_v6  ;;  %v2002_v17 = vadd.f32 %v1968_v16, %v1928_v44  ;;  %v1961_v59 = vcombine.high %v1959_v45, %v1959_v45  ;;  %v1931_v6 = vrot.slane %v12501_v39, 1 }
 0x278   :  { %10627 = vpow2.f32 %v9733_v37  ;;  %v2003_v21 = vadd.f32 %v1982_v13, %v1929_v54  ;;  %v1975_v19 = vrot.slane %v1959_v45, %v12002_v11  ;;  %v1990_v30 = vcombine.high %v1968_v16, %v1968_v16 }
 0x279   :  { %10629 = vpow2.f32 %v9734_v36  ;;  %v9737_v28 = vmul.f32 -1.442695, %v2002_v17  ;;  %v1932_v5 = vrot.slane %v12505_v41, 1  ;;  %v1989_v37 = vrot.slane %v1961_v59, %v12002_v11 }
 0x27a   :  { %10631 = vpow2.f32 %v9735_v40  ;;  %v9738_v12 = vmul.f32 -1.442695, %v2003_v21  ;;  %v1992_v36 = vcombine.high %v1982_v13, %v1982_v13  ;;  %v2067_v16 = vrot.slane %v2058_v22, %v12002_v11 }
 0x27b   :  { %10633 = vpow2.f32 %v9736_v43  ;;  %v2060_v43 = vcombine.high %v2058_v22, %v2058_v22  ;;  %v1935_v45 = vrot.slane %v12515_v0, 1  ;;  %v2004_v10 = vadd.f32 %v1990_v30, %v1930_v29 }
 0x27c   :  { %10635 = vpow2.f32 %v9737_v28  ;;  %v1993_v8 = vcombine.high %v1989_v37, %v1989_v37  ;;  %v2005_v7 = vadd.f32 %v1992_v36, %v1931_v6  ;;  %v2075_v35 = vcombine.high %v2067_v16, %v2067_v16 }
 0x27d   :  { %v10620_v9 = vpop.eup %10619  ;;  %v2074_v28 = vrot.slane %v2060_v43, %v12002_v11  ;;  %v2007_v2 = vadd.f32 %v1989_v37, %v1933_v31  ;;  %v9739_v30 = vmul.f32 -1.442695, %v2004_v10  ;;  %v2126_v10 = vrot.slane %v12495_v33, 2 }
 0x27e   :  { %v1896_v34 = vadd.f32 1.0, %v10620_v9  ;;  %v1991_v9 = vcombine.high %v1975_v19, %v1975_v19  ;;  %v9740_v6 = vmul.f32 -1.442695, %v2005_v7  ;;  %v2097_v43 = vrot.slane %v2075_v35, %v12002_v11 }
 0x27f   :  { %v10622_v40 = vpop.eup %10621 }
 0x280   :  { %v10624_v44 = vpop.eup %10623  ;;  %v1897_v54 = vadd.f32 1.0, %v10622_v40  ;;  %10637 = vrcp.f32 %v1896_v34  ;;  %v2006_v34 = vadd.f32 %v1975_v19, %v1932_v5  ;;  %v2008_v29 = vadd.f32 %v1991_v9, %v1934_v14 }
 0x281   :  { %v10626_v17 = vpop.eup %10625  ;;  %v1898_v21 = vadd.f32 1.0, %v10624_v44  ;;  %10639 = vpow2.f32 %v9738_v12  ;;  %v2083_v19 = vrot.slane %v2067_v16, %v12002_v11  ;;  %v9742_v5 = vmul.f32 -1.442695, %v2007_v2 }
 0x282   :  { %v10628_v13 = vpop.eup %10627  ;;  %v1899_v59 = vadd.f32 1.0, %v10626_v17  ;;  %10641 = vrcp.f32 %v1897_v54  ;;  %v2009_v54 = vadd.f32 %v1993_v8, %v1935_v45  ;;  %v9741_v36 = vmul.f32 -1.442695, %v2006_v34 }
 0x283   :  { %v10630_v4 = vpop.eup %10629  ;;  %v1900_v3 = vadd.f32 1.0, %v10628_v13  ;;  %10643 = vrcp.f32 %v1898_v21  ;;  %v2076_v17 = vcombine.high %v2074_v28, %v2074_v28  ;;  %v9743_v37 = vmul.f32 -1.442695, %v2008_v29 }
 0x284   :  { %v10632_v40 = vpop.eup %10631  ;;  %v1901_v22 = vadd.f32 1.0, %v10630_v4  ;;  %10645 = vrcp.f32 %v1899_v59  ;;  %v9744_v8 = vmul.f32 -1.442695, %v2009_v54  ;;  %v2090_v14 = vrot.slane %v2074_v28, %v12002_v11 }
 0x285   :  { %v10634_v44 = vpop.eup %10633  ;;  %v1902_v1 = vadd.f32 1.0, %v10632_v40  ;;  %10647 = vrcp.f32 %v1900_v3  ;;  %v2125_v3 = vrot.slane %v12493_v32, 2  ;;  %v2104_v16 = vrot.slane %v2076_v17, %v12002_v11 }
 0x286   :  { %v1903_v12 = vadd.f32 1.0, %v10634_v44  ;;  %10649 = vrcp.f32 %v1901_v22  ;;  %v10636_v4 = vpop.eup %10635  ;;  %v2105_v35 = vcombine.high %v2083_v19, %v2083_v19  ;;  %v2107_v13 = vcombine.high %v2097_v43, %v2097_v43 }
 0x287   :  { %10651 = vrcp.f32 %v1902_v1  ;;  %v2127_v1 = vrot.slane %v12499_v38, 2  ;;  %v2034_v21 = vadd.f32 1.0, %v10636_v4  ;;  %v2128_v34 = vrot.slane %v12501_v39, 2 }
 0x288   :  { %10653 = vrcp.f32 %v1903_v12  ;;  %v2129_v38 = vrot.slane %v12505_v41, 2  ;;  %v2130_v22 = vrot.slane %v12507_v42, 2  ;;  %v2106_v12 = vcombine.high %v2090_v14, %v2090_v14 }
 0x289   :  { %10655 = vpow2.f32 %v9739_v30  ;;  %v2108_v17 = vcombine.high %v2104_v16, %v2104_v16  ;;  %v2131_v41 = vrot.slane %v12511_v15, 2 }
 0x28a   :  { %v10638_v31 = vpop.eup %10637  ;;  %10657 = vpow2.f32 %v9740_v6 }
 0x28b   :  { %v10640_v7 = vpop.eup %10639  ;;  %v2117_v45 = vmul.f32 %v10638_v31, %v2083_v19  ;;  %10659 = vpow2.f32 %v9741_v36 }
 0x28c   :  { %v10642_v2 = vpop.eup %10641  ;;  %10661 = vpow2.f32 %v9742_v5 }
 0x28d   :  { %v10644_v9 = vpop.eup %10643  ;;  %v2118_v32 = vmul.f32 %v10642_v2, %v2097_v43  ;;  %v2141_v59 = vadd.f32 %v2125_v3, %v2117_v45  ;;  %10663 = vpow2.f32 %v9743_v37  ;;  %v2132_v37 = vrot.slane %v12515_v0, 2 }
 0x28e   :  { %v10646_v33 = vpop.eup %10645  ;;  %v2119_v40 = vmul.f32 %v10644_v9, %v2105_v35  ;;  %10665 = vpow2.f32 %v9744_v8 }
 0x28f   :  { %v10648_v28 = vpop.eup %10647  ;;  %v2120_v44 = vmul.f32 %v10646_v33, %v2107_v13  ;;  %v2142_v29 = vadd.f32 %v2126_v10, %v2118_v32  ;;  %10667 = vtanh.f32 %v2141_v59 }
 0x290   :  { %v10650_v30 = vpop.eup %10649  ;;  %v2121_v54 = vmul.f32 %v10648_v28, %v2090_v14  ;;  %v2143_v6 = vadd.f32 %v2127_v1, %v2119_v40  ;;  %10669 = vrcp.f32 %v2034_v21  ;;  %v2035_v1 = vadd.f32 1.0, %v10640_v7 }
 0x291   :  { %v10652_v36 = vpop.eup %10651  ;;  %v2122_v19 = vmul.f32 %v10650_v30, %v2104_v16  ;;  %v2144_v5 = vadd.f32 %v2128_v34, %v2120_v44  ;;  %10671 = vtanh.f32 %v2142_v29 }
 0x292   :  { %v10654_v39 = vpop.eup %10653  ;;  %v2123_v4 = vmul.f32 %v10652_v36, %v2106_v12  ;;  %v2145_v43 = vadd.f32 %v2129_v38, %v2121_v54  ;;  %10673 = vtanh.f32 %v2143_v6 }
 0x293   :  { %v10656_v42 = vpop.eup %10655  ;;  %v2124_v31 = vmul.f32 %v10654_v39, %v2108_v17  ;;  %v2146_v3 = vadd.f32 %v2130_v22, %v2122_v19  ;;  %10675 = vtanh.f32 %v2144_v5 }
 0x294   :  { %v10658_v10 = vpop.eup %10657  ;;  %v2147_v8 = vadd.f32 %v2131_v41, %v2123_v4  ;;  %10677 = vtanh.f32 %v2145_v43  ;;  %v2036_v2 = vadd.f32 1.0, %v10656_v42 }
 0x295   :  { %v10660_v14 = vpop.eup %10659  ;;  %v2148_v45 = vadd.f32 %v2132_v37, %v2124_v31  ;;  %10679 = vtanh.f32 %v2146_v3  ;;  %v2037_v15 = vadd.f32 1.0, %v10658_v10 }
 0x296   :  { %v10662_v16 = vpop.eup %10661  ;;  %10681 = vtanh.f32 %v2147_v8  ;;  %v2038_v21 = vadd.f32 1.0, %v10660_v14 }
 0x297   :  { %v10664_v35 = vpop.eup %10663  ;;  %10683 = vtanh.f32 %v2148_v45  ;;  %v2039_v13 = vadd.f32 1.0, %v10662_v16 }
 0x298   :  { %v10666_v9 = vpop.eup %10665  ;;  %10685 = vrcp.f32 %v2035_v1  ;;  %v2040_v32 = vadd.f32 1.0, %v10664_v35 }
 0x299   :  { %v10668_v0 = vpop.eup %10667  ;;  %10687 = vrcp.f32 %v2036_v2  ;;  %v2041_v33 = vadd.f32 1.0, %v10666_v9 }
 0x29a   :  { %v10670_v59 = vpop.eup %10669  ;;  %10689 = vrcp.f32 %v2037_v15 }
 0x29b   :  { %v10672_v7 = vpop.eup %10671  ;;  %10691 = vrcp.f32 %v2038_v21  ;;  %v2157_v34 = vsub.f32 1.0, %v10670_v59  ;;  %v2173_v22 = vmul.f32 %v10670_v59, %v12336_v46 }
 0x29c   :  { %v10674_v38 = vpop.eup %10673  ;;  %10693 = vrcp.f32 %v2039_v13 }
 0x29d   :  { %v10676_v40 = vpop.eup %10675  ;;  %10695 = vrcp.f32 %v2040_v32  ;;  %v2165_v28 = vmul.f32 %v10668_v0, %v2157_v34 }
 0x29e   :  { %v10678_v44 = vpop.eup %10677  ;;  %10697 = vrcp.f32 %v2041_v33 }
 0x29f   :  { %v10680_v29 = vpop.eup %10679  ;;  %v12550_v30 = vadd.f32 %v2173_v22, %v2165_v28 }
 0x2a0   :  { %v10682_v12 = vpop.eup %10681 }
 0x2a1   :  { %v10684_v54 = vpop.eup %10683  ;;  %2189 = vst [vmem:[%s15179_s6 + $0x2] sm:$0x1] %v12550_v30  ;;  %v2213_v43 = vpack.c.bf16 %v12550_v30, %v12550_v30 }
 0x2a2   :  { %v10686_v6 = vpop.eup %10685 }
 0x2a3   :  { %v10688_v36 = vpop.eup %10687  ;;  %v2158_v17 = vsub.f32 1.0, %v10686_v6  ;;  %v2174_v4 = vmul.f32 %v10686_v6, %v12338_v23 }
 0x2a4   :  { %v10690_v19 = vpop.eup %10689  ;;  %v2159_v5 = vsub.f32 1.0, %v10688_v36  ;;  %v2175_v3 = vmul.f32 %v10688_v36, %v12340_v53 }
 0x2a5   :  { %v10692_v39 = vpop.eup %10691  ;;  %v2160_v41 = vsub.f32 1.0, %v10690_v19  ;;  %v2166_v46 = vmul.f32 %v10672_v7, %v2158_v17  ;;  %v2176_v10 = vmul.f32 %v10690_v19, %v12346_v55 }
 0x2a6   :  { %v10694_v42 = vpop.eup %10693  ;;  %v2161_v37 = vsub.f32 1.0, %v10692_v39  ;;  %v2167_v31 = vmul.f32 %v10674_v38, %v2159_v5  ;;  %v2177_v45 = vmul.f32 %v10692_v39, %v12356_v60 }
 0x2a7   :  { %v10696_v8 = vpop.eup %10695  ;;  %v2162_v1 = vsub.f32 1.0, %v10694_v42  ;;  %v2168_v14 = vmul.f32 %v10676_v40, %v2160_v41  ;;  %v12562_v2 = vadd.f32 %v2174_v4, %v2166_v46  ;;  %v2178_v21 = vmul.f32 %v10694_v42, %v12376_v18 }
 0x2a8   :  { %v10698_v16 = vpop.eup %10697  ;;  %v2169_v15 = vmul.f32 %v10678_v44, %v2161_v37  ;;  %v12564_v23 = vadd.f32 %v2175_v3, %v2167_v31  ;;  %v2163_v35 = vsub.f32 1.0, %v10696_v8  ;;  %v2179_v9 = vmul.f32 %v10696_v8, %v12378_v20 }
 0x2a9   :  { %2190 = vst [vmem:[%s15179_s6 + $0x12] sm:$0x1] %v12562_v2  ;;  %v2164_v53 = vsub.f32 1.0, %v10698_v16  ;;  %v2170_v55 = vmul.f32 %v10680_v29, %v2162_v1  ;;  %v12572_v13 = vadd.f32 %v2176_v10, %v2168_v14  ;;  %v2214_v18 = vpack.c.bf16 %v12562_v2, %v12562_v2 }
 0x2aa   :  { %2191 = vst [vmem:[%s15179_s6 + $0x22] sm:$0x1] %v12564_v23  ;;  %v2171_v60 = vmul.f32 %v10682_v12, %v2163_v35  ;;  %v12578_v0 = vadd.f32 %v2177_v45, %v2169_v15  ;;  %v2215_v32 = vpack.c.bf16 %v12564_v23, %v12564_v23  ;;  %v2180_v33 = vmul.f32 %v10698_v16, %v12380_v25 }
 0x2ab   :  { %v2172_v59 = vmul.f32 %v10684_v54, %v2164_v53  ;;  %v12585_v20 = vadd.f32 %v2178_v21, %v2170_v55  ;;  %2192 = vst [vmem:[%s15179_s6 + $0x32] sm:$0x1] %v12572_v13  ;;  %v2216_v7 = vpack.c.bf16 %v12572_v13, %v12572_v13  ;;  %v2230_v38 = vunpack.c.l.b16 %v2214_v18 }
 0x2ac   :  { %v12593_v34 = vadd.f32 %v2179_v9, %v2171_v60  ;;  %2193 = vst [vmem:[%s15179_s6 + $0x42] sm:$0x1] %v12578_v0  ;;  %v2217_v25 = vpack.c.bf16 %v12578_v0, %v12578_v0  ;;  %v2231_v40 = vunpack.c.l.b16 %v2215_v32  ;;  %v2229_v44 = vunpack.c.l.b16 %v2213_v43  ;;  %v12668_v32 = vld [vmem:[#allocation2 + $0x2] ss:$8 sm:$0x7] }
 0x2ad   :  { %v12601_v28 = vadd.f32 %v2180_v33, %v2172_v59  ;;  %2194 = vst [vmem:[%s15179_s6 + $0x52] sm:$0x1] %v12585_v20  ;;  %v2218_v22 = vpack.c.bf16 %v12585_v20, %v12585_v20  ;;  %v2232_v29 = vunpack.c.l.b16 %v2216_v7  ;;  %v2237_v6 = vrot.slane %v2230_v38, 7  ;;  %v12670_v59 = vld [vmem:[#allocation2 + $0x32] ss:$8 sm:$0x7] }
 0x2ae   :  { %2195 = vst [vmem:[%s15179_s6 + $0x62] sm:$0x1] %v12593_v34  ;;  %v2219_v12 = vpack.c.bf16 %v12593_v34, %v12593_v34  ;;  %v2233_v54 = vunpack.c.l.b16 %v2217_v25  ;;  %v2239_v36 = vrot.slane %v2231_v40, 6  ;;  %v15267_v16 = vmov 0.0  }
 0x2af   :  { %2196 = vst [vmem:[%s15179_s6 + $0x72] sm:$0x1] %v12601_v28  ;;  %v2220_v17 = vpack.c.bf16 %v12601_v28, %v12601_v28  ;;  %v2234_v19 = vunpack.c.l.b16 %v2218_v22  ;;  %v2241_v5 = vrot.slane %v2232_v29, 5  ;;  %v2238_v41 = vsel %vm1703_vm3, %v2237_v6, %v2229_v44  ;;  %v12674_v40 = vld [vmem:[#allocation2 + $0x62] ss:$8 sm:$0x7] }
 0x2b0   :  { %v2235_v39 = vunpack.c.l.b16 %v2219_v12  ;;  %v2240_v4 = vsel %vm1706_vm4, %v2239_v36, %v2238_v41  ;;  %v2243_v43 = vrot.slane %v2233_v54, 4  ;;  %v15268_v15 = vmov 0   ;;  %v12676_v22 = vld [vmem:[#allocation2 + $0x92] ss:$8 sm:$0x7] }
 0x2b1   :  { %v2236_v46 = vunpack.c.l.b16 %v2220_v17  ;;  %v2242_v42 = vsel %vm1709_vm5, %v2241_v5, %v2240_v4  ;;  %v2245_v37 = vrot.slane %v2234_v19, 3  ;;  %v12680_v12 = vld [vmem:[#allocation2 + $0xc2] ss:$8 sm:$0x7] }
 0x2b2   :  { %v2244_v31 = vsel %vm1712_vm6, %v2243_v43, %v2242_v42  ;;  %v2247_v3 = vrot.slane %v2235_v39, 2  ;;  %v12682_v54 = vld [vmem:[#allocation2 + $0xf2] ss:$8 sm:$0x7] }
 0x2b3   :  { %v2246_v10 = vsel %vm1715_vm7, %v2245_v37, %v2244_v31  ;;  %v2249_v8 = vrot.slane %v2236_v46, 1  ;;  %v12686_v5 = vld [vmem:[#allocation2 + $0x122] ss:$8 sm:$0x7] }
 0x2b4   :  { %v2248_v1 = vsel %vm1718_vm8, %v2247_v3, %v2246_v10  ;;  %v12690_v43 = vld [vmem:[#allocation2 + $0x152] ss:$8 sm:$0x7] }
 0x2b5   :  { %v2250_v14 = vsel %vm1721_vm9, %v2249_v8, %v2248_v1 }
 0x2b6   :  { %v2251_v45 = vpack.c.b16 %v2250_v14, %v2250_v14 }
 0x2b8   :  { %2286 = vmatmul.mubr.bf16.vlgmr.msra.gmra.mrb[40].mxu0 %v2251_v45  ;;  %10234 = vmatmul.mubr.bf16.vlgmr.msra.gmra.mrb[40].mxu1 %v2251_v45 }
 0x2b9   :  { %2782 = vmatpush1.bf16.msra.mxu0 %v12407_v27  ;;  %10238 = vmatpush3.bf16.msra.mxu1 %v12410_v47  ;;  %v15269_v27 = vld [vmem:[#allocation7_spill] sm:$0xff]  ;;  %v15270_v47 = vld [vmem:[#allocation8_spill] sm:$0xff] }
 0x2ba   :  { %2783 = vmatprep.subr.bf16.mxu0 %v12413_v48  ;;  %10239 = vmatprep.subr.bf16.mxu1 %v15267_v16  ;;  %v15271_v48 = vld [vmem:[#allocation9_spill] sm:$0xff] }
 0x2bb   :  { %2813 = vmatprep.mubr.bf16.mxu0 %v15268_v15  ;;  %10253 = vmatprep.mubr.msk.bf16.mxu1 %vm11945_vm0, %v15267_v16 }
 0x2bd   :  { %2784 = vmatpush1.bf16.msra.mxu0 %v12420_v49  ;;  %10240 = vmatpush3.bf16.msra.mxu1 %v12423_v50  ;;  %v15272_v49 = vld [vmem:[#allocation10_spill] sm:$0xff]  ;;  %v15273_v50 = vld [vmem:[#allocation11_spill] sm:$0xff] }
 0x2be   :  { %2785 = vmatprep.subr.bf16.mxu0 %v12426_v51  ;;  %10241 = vmatprep.subr.bf16.mxu1 %v15267_v16  ;;  %v15274_v51 = vld [vmem:[#allocation12_spill] sm:$0xff] }
 0x2c1   :  { %2786 = vmatpush1.bf16.msra.mxu0 %v12430_v52  ;;  %10242 = vmatpush3.bf16.msra.mxu1 %v12433_v24  ;;  %v15275_v52 = vld [vmem:[#allocation13_spill] sm:$0xff]  ;;  %v15276_v24 = vld [vmem:[#allocation14_spill] sm:$0xff] }
 0x2c2   :  { %2787 = vmatprep.subr.bf16.mxu0 %v12436_v56  ;;  %10243 = vmatprep.subr.bf16.mxu1 %v15267_v16  ;;  %v15277_v56 = vld [vmem:[#allocation15_spill] sm:$0xff] }
 0x2c5   :  { %2788 = vmatpush1.bf16.msra.mxu0 %v12440_v57  ;;  %10244 = vmatpush3.bf16.msra.mxu1 %v12443_v58 }
 0x2c6   :  { %2789 = vmatprep.subr.bf16.mxu0 %v12446_v26  ;;  %10245 = vmatprep.subr.bf16.mxu1 %v15267_v16 }
 0x2c9   :  { %2790 = vmatpush1.bf16.msra.mxu0 %v12450_v61  ;;  %10246 = vmatpush3.bf16.msra.mxu1 %v12453_v62 }
 0x2ca   :  { %2791 = vmatprep.subr.bf16.mxu0 %v12456_v63  ;;  %10247 = vmatprep.subr.bf16.mxu1 %v15267_v16 }
 0x2cd   :  { %2792 = vmatpush1.bf16.msra.mxu0 %v15269_v27  ;;  %10248 = vmatpush3.bf16.msra.mxu1 %v15270_v47 }
 0x2ce   :  { %2793 = vmatprep.subr.bf16.mxu0 %v15271_v48  ;;  %10249 = vmatprep.subr.bf16.mxu1 %v15267_v16 }
 0x2d1   :  { %2794 = vmatpush1.bf16.msra.mxu0 %v15272_v49  ;;  %10250 = vmatpush3.bf16.msra.mxu1 %v15273_v50 }
 0x2d2   :  { %2795 = vmatprep.subr.bf16.mxu0 %v15274_v51  ;;  %10251 = vmatprep.subr.bf16.mxu1 %v15267_v16 }
 0x2d5   :  { %2796 = vmatpush1.bf16.msra.mxu0 %v15275_v52  ;;  %10252 = vmatpush3.bf16.msra.mxu1 %v15276_v24  ;;  %v2456_v52 = vrot.slane %v12668_v32, 1 }
 0x2d6   :  { %3309 = vmatprep.subr.bf16.mxu0 %v15277_v56  ;;  %10257 = vmatprep.subr.bf16.mxu1 %v15267_v16  ;;  %v2457_v56 = vrot.slane %v12670_v59, 1 }
 0x38b   :  { %v2287_v57 = vpop.f32.mrb[40].mxu0  ;;  %v12663_v58 = vpop.f32.mrb[40].mxu1 }
 0x38c   :  { %v2335_v26 = vcombine.high %v2287_v57, %v2287_v57  ;;  %v2342_v61 = vrot.slane %v2287_v57, %v12002_v11  ;;  %v2289_v62 = vpop.f32.mrb[41].mxu0  ;;  %v10235_v63 = vpop.f32.mrb[41].mxu1 }
 0x38d   :  { %v2291_v35 = vpop.f32.mrb[42].mxu0  ;;  %v2331_v21 = vpop.f32.mrb[42].mxu1  ;;  %v2480_v29 = vrot.slane %v2289_v62, %v12002_v11  ;;  %v2473_v4 = vcombine.high %v2289_v62, %v2289_v62 }
 0x38e   :  { %v2349_v53 = vrot.slane %v2335_v26, %v12002_v11  ;;  %v2350_v55 = vcombine.high %v2342_v61, %v2342_v61  ;;  %v2358_v9 = vrot.slane %v2342_v61, %v12002_v11  ;;  %v2292_v60 = vpop.f32.mrb[43].mxu0  ;;  %v10236_v18 = vpop.f32.mrb[43].mxu1  ;;  %v12704_v61 = vld [vmem:[%s15177_s4] ss:$0 sm:$0xff]  ;;  %v2458_v35 = vrot.slane %v12674_v40, 1 }
 0x38f   :  { %v2488_v27 = vcombine.high %v2480_v29, %v2480_v29  ;;  %v2496_v48 = vrot.slane %v2480_v29, %v12002_v11  ;;  %v2487_v50 = vrot.slane %v2473_v4, %v12002_v11  ;;  %v2586_v62 = vadd.f32 %v12704_v61, %v12663_v58 }
 0x390   :  { %v2351_v33 = vcombine.high %v2349_v53, %v2349_v53  ;;  %v2365_v7 = vrot.slane %v2349_v53, %v12002_v11  ;;  %v2372_v25 = vrot.slane %v2350_v55, %v12002_v11  ;;  %v2380_v38 = vcombine.high %v2358_v9, %v2358_v9 }
 0x391   :  { %v2392_v44 = vadd.f32 %v2358_v9, %v12668_v32  ;;  %v2510_v24 = vrot.slane %v2488_v27, %v12002_v11  ;;  %v2530_v57 = vadd.f32 %v2496_v48, %v2456_v52  ;;  %v2489_v26 = vcombine.high %v2487_v50, %v2487_v50 }
 0x392   :  { %v2379_v6 = vrot.slane %v2351_v33, %v12002_v11  ;;  %v2381_v36 = vcombine.high %v2365_v7, %v2365_v7  ;;  %v2382_v17 = vcombine.high %v2372_v25, %v2372_v25  ;;  %v2393_v19 = vadd.f32 %v2372_v25, %v12670_v59 }
 0x393   :  { %v2394_v39 = vadd.f32 %v2380_v38, %v12674_v40  ;;  %v2396_v41 = vadd.f32 %v2365_v7, %v12680_v12  ;;  %v9745_v46 = vmul.f32 -1.442695, %v2392_v44  ;;  %v2531_v63 = vadd.f32 %v2510_v24, %v2457_v56 }
 0x394   :  { %v2383_v42 = vcombine.high %v2379_v6, %v2379_v6  ;;  %v2395_v37 = vadd.f32 %v2382_v17, %v12676_v22  ;;  %v2397_v31 = vadd.f32 %v2379_v6, %v12682_v54  ;;  %v2398_v3 = vadd.f32 %v2381_v36, %v12686_v5 }
 0x395   :  { %10699 = vpow2.f32 %v9745_v46  ;;  %v9746_v10 = vmul.f32 -1.442695, %v2393_v19  ;;  %v9747_v8 = vmul.f32 -1.442695, %v2394_v39  ;;  %v9749_v45 = vmul.f32 -1.442695, %v2396_v41 }
 0x396   :  { %v2399_v1 = vadd.f32 %v2383_v42, %v12690_v43  ;;  %v9748_v14 = vmul.f32 -1.442695, %v2395_v37  ;;  %v9750_v47 = vmul.f32 -1.442695, %v2397_v31  ;;  %v9751_v49 = vmul.f32 -1.442695, %v2398_v3 }
 0x397   :  { %10701 = vpow2.f32 %v9746_v10  ;;  %v2459_v21 = vrot.slane %v12676_v22, 1  ;;  %v2503_v55 = vrot.slane %v2487_v50, %v12002_v11  ;;  %v2518_v9 = vcombine.high %v2496_v48, %v2496_v48 }
 0x398   :  { %10703 = vpow2.f32 %v9747_v8  ;;  %v9752_v51 = vmul.f32 -1.442695, %v2399_v1  ;;  %v9753_v60 = vmul.f32 -1.442695, %v2530_v57  ;;  %v9754_v18 = vmul.f32 -1.442695, %v2531_v63 }
 0x399   :  { %10705 = vpow2.f32 %v9748_v14  ;;  %v2460_v7 = vrot.slane %v12680_v12, 1  ;;  %v2517_v25 = vrot.slane %v2489_v26, %v12002_v11  ;;  %v2520_v38 = vcombine.high %v2510_v24, %v2510_v24 }
 0x39a   :  { %10707 = vpow2.f32 %v9749_v45  ;;  %v2588_v29 = vcombine.high %v2586_v62, %v2586_v62  ;;  %v2461_v58 = vrot.slane %v12682_v54, 1  ;;  %v2462_v6 = vrot.slane %v12686_v5, 1 }
 0x39b   :  { %10709 = vpow2.f32 %v9750_v47  ;;  %v2595_v19 = vrot.slane %v2586_v62, %v12002_v11  ;;  %v2463_v39 = vrot.slane %v12690_v43, 1  ;;  %v2519_v4 = vcombine.high %v2503_v55, %v2503_v55 }
 0x39c   :  { %10711 = vpow2.f32 %v9751_v49  ;;  %v2532_v42 = vadd.f32 %v2518_v9, %v2458_v35  ;;  %v2521_v3 = vcombine.high %v2517_v25, %v2517_v25  ;;  %v2533_v10 = vadd.f32 %v2520_v38, %v2459_v21 }
 0x39d   :  { %10713 = vpow2.f32 %v9752_v51  ;;  %v2602_v14 = vrot.slane %v2588_v29, %v12002_v11  ;;  %v2534_v45 = vadd.f32 %v2503_v55, %v2460_v7  ;;  %v2603_v48 = vcombine.high %v2595_v19, %v2595_v19 }
 0x39e   :  { %10715 = vpow2.f32 %v9753_v60  ;;  %v2535_v49 = vadd.f32 %v2517_v25, %v2461_v58  ;;  %v2536_v52 = vadd.f32 %v2519_v4, %v2462_v6  ;;  %v9755_v24 = vmul.f32 -1.442695, %v2532_v42 }
 0x39f   :  { %v10700_v53 = vpop.eup %10699  ;;  %v2537_v57 = vadd.f32 %v2521_v3, %v2463_v39  ;;  %v9756_v26 = vmul.f32 -1.442695, %v2533_v10  ;;  %v9757_v62 = vmul.f32 -1.442695, %v2534_v45  ;;  %v2604_v63 = vcombine.high %v2602_v14, %v2602_v14 }
 0x3a0   :  { %v2424_v33 = vadd.f32 1.0, %v10700_v53  ;;  %v2611_v35 = vrot.slane %v2595_v19, %v12002_v11  ;;  %v9758_v21 = vmul.f32 -1.442695, %v2535_v49  ;;  %v2625_v55 = vrot.slane %v2603_v48, %v12002_v11 }
 0x3a1   :  { %v10702_v44 = vpop.eup %10701  ;;  %v9759_v9 = vmul.f32 -1.442695, %v2536_v52  ;;  %v9760_v7 = vmul.f32 -1.442695, %v2537_v57  ;;  %v2655_v38 = vrot.slane %v12674_v40, 2  ;;  %v2632_v6 = vrot.slane %v2604_v63, %v12002_v11 }
 0x3a2   :  { %v10704_v36 = vpop.eup %10703  ;;  %v2425_v17 = vadd.f32 1.0, %v10702_v44  ;;  %10717 = vrcp.f32 %v2424_v33  ;;  %v2654_v33 = vrot.slane %v12670_v59, 2  ;;  %v2618_v44 = vrot.slane %v2602_v14, %v12002_v11 }
 0x3a3   :  { %v10706_v41 = vpop.eup %10705  ;;  %v2426_v46 = vadd.f32 1.0, %v10704_v36  ;;  %10719 = vpow2.f32 %v9754_v18  ;;  %v2653_v18 = vrot.slane %v12668_v32, 2  ;;  %v2633_v36 = vcombine.high %v2611_v35, %v2611_v35 }
 0x3a4   :  { %v10708_v37 = vpop.eup %10707  ;;  %v2427_v31 = vadd.f32 1.0, %v10706_v41  ;;  %10721 = vrcp.f32 %v2425_v17  ;;  %v2635_v39 = vcombine.high %v2625_v55, %v2625_v55  ;;  %v2657_v40 = vrot.slane %v12680_v12, 2 }
 0x3a5   :  { %v10710_v8 = vpop.eup %10709  ;;  %v2428_v1 = vadd.f32 1.0, %v10708_v37  ;;  %10723 = vrcp.f32 %v2426_v46  ;;  %v2656_v46 = vrot.slane %v12676_v22, 2  ;;  %v2658_v37 = vrot.slane %v12682_v54, 2 }
 0x3a6   :  { %v10712_v27 = vpop.eup %10711  ;;  %v2429_v47 = vadd.f32 1.0, %v10710_v8  ;;  %10725 = vrcp.f32 %v2427_v31  ;;  %v2634_v8 = vcombine.high %v2618_v44, %v2618_v44  ;;  %v2659_v12 = vrot.slane %v12686_v5, 2 }
 0x3a7   :  { %v10714_v50 = vpop.eup %10713  ;;  %v2430_v51 = vadd.f32 1.0, %v10712_v27  ;;  %10727 = vrcp.f32 %v2428_v1  ;;  %v2636_v27 = vcombine.high %v2632_v6, %v2632_v6 }
 0x3a8   :  { %v2431_v56 = vadd.f32 1.0, %v10714_v50  ;;  %10729 = vrcp.f32 %v2429_v47  ;;  %v10716_v53 = vpop.eup %10715 }
 0x3a9   :  { %10731 = vrcp.f32 %v2430_v51  ;;  %v2562_v17 = vadd.f32 1.0, %v10716_v53  ;;  %v2660_v51 = vrot.slane %v12690_v43, 2 }
 0x3aa   :  { %10733 = vrcp.f32 %v2431_v56 }
 0x3ab   :  { %10735 = vpow2.f32 %v9755_v24 }
 0x3ac   :  { %v10718_v60 = vpop.eup %10717  ;;  %10737 = vpow2.f32 %v9756_v26 }
 0x3ad   :  { %v10720_v25 = vpop.eup %10719  ;;  %v2645_v29 = vmul.f32 %v10718_v60, %v2611_v35  ;;  %10739 = vpow2.f32 %v9757_v62 }
 0x3ae   :  { %v10722_v58 = vpop.eup %10721  ;;  %10741 = vpow2.f32 %v9758_v21  ;;  %v2563_v26 = vadd.f32 1.0, %v10720_v25 }
 0x3af   :  { %v10724_v19 = vpop.eup %10723  ;;  %v2646_v32 = vmul.f32 %v10722_v58, %v2625_v55  ;;  %v2669_v41 = vadd.f32 %v2653_v18, %v2645_v29  ;;  %10743 = vpow2.f32 %v9759_v9 }
 0x3b0   :  { %v10726_v59 = vpop.eup %10725  ;;  %v2647_v4 = vmul.f32 %v10724_v19, %v2633_v36  ;;  %10745 = vpow2.f32 %v9760_v7 }
 0x3b1   :  { %v10728_v42 = vpop.eup %10727  ;;  %v2648_v31 = vmul.f32 %v10726_v59, %v2635_v39  ;;  %v2670_v3 = vadd.f32 %v2654_v33, %v2646_v32  ;;  %10747 = vtanh.f32 %v2669_v41 }
 0x3b2   :  { %v10730_v10 = vpop.eup %10729  ;;  %v2649_v1 = vmul.f32 %v10728_v42, %v2618_v44  ;;  %v2671_v14 = vadd.f32 %v2655_v38, %v2647_v4  ;;  %10749 = vrcp.f32 %v2562_v17 }
 0x3b3   :  { %v10732_v45 = vpop.eup %10731  ;;  %v2650_v47 = vmul.f32 %v10730_v10, %v2632_v6  ;;  %v2672_v48 = vadd.f32 %v2656_v46, %v2648_v31  ;;  %10751 = vtanh.f32 %v2670_v3 }
 0x3b4   :  { %v10734_v22 = vpop.eup %10733  ;;  %v2651_v49 = vmul.f32 %v10732_v45, %v2634_v8  ;;  %v2673_v50 = vadd.f32 %v2657_v40, %v2649_v1  ;;  %10753 = vtanh.f32 %v2671_v14 }
 0x3b5   :  { %v10736_v54 = vpop.eup %10735  ;;  %v2652_v52 = vmul.f32 %v10734_v22, %v2636_v27  ;;  %v2674_v24 = vadd.f32 %v2658_v37, %v2650_v47  ;;  %10755 = vtanh.f32 %v2672_v48 }
 0x3b6   :  { %v10738_v56 = vpop.eup %10737  ;;  %v2675_v57 = vadd.f32 %v2659_v12, %v2651_v49  ;;  %10757 = vtanh.f32 %v2673_v50  ;;  %v2564_v35 = vadd.f32 1.0, %v10736_v54 }
 0x3b7   :  { %v10740_v62 = vpop.eup %10739  ;;  %v2676_v63 = vadd.f32 %v2660_v51, %v2652_v52  ;;  %10759 = vtanh.f32 %v2674_v24  ;;  %v2565_v5 = vadd.f32 1.0, %v10738_v56 }
 0x3b8   :  { %v10742_v21 = vpop.eup %10741  ;;  %10761 = vtanh.f32 %v2675_v57  ;;  %v2566_v55 = vadd.f32 1.0, %v10740_v62 }
 0x3b9   :  { %v10744_v53 = vpop.eup %10743  ;;  %10763 = vtanh.f32 %v2676_v63  ;;  %v2567_v60 = vadd.f32 1.0, %v10742_v21 }
 0x3ba   :  { %v10746_v9 = vpop.eup %10745  ;;  %10765 = vrcp.f32 %v2563_v26  ;;  %v2568_v18 = vadd.f32 1.0, %v10744_v53 }
 0x3bb   :  { %v10748_v43 = vpop.eup %10747  ;;  %10767 = vrcp.f32 %v2564_v35  ;;  %v2569_v7 = vadd.f32 1.0, %v10746_v9 }
 0x3bc   :  { %v10750_v33 = vpop.eup %10749  ;;  %10769 = vrcp.f32 %v2565_v5 }
 0x3bd   :  { %v10752_v25 = vpop.eup %10751  ;;  %10771 = vrcp.f32 %v2566_v55  ;;  %v2685_v38 = vsub.f32 1.0, %v10750_v33  ;;  %v2701_v6 = vmul.f32 %v10750_v33, %v12550_v30 }
 0x3be   :  { %v10754_v44 = vpop.eup %10753  ;;  %10773 = vrcp.f32 %v2567_v60 }
 0x3bf   :  { %v10756_v29 = vpop.eup %10755  ;;  %10775 = vrcp.f32 %v2568_v18  ;;  %v2693_v58 = vmul.f32 %v10748_v43, %v2685_v38 }
 0x3c0   :  { %v10758_v36 = vpop.eup %10757  ;;  %10777 = vrcp.f32 %v2569_v7 }
 0x3c1   :  { %v10760_v17 = vpop.eup %10759  ;;  %v12731_v19 = vadd.f32 %v2701_v6, %v2693_v58 }
 0x3c2   :  { %v10762_v39 = vpop.eup %10761 }
 0x3c3   :  { %v10764_v32 = vpop.eup %10763  ;;  %2717 = vst [vmem:[%s15179_s6 + $0x3] sm:$0x1] %v12731_v19  ;;  %v2741_v3 = vpack.c.bf16 %v12731_v19, %v12731_v19 }
 0x3c4   :  { %v10766_v41 = vpop.eup %10765 }
 0x3c5   :  { %v10768_v59 = vpop.eup %10767  ;;  %v2686_v46 = vsub.f32 1.0, %v10766_v41  ;;  %v2702_v31 = vmul.f32 %v10766_v41, %v12562_v2  ;;  %v2757_v9 = vunpack.c.l.b16 %v2741_v3  ;;  %v12815_v3 = vld [vmem:[#allocation4 + $0x1c] ss:$12 sps:$4 sm:$0xff]  }
 0x3c6   :  { %v10770_v40 = vpop.eup %10769  ;;  %v2687_v4 = vsub.f32 1.0, %v10768_v59  ;;  %v2703_v14 = vmul.f32 %v10768_v59, %v12564_v23 }
 0x3c7   :  { %v10772_v42 = vpop.eup %10771  ;;  %v2688_v37 = vsub.f32 1.0, %v10770_v40  ;;  %v2694_v30 = vmul.f32 %v10752_v25, %v2686_v46  ;;  %v2704_v45 = vmul.f32 %v10770_v40, %v12572_v13 }
 0x3c8   :  { %v10774_v10 = vpop.eup %10773  ;;  %v2689_v8 = vsub.f32 1.0, %v10772_v42  ;;  %v2695_v1 = vmul.f32 %v10754_v44, %v2687_v4  ;;  %v2705_v22 = vmul.f32 %v10772_v42, %v12578_v0 }
 0x3c9   :  { %v10776_v27 = vpop.eup %10775  ;;  %v2690_v47 = vsub.f32 1.0, %v10774_v10  ;;  %v2696_v48 = vmul.f32 %v10756_v29, %v2688_v37  ;;  %v12743_v12 = vadd.f32 %v2702_v31, %v2694_v30  ;;  %v2706_v51 = vmul.f32 %v10774_v10, %v12585_v20  ;;  %v12809_v30 = vld [vmem:[#allocation4] ss:$12 sps:$4 sm:$0xff]   ;;  %v12812_v31 = vld [vmem:[#allocation4 + $0x8] ss:$12 sps:$4 sm:$0xff]  }
 0x3ca   :  { %v10778_v49 = vpop.eup %10777  ;;  %v2697_v50 = vmul.f32 %v10758_v36, %v2689_v8  ;;  %v12745_v2 = vadd.f32 %v2703_v14, %v2695_v1  ;;  %v2691_v54 = vsub.f32 1.0, %v10776_v27  ;;  %v2707_v52 = vmul.f32 %v10776_v27, %v12593_v34  ;;  %v12822_v10 = vld [vmem:[#allocation4 + $0x18] ss:$12 sps:$4 sm:$0xff]   ;;  %v12825_v8 = vld [vmem:[#allocation4 + $0x20] ss:$12 sps:$4 sm:$0xff]  }
 0x3cb   :  { %2718 = vst [vmem:[%s15179_s6 + $0x13] sm:$0x1] %v12743_v12  ;;  %v2692_v23 = vsub.f32 1.0, %v10778_v49  ;;  %v2698_v13 = vmul.f32 %v10760_v17, %v2690_v47  ;;  %v12753_v24 = vadd.f32 %v2704_v45, %v2696_v48  ;;  %v2742_v20 = vpack.c.bf16 %v12743_v12, %v12743_v12  ;;  %v12828_v1 = vld [vmem:[#allocation4 + $0x34] ss:$12 sps:$4 sm:$0xff]  }
 0x3cc   :  { %2719 = vst [vmem:[%s15179_s6 + $0x23] sm:$0x1] %v12745_v2  ;;  %v2699_v0 = vmul.f32 %v10762_v39, %v2691_v54  ;;  %v12759_v56 = vadd.f32 %v2705_v22, %v2697_v50  ;;  %v2743_v57 = vpack.c.bf16 %v12745_v2, %v12745_v2  ;;  %v2708_v62 = vmul.f32 %v10778_v49, %v12601_v28  ;;  %v12832_v14 = vld [vmem:[#allocation4 + $0x30] ss:$12 sps:$4 sm:$0xff]   ;;  %v12835_v45 = vld [vmem:[#allocation4 + $0x38] ss:$12 sps:$4 sm:$0xff]  }
 0x3cd   :  { %v2700_v26 = vmul.f32 %v10764_v32, %v2692_v23  ;;  %v12766_v34 = vadd.f32 %v2706_v51, %v2698_v13  ;;  %2720 = vst [vmem:[%s15179_s6 + $0x33] sm:$0x1] %v12753_v24  ;;  %v2744_v63 = vpack.c.bf16 %v12753_v24, %v12753_v24  ;;  %v2758_v21 = vunpack.c.l.b16 %v2742_v20  ;;  %v12838_v27 = vld [vmem:[#allocation4 + $0x4c] ss:$12 sps:$4 sm:$0xff]   ;;  %v12842_v47 = vld [vmem:[#allocation4 + $0x48] ss:$12 sps:$4 sm:$0xff]  }
 0x3ce   :  { %v12774_v35 = vadd.f32 %v2707_v52, %v2699_v0  ;;  %2721 = vst [vmem:[%s15179_s6 + $0x43] sm:$0x1] %v12759_v56  ;;  %v2745_v28 = vpack.c.bf16 %v12759_v56, %v12759_v56  ;;  %v2759_v5 = vunpack.c.l.b16 %v2743_v57  ;;  %v12845_v48 = vld [vmem:[#allocation4 + $0x50] ss:$12 sps:$4 sm:$0xff]   ;;  %v12852_v49 = vld [vmem:[#allocation4 + $0x60] ss:$12 sps:$4 sm:$0xff]  }
 0x3cf   :  { %v12782_v53 = vadd.f32 %v2708_v62, %v2700_v26  ;;  %2722 = vst [vmem:[%s15179_s6 + $0x53] sm:$0x1] %v12766_v34  ;;  %v2746_v55 = vpack.c.bf16 %v12766_v34, %v12766_v34  ;;  %v2760_v60 = vunpack.c.l.b16 %v2744_v63  ;;  %v2765_v33 = vrot.slane %v2758_v21, 7  ;;  %v12848_v22 = vld [vmem:[#allocation4 + $0x64] ss:$12 sps:$4 sm:$0xff]  }
 0x3d0   :  { %2723 = vst [vmem:[%s15179_s6 + $0x63] sm:$0x1] %v12774_v35  ;;  %v2747_v43 = vpack.c.bf16 %v12774_v35, %v12774_v35  ;;  %v2761_v18 = vunpack.c.l.b16 %v2745_v28  ;;  %v2767_v7 = vrot.slane %v2759_v5, 6  ;;  %v12855_v50 = vld [vmem:[#allocation4 + $0x68] ss:$12 sps:$4 sm:$0xff]  }
 0x3d1   :  { %2724 = vst [vmem:[%s15179_s6 + $0x73] sm:$0x1] %v12782_v53  ;;  %v2748_v25 = vpack.c.bf16 %v12782_v53, %v12782_v53  ;;  %v2762_v38 = vunpack.c.l.b16 %v2746_v55  ;;  %v2769_v44 = vrot.slane %v2760_v60, 5  ;;  %v2766_v58 = vsel %vm1703_vm3, %v2765_v33, %v2757_v9  ;;  %15278 = vst [vmem:[#allocation7_spill] sm:$0xff] %v12855_v50  ;;  %v12858_v54 = vld [vmem:[#allocation4 + $0x7c] ss:$12 sps:$4 sm:$0xff]  }
 0x3d2   :  { %v2763_v29 = vunpack.c.l.b16 %v2747_v43  ;;  %v2768_v36 = vsel %vm1706_vm4, %v2767_v7, %v2766_v58  ;;  %v2771_v17 = vrot.slane %v2761_v18, 4  ;;  %15279 = vst [vmem:[#allocation8_spill] sm:$0xff] %v12858_v54  ;;  %v12862_v51 = vld [vmem:[#allocation4 + $0x78] ss:$12 sps:$4 sm:$0xff]   ;;  %v12865_v23 = vld [vmem:[#allocation4 + $0x80] ss:$12 sps:$4 sm:$0xff]  }
 0x3d3   :  { %v2764_v6 = vunpack.c.l.b16 %v2748_v25  ;;  %v2770_v39 = vsel %vm1709_vm5, %v2769_v44, %v2768_v36  ;;  %v2773_v32 = vrot.slane %v2762_v38, 3  ;;  %15280 = vst [vmem:[#allocation9_spill] sm:$0xff] %v12862_v51  ;;  %15281 = vst [vmem:[#allocation10_spill] sm:$0xff] %v12865_v23  ;;  %v12868_v13 = vld [vmem:[#allocation4 + $0x94] ss:$12 sps:$4 sm:$0xff]  }
 0x3d4   :  { %v2772_v41 = vsel %vm1712_vm6, %v2771_v17, %v2770_v39  ;;  %v2775_v59 = vrot.slane %v2763_v29, 2  ;;  %15282 = vst [vmem:[#allocation11_spill] sm:$0xff] %v12868_v13  ;;  %v12872_v52 = vld [vmem:[#allocation4 + $0x90] ss:$12 sps:$4 sm:$0xff]   ;;  %v12875_v0 = vld [vmem:[#allocation4 + $0x98] ss:$12 sps:$4 sm:$0xff]  }
 0x3d5   :  { %v2774_v46 = vsel %vm1715_vm7, %v2773_v32, %v2772_v41  ;;  %v2777_v40 = vrot.slane %v2764_v6, 1  ;;  %15283 = vst [vmem:[#allocation12_spill] sm:$0xff] %v12872_v52  ;;  %15284 = vst [vmem:[#allocation13_spill] sm:$0xff] %v12875_v0  ;;  %v12878_v20 = vld [vmem:[#allocation4 + $0xac] ss:$12 sps:$4 sm:$0xff]  }
 0x3d6   :  { %v2776_v4 = vsel %vm1718_vm8, %v2775_v59, %v2774_v46  ;;  %15285 = vst [vmem:[#allocation14_spill] sm:$0xff] %v12878_v20  ;;  %v12882_v57 = vld [vmem:[#allocation4 + $0xa8] ss:$12 sps:$4 sm:$0xff]   ;;  %v12885_v26 = vld [vmem:[#allocation4 + $0xb0] ss:$12 sps:$4 sm:$0xff]  }
 0x3d7   :  { %v2778_v42 = vsel %vm1721_vm9, %v2777_v40, %v2776_v4  ;;  %15286 = vst [vmem:[#allocation15_spill] sm:$0xff] %v12882_v57  ;;  %15287 = vst [vmem:[#allocation16_spill] sm:$0xff] %v12885_v26  ;;  %v12888_v62 = vld [vmem:[#allocation4 + $0x4] ss:$12 sps:$4 sm:$0xff]  }
 0x3d8   :  { %v2779_v37 = vpack.c.b16 %v2778_v42, %v2778_v42  ;;  %15288 = vst [vmem:[#allocation17_spill] sm:$0xff] %v12888_v62  ;;  %v12895_v44 = vld [vmem:[#allocation2 + $0x3] ss:$8 sm:$0x7] }
 0x3d9   :  { %v12897_v29 = vld [vmem:[#allocation2 + $0x33] ss:$8 sm:$0x7] }
 0x3da   :  { %2814 = vmatmul.mubr.bf16.vlgmr.msra.gmra.mrb[44].mxu0 %v2779_v37  ;;  %10254 = vmatmul.mubr.bf16.vlgmr.msra.gmra.mrb[44].mxu1 %v2779_v37  ;;  %v12901_v39 = vld [vmem:[#allocation2 + $0x63] ss:$8 sm:$0x7] }
 0x3db   :  { %3310 = vmatpush1.bf16.msra.mxu0 %v12809_v30  ;;  %10258 = vmatpush3.bf16.msra.mxu1 %v12812_v31  ;;  %v12903_v32 = vld [vmem:[#allocation2 + $0x93] ss:$8 sm:$0x7] }
 0x3dc   :  { %3311 = vmatprep.subr.bf16.mxu0 %v12815_v3  ;;  %10259 = vmatprep.subr.bf16.mxu1 %v15267_v16  ;;  %v12907_v46 = vld [vmem:[#allocation2 + $0xc3] ss:$8 sm:$0x7] }
 0x3dd   :  { %3341 = vmatprep.mubr.bf16.mxu0 %v15268_v15  ;;  %10273 = vmatprep.mubr.msk.bf16.mxu1 %vm11945_vm0, %v15267_v16  ;;  %v12909_v40 = vld [vmem:[#allocation2 + $0xf3] ss:$8 sm:$0x7] }
 0x3df   :  { %3312 = vmatpush1.bf16.msra.mxu0 %v12822_v10  ;;  %10260 = vmatpush3.bf16.msra.mxu1 %v12825_v8 }
 0x3e0   :  { %3313 = vmatprep.subr.bf16.mxu0 %v12828_v1  ;;  %10261 = vmatprep.subr.bf16.mxu1 %v15267_v16 }
 0x3e3   :  { %3314 = vmatpush1.bf16.msra.mxu0 %v12832_v14  ;;  %10262 = vmatpush3.bf16.msra.mxu1 %v12835_v45 }
 0x3e4   :  { %3315 = vmatprep.subr.bf16.mxu0 %v12838_v27  ;;  %10263 = vmatprep.subr.bf16.mxu1 %v15267_v16 }
 0x3e7   :  { %3316 = vmatpush1.bf16.msra.mxu0 %v12842_v47  ;;  %10264 = vmatpush3.bf16.msra.mxu1 %v12845_v48 }
 0x3e8   :  { %3317 = vmatprep.subr.bf16.mxu0 %v12848_v22  ;;  %10265 = vmatprep.subr.bf16.mxu1 %v15267_v16 }
 0x3eb   :  { %3318 = vmatpush1.bf16.msra.mxu0 %v12852_v49  ;;  %10266 = vmatpush3.bf16.msra.mxu1 %v12855_v50 }
 0x3ec   :  { %3319 = vmatprep.subr.bf16.mxu0 %v12858_v54  ;;  %10267 = vmatprep.subr.bf16.mxu1 %v15267_v16 }
 0x3ef   :  { %3320 = vmatpush1.bf16.msra.mxu0 %v12862_v51  ;;  %10268 = vmatpush3.bf16.msra.mxu1 %v12865_v23 }
 0x3f0   :  { %3321 = vmatprep.subr.bf16.mxu0 %v12868_v13  ;;  %10269 = vmatprep.subr.bf16.mxu1 %v15267_v16 }
 0x3f3   :  { %3322 = vmatpush1.bf16.msra.mxu0 %v12872_v52  ;;  %10270 = vmatpush3.bf16.msra.mxu1 %v12875_v0 }
 0x3f4   :  { %3323 = vmatprep.subr.bf16.mxu0 %v12878_v20  ;;  %10271 = vmatprep.subr.bf16.mxu1 %v15267_v16 }
 0x3f7   :  { %3324 = vmatpush1.bf16.msra.mxu0 %v12882_v57  ;;  %10272 = vmatpush3.bf16.msra.mxu1 %v12885_v26 }
 0x3f8   :  { %3837 = vmatprep.subr.bf16.mxu0 %v12888_v62  ;;  %10277 = vmatprep.subr.bf16.mxu1 %v15267_v16 }
 0x4ad   :  { %v2815_v63 = vpop.f32.mrb[44].mxu0  ;;  %v2856_v28 = vpop.f32.mrb[44].mxu1 }
 0x4ae   :  { %v2863_v21 = vcombine.high %v2815_v63, %v2815_v63  ;;  %v2870_v5 = vrot.slane %v2815_v63, %v12002_v11  ;;  %v2817_v55 = vpop.f32.mrb[45].mxu0  ;;  %v10255_v9 = vpop.f32.mrb[45].mxu1 }
 0x4af   :  { %v2819_v60 = vpop.f32.mrb[46].mxu0  ;;  %v2859_v43 = vpop.f32.mrb[46].mxu1  ;;  %v3008_v59 = vrot.slane %v2817_v55, %v12002_v11 }
 0x4b0   :  { %v2877_v18 = vrot.slane %v2863_v21, %v12002_v11  ;;  %v2878_v33 = vcombine.high %v2870_v5, %v2870_v5  ;;  %v2886_v7 = vrot.slane %v2870_v5, %v12002_v11  ;;  %v2820_v25 = vpop.f32.mrb[47].mxu0  ;;  %v10256_v38 = vpop.f32.mrb[47].mxu1  ;;  %v12913_v21 = vld [vmem:[#allocation2 + $0x123] ss:$8 sm:$0x7]  ;;  %v3001_v43 = vcombine.high %v2817_v55, %v2817_v55 }
 0x4b1   :  { %v3016_v57 = vcombine.high %v3008_v59, %v3008_v59  ;;  %v3024_v55 = vrot.slane %v3008_v59, %v12002_v11  ;;  %v3114_v59 = vadd.f32 %v12704_v61, %v2856_v28  ;;  %v2989_v61 = vrot.slane %v12909_v40, 1 }
 0x4b2   :  { %v2879_v58 = vcombine.high %v2877_v18, %v2877_v18  ;;  %v2893_v6 = vrot.slane %v2877_v18, %v12002_v11  ;;  %v2900_v36 = vrot.slane %v2878_v33, %v12002_v11  ;;  %v2908_v17 = vcombine.high %v2886_v7, %v2886_v7  ;;  %v12917_v18 = vld [vmem:[#allocation2 + $0x153] ss:$8 sm:$0x7] }
 0x4b3   :  { %v2920_v41 = vadd.f32 %v2886_v7, %v12895_v44  ;;  %v2990_v28 = vrot.slane %v12913_v21, 1 }
 0x4b4   :  { %v2907_v4 = vrot.slane %v2879_v58, %v12002_v11  ;;  %v2909_v42 = vcombine.high %v2893_v6, %v2893_v6  ;;  %v2910_v37 = vcombine.high %v2900_v36, %v2900_v36  ;;  %v2921_v63 = vadd.f32 %v2900_v36, %v12897_v29 }
 0x4b5   :  { %v2922_v5 = vadd.f32 %v2908_v17, %v12901_v39  ;;  %v2924_v9 = vadd.f32 %v2893_v6, %v12907_v46  ;;  %v9761_v60 = vmul.f32 -1.442695, %v2920_v41 }
 0x4b6   :  { %v2911_v33 = vcombine.high %v2907_v4, %v2907_v4  ;;  %v2923_v7 = vadd.f32 %v2910_v37, %v12903_v32  ;;  %v2925_v25 = vadd.f32 %v2907_v4, %v12909_v40  ;;  %v2926_v38 = vadd.f32 %v2909_v42, %v12913_v21 }
 0x4b7   :  { %10779 = vpow2.f32 %v9761_v60  ;;  %v9762_v58 = vmul.f32 -1.442695, %v2921_v63  ;;  %v9763_v36 = vmul.f32 -1.442695, %v2922_v5  ;;  %v9765_v17 = vmul.f32 -1.442695, %v2924_v9 }
 0x4b8   :  { %v2927_v62 = vadd.f32 %v2911_v33, %v12917_v18  ;;  %v9764_v26 = vmul.f32 -1.442695, %v2923_v7  ;;  %v9766_v6 = vmul.f32 -1.442695, %v2925_v25  ;;  %v9767_v41 = vmul.f32 -1.442695, %v2926_v38 }
 0x4b9   :  { %10781 = vpow2.f32 %v9762_v58  ;;  %v3015_v37 = vrot.slane %v3001_v43, %v12002_v11  ;;  %v2984_v42 = vrot.slane %v12895_v44, 1  ;;  %v3038_v63 = vrot.slane %v3016_v57, %v12002_v11 }
 0x4ba   :  { %10783 = vpow2.f32 %v9763_v36  ;;  %v9768_v4 = vmul.f32 -1.442695, %v2927_v62  ;;  %v2985_v5 = vrot.slane %v12897_v29, 1  ;;  %v2986_v7 = vrot.slane %v12901_v39, 1 }
 0x4bb   :  { %10785 = vpow2.f32 %v9764_v26  ;;  %v3058_v9 = vadd.f32 %v3024_v55, %v2984_v42  ;;  %v3017_v60 = vcombine.high %v3015_v37, %v3015_v37  ;;  %v2987_v26 = vrot.slane %v12903_v32, 1 }
 0x4bc   :  { %10787 = vpow2.f32 %v9765_v17  ;;  %v3059_v33 = vadd.f32 %v3038_v63, %v2985_v5  ;;  %v3031_v43 = vrot.slane %v3015_v37, %v12002_v11  ;;  %v3046_v25 = vcombine.high %v3024_v55, %v3024_v55 }
 0x4bd   :  { %10789 = vpow2.f32 %v9766_v6  ;;  %v9769_v38 = vmul.f32 -1.442695, %v3058_v9  ;;  %v2988_v36 = vrot.slane %v12907_v46, 1  ;;  %v3045_v17 = vrot.slane %v3017_v60, %v12002_v11 }
 0x4be   :  { %10791 = vpow2.f32 %v9767_v41  ;;  %v9770_v57 = vmul.f32 -1.442695, %v3059_v33  ;;  %v3048_v6 = vcombine.high %v3038_v63, %v3038_v63  ;;  %v3123_v55 = vrot.slane %v3114_v59, %v12002_v11 }
 0x4bf   :  { %10793 = vpow2.f32 %v9768_v4  ;;  %v3116_v4 = vcombine.high %v3114_v59, %v3114_v59  ;;  %v2991_v37 = vrot.slane %v12917_v18, 1  ;;  %v3060_v20 = vadd.f32 %v3046_v25, %v2986_v7 }
 0x4c0   :  { %10795 = vpow2.f32 %v9769_v38  ;;  %v3049_v0 = vcombine.high %v3045_v17, %v3045_v17  ;;  %v3061_v52 = vadd.f32 %v3048_v6, %v2987_v26  ;;  %v3131_v51 = vcombine.high %v3123_v55, %v3123_v55 }
 0x4c1   :  { %v10780_v62 = vpop.eup %10779  ;;  %v3130_v38 = vrot.slane %v3116_v4, %v12002_v11  ;;  %v3063_v54 = vadd.f32 %v3045_v17, %v2989_v61  ;;  %v9771_v25 = vmul.f32 -1.442695, %v3060_v20  ;;  %v3182_v20 = vrot.slane %v12897_v29, 2 }
 0x4c2   :  { %v2952_v58 = vadd.f32 1.0, %v10780_v62  ;;  %v3047_v62 = vcombine.high %v3031_v43, %v3031_v43  ;;  %v9772_v26 = vmul.f32 -1.442695, %v3061_v52  ;;  %v3153_v4 = vrot.slane %v3131_v51, %v12002_v11 }
 0x4c3   :  { %v10782_v41 = vpop.eup %10781 }
 0x4c4   :  { %v10784_v42 = vpop.eup %10783  ;;  %v2953_v5 = vadd.f32 1.0, %v10782_v41  ;;  %10797 = vrcp.f32 %v2952_v58  ;;  %v3062_v58 = vadd.f32 %v3031_v43, %v2988_v36  ;;  %v3064_v7 = vadd.f32 %v3047_v62, %v2990_v28 }
 0x4c5   :  { %v10786_v9 = vpop.eup %10785  ;;  %v2954_v33 = vadd.f32 1.0, %v10784_v42  ;;  %10799 = vpow2.f32 %v9770_v57  ;;  %v3139_v43 = vrot.slane %v3123_v55, %v12002_v11  ;;  %v9774_v36 = vmul.f32 -1.442695, %v3063_v54 }
 0x4c6   :  { %v10788_v63 = vpop.eup %10787  ;;  %v2955_v60 = vadd.f32 1.0, %v10786_v9  ;;  %10801 = vrcp.f32 %v2953_v5  ;;  %v3065_v5 = vadd.f32 %v3049_v0, %v2991_v37  ;;  %v9773_v6 = vmul.f32 -1.442695, %v3062_v58 }
 0x4c7   :  { %v10790_v13 = vpop.eup %10789  ;;  %v2956_v23 = vadd.f32 1.0, %v10788_v63  ;;  %10803 = vrcp.f32 %v2954_v33  ;;  %v3132_v9 = vcombine.high %v3130_v38, %v3130_v38  ;;  %v9775_v17 = vmul.f32 -1.442695, %v3064_v7 }
 0x4c8   :  { %v10792_v41 = vpop.eup %10791  ;;  %v2957_v59 = vadd.f32 1.0, %v10790_v13  ;;  %10805 = vrcp.f32 %v2955_v60  ;;  %v9776_v0 = vmul.f32 -1.442695, %v3065_v5  ;;  %v3146_v28 = vrot.slane %v3130_v38, %v12002_v11 }
 0x4c9   :  { %v10794_v42 = vpop.eup %10793  ;;  %v2958_v50 = vadd.f32 1.0, %v10792_v41  ;;  %10807 = vrcp.f32 %v2956_v23  ;;  %v3181_v23 = vrot.slane %v12895_v44, 2  ;;  %v3160_v55 = vrot.slane %v3132_v9, %v12002_v11 }
 0x4ca   :  { %v2959_v57 = vadd.f32 1.0, %v10794_v42  ;;  %10809 = vrcp.f32 %v2957_v59  ;;  %v10796_v13 = vpop.eup %10795  ;;  %v3161_v51 = vcombine.high %v3139_v43, %v3139_v43  ;;  %v3163_v63 = vcombine.high %v3153_v4, %v3153_v4 }
 0x4cb   :  { %10811 = vrcp.f32 %v2958_v50  ;;  %v3183_v50 = vrot.slane %v12901_v39, 2  ;;  %v3090_v33 = vadd.f32 1.0, %v10796_v13  ;;  %v3184_v58 = vrot.slane %v12903_v32, 2 }
 0x4cc   :  { %10813 = vrcp.f32 %v2959_v57  ;;  %v3185_v39 = vrot.slane %v12907_v46, 2  ;;  %v3186_v59 = vrot.slane %v12909_v40, 2  ;;  %v3162_v57 = vcombine.high %v3146_v28, %v3146_v28 }
 0x4cd   :  { %10815 = vpow2.f32 %v9771_v25  ;;  %v3164_v9 = vcombine.high %v3160_v55, %v3160_v55  ;;  %v3187_v46 = vrot.slane %v12913_v21, 2 }
 0x4ce   :  { %v10798_v61 = vpop.eup %10797  ;;  %10817 = vpow2.f32 %v9772_v26 }
 0x4cf   :  { %v10800_v52 = vpop.eup %10799  ;;  %v3173_v37 = vmul.f32 %v10798_v61, %v3139_v43  ;;  %10819 = vpow2.f32 %v9773_v6 }
 0x4d0   :  { %v10802_v54 = vpop.eup %10801  ;;  %10821 = vpow2.f32 %v9774_v36 }
 0x4d1   :  { %v10804_v62 = vpop.eup %10803  ;;  %v3174_v44 = vmul.f32 %v10802_v54, %v3153_v4  ;;  %v3197_v60 = vadd.f32 %v3181_v23, %v3173_v37  ;;  %10823 = vpow2.f32 %v9775_v17  ;;  %v3188_v17 = vrot.slane %v12917_v18, 2 }
 0x4d2   :  { %v10806_v29 = vpop.eup %10805  ;;  %v3175_v41 = vmul.f32 %v10804_v62, %v3161_v51  ;;  %10825 = vpow2.f32 %v9776_v0 }
 0x4d3   :  { %v10808_v38 = vpop.eup %10807  ;;  %v3176_v42 = vmul.f32 %v10806_v29, %v3163_v63  ;;  %v3198_v7 = vadd.f32 %v3182_v20, %v3174_v44  ;;  %10827 = vtanh.f32 %v3197_v60 }
 0x4d4   :  { %v10810_v25 = vpop.eup %10809  ;;  %v3177_v5 = vmul.f32 %v10808_v38, %v3146_v28  ;;  %v3199_v26 = vadd.f32 %v3183_v50, %v3175_v41  ;;  %10829 = vrcp.f32 %v3090_v33  ;;  %v3091_v50 = vadd.f32 1.0, %v10800_v52 }
 0x4d5   :  { %v10812_v6 = vpop.eup %10811  ;;  %v3178_v43 = vmul.f32 %v10810_v25, %v3160_v55  ;;  %v3200_v36 = vadd.f32 %v3184_v58, %v3176_v42  ;;  %10831 = vtanh.f32 %v3198_v7 }
 0x4d6   :  { %v10814_v32 = vpop.eup %10813  ;;  %v3179_v13 = vmul.f32 %v10812_v6, %v3162_v57  ;;  %v3201_v4 = vadd.f32 %v3185_v39, %v3177_v5  ;;  %10833 = vtanh.f32 %v3199_v26 }
 0x4d7   :  { %v10816_v40 = vpop.eup %10815  ;;  %v3180_v61 = vmul.f32 %v10814_v32, %v3164_v9  ;;  %v3202_v23 = vadd.f32 %v3186_v59, %v3178_v43  ;;  %10835 = vtanh.f32 %v3200_v36 }
 0x4d8   :  { %v10818_v20 = vpop.eup %10817  ;;  %v3203_v0 = vadd.f32 %v3187_v46, %v3179_v13  ;;  %10837 = vtanh.f32 %v3201_v4  ;;  %v3092_v54 = vadd.f32 1.0, %v10816_v40 }
 0x4d9   :  { %v10820_v28 = vpop.eup %10819  ;;  %v3204_v37 = vadd.f32 %v3188_v17, %v3180_v61  ;;  %10839 = vtanh.f32 %v3202_v23  ;;  %v3093_v21 = vadd.f32 1.0, %v10818_v20 }
 0x4da   :  { %v10822_v55 = vpop.eup %10821  ;;  %10841 = vtanh.f32 %v3203_v0  ;;  %v3094_v33 = vadd.f32 1.0, %v10820_v28 }
 0x4db   :  { %v10824_v51 = vpop.eup %10823  ;;  %10843 = vtanh.f32 %v3204_v37  ;;  %v3095_v63 = vadd.f32 1.0, %v10822_v55 }
 0x4dc   :  { %v10826_v62 = vpop.eup %10825  ;;  %10845 = vrcp.f32 %v3091_v50  ;;  %v3096_v44 = vadd.f32 1.0, %v10824_v51 }
 0x4dd   :  { %v10828_v18 = vpop.eup %10827  ;;  %10847 = vrcp.f32 %v3092_v54  ;;  %v3097_v29 = vadd.f32 1.0, %v10826_v62 }
 0x4de   :  { %v10830_v60 = vpop.eup %10829  ;;  %10849 = vrcp.f32 %v3093_v21 }
 0x4df   :  { %v10832_v52 = vpop.eup %10831  ;;  %10851 = vrcp.f32 %v3094_v33  ;;  %v3213_v58 = vsub.f32 1.0, %v10830_v60  ;;  %v3229_v59 = vmul.f32 %v10830_v60, %v12731_v19 }
 0x4e0   :  { %v10834_v39 = vpop.eup %10833  ;;  %10853 = vrcp.f32 %v3095_v63 }
 0x4e1   :  { %v10836_v41 = vpop.eup %10835  ;;  %10855 = vrcp.f32 %v3096_v44  ;;  %v3221_v38 = vmul.f32 %v10828_v18, %v3213_v58 }
 0x4e2   :  { %v10838_v42 = vpop.eup %10837  ;;  %10857 = vrcp.f32 %v3097_v29 }
 0x4e3   :  { %v10840_v7 = vpop.eup %10839  ;;  %v12952_v25 = vadd.f32 %v3229_v59, %v3221_v38 }
 0x4e4   :  { %v10842_v57 = vpop.eup %10841 }
 0x4e5   :  { %v10844_v5 = vpop.eup %10843  ;;  %3245 = vst [vmem:[%s15179_s6 + $0x4] sm:$0x1] %v12952_v25  ;;  %v3269_v4 = vpack.c.bf16 %v12952_v25, %v12952_v25 }
 0x4e6   :  { %v10846_v26 = vpop.eup %10845 }
 0x4e7   :  { %v10848_v6 = vpop.eup %10847  ;;  %v3214_v9 = vsub.f32 1.0, %v10846_v26  ;;  %v3230_v13 = vmul.f32 %v10846_v26, %v12743_v12 }
 0x4e8   :  { %v10850_v43 = vpop.eup %10849  ;;  %v3215_v36 = vsub.f32 1.0, %v10848_v6  ;;  %v3231_v23 = vmul.f32 %v10848_v6, %v12745_v2 }
 0x4e9   :  { %v10852_v32 = vpop.eup %10851  ;;  %v3216_v46 = vsub.f32 1.0, %v10850_v43  ;;  %v3222_v19 = vmul.f32 %v10832_v52, %v3214_v9  ;;  %v3232_v20 = vmul.f32 %v10850_v43, %v12753_v24 }
 0x4ea   :  { %v10854_v40 = vpop.eup %10853  ;;  %v3217_v17 = vsub.f32 1.0, %v10852_v32  ;;  %v3223_v61 = vmul.f32 %v10834_v39, %v3215_v36  ;;  %v3233_v37 = vmul.f32 %v10852_v32, %v12759_v56 }
 0x4eb   :  { %v10856_v0 = vpop.eup %10855  ;;  %v3218_v50 = vsub.f32 1.0, %v10854_v40  ;;  %v3224_v28 = vmul.f32 %v10836_v41, %v3216_v46  ;;  %v12964_v54 = vadd.f32 %v3230_v13, %v3222_v19  ;;  %v3234_v33 = vmul.f32 %v10854_v40, %v12766_v34 }
 0x4ec   :  { %v10858_v55 = vpop.eup %10857  ;;  %v3225_v21 = vmul.f32 %v10838_v42, %v3217_v17  ;;  %v12966_v12 = vadd.f32 %v3231_v23, %v3223_v61  ;;  %v3219_v51 = vsub.f32 1.0, %v10856_v0  ;;  %v3235_v62 = vmul.f32 %v10856_v0, %v12774_v35 }
 0x4ed   :  { %3246 = vst [vmem:[%s15179_s6 + $0x14] sm:$0x1] %v12964_v54  ;;  %v3220_v2 = vsub.f32 1.0, %v10858_v55  ;;  %v3226_v24 = vmul.f32 %v10840_v7, %v3218_v50  ;;  %v12974_v63 = vadd.f32 %v3232_v20, %v3224_v28  ;;  %v3270_v34 = vpack.c.bf16 %v12964_v54, %v12964_v54 }
 0x4ee   :  { %3247 = vst [vmem:[%s15179_s6 + $0x24] sm:$0x1] %v12966_v12  ;;  %v3227_v56 = vmul.f32 %v10842_v57, %v3219_v51  ;;  %v12980_v18 = vadd.f32 %v3233_v37, %v3225_v21  ;;  %v3271_v44 = vpack.c.bf16 %v12966_v12, %v12966_v12  ;;  %v3236_v29 = vmul.f32 %v10858_v55, %v12782_v53 }
 0x4ef   :  { %v3228_v60 = vmul.f32 %v10844_v5, %v3220_v2  ;;  %v12987_v35 = vadd.f32 %v3234_v33, %v3226_v24  ;;  %3248 = vst [vmem:[%s15179_s6 + $0x34] sm:$0x1] %v12974_v63  ;;  %v3272_v52 = vpack.c.bf16 %v12974_v63, %v12974_v63  ;;  %v3286_v39 = vunpack.c.l.b16 %v3270_v34 }
 0x4f0   :  { %v12995_v58 = vadd.f32 %v3235_v62, %v3227_v56  ;;  %3249 = vst [vmem:[%s15179_s6 + $0x44] sm:$0x1] %v12980_v18  ;;  %v3273_v53 = vpack.c.bf16 %v12980_v18, %v12980_v18  ;;  %v3287_v41 = vunpack.c.l.b16 %v3271_v44  ;;  %v3285_v42 = vunpack.c.l.b16 %v3269_v4 }
 0x4f1   :  { %v13003_v38 = vadd.f32 %v3236_v29, %v3228_v60  ;;  %3250 = vst [vmem:[%s15179_s6 + $0x54] sm:$0x1] %v12987_v35  ;;  %v3274_v59 = vpack.c.bf16 %v12987_v35, %v12987_v35  ;;  %v3288_v7 = vunpack.c.l.b16 %v3272_v52  ;;  %v3293_v26 = vrot.slane %v3286_v39, 7  ;;  %v13070_v29 = vld [vmem:[#allocation2 + $0x4] ss:$8 sm:$0x7] }
 0x4f2   :  { %3251 = vst [vmem:[%s15179_s6 + $0x64] sm:$0x1] %v12995_v58  ;;  %v3275_v57 = vpack.c.bf16 %v12995_v58, %v12995_v58  ;;  %v3289_v5 = vunpack.c.l.b16 %v3273_v53  ;;  %v3295_v6 = vrot.slane %v3287_v41, 6  ;;  %v13072_v52 = vld [vmem:[#allocation2 + $0x34] ss:$8 sm:$0x7] }
 0x4f3   :  { %3252 = vst [vmem:[%s15179_s6 + $0x74] sm:$0x1] %v13003_v38  ;;  %v3276_v9 = vpack.c.bf16 %v13003_v38, %v13003_v38  ;;  %v3290_v43 = vunpack.c.l.b16 %v3274_v59  ;;  %v3297_v36 = vrot.slane %v3288_v7, 5  ;;  %v3294_v46 = vsel %vm1703_vm3, %v3293_v26, %v3285_v42  ;;  %v13076_v42 = vld [vmem:[#allocation2 + $0x64] ss:$8 sm:$0x7] }
 0x4f4   :  { %v3291_v32 = vunpack.c.l.b16 %v3275_v57  ;;  %v3296_v13 = vsel %vm1706_vm4, %v3295_v6, %v3294_v46  ;;  %v3299_v4 = vrot.slane %v3289_v5, 4  ;;  %v13078_v7 = vld [vmem:[#allocation2 + $0x94] ss:$8 sm:$0x7] }
 0x4f5   :  { %v3292_v19 = vunpack.c.l.b16 %v3276_v9  ;;  %v3298_v40 = vsel %vm1709_vm5, %v3297_v36, %v3296_v13  ;;  %v3301_v17 = vrot.slane %v3290_v43, 3  ;;  %v13082_v26 = vld [vmem:[#allocation2 + $0xc4] ss:$8 sm:$0x7] }
 0x4f6   :  { %v3300_v61 = vsel %vm1712_vm6, %v3299_v4, %v3298_v40  ;;  %v3303_v23 = vrot.slane %v3291_v32, 2  ;;  %v13084_v6 = vld [vmem:[#allocation2 + $0xf4] ss:$8 sm:$0x7] }
 0x4f7   :  { %v3302_v20 = vsel %vm1715_vm7, %v3301_v17, %v3300_v61  ;;  %v3305_v0 = vrot.slane %v3292_v19, 1  ;;  %v13088_v46 = vld [vmem:[#allocation2 + $0x124] ss:$8 sm:$0x7] }
 0x4f8   :  { %v3304_v50 = vsel %vm1718_vm8, %v3303_v23, %v3302_v20  ;;  %v13092_v17 = vld [vmem:[#allocation2 + $0x154] ss:$8 sm:$0x7] }
 0x4f9   :  { %v3306_v28 = vsel %vm1721_vm9, %v3305_v0, %v3304_v50 }
 0x4fa   :  { %v3307_v37 = vpack.c.b16 %v3306_v28, %v3306_v28 }
 0x4fc   :  { %3342 = vmatmul.mubr.bf16.vlgmr.msra.gmra.mrb[48].mxu0 %v3307_v37  ;;  %10274 = vmatmul.mubr.bf16.vlgmr.msra.gmra.mrb[48].mxu1 %v3307_v37 }
 0x4fd   :  { %3838 = vmatpush1.bf16.msra.mxu0 %v12809_v30  ;;  %10278 = vmatpush3.bf16.msra.mxu1 %v12812_v31  ;;  %v15289_v30 = vld [vmem:[#allocation7_spill] sm:$0xff]  ;;  %v15290_v31 = vld [vmem:[#allocation8_spill] sm:$0xff] }
 0x4fe   :  { %3839 = vmatprep.subr.bf16.mxu0 %v12815_v3  ;;  %10279 = vmatprep.subr.bf16.mxu1 %v15267_v16  ;;  %v15291_v3 = vld [vmem:[#allocation9_spill] sm:$0xff] }
 0x4ff   :  { %3869 = vmatprep.mubr.bf16.mxu0 %v15268_v15  ;;  %10293 = vmatprep.mubr.msk.bf16.mxu1 %vm11945_vm0, %v15267_v16 }
 0x501   :  { %3840 = vmatpush1.bf16.msra.mxu0 %v12822_v10  ;;  %10280 = vmatpush3.bf16.msra.mxu1 %v12825_v8  ;;  %v15292_v10 = vld [vmem:[#allocation10_spill] sm:$0xff]  ;;  %v15293_v8 = vld [vmem:[#allocation11_spill] sm:$0xff] }
 0x502   :  { %3841 = vmatprep.subr.bf16.mxu0 %v12828_v1  ;;  %10281 = vmatprep.subr.bf16.mxu1 %v15267_v16  ;;  %v15294_v1 = vld [vmem:[#allocation12_spill] sm:$0xff] }
 0x505   :  { %3842 = vmatpush1.bf16.msra.mxu0 %v12832_v14  ;;  %10282 = vmatpush3.bf16.msra.mxu1 %v12835_v45  ;;  %v15295_v14 = vld [vmem:[#allocation13_spill] sm:$0xff]  ;;  %v15296_v45 = vld [vmem:[#allocation14_spill] sm:$0xff] }
 0x506   :  { %3843 = vmatprep.subr.bf16.mxu0 %v12838_v27  ;;  %10283 = vmatprep.subr.bf16.mxu1 %v15267_v16  ;;  %v15297_v27 = vld [vmem:[#allocation15_spill] sm:$0xff] }
 0x509   :  { %3844 = vmatpush1.bf16.msra.mxu0 %v12842_v47  ;;  %10284 = vmatpush3.bf16.msra.mxu1 %v12845_v48  ;;  %v15298_v47 = vld [vmem:[#allocation16_spill] sm:$0xff]  ;;  %v15299_v48 = vld [vmem:[#allocation17_spill] sm:$0xff] }
 0x50a   :  { %3845 = vmatprep.subr.bf16.mxu0 %v12848_v22  ;;  %10285 = vmatprep.subr.bf16.mxu1 %v15267_v16 }
 0x50d   :  { %3846 = vmatpush1.bf16.msra.mxu0 %v12852_v49  ;;  %10286 = vmatpush3.bf16.msra.mxu1 %v15289_v30 }
 0x50e   :  { %3847 = vmatprep.subr.bf16.mxu0 %v15290_v31  ;;  %10287 = vmatprep.subr.bf16.mxu1 %v15267_v16 }
 0x511   :  { %3848 = vmatpush1.bf16.msra.mxu0 %v15291_v3  ;;  %10288 = vmatpush3.bf16.msra.mxu1 %v15292_v10 }
 0x512   :  { %3849 = vmatprep.subr.bf16.mxu0 %v15293_v8  ;;  %10289 = vmatprep.subr.bf16.mxu1 %v15267_v16 }
 0x515   :  { %3850 = vmatpush1.bf16.msra.mxu0 %v15294_v1  ;;  %10290 = vmatpush3.bf16.msra.mxu1 %v15295_v14 }
 0x516   :  { %3851 = vmatprep.subr.bf16.mxu0 %v15296_v45  ;;  %10291 = vmatprep.subr.bf16.mxu1 %v15267_v16 }
 0x519   :  { %3852 = vmatpush1.bf16.msra.mxu0 %v15297_v27  ;;  %10292 = vmatpush3.bf16.msra.mxu1 %v15298_v47  ;;  %v3512_v27 = vrot.slane %v13070_v29, 1 }
 0x51a   :  { %4365 = vmatprep.subr.bf16.mxu0 %v15299_v48  ;;  %10297 = vmatprep.subr.bf16.mxu1 %v15267_v16  ;;  %v3513_v48 = vrot.slane %v13072_v52, 1 }
 0x5cf   :  { %v3343_v22 = vpop.f32.mrb[48].mxu0  ;;  %v13065_v49 = vpop.f32.mrb[48].mxu1 }
 0x5d0   :  { %v3391_v55 = vcombine.high %v3343_v22, %v3343_v22  ;;  %v3398_v21 = vrot.slane %v3343_v22, %v12002_v11  ;;  %v3345_v51 = vpop.f32.mrb[49].mxu0  ;;  %v10275_v33 = vpop.f32.mrb[49].mxu1 }
 0x5d1   :  { %v3347_v2 = vpop.f32.mrb[50].mxu0  ;;  %v3387_v24 = vpop.f32.mrb[50].mxu1  ;;  %v3536_v5 = vrot.slane %v3345_v51, %v12002_v11  ;;  %v3529_v40 = vcombine.high %v3345_v51, %v3345_v51 }
 0x5d2   :  { %v3405_v62 = vrot.slane %v3391_v55, %v12002_v11  ;;  %v3406_v56 = vcombine.high %v3398_v21, %v3398_v21  ;;  %v3414_v34 = vrot.slane %v3398_v21, %v12002_v11  ;;  %v3348_v44 = vpop.f32.mrb[51].mxu0  ;;  %v10276_v60 = vpop.f32.mrb[51].mxu1  ;;  %v13106_v21 = vld [vmem:[%s15177_s4] ss:$0 sm:$0xff]  ;;  %v3514_v2 = vrot.slane %v13076_v42, 1 }
 0x5d3   :  { %v3544_v3 = vcombine.high %v3536_v5, %v3536_v5  ;;  %v3552_v8 = vrot.slane %v3536_v5, %v12002_v11  ;;  %v3543_v14 = vrot.slane %v3529_v40, %v12002_v11  ;;  %v3642_v51 = vadd.f32 %v13106_v21, %v13065_v49 }
 0x5d4   :  { %v3407_v53 = vcombine.high %v3405_v62, %v3405_v62  ;;  %v3421_v39 = vrot.slane %v3405_v62, %v12002_v11  ;;  %v3428_v41 = vrot.slane %v3406_v56, %v12002_v11  ;;  %v3436_v59 = vcombine.high %v3414_v34, %v3414_v34 }
 0x5d5   :  { %v3448_v57 = vadd.f32 %v3414_v34, %v13070_v29  ;;  %v3566_v47 = vrot.slane %v3544_v3, %v12002_v11  ;;  %v3586_v22 = vadd.f32 %v3552_v8, %v3512_v27  ;;  %v3545_v55 = vcombine.high %v3543_v14, %v3543_v14 }
 0x5d6   :  { %v3435_v9 = vrot.slane %v3407_v53, %v12002_v11  ;;  %v3437_v43 = vcombine.high %v3421_v39, %v3421_v39  ;;  %v3438_v36 = vcombine.high %v3428_v41, %v3428_v41  ;;  %v3449_v32 = vadd.f32 %v3428_v41, %v13072_v52 }
 0x5d7   :  { %v3450_v19 = vadd.f32 %v3436_v59, %v13076_v42  ;;  %v3452_v13 = vadd.f32 %v3421_v39, %v13082_v26  ;;  %v9777_v4 = vmul.f32 -1.442695, %v3448_v57  ;;  %v3587_v33 = vadd.f32 %v3566_v47, %v3513_v48 }
 0x5d8   :  { %v3439_v61 = vcombine.high %v3435_v9, %v3435_v9  ;;  %v3451_v23 = vadd.f32 %v3438_v36, %v13078_v7  ;;  %v3453_v20 = vadd.f32 %v3435_v9, %v13084_v6  ;;  %v3454_v0 = vadd.f32 %v3437_v43, %v13088_v46 }
 0x5d9   :  { %10859 = vpow2.f32 %v9777_v4  ;;  %v9778_v50 = vmul.f32 -1.442695, %v3449_v32  ;;  %v9779_v28 = vmul.f32 -1.442695, %v3450_v19  ;;  %v9781_v31 = vmul.f32 -1.442695, %v3452_v13 }
 0x5da   :  { %v3455_v37 = vadd.f32 %v3439_v61, %v13092_v17  ;;  %v9780_v30 = vmul.f32 -1.442695, %v3451_v23  ;;  %v9782_v10 = vmul.f32 -1.442695, %v3453_v20  ;;  %v9783_v1 = vmul.f32 -1.442695, %v3454_v0 }
 0x5db   :  { %10861 = vpow2.f32 %v9778_v50  ;;  %v3515_v24 = vrot.slane %v13078_v7, 1  ;;  %v3559_v56 = vrot.slane %v3543_v14, %v12002_v11  ;;  %v3574_v34 = vcombine.high %v3552_v8, %v3552_v8 }
 0x5dc   :  { %10863 = vpow2.f32 %v9779_v28  ;;  %v9784_v45 = vmul.f32 -1.442695, %v3455_v37  ;;  %v9785_v44 = vmul.f32 -1.442695, %v3586_v22  ;;  %v9786_v60 = vmul.f32 -1.442695, %v3587_v33 }
 0x5dd   :  { %10865 = vpow2.f32 %v9780_v30  ;;  %v3516_v39 = vrot.slane %v13082_v26, 1  ;;  %v3573_v41 = vrot.slane %v3545_v55, %v12002_v11  ;;  %v3576_v59 = vcombine.high %v3566_v47, %v3566_v47 }
 0x5de   :  { %10867 = vpow2.f32 %v9781_v31  ;;  %v3644_v5 = vcombine.high %v3642_v51, %v3642_v51  ;;  %v3517_v49 = vrot.slane %v13084_v6, 1  ;;  %v3518_v9 = vrot.slane %v13088_v46, 1 }
 0x5df   :  { %10869 = vpow2.f32 %v9782_v10  ;;  %v3651_v32 = vrot.slane %v3642_v51, %v12002_v11  ;;  %v3519_v19 = vrot.slane %v13092_v17, 1  ;;  %v3575_v40 = vcombine.high %v3559_v56, %v3559_v56 }
 0x5e0   :  { %10871 = vpow2.f32 %v9783_v1  ;;  %v3588_v61 = vadd.f32 %v3574_v34, %v3514_v2  ;;  %v3577_v0 = vcombine.high %v3573_v41, %v3573_v41  ;;  %v3589_v50 = vadd.f32 %v3576_v59, %v3515_v24 }
 0x5e1   :  { %10873 = vpow2.f32 %v9784_v45  ;;  %v3658_v30 = vrot.slane %v3644_v5, %v12002_v11  ;;  %v3590_v31 = vadd.f32 %v3559_v56, %v3516_v39  ;;  %v3659_v8 = vcombine.high %v3651_v32, %v3651_v32 }
 0x5e2   :  { %10875 = vpow2.f32 %v9785_v44  ;;  %v3591_v1 = vadd.f32 %v3573_v41, %v3517_v49  ;;  %v3592_v27 = vadd.f32 %v3575_v40, %v3518_v9  ;;  %v9787_v47 = vmul.f32 -1.442695, %v3588_v61 }
 0x5e3   :  { %v10860_v62 = vpop.eup %10859  ;;  %v3593_v22 = vadd.f32 %v3577_v0, %v3519_v19  ;;  %v9788_v55 = vmul.f32 -1.442695, %v3589_v50  ;;  %v9789_v51 = vmul.f32 -1.442695, %v3590_v31  ;;  %v3660_v33 = vcombine.high %v3658_v30, %v3658_v30 }
 0x5e4   :  { %v3480_v53 = vadd.f32 1.0, %v10860_v62  ;;  %v3667_v2 = vrot.slane %v3651_v32, %v12002_v11  ;;  %v9790_v24 = vmul.f32 -1.442695, %v3591_v1  ;;  %v3681_v56 = vrot.slane %v3659_v8, %v12002_v11 }
 0x5e5   :  { %v10862_v57 = vpop.eup %10861  ;;  %v9791_v34 = vmul.f32 -1.442695, %v3592_v27  ;;  %v9792_v39 = vmul.f32 -1.442695, %v3593_v22  ;;  %v3711_v59 = vrot.slane %v13076_v42, 2  ;;  %v3688_v9 = vrot.slane %v3660_v33, %v12002_v11 }
 0x5e6   :  { %v10864_v43 = vpop.eup %10863  ;;  %v3481_v36 = vadd.f32 1.0, %v10862_v57  ;;  %10877 = vrcp.f32 %v3480_v53  ;;  %v3710_v53 = vrot.slane %v13072_v52, 2  ;;  %v3674_v57 = vrot.slane %v3658_v30, %v12002_v11 }
 0x5e7   :  { %v10866_v13 = vpop.eup %10865  ;;  %v3482_v4 = vadd.f32 1.0, %v10864_v43  ;;  %10879 = vpow2.f32 %v9786_v60  ;;  %v3709_v60 = vrot.slane %v13070_v29, 2  ;;  %v3689_v43 = vcombine.high %v3667_v2, %v3667_v2 }
 0x5e8   :  { %v10868_v23 = vpop.eup %10867  ;;  %v3483_v20 = vadd.f32 1.0, %v10866_v13  ;;  %10881 = vrcp.f32 %v3481_v36  ;;  %v3691_v19 = vcombine.high %v3681_v56, %v3681_v56  ;;  %v3713_v42 = vrot.slane %v13082_v26, 2 }
 0x5e9   :  { %v10870_v28 = vpop.eup %10869  ;;  %v3484_v37 = vadd.f32 1.0, %v10868_v23  ;;  %10883 = vrcp.f32 %v3482_v4  ;;  %v3712_v4 = vrot.slane %v13078_v7, 2  ;;  %v3714_v23 = vrot.slane %v13084_v6, 2 }
 0x5ea   :  { %v10872_v3 = vpop.eup %10871  ;;  %v3485_v10 = vadd.f32 1.0, %v10870_v28  ;;  %10885 = vrcp.f32 %v3483_v20  ;;  %v3690_v28 = vcombine.high %v3674_v57, %v3674_v57  ;;  %v3715_v26 = vrot.slane %v13088_v46, 2 }
 0x5eb   :  { %v10874_v14 = vpop.eup %10873  ;;  %v3486_v45 = vadd.f32 1.0, %v10872_v3  ;;  %10887 = vrcp.f32 %v3484_v37  ;;  %v3692_v3 = vcombine.high %v3688_v9, %v3688_v9 }
 0x5ec   :  { %v3487_v48 = vadd.f32 1.0, %v10874_v14  ;;  %10889 = vrcp.f32 %v3485_v10  ;;  %v10876_v62 = vpop.eup %10875 }
 0x5ed   :  { %10891 = vrcp.f32 %v3486_v45  ;;  %v3618_v36 = vadd.f32 1.0, %v10876_v62  ;;  %v3716_v45 = vrot.slane %v13092_v17, 2 }
 0x5ee   :  { %10893 = vrcp.f32 %v3487_v48 }
 0x5ef   :  { %10895 = vpow2.f32 %v9787_v47 }
 0x5f0   :  { %v10878_v44 = vpop.eup %10877  ;;  %10897 = vpow2.f32 %v9788_v55 }
 0x5f1   :  { %v10880_v41 = vpop.eup %10879  ;;  %v3701_v5 = vmul.f32 %v10878_v44, %v3667_v2  ;;  %10899 = vpow2.f32 %v9789_v51 }
 0x5f2   :  { %v10882_v49 = vpop.eup %10881  ;;  %10901 = vpow2.f32 %v9790_v24  ;;  %v3619_v55 = vadd.f32 1.0, %v10880_v41 }
 0x5f3   :  { %v10884_v32 = vpop.eup %10883  ;;  %v3702_v29 = vmul.f32 %v10882_v49, %v3681_v56  ;;  %v3725_v13 = vadd.f32 %v3709_v60, %v3701_v5  ;;  %10903 = vpow2.f32 %v9791_v34 }
 0x5f4   :  { %v10886_v52 = vpop.eup %10885  ;;  %v3703_v40 = vmul.f32 %v10884_v32, %v3689_v43  ;;  %10905 = vpow2.f32 %v9792_v39 }
 0x5f5   :  { %v10888_v61 = vpop.eup %10887  ;;  %v3704_v20 = vmul.f32 %v10886_v52, %v3691_v19  ;;  %v3726_v0 = vadd.f32 %v3710_v53, %v3702_v29  ;;  %10907 = vtanh.f32 %v3725_v13 }
 0x5f6   :  { %v10890_v50 = vpop.eup %10889  ;;  %v3705_v37 = vmul.f32 %v10888_v61, %v3674_v57  ;;  %v3727_v30 = vadd.f32 %v3711_v59, %v3703_v40  ;;  %10909 = vrcp.f32 %v3618_v36 }
 0x5f7   :  { %v10892_v31 = vpop.eup %10891  ;;  %v3706_v10 = vmul.f32 %v10890_v50, %v3688_v9  ;;  %v3728_v8 = vadd.f32 %v3712_v4, %v3704_v20  ;;  %10911 = vtanh.f32 %v3726_v0 }
 0x5f8   :  { %v10894_v7 = vpop.eup %10893  ;;  %v3707_v1 = vmul.f32 %v10892_v31, %v3690_v28  ;;  %v3729_v14 = vadd.f32 %v3713_v42, %v3705_v37  ;;  %10913 = vtanh.f32 %v3727_v30 }
 0x5f9   :  { %v10896_v6 = vpop.eup %10895  ;;  %v3708_v27 = vmul.f32 %v10894_v7, %v3692_v3  ;;  %v3730_v47 = vadd.f32 %v3714_v23, %v3706_v10  ;;  %10915 = vtanh.f32 %v3728_v8 }
 0x5fa   :  { %v10898_v48 = vpop.eup %10897  ;;  %v3731_v22 = vadd.f32 %v3715_v26, %v3707_v1  ;;  %10917 = vtanh.f32 %v3729_v14  ;;  %v3620_v2 = vadd.f32 1.0, %v10896_v6 }
 0x5fb   :  { %v10900_v51 = vpop.eup %10899  ;;  %v3732_v33 = vadd.f32 %v3716_v45, %v3708_v27  ;;  %10919 = vtanh.f32 %v3730_v47  ;;  %v3621_v46 = vadd.f32 1.0, %v10898_v48 }
 0x5fc   :  { %v10902_v24 = vpop.eup %10901  ;;  %10921 = vtanh.f32 %v3731_v22  ;;  %v3622_v56 = vadd.f32 1.0, %v10900_v51 }
 0x5fd   :  { %v10904_v62 = vpop.eup %10903  ;;  %10923 = vtanh.f32 %v3732_v33  ;;  %v3623_v44 = vadd.f32 1.0, %v10902_v24 }
 0x5fe   :  { %v10906_v34 = vpop.eup %10905  ;;  %10925 = vrcp.f32 %v3619_v55  ;;  %v3624_v60 = vadd.f32 1.0, %v10904_v62 }
 0x5ff   :  { %v10908_v17 = vpop.eup %10907  ;;  %10927 = vrcp.f32 %v3620_v2  ;;  %v3625_v39 = vadd.f32 1.0, %v10906_v34 }
 0x600   :  { %v10910_v53 = vpop.eup %10909  ;;  %10929 = vrcp.f32 %v3621_v46 }
 0x601   :  { %v10912_v41 = vpop.eup %10911  ;;  %10931 = vrcp.f32 %v3622_v56  ;;  %v3741_v59 = vsub.f32 1.0, %v10910_v53  ;;  %v3757_v9 = vmul.f32 %v10910_v53, %v12952_v25 }
 0x602   :  { %v10914_v57 = vpop.eup %10913  ;;  %10933 = vrcp.f32 %v3623_v44 }
 0x603   :  { %v10916_v5 = vpop.eup %10915  ;;  %10935 = vrcp.f32 %v3624_v60  ;;  %v3749_v49 = vmul.f32 %v10908_v17, %v3741_v59 }
 0x604   :  { %v10918_v43 = vpop.eup %10917  ;;  %10937 = vrcp.f32 %v3625_v39 }
 0x605   :  { %v10920_v36 = vpop.eup %10919  ;;  %v13133_v32 = vadd.f32 %v3757_v9, %v3749_v49 }
 0x606   :  { %v10922_v19 = vpop.eup %10921 }
 0x607   :  { %v10924_v29 = vpop.eup %10923  ;;  %3773 = vst [vmem:[%s15179_s6 + $0x5] sm:$0x1] %v13133_v32  ;;  %v3797_v0 = vpack.c.bf16 %v13133_v32, %v13133_v32 }
 0x608   :  { %v10926_v13 = vpop.eup %10925 }
 0x609   :  { %v10928_v52 = vpop.eup %10927  ;;  %v3742_v4 = vsub.f32 1.0, %v10926_v13  ;;  %v3758_v20 = vmul.f32 %v10926_v13, %v12964_v54  ;;  %v3813_v34 = vunpack.c.l.b16 %v3797_v0  ;;  %v13217_v0 = vld [vmem:[#allocation4 + $0x1c] ss:$12 sps:$4 sm:$0xff]  }
 0x60a   :  { %v10930_v42 = vpop.eup %10929  ;;  %v3743_v40 = vsub.f32 1.0, %v10928_v52  ;;  %v3759_v30 = vmul.f32 %v10928_v52, %v12966_v12 }
 0x60b   :  { %v10932_v61 = vpop.eup %10931  ;;  %v3744_v23 = vsub.f32 1.0, %v10930_v42  ;;  %v3750_v25 = vmul.f32 %v10912_v41, %v3742_v4  ;;  %v3760_v31 = vmul.f32 %v10930_v42, %v12974_v63 }
 0x60c   :  { %v10934_v50 = vpop.eup %10933  ;;  %v3745_v28 = vsub.f32 1.0, %v10932_v61  ;;  %v3751_v37 = vmul.f32 %v10914_v57, %v3743_v40  ;;  %v3761_v7 = vmul.f32 %v10932_v61, %v12980_v18 }
 0x60d   :  { %v10936_v3 = vpop.eup %10935  ;;  %v3746_v10 = vsub.f32 1.0, %v10934_v50  ;;  %v3752_v8 = vmul.f32 %v10916_v5, %v3744_v23  ;;  %v13145_v26 = vadd.f32 %v3758_v20, %v3750_v25  ;;  %v3762_v45 = vmul.f32 %v10934_v50, %v12987_v35  ;;  %v13211_v25 = vld [vmem:[#allocation4] ss:$12 sps:$4 sm:$0xff]   ;;  %v13214_v20 = vld [vmem:[#allocation4 + $0x8] ss:$12 sps:$4 sm:$0xff]  }
 0x60e   :  { %v10938_v1 = vpop.eup %10937  ;;  %v3753_v14 = vmul.f32 %v10918_v43, %v3745_v28  ;;  %v13147_v54 = vadd.f32 %v3759_v30, %v3751_v37  ;;  %v3747_v6 = vsub.f32 1.0, %v10936_v3  ;;  %v3763_v27 = vmul.f32 %v10936_v3, %v12995_v58  ;;  %v13224_v50 = vld [vmem:[#allocation4 + $0x18] ss:$12 sps:$4 sm:$0xff]   ;;  %v13227_v28 = vld [vmem:[#allocation4 + $0x20] ss:$12 sps:$4 sm:$0xff]  }
 0x60f   :  { %3774 = vst [vmem:[%s15179_s6 + $0x15] sm:$0x1] %v13145_v26  ;;  %v3748_v12 = vsub.f32 1.0, %v10938_v1  ;;  %v3754_v63 = vmul.f32 %v10920_v36, %v3746_v10  ;;  %v13155_v47 = vadd.f32 %v3760_v31, %v3752_v8  ;;  %v3798_v35 = vpack.c.bf16 %v13145_v26, %v13145_v26  ;;  %v13230_v37 = vld [vmem:[#allocation4 + $0x34] ss:$12 sps:$4 sm:$0xff]  }
 0x610   :  { %3775 = vst [vmem:[%s15179_s6 + $0x25] sm:$0x1] %v13147_v54  ;;  %v3755_v18 = vmul.f32 %v10922_v19, %v3747_v6  ;;  %v13161_v48 = vadd.f32 %v3761_v7, %v3753_v14  ;;  %v3799_v22 = vpack.c.bf16 %v13147_v54, %v13147_v54  ;;  %v3764_v51 = vmul.f32 %v10938_v1, %v13003_v38  ;;  %v13234_v30 = vld [vmem:[#allocation4 + $0x30] ss:$12 sps:$4 sm:$0xff]   ;;  %v13237_v31 = vld [vmem:[#allocation4 + $0x38] ss:$12 sps:$4 sm:$0xff]  }
 0x611   :  { %v3756_v55 = vmul.f32 %v10924_v29, %v3748_v12  ;;  %v13168_v58 = vadd.f32 %v3762_v45, %v3754_v63  ;;  %3776 = vst [vmem:[%s15179_s6 + $0x35] sm:$0x1] %v13155_v47  ;;  %v3800_v33 = vpack.c.bf16 %v13155_v47, %v13155_v47  ;;  %v3814_v24 = vunpack.c.l.b16 %v3798_v35  ;;  %v13240_v3 = vld [vmem:[#allocation4 + $0x4c] ss:$12 sps:$4 sm:$0xff]   ;;  %v13244_v10 = vld [vmem:[#allocation4 + $0x48] ss:$12 sps:$4 sm:$0xff]  }
 0x612   :  { %v13176_v2 = vadd.f32 %v3763_v27, %v3755_v18  ;;  %3777 = vst [vmem:[%s15179_s6 + $0x45] sm:$0x1] %v13161_v48  ;;  %v3801_v38 = vpack.c.bf16 %v13161_v48, %v13161_v48  ;;  %v3815_v46 = vunpack.c.l.b16 %v3799_v22  ;;  %v13247_v8 = vld [vmem:[#allocation4 + $0x50] ss:$12 sps:$4 sm:$0xff]   ;;  %v13254_v1 = vld [vmem:[#allocation4 + $0x60] ss:$12 sps:$4 sm:$0xff]  }
 0x613   :  { %v13184_v62 = vadd.f32 %v3764_v51, %v3756_v55  ;;  %3778 = vst [vmem:[%s15179_s6 + $0x55] sm:$0x1] %v13168_v58  ;;  %v3802_v56 = vpack.c.bf16 %v13168_v58, %v13168_v58  ;;  %v3816_v44 = vunpack.c.l.b16 %v3800_v33  ;;  %v3821_v53 = vrot.slane %v3814_v24, 7  ;;  %v13250_v7 = vld [vmem:[#allocation4 + $0x64] ss:$12 sps:$4 sm:$0xff]  }
 0x614   :  { %3779 = vst [vmem:[%s15179_s6 + $0x65] sm:$0x1] %v13176_v2  ;;  %v3803_v17 = vpack.c.bf16 %v13176_v2, %v13176_v2  ;;  %v3817_v60 = vunpack.c.l.b16 %v3801_v38  ;;  %v3823_v39 = vrot.slane %v3815_v46, 6  ;;  %v13257_v14 = vld [vmem:[#allocation4 + $0x68] ss:$12 sps:$4 sm:$0xff]  }
 0x615   :  { %3780 = vst [vmem:[%s15179_s6 + $0x75] sm:$0x1] %v13184_v62  ;;  %v3804_v41 = vpack.c.bf16 %v13184_v62, %v13184_v62  ;;  %v3818_v59 = vunpack.c.l.b16 %v3802_v56  ;;  %v3825_v57 = vrot.slane %v3816_v44, 5  ;;  %v3822_v49 = vsel %vm1703_vm3, %v3821_v53, %v3813_v34  ;;  %15300 = vst [vmem:[#allocation7_spill] sm:$0xff] %v13257_v14  ;;  %v13260_v6 = vld [vmem:[#allocation4 + $0x7c] ss:$12 sps:$4 sm:$0xff]  }
 0x616   :  { %v3819_v5 = vunpack.c.l.b16 %v3803_v17  ;;  %v3824_v43 = vsel %vm1706_vm4, %v3823_v39, %v3822_v49  ;;  %v3827_v36 = vrot.slane %v3817_v60, 4  ;;  %15301 = vst [vmem:[#allocation8_spill] sm:$0xff] %v13260_v6  ;;  %v13264_v45 = vld [vmem:[#allocation4 + $0x78] ss:$12 sps:$4 sm:$0xff]   ;;  %v13267_v12 = vld [vmem:[#allocation4 + $0x80] ss:$12 sps:$4 sm:$0xff]  }
 0x617   :  { %v3820_v9 = vunpack.c.l.b16 %v3804_v41  ;;  %v3826_v19 = vsel %vm1709_vm5, %v3825_v57, %v3824_v43  ;;  %v3829_v29 = vrot.slane %v3818_v59, 3  ;;  %15302 = vst [vmem:[#allocation9_spill] sm:$0xff] %v13264_v45  ;;  %15303 = vst [vmem:[#allocation10_spill] sm:$0xff] %v13267_v12  ;;  %v13270_v63 = vld [vmem:[#allocation4 + $0x94] ss:$12 sps:$4 sm:$0xff]  }
 0x618   :  { %v3828_v13 = vsel %vm1712_vm6, %v3827_v36, %v3826_v19  ;;  %v3831_v52 = vrot.slane %v3819_v5, 2  ;;  %15304 = vst [vmem:[#allocation11_spill] sm:$0xff] %v13270_v63  ;;  %v13274_v27 = vld [vmem:[#allocation4 + $0x90] ss:$12 sps:$4 sm:$0xff]   ;;  %v13277_v18 = vld [vmem:[#allocation4 + $0x98] ss:$12 sps:$4 sm:$0xff]  }
 0x619   :  { %v3830_v4 = vsel %vm1715_vm7, %v3829_v29, %v3828_v13  ;;  %v3833_v42 = vrot.slane %v3820_v9, 1  ;;  %15305 = vst [vmem:[#allocation12_spill] sm:$0xff] %v13274_v27  ;;  %15306 = vst [vmem:[#allocation13_spill] sm:$0xff] %v13277_v18  ;;  %v13280_v35 = vld [vmem:[#allocation4 + $0xac] ss:$12 sps:$4 sm:$0xff]  }
 0x61a   :  { %v3832_v40 = vsel %vm1718_vm8, %v3831_v52, %v3830_v4  ;;  %15307 = vst [vmem:[#allocation14_spill] sm:$0xff] %v13280_v35  ;;  %v13284_v22 = vld [vmem:[#allocation4 + $0xa8] ss:$12 sps:$4 sm:$0xff]   ;;  %v13287_v55 = vld [vmem:[#allocation4 + $0xb0] ss:$12 sps:$4 sm:$0xff]  }
 0x61b   :  { %v3834_v61 = vsel %vm1721_vm9, %v3833_v42, %v3832_v40  ;;  %15308 = vst [vmem:[#allocation15_spill] sm:$0xff] %v13284_v22  ;;  %15309 = vst [vmem:[#allocation16_spill] sm:$0xff] %v13287_v55  ;;  %v13290_v51 = vld [vmem:[#allocation4 + $0x4] ss:$12 sps:$4 sm:$0xff]  }
 0x61c   :  { %v3835_v23 = vpack.c.b16 %v3834_v61, %v3834_v61  ;;  %15310 = vst [vmem:[#allocation17_spill] sm:$0xff] %v13290_v51  ;;  %v13297_v57 = vld [vmem:[#allocation2 + $0x5] ss:$8 sm:$0x7] }
 0x61d   :  { %v13299_v5 = vld [vmem:[#allocation2 + $0x35] ss:$8 sm:$0x7] }
 0x61e   :  { %3870 = vmatmul.mubr.bf16.vlgmr.msra.gmra.mrb[52].mxu0 %v3835_v23  ;;  %10294 = vmatmul.mubr.bf16.vlgmr.msra.gmra.mrb[52].mxu1 %v3835_v23  ;;  %v13303_v19 = vld [vmem:[#allocation2 + $0x65] ss:$8 sm:$0x7] }
 0x61f   :  { %4366 = vmatpush1.bf16.msra.mxu0 %v13211_v25  ;;  %10298 = vmatpush3.bf16.msra.mxu1 %v13214_v20  ;;  %v13305_v29 = vld [vmem:[#allocation2 + $0x95] ss:$8 sm:$0x7] }
 0x620   :  { %4367 = vmatprep.subr.bf16.mxu0 %v13217_v0  ;;  %10299 = vmatprep.subr.bf16.mxu1 %v15267_v16  ;;  %v13309_v4 = vld [vmem:[#allocation2 + $0xc5] ss:$8 sm:$0x7] }
 0x621   :  { %4397 = vmatprep.mubr.bf16.mxu0 %v15268_v15  ;;  %10313 = vmatprep.mubr.msk.bf16.mxu1 %vm11945_vm0, %v15267_v16  ;;  %v13311_v42 = vld [vmem:[#allocation2 + $0xf5] ss:$8 sm:$0x7] }
 0x623   :  { %4368 = vmatpush1.bf16.msra.mxu0 %v13224_v50  ;;  %10300 = vmatpush3.bf16.msra.mxu1 %v13227_v28 }
 0x624   :  { %4369 = vmatprep.subr.bf16.mxu0 %v13230_v37  ;;  %10301 = vmatprep.subr.bf16.mxu1 %v15267_v16 }
 0x627   :  { %4370 = vmatpush1.bf16.msra.mxu0 %v13234_v30  ;;  %10302 = vmatpush3.bf16.msra.mxu1 %v13237_v31 }
 0x628   :  { %4371 = vmatprep.subr.bf16.mxu0 %v13240_v3  ;;  %10303 = vmatprep.subr.bf16.mxu1 %v15267_v16 }
 0x62b   :  { %4372 = vmatpush1.bf16.msra.mxu0 %v13244_v10  ;;  %10304 = vmatpush3.bf16.msra.mxu1 %v13247_v8 }
 0x62c   :  { %4373 = vmatprep.subr.bf16.mxu0 %v13250_v7  ;;  %10305 = vmatprep.subr.bf16.mxu1 %v15267_v16 }
 0x62f   :  { %4374 = vmatpush1.bf16.msra.mxu0 %v13254_v1  ;;  %10306 = vmatpush3.bf16.msra.mxu1 %v13257_v14 }
 0x630   :  { %4375 = vmatprep.subr.bf16.mxu0 %v13260_v6  ;;  %10307 = vmatprep.subr.bf16.mxu1 %v15267_v16 }
 0x633   :  { %4376 = vmatpush1.bf16.msra.mxu0 %v13264_v45  ;;  %10308 = vmatpush3.bf16.msra.mxu1 %v13267_v12 }
 0x634   :  { %4377 = vmatprep.subr.bf16.mxu0 %v13270_v63  ;;  %10309 = vmatprep.subr.bf16.mxu1 %v15267_v16 }
 0x637   :  { %4378 = vmatpush1.bf16.msra.mxu0 %v13274_v27  ;;  %10310 = vmatpush3.bf16.msra.mxu1 %v13277_v18 }
 0x638   :  { %4379 = vmatprep.subr.bf16.mxu0 %v13280_v35  ;;  %10311 = vmatprep.subr.bf16.mxu1 %v15267_v16 }
 0x63b   :  { %4380 = vmatpush1.bf16.msra.mxu0 %v13284_v22  ;;  %10312 = vmatpush3.bf16.msra.mxu1 %v13287_v55 }
 0x63c   :  { %4893 = vmatprep.subr.bf16.mxu0 %v13290_v51  ;;  %10317 = vmatprep.subr.bf16.mxu1 %v15267_v16 }
 0x6f1   :  { %v3871_v33 = vpop.f32.mrb[52].mxu0  ;;  %v3912_v38 = vpop.f32.mrb[52].mxu1 }
 0x6f2   :  { %v3919_v24 = vcombine.high %v3871_v33, %v3871_v33  ;;  %v3926_v46 = vrot.slane %v3871_v33, %v12002_v11  ;;  %v3873_v56 = vpop.f32.mrb[53].mxu0  ;;  %v10295_v34 = vpop.f32.mrb[53].mxu1 }
 0x6f3   :  { %v3875_v44 = vpop.f32.mrb[54].mxu0  ;;  %v3915_v17 = vpop.f32.mrb[54].mxu1  ;;  %v4064_v52 = vrot.slane %v3873_v56, %v12002_v11 }
 0x6f4   :  { %v3933_v60 = vrot.slane %v3919_v24, %v12002_v11  ;;  %v3934_v53 = vcombine.high %v3926_v46, %v3926_v46  ;;  %v3942_v39 = vrot.slane %v3926_v46, %v12002_v11  ;;  %v3876_v41 = vpop.f32.mrb[55].mxu0  ;;  %v10296_v59 = vpop.f32.mrb[55].mxu1  ;;  %v13315_v24 = vld [vmem:[#allocation2 + $0x125] ss:$8 sm:$0x7]  ;;  %v4057_v17 = vcombine.high %v3873_v56, %v3873_v56 }
 0x6f5   :  { %v4072_v22 = vcombine.high %v4064_v52, %v4064_v52  ;;  %v4080_v56 = vrot.slane %v4064_v52, %v12002_v11  ;;  %v4170_v52 = vadd.f32 %v13106_v21, %v3912_v38  ;;  %v4045_v21 = vrot.slane %v13311_v42, 1 }
 0x6f6   :  { %v3935_v49 = vcombine.high %v3933_v60, %v3933_v60  ;;  %v3949_v9 = vrot.slane %v3933_v60, %v12002_v11  ;;  %v3956_v43 = vrot.slane %v3934_v53, %v12002_v11  ;;  %v3964_v36 = vcombine.high %v3942_v39, %v3942_v39  ;;  %v13319_v60 = vld [vmem:[#allocation2 + $0x155] ss:$8 sm:$0x7] }
 0x6f7   :  { %v3976_v13 = vadd.f32 %v3942_v39, %v13297_v57  ;;  %v4046_v38 = vrot.slane %v13315_v24, 1 }
 0x6f8   :  { %v3963_v40 = vrot.slane %v3935_v49, %v12002_v11  ;;  %v3965_v61 = vcombine.high %v3949_v9, %v3949_v9  ;;  %v3966_v23 = vcombine.high %v3956_v43, %v3956_v43  ;;  %v3977_v33 = vadd.f32 %v3956_v43, %v13299_v5 }
 0x6f9   :  { %v3978_v46 = vadd.f32 %v3964_v36, %v13303_v19  ;;  %v3980_v34 = vadd.f32 %v3949_v9, %v13309_v4  ;;  %v9793_v44 = vmul.f32 -1.442695, %v3976_v13 }
 0x6fa   :  { %v3967_v53 = vcombine.high %v3963_v40, %v3963_v40  ;;  %v3979_v39 = vadd.f32 %v3966_v23, %v13305_v29  ;;  %v3981_v41 = vadd.f32 %v3963_v40, %v13311_v42  ;;  %v3982_v59 = vadd.f32 %v3965_v61, %v13315_v24 }
 0x6fb   :  { %10939 = vpow2.f32 %v9793_v44  ;;  %v9794_v49 = vmul.f32 -1.442695, %v3977_v33  ;;  %v9795_v43 = vmul.f32 -1.442695, %v3978_v46  ;;  %v9797_v36 = vmul.f32 -1.442695, %v3980_v34 }
 0x6fc   :  { %v3983_v51 = vadd.f32 %v3967_v53, %v13319_v60  ;;  %v9796_v55 = vmul.f32 -1.442695, %v3979_v39  ;;  %v9798_v9 = vmul.f32 -1.442695, %v3981_v41  ;;  %v9799_v13 = vmul.f32 -1.442695, %v3982_v59 }
 0x6fd   :  { %10941 = vpow2.f32 %v9794_v49  ;;  %v4071_v23 = vrot.slane %v4057_v17, %v12002_v11  ;;  %v4040_v61 = vrot.slane %v13297_v57, 1  ;;  %v4094_v33 = vrot.slane %v4072_v22, %v12002_v11 }
 0x6fe   :  { %10943 = vpow2.f32 %v9795_v43  ;;  %v9800_v40 = vmul.f32 -1.442695, %v3983_v51  ;;  %v4041_v46 = vrot.slane %v13299_v5, 1  ;;  %v4042_v39 = vrot.slane %v13303_v19, 1 }
 0x6ff   :  { %10945 = vpow2.f32 %v9796_v55  ;;  %v4114_v34 = vadd.f32 %v4080_v56, %v4040_v61  ;;  %v4073_v44 = vcombine.high %v4071_v23, %v4071_v23  ;;  %v4043_v55 = vrot.slane %v13305_v29, 1 }
 0x700   :  { %10947 = vpow2.f32 %v9797_v36  ;;  %v4115_v53 = vadd.f32 %v4094_v33, %v4041_v46  ;;  %v4087_v17 = vrot.slane %v4071_v23, %v12002_v11  ;;  %v4102_v41 = vcombine.high %v4080_v56, %v4080_v56 }
 0x701   :  { %10949 = vpow2.f32 %v9798_v9  ;;  %v9801_v59 = vmul.f32 -1.442695, %v4114_v34  ;;  %v4044_v43 = vrot.slane %v13309_v4, 1  ;;  %v4101_v36 = vrot.slane %v4073_v44, %v12002_v11 }
 0x702   :  { %10951 = vpow2.f32 %v9799_v13  ;;  %v9802_v22 = vmul.f32 -1.442695, %v4115_v53  ;;  %v4104_v9 = vcombine.high %v4094_v33, %v4094_v33  ;;  %v4179_v56 = vrot.slane %v4170_v52, %v12002_v11 }
 0x703   :  { %10953 = vpow2.f32 %v9800_v40  ;;  %v4172_v40 = vcombine.high %v4170_v52, %v4170_v52  ;;  %v4047_v23 = vrot.slane %v13319_v60, 1  ;;  %v4116_v35 = vadd.f32 %v4102_v41, %v4042_v39 }
 0x704   :  { %10955 = vpow2.f32 %v9801_v59  ;;  %v4105_v18 = vcombine.high %v4101_v36, %v4101_v36  ;;  %v4117_v27 = vadd.f32 %v4104_v9, %v4043_v55  ;;  %v4187_v45 = vcombine.high %v4179_v56, %v4179_v56 }
 0x705   :  { %v10940_v51 = vpop.eup %10939  ;;  %v4186_v59 = vrot.slane %v4172_v40, %v12002_v11  ;;  %v4119_v6 = vadd.f32 %v4101_v36, %v4045_v21  ;;  %v9803_v41 = vmul.f32 -1.442695, %v4116_v35  ;;  %v4238_v35 = vrot.slane %v13299_v5, 2 }
 0x706   :  { %v4008_v49 = vadd.f32 1.0, %v10940_v51  ;;  %v4103_v51 = vcombine.high %v4087_v17, %v4087_v17  ;;  %v9804_v55 = vmul.f32 -1.442695, %v4117_v27  ;;  %v4209_v40 = vrot.slane %v4187_v45, %v12002_v11 }
 0x707   :  { %v10942_v13 = vpop.eup %10941 }
 0x708   :  { %v10944_v61 = vpop.eup %10943  ;;  %v4009_v46 = vadd.f32 1.0, %v10942_v13  ;;  %10957 = vrcp.f32 %v4008_v49  ;;  %v4118_v49 = vadd.f32 %v4087_v17, %v4044_v43  ;;  %v4120_v39 = vadd.f32 %v4103_v51, %v4046_v38 }
 0x709   :  { %v10946_v34 = vpop.eup %10945  ;;  %v4010_v53 = vadd.f32 1.0, %v10944_v61  ;;  %10959 = vpow2.f32 %v9802_v22  ;;  %v4195_v17 = vrot.slane %v4179_v56, %v12002_v11  ;;  %v9806_v43 = vmul.f32 -1.442695, %v4119_v6 }
 0x70a   :  { %v10948_v33 = vpop.eup %10947  ;;  %v4011_v44 = vadd.f32 1.0, %v10946_v34  ;;  %10961 = vrcp.f32 %v4009_v46  ;;  %v4121_v46 = vadd.f32 %v4105_v18, %v4047_v23  ;;  %v9805_v9 = vmul.f32 -1.442695, %v4118_v49 }
 0x70b   :  { %v10950_v63 = vpop.eup %10949  ;;  %v4012_v12 = vadd.f32 1.0, %v10948_v33  ;;  %10963 = vrcp.f32 %v4010_v53  ;;  %v4188_v34 = vcombine.high %v4186_v59, %v4186_v59  ;;  %v9807_v36 = vmul.f32 -1.442695, %v4120_v39 }
 0x70c   :  { %v10952_v13 = vpop.eup %10951  ;;  %v4013_v52 = vadd.f32 1.0, %v10950_v63  ;;  %10965 = vrcp.f32 %v4011_v44  ;;  %v9808_v18 = vmul.f32 -1.442695, %v4121_v46  ;;  %v4202_v38 = vrot.slane %v4186_v59, %v12002_v11 }
 0x70d   :  { %v10954_v61 = vpop.eup %10953  ;;  %v4014_v14 = vadd.f32 1.0, %v10952_v13  ;;  %10967 = vrcp.f32 %v4012_v12  ;;  %v4237_v12 = vrot.slane %v13297_v57, 2  ;;  %v4216_v56 = vrot.slane %v4188_v34, %v12002_v11 }
 0x70e   :  { %v4015_v22 = vadd.f32 1.0, %v10954_v61  ;;  %10969 = vrcp.f32 %v4013_v52  ;;  %v10956_v63 = vpop.eup %10955  ;;  %v4217_v45 = vcombine.high %v4195_v17, %v4195_v17  ;;  %v4219_v33 = vcombine.high %v4209_v40, %v4209_v40 }
 0x70f   :  { %10971 = vrcp.f32 %v4014_v14  ;;  %v4239_v14 = vrot.slane %v13303_v19, 2  ;;  %v4146_v53 = vadd.f32 1.0, %v10956_v63  ;;  %v4240_v49 = vrot.slane %v13305_v29, 2 }
 0x710   :  { %10973 = vrcp.f32 %v4015_v22  ;;  %v4241_v19 = vrot.slane %v13309_v4, 2  ;;  %v4242_v52 = vrot.slane %v13311_v42, 2  ;;  %v4218_v22 = vcombine.high %v4202_v38, %v4202_v38 }
 0x711   :  { %10975 = vpow2.f32 %v9803_v41  ;;  %v4220_v34 = vcombine.high %v4216_v56, %v4216_v56  ;;  %v4243_v4 = vrot.slane %v13315_v24, 2 }
 0x712   :  { %v10958_v21 = vpop.eup %10957  ;;  %10977 = vpow2.f32 %v9804_v55 }
 0x713   :  { %v10960_v27 = vpop.eup %10959  ;;  %v4229_v23 = vmul.f32 %v10958_v21, %v4195_v17  ;;  %10979 = vpow2.f32 %v9805_v9 }
 0x714   :  { %v10962_v6 = vpop.eup %10961  ;;  %10981 = vpow2.f32 %v9806_v43 }
 0x715   :  { %v10964_v51 = vpop.eup %10963  ;;  %v4230_v57 = vmul.f32 %v10962_v6, %v4209_v40  ;;  %v4253_v44 = vadd.f32 %v4237_v12, %v4229_v23  ;;  %10983 = vpow2.f32 %v9807_v36  ;;  %v4244_v36 = vrot.slane %v13319_v60, 2 }
 0x716   :  { %v10966_v5 = vpop.eup %10965  ;;  %v4231_v13 = vmul.f32 %v10964_v51, %v4217_v45  ;;  %10985 = vpow2.f32 %v9808_v18 }
 0x717   :  { %v10968_v59 = vpop.eup %10967  ;;  %v4232_v61 = vmul.f32 %v10966_v5, %v4219_v33  ;;  %v4254_v39 = vadd.f32 %v4238_v35, %v4230_v57  ;;  %10987 = vtanh.f32 %v4253_v44 }
 0x718   :  { %v10970_v41 = vpop.eup %10969  ;;  %v4233_v46 = vmul.f32 %v10968_v59, %v4202_v38  ;;  %v4255_v55 = vadd.f32 %v4239_v14, %v4231_v13  ;;  %10989 = vrcp.f32 %v4146_v53  ;;  %v4147_v14 = vadd.f32 1.0, %v10960_v27 }
 0x719   :  { %v10972_v9 = vpop.eup %10971  ;;  %v4234_v17 = vmul.f32 %v10970_v41, %v4216_v56  ;;  %v4256_v43 = vadd.f32 %v4240_v49, %v4232_v61  ;;  %10991 = vtanh.f32 %v4254_v39 }
 0x71a   :  { %v10974_v29 = vpop.eup %10973  ;;  %v4235_v63 = vmul.f32 %v10972_v9, %v4218_v22  ;;  %v4257_v40 = vadd.f32 %v4241_v19, %v4233_v46  ;;  %10993 = vtanh.f32 %v4255_v55 }
 0x71b   :  { %v10976_v42 = vpop.eup %10975  ;;  %v4236_v21 = vmul.f32 %v10974_v29, %v4220_v34  ;;  %v4258_v12 = vadd.f32 %v4242_v52, %v4234_v17  ;;  %10995 = vtanh.f32 %v4256_v43 }
 0x71c   :  { %v10978_v35 = vpop.eup %10977  ;;  %v4259_v18 = vadd.f32 %v4243_v4, %v4235_v63  ;;  %10997 = vtanh.f32 %v4257_v40  ;;  %v4148_v6 = vadd.f32 1.0, %v10976_v42 }
 0x71d   :  { %v10980_v38 = vpop.eup %10979  ;;  %v4260_v23 = vadd.f32 %v4244_v36, %v4236_v21  ;;  %10999 = vtanh.f32 %v4258_v12  ;;  %v4149_v24 = vadd.f32 1.0, %v10978_v35 }
 0x71e   :  { %v10982_v56 = vpop.eup %10981  ;;  %11001 = vtanh.f32 %v4259_v18  ;;  %v4150_v53 = vadd.f32 1.0, %v10980_v38 }
 0x71f   :  { %v10984_v45 = vpop.eup %10983  ;;  %11003 = vtanh.f32 %v4260_v23  ;;  %v4151_v33 = vadd.f32 1.0, %v10982_v56 }
 0x720   :  { %v10986_v51 = vpop.eup %10985  ;;  %11005 = vrcp.f32 %v4147_v14  ;;  %v4152_v57 = vadd.f32 1.0, %v10984_v45 }
 0x721   :  { %v10988_v60 = vpop.eup %10987  ;;  %11007 = vrcp.f32 %v4148_v6  ;;  %v4153_v5 = vadd.f32 1.0, %v10986_v51 }
 0x722   :  { %v10990_v44 = vpop.eup %10989  ;;  %11009 = vrcp.f32 %v4149_v24 }
 0x723   :  { %v10992_v27 = vpop.eup %10991  ;;  %11011 = vrcp.f32 %v4150_v53  ;;  %v4269_v49 = vsub.f32 1.0, %v10990_v44  ;;  %v4285_v52 = vmul.f32 %v10990_v44, %v13133_v32 }
 0x724   :  { %v10994_v19 = vpop.eup %10993  ;;  %11013 = vrcp.f32 %v4151_v33 }
 0x725   :  { %v10996_v13 = vpop.eup %10995  ;;  %11015 = vrcp.f32 %v4152_v57  ;;  %v4277_v59 = vmul.f32 %v10988_v60, %v4269_v49 }
 0x726   :  { %v10998_v61 = vpop.eup %10997  ;;  %11017 = vrcp.f32 %v4153_v5 }
 0x727   :  { %v11000_v39 = vpop.eup %10999  ;;  %v13354_v41 = vadd.f32 %v4285_v52, %v4277_v59 }
 0x728   :  { %v11002_v22 = vpop.eup %11001 }
 0x729   :  { %v11004_v46 = vpop.eup %11003  ;;  %4301 = vst [vmem:[%s15179_s6 + $0x6] sm:$0x1] %v13354_v41  ;;  %v4325_v40 = vpack.c.bf16 %v13354_v41, %v13354_v41 }
 0x72a   :  { %v11006_v55 = vpop.eup %11005 }
 0x72b   :  { %v11008_v9 = vpop.eup %11007  ;;  %v4270_v34 = vsub.f32 1.0, %v11006_v55  ;;  %v4286_v63 = vmul.f32 %v11006_v55, %v13145_v26 }
 0x72c   :  { %v11010_v17 = vpop.eup %11009  ;;  %v4271_v43 = vsub.f32 1.0, %v11008_v9  ;;  %v4287_v12 = vmul.f32 %v11008_v9, %v13147_v54 }
 0x72d   :  { %v11012_v29 = vpop.eup %11011  ;;  %v4272_v4 = vsub.f32 1.0, %v11010_v17  ;;  %v4278_v32 = vmul.f32 %v10992_v27, %v4270_v34  ;;  %v4288_v35 = vmul.f32 %v11010_v17, %v13155_v47 }
 0x72e   :  { %v11014_v42 = vpop.eup %11013  ;;  %v4273_v36 = vsub.f32 1.0, %v11012_v29  ;;  %v4279_v21 = vmul.f32 %v10994_v19, %v4271_v43  ;;  %v4289_v23 = vmul.f32 %v11012_v29, %v13161_v48 }
 0x72f   :  { %v11016_v18 = vpop.eup %11015  ;;  %v4274_v14 = vsub.f32 1.0, %v11014_v42  ;;  %v4280_v38 = vmul.f32 %v10996_v13, %v4272_v4  ;;  %v13366_v6 = vadd.f32 %v4286_v63, %v4278_v32  ;;  %v4290_v53 = vmul.f32 %v11014_v42, %v13168_v58 }
 0x730   :  { %v11018_v56 = vpop.eup %11017  ;;  %v4281_v24 = vmul.f32 %v10998_v61, %v4273_v36  ;;  %v13368_v26 = vadd.f32 %v4287_v12, %v4279_v21  ;;  %v4275_v45 = vsub.f32 1.0, %v11016_v18  ;;  %v4291_v51 = vmul.f32 %v11016_v18, %v13176_v2 }
 0x731   :  { %4302 = vst [vmem:[%s15179_s6 + $0x16] sm:$0x1] %v13366_v6  ;;  %v4276_v54 = vsub.f32 1.0, %v11018_v56  ;;  %v4282_v47 = vmul.f32 %v11000_v39, %v4274_v14  ;;  %v13376_v33 = vadd.f32 %v4288_v35, %v4280_v38  ;;  %v4326_v58 = vpack.c.bf16 %v13366_v6, %v13366_v6 }
 0x732   :  { %4303 = vst [vmem:[%s15179_s6 + $0x26] sm:$0x1] %v13368_v26  ;;  %v4283_v48 = vmul.f32 %v11002_v22, %v4275_v45  ;;  %v13382_v60 = vadd.f32 %v4289_v23, %v4281_v24  ;;  %v4327_v57 = vpack.c.bf16 %v13368_v26, %v13368_v26  ;;  %v4292_v5 = vmul.f32 %v11018_v56, %v13184_v62 }
 0x733   :  { %v4284_v44 = vmul.f32 %v11004_v46, %v4276_v54  ;;  %v13389_v2 = vadd.f32 %v4290_v53, %v4282_v47  ;;  %4304 = vst [vmem:[%s15179_s6 + $0x36] sm:$0x1] %v13376_v33  ;;  %v4328_v27 = vpack.c.bf16 %v13376_v33, %v13376_v33  ;;  %v4342_v19 = vunpack.c.l.b16 %v4326_v58 }
 0x734   :  { %v13397_v49 = vadd.f32 %v4291_v51, %v4283_v48  ;;  %4305 = vst [vmem:[%s15179_s6 + $0x46] sm:$0x1] %v13382_v60  ;;  %v4329_v62 = vpack.c.bf16 %v13382_v60, %v13382_v60  ;;  %v4343_v13 = vunpack.c.l.b16 %v4327_v57  ;;  %v4341_v61 = vunpack.c.l.b16 %v4325_v40 }
 0x735   :  { %v13405_v59 = vadd.f32 %v4292_v5, %v4284_v44  ;;  %4306 = vst [vmem:[%s15179_s6 + $0x56] sm:$0x1] %v13389_v2  ;;  %v4330_v52 = vpack.c.bf16 %v13389_v2, %v13389_v2  ;;  %v4344_v39 = vunpack.c.l.b16 %v4328_v27  ;;  %v4349_v55 = vrot.slane %v4342_v19, 7  ;;  %v13472_v5 = vld [vmem:[#allocation2 + $0x6] ss:$8 sm:$0x7] }
 0x736   :  { %4307 = vst [vmem:[%s15179_s6 + $0x66] sm:$0x1] %v13397_v49  ;;  %v4331_v22 = vpack.c.bf16 %v13397_v49, %v13397_v49  ;;  %v4345_v46 = vunpack.c.l.b16 %v4329_v62  ;;  %v4351_v9 = vrot.slane %v4343_v13, 6  ;;  %v13474_v27 = vld [vmem:[#allocation2 + $0x36] ss:$8 sm:$0x7] }
 0x737   :  { %4308 = vst [vmem:[%s15179_s6 + $0x76] sm:$0x1] %v13405_v59  ;;  %v4332_v34 = vpack.c.bf16 %v13405_v59, %v13405_v59  ;;  %v4346_v17 = vunpack.c.l.b16 %v4330_v52  ;;  %v4353_v43 = vrot.slane %v4344_v39, 5  ;;  %v4350_v4 = vsel %vm1703_vm3, %v4349_v55, %v4341_v61  ;;  %v13478_v61 = vld [vmem:[#allocation2 + $0x66] ss:$8 sm:$0x7] }
 0x738   :  { %v4347_v29 = vunpack.c.l.b16 %v4331_v22  ;;  %v4352_v63 = vsel %vm1706_vm4, %v4351_v9, %v4350_v4  ;;  %v4355_v40 = vrot.slane %v4345_v46, 4  ;;  %v13480_v39 = vld [vmem:[#allocation2 + $0x96] ss:$8 sm:$0x7] }
 0x739   :  { %v4348_v32 = vunpack.c.l.b16 %v4332_v34  ;;  %v4354_v42 = vsel %vm1709_vm5, %v4353_v43, %v4352_v63  ;;  %v4357_v36 = vrot.slane %v4346_v17, 3  ;;  %v13484_v55 = vld [vmem:[#allocation2 + $0xc6] ss:$8 sm:$0x7] }
 0x73a   :  { %v4356_v21 = vsel %vm1712_vm6, %v4355_v40, %v4354_v42  ;;  %v4359_v12 = vrot.slane %v4347_v29, 2  ;;  %v13486_v9 = vld [vmem:[#allocation2 + $0xf6] ss:$8 sm:$0x7] }
 0x73b   :  { %v4358_v35 = vsel %vm1715_vm7, %v4357_v36, %v4356_v21  ;;  %v4361_v18 = vrot.slane %v4348_v32, 1  ;;  %v13490_v4 = vld [vmem:[#allocation2 + $0x126] ss:$8 sm:$0x7] }
 0x73c   :  { %v4360_v14 = vsel %vm1718_vm8, %v4359_v12, %v4358_v35  ;;  %v13494_v36 = vld [vmem:[#allocation2 + $0x156] ss:$8 sm:$0x7] }
 0x73d   :  { %v4362_v38 = vsel %vm1721_vm9, %v4361_v18, %v4360_v14 }
 0x73e   :  { %v4363_v23 = vpack.c.b16 %v4362_v38, %v4362_v38 }
 0x740   :  { %4398 = vmatmul.mubr.bf16.vlgmr.msra.gmra.mrb[56].mxu0 %v4363_v23  ;;  %10314 = vmatmul.mubr.bf16.vlgmr.msra.gmra.mrb[56].mxu1 %v4363_v23 }
 0x741   :  { %4894 = vmatpush1.bf16.msra.mxu0 %v13211_v25  ;;  %10318 = vmatpush3.bf16.msra.mxu1 %v13214_v20  ;;  %v15311_v25 = vld [vmem:[#allocation7_spill] sm:$0xff]  ;;  %v15312_v20 = vld [vmem:[#allocation8_spill] sm:$0xff] }
 0x742   :  { %4895 = vmatprep.subr.bf16.mxu0 %v13217_v0  ;;  %10319 = vmatprep.subr.bf16.mxu1 %v15267_v16  ;;  %v15313_v0 = vld [vmem:[#allocation9_spill] sm:$0xff] }
 0x743   :  { %4925 = vmatprep.mubr.bf16.mxu0 %v15268_v15  ;;  %10333 = vmatprep.mubr.msk.bf16.mxu1 %vm11945_vm0, %v15267_v16 }
 0x745   :  { %4896 = vmatpush1.bf16.msra.mxu0 %v13224_v50  ;;  %10320 = vmatpush3.bf16.msra.mxu1 %v13227_v28  ;;  %v15314_v50 = vld [vmem:[#allocation10_spill] sm:$0xff]  ;;  %v15315_v28 = vld [vmem:[#allocation11_spill] sm:$0xff] }
 0x746   :  { %4897 = vmatprep.subr.bf16.mxu0 %v13230_v37  ;;  %10321 = vmatprep.subr.bf16.mxu1 %v15267_v16  ;;  %v15316_v37 = vld [vmem:[#allocation12_spill] sm:$0xff] }
 0x749   :  { %4898 = vmatpush1.bf16.msra.mxu0 %v13234_v30  ;;  %10322 = vmatpush3.bf16.msra.mxu1 %v13237_v31  ;;  %v15317_v30 = vld [vmem:[#allocation13_spill] sm:$0xff]  ;;  %v15318_v31 = vld [vmem:[#allocation14_spill] sm:$0xff] }
 0x74a   :  { %4899 = vmatprep.subr.bf16.mxu0 %v13240_v3  ;;  %10323 = vmatprep.subr.bf16.mxu1 %v15267_v16  ;;  %v15319_v3 = vld [vmem:[#allocation15_spill] sm:$0xff] }
 0x74d   :  { %4900 = vmatpush1.bf16.msra.mxu0 %v13244_v10  ;;  %10324 = vmatpush3.bf16.msra.mxu1 %v13247_v8  ;;  %v15320_v10 = vld [vmem:[#allocation16_spill] sm:$0xff]  ;;  %v15321_v8 = vld [vmem:[#allocation17_spill] sm:$0xff] }
 0x74e   :  { %4901 = vmatprep.subr.bf16.mxu0 %v13250_v7  ;;  %10325 = vmatprep.subr.bf16.mxu1 %v15267_v16 }
 0x751   :  { %4902 = vmatpush1.bf16.msra.mxu0 %v13254_v1  ;;  %10326 = vmatpush3.bf16.msra.mxu1 %v15311_v25 }
 0x752   :  { %4903 = vmatprep.subr.bf16.mxu0 %v15312_v20  ;;  %10327 = vmatprep.subr.bf16.mxu1 %v15267_v16 }
 0x755   :  { %4904 = vmatpush1.bf16.msra.mxu0 %v15313_v0  ;;  %10328 = vmatpush3.bf16.msra.mxu1 %v15314_v50 }
 0x756   :  { %4905 = vmatprep.subr.bf16.mxu0 %v15315_v28  ;;  %10329 = vmatprep.subr.bf16.mxu1 %v15267_v16 }
 0x759   :  { %4906 = vmatpush1.bf16.msra.mxu0 %v15316_v37  ;;  %10330 = vmatpush3.bf16.msra.mxu1 %v15317_v30 }
 0x75a   :  { %4907 = vmatprep.subr.bf16.mxu0 %v15318_v31  ;;  %10331 = vmatprep.subr.bf16.mxu1 %v15267_v16 }
 0x75d   :  { %4908 = vmatpush1.bf16.msra.mxu0 %v15319_v3  ;;  %10332 = vmatpush3.bf16.msra.mxu1 %v15320_v10  ;;  %v4568_v3 = vrot.slane %v13472_v5, 1 }
 0x75e   :  { %5421 = vmatprep.subr.bf16.mxu0 %v15321_v8  ;;  %10337 = vmatprep.subr.bf16.mxu1 %v15267_v16  ;;  %v4569_v8 = vrot.slane %v13474_v27, 1 }
 0x813   :  { %v4399_v7 = vpop.f32.mrb[56].mxu0  ;;  %v13467_v1 = vpop.f32.mrb[56].mxu1 }
 0x814   :  { %v4447_v56 = vcombine.high %v4399_v7, %v4399_v7  ;;  %v4454_v24 = vrot.slane %v4399_v7, %v12002_v11  ;;  %v4401_v45 = vpop.f32.mrb[57].mxu0  ;;  %v10315_v53 = vpop.f32.mrb[57].mxu1 }
 0x815   :  { %v4403_v54 = vpop.f32.mrb[58].mxu0  ;;  %v4443_v47 = vpop.f32.mrb[58].mxu1  ;;  %v4592_v46 = vrot.slane %v4401_v45, %v12002_v11  ;;  %v4585_v42 = vcombine.high %v4401_v45, %v4401_v45 }
 0x816   :  { %v4461_v51 = vrot.slane %v4447_v56, %v12002_v11  ;;  %v4462_v48 = vcombine.high %v4454_v24, %v4454_v24  ;;  %v4470_v58 = vrot.slane %v4454_v24, %v12002_v11  ;;  %v4404_v57 = vpop.f32.mrb[59].mxu0  ;;  %v10316_v44 = vpop.f32.mrb[59].mxu1  ;;  %v13508_v24 = vld [vmem:[%s15177_s4] ss:$0 sm:$0xff]  ;;  %v4570_v54 = vrot.slane %v13478_v61, 1 }
 0x817   :  { %v4600_v0 = vcombine.high %v4592_v46, %v4592_v46  ;;  %v4608_v28 = vrot.slane %v4592_v46, %v12002_v11  ;;  %v4599_v30 = vrot.slane %v4585_v42, %v12002_v11  ;;  %v4698_v45 = vadd.f32 %v13508_v24, %v13467_v1 }
 0x818   :  { %v4463_v62 = vcombine.high %v4461_v51, %v4461_v51  ;;  %v4477_v19 = vrot.slane %v4461_v51, %v12002_v11  ;;  %v4484_v13 = vrot.slane %v4462_v48, %v12002_v11  ;;  %v4492_v52 = vcombine.high %v4470_v58, %v4470_v58 }
 0x819   :  { %v4504_v22 = vadd.f32 %v4470_v58, %v13472_v5  ;;  %v4622_v10 = vrot.slane %v4600_v0, %v12002_v11  ;;  %v4642_v7 = vadd.f32 %v4608_v28, %v4568_v3  ;;  %v4601_v56 = vcombine.high %v4599_v30, %v4599_v30 }
 0x81a   :  { %v4491_v34 = vrot.slane %v4463_v62, %v12002_v11  ;;  %v4493_v17 = vcombine.high %v4477_v19, %v4477_v19  ;;  %v4494_v43 = vcombine.high %v4484_v13, %v4484_v13  ;;  %v4505_v29 = vadd.f32 %v4484_v13, %v13474_v27 }
 0x81b   :  { %v4506_v32 = vadd.f32 %v4492_v52, %v13478_v61  ;;  %v4508_v63 = vadd.f32 %v4477_v19, %v13484_v55  ;;  %v9809_v40 = vmul.f32 -1.442695, %v4504_v22  ;;  %v4643_v53 = vadd.f32 %v4622_v10, %v4569_v8 }
 0x81c   :  { %v4495_v21 = vcombine.high %v4491_v34, %v4491_v34  ;;  %v4507_v12 = vadd.f32 %v4494_v43, %v13480_v39  ;;  %v4509_v35 = vadd.f32 %v4491_v34, %v13486_v9  ;;  %v4510_v18 = vadd.f32 %v4493_v17, %v13490_v4 }
 0x81d   :  { %11019 = vpow2.f32 %v9809_v40  ;;  %v9810_v14 = vmul.f32 -1.442695, %v4505_v29  ;;  %v9811_v38 = vmul.f32 -1.442695, %v4506_v32  ;;  %v9813_v20 = vmul.f32 -1.442695, %v4508_v63 }
 0x81e   :  { %v4511_v23 = vadd.f32 %v4495_v21, %v13494_v36  ;;  %v9812_v25 = vmul.f32 -1.442695, %v4507_v12  ;;  %v9814_v50 = vmul.f32 -1.442695, %v4509_v35  ;;  %v9815_v37 = vmul.f32 -1.442695, %v4510_v18 }
 0x81f   :  { %11021 = vpow2.f32 %v9810_v14  ;;  %v4571_v47 = vrot.slane %v13480_v39, 1  ;;  %v4615_v48 = vrot.slane %v4599_v30, %v12002_v11  ;;  %v4630_v58 = vcombine.high %v4608_v28, %v4608_v28 }
 0x820   :  { %11023 = vpow2.f32 %v9811_v38  ;;  %v9816_v31 = vmul.f32 -1.442695, %v4511_v23  ;;  %v9817_v57 = vmul.f32 -1.442695, %v4642_v7  ;;  %v9818_v44 = vmul.f32 -1.442695, %v4643_v53 }
 0x821   :  { %11025 = vpow2.f32 %v9812_v25  ;;  %v4572_v19 = vrot.slane %v13484_v55, 1  ;;  %v4629_v13 = vrot.slane %v4601_v56, %v12002_v11  ;;  %v4632_v52 = vcombine.high %v4622_v10, %v4622_v10 }
 0x822   :  { %11027 = vpow2.f32 %v9813_v20  ;;  %v4700_v46 = vcombine.high %v4698_v45, %v4698_v45  ;;  %v4573_v1 = vrot.slane %v13486_v9, 1  ;;  %v4574_v34 = vrot.slane %v13490_v4, 1 }
 0x823   :  { %11029 = vpow2.f32 %v9814_v50  ;;  %v4707_v29 = vrot.slane %v4698_v45, %v12002_v11  ;;  %v4575_v32 = vrot.slane %v13494_v36, 1  ;;  %v4631_v42 = vcombine.high %v4615_v48, %v4615_v48 }
 0x824   :  { %11031 = vpow2.f32 %v9815_v37  ;;  %v4644_v21 = vadd.f32 %v4630_v58, %v4570_v54  ;;  %v4633_v18 = vcombine.high %v4629_v13, %v4629_v13  ;;  %v4645_v14 = vadd.f32 %v4632_v52, %v4571_v47 }
 0x825   :  { %11033 = vpow2.f32 %v9816_v31  ;;  %v4714_v25 = vrot.slane %v4700_v46, %v12002_v11  ;;  %v4646_v20 = vadd.f32 %v4615_v48, %v4572_v19  ;;  %v4715_v28 = vcombine.high %v4707_v29, %v4707_v29 }
 0x826   :  { %11035 = vpow2.f32 %v9817_v57  ;;  %v4647_v37 = vadd.f32 %v4629_v13, %v4573_v1  ;;  %v4648_v3 = vadd.f32 %v4631_v42, %v4574_v34  ;;  %v9819_v10 = vmul.f32 -1.442695, %v4644_v21 }
 0x827   :  { %v11020_v51 = vpop.eup %11019  ;;  %v4649_v7 = vadd.f32 %v4633_v18, %v4575_v32  ;;  %v9820_v56 = vmul.f32 -1.442695, %v4645_v14  ;;  %v9821_v45 = vmul.f32 -1.442695, %v4646_v20  ;;  %v4716_v53 = vcombine.high %v4714_v25, %v4714_v25 }
 0x828   :  { %v4536_v62 = vadd.f32 1.0, %v11020_v51  ;;  %v4723_v54 = vrot.slane %v4707_v29, %v12002_v11  ;;  %v9822_v47 = vmul.f32 -1.442695, %v4647_v37  ;;  %v4737_v48 = vrot.slane %v4715_v28, %v12002_v11 }
 0x829   :  { %v11022_v22 = vpop.eup %11021  ;;  %v9823_v58 = vmul.f32 -1.442695, %v4648_v3  ;;  %v9824_v19 = vmul.f32 -1.442695, %v4649_v7  ;;  %v4767_v52 = vrot.slane %v13478_v61, 2  ;;  %v4744_v34 = vrot.slane %v4716_v53, %v12002_v11 }
 0x82a   :  { %v11024_v17 = vpop.eup %11023  ;;  %v4537_v43 = vadd.f32 1.0, %v11022_v22  ;;  %11037 = vrcp.f32 %v4536_v62  ;;  %v4766_v62 = vrot.slane %v13474_v27, 2  ;;  %v4730_v22 = vrot.slane %v4714_v25, %v12002_v11 }
 0x82b   :  { %v11026_v63 = vpop.eup %11025  ;;  %v4538_v40 = vadd.f32 1.0, %v11024_v17  ;;  %11039 = vpow2.f32 %v9818_v44  ;;  %v4765_v44 = vrot.slane %v13472_v5, 2  ;;  %v4745_v17 = vcombine.high %v4723_v54, %v4723_v54 }
 0x82c   :  { %v11028_v12 = vpop.eup %11027  ;;  %v4539_v35 = vadd.f32 1.0, %v11026_v63  ;;  %11041 = vrcp.f32 %v4537_v43  ;;  %v4747_v32 = vcombine.high %v4737_v48, %v4737_v48  ;;  %v4769_v61 = vrot.slane %v13484_v55, 2 }
 0x82d   :  { %v11030_v38 = vpop.eup %11029  ;;  %v4540_v23 = vadd.f32 1.0, %v11028_v12  ;;  %11043 = vrcp.f32 %v4538_v40  ;;  %v4768_v40 = vrot.slane %v13480_v39, 2  ;;  %v4770_v12 = vrot.slane %v13486_v9, 2 }
 0x82e   :  { %v11032_v0 = vpop.eup %11031  ;;  %v4541_v50 = vadd.f32 1.0, %v11030_v38  ;;  %11045 = vrcp.f32 %v4539_v35  ;;  %v4746_v38 = vcombine.high %v4730_v22, %v4730_v22  ;;  %v4771_v55 = vrot.slane %v13490_v4, 2 }
 0x82f   :  { %v11034_v30 = vpop.eup %11033  ;;  %v4542_v31 = vadd.f32 1.0, %v11032_v0  ;;  %11047 = vrcp.f32 %v4540_v23  ;;  %v4748_v0 = vcombine.high %v4744_v34, %v4744_v34 }
 0x830   :  { %v4543_v8 = vadd.f32 1.0, %v11034_v30  ;;  %11049 = vrcp.f32 %v4541_v50  ;;  %v11036_v51 = vpop.eup %11035 }
 0x831   :  { %11051 = vrcp.f32 %v4542_v31  ;;  %v4674_v43 = vadd.f32 1.0, %v11036_v51  ;;  %v4772_v31 = vrot.slane %v13494_v36, 2 }
 0x832   :  { %11053 = vrcp.f32 %v4543_v8 }
 0x833   :  { %11055 = vpow2.f32 %v9819_v10 }
 0x834   :  { %v11038_v57 = vpop.eup %11037  ;;  %11057 = vpow2.f32 %v9820_v56 }
 0x835   :  { %v11040_v13 = vpop.eup %11039  ;;  %v4757_v46 = vmul.f32 %v11038_v57, %v4723_v54  ;;  %11059 = vpow2.f32 %v9821_v45 }
 0x836   :  { %v11042_v1 = vpop.eup %11041  ;;  %11061 = vpow2.f32 %v9822_v47  ;;  %v4675_v56 = vadd.f32 1.0, %v11040_v13 }
 0x837   :  { %v11044_v29 = vpop.eup %11043  ;;  %v4758_v5 = vmul.f32 %v11042_v1, %v4737_v48  ;;  %v4781_v63 = vadd.f32 %v4765_v44, %v4757_v46  ;;  %11063 = vpow2.f32 %v9823_v58 }
 0x838   :  { %v11046_v27 = vpop.eup %11045  ;;  %v4759_v42 = vmul.f32 %v11044_v29, %v4745_v17  ;;  %11065 = vpow2.f32 %v9824_v19 }
 0x839   :  { %v11048_v21 = vpop.eup %11047  ;;  %v4760_v35 = vmul.f32 %v11046_v27, %v4747_v32  ;;  %v4782_v18 = vadd.f32 %v4766_v62, %v4758_v5  ;;  %11067 = vtanh.f32 %v4781_v63 }
 0x83a   :  { %v11050_v14 = vpop.eup %11049  ;;  %v4761_v23 = vmul.f32 %v11048_v21, %v4730_v22  ;;  %v4783_v25 = vadd.f32 %v4767_v52, %v4759_v42  ;;  %11069 = vrcp.f32 %v4674_v43 }
 0x83b   :  { %v11052_v20 = vpop.eup %11051  ;;  %v4762_v50 = vmul.f32 %v11050_v14, %v4744_v34  ;;  %v4784_v28 = vadd.f32 %v4768_v40, %v4760_v35  ;;  %11071 = vtanh.f32 %v4782_v18 }
 0x83c   :  { %v11054_v39 = vpop.eup %11053  ;;  %v4763_v37 = vmul.f32 %v11052_v20, %v4746_v38  ;;  %v4785_v30 = vadd.f32 %v4769_v61, %v4761_v23  ;;  %11073 = vtanh.f32 %v4783_v25 }
 0x83d   :  { %v11056_v9 = vpop.eup %11055  ;;  %v4764_v3 = vmul.f32 %v11054_v39, %v4748_v0  ;;  %v4786_v10 = vadd.f32 %v4770_v12, %v4762_v50  ;;  %11075 = vtanh.f32 %v4784_v28 }
 0x83e   :  { %v11058_v8 = vpop.eup %11057  ;;  %v4787_v7 = vadd.f32 %v4771_v55, %v4763_v37  ;;  %11077 = vtanh.f32 %v4785_v30  ;;  %v4676_v54 = vadd.f32 1.0, %v11056_v9 }
 0x83f   :  { %v11060_v45 = vpop.eup %11059  ;;  %v4788_v53 = vadd.f32 %v4772_v31, %v4764_v3  ;;  %11079 = vtanh.f32 %v4786_v10  ;;  %v4677_v4 = vadd.f32 1.0, %v11058_v8 }
 0x840   :  { %v11062_v47 = vpop.eup %11061  ;;  %11081 = vtanh.f32 %v4787_v7  ;;  %v4678_v48 = vadd.f32 1.0, %v11060_v45 }
 0x841   :  { %v11064_v51 = vpop.eup %11063  ;;  %11083 = vtanh.f32 %v4788_v53  ;;  %v4679_v57 = vadd.f32 1.0, %v11062_v47 }
 0x842   :  { %v11066_v58 = vpop.eup %11065  ;;  %11085 = vrcp.f32 %v4675_v56  ;;  %v4680_v44 = vadd.f32 1.0, %v11064_v51 }
 0x843   :  { %v11068_v36 = vpop.eup %11067  ;;  %11087 = vrcp.f32 %v4676_v54  ;;  %v4681_v19 = vadd.f32 1.0, %v11066_v58 }
 0x844   :  { %v11070_v62 = vpop.eup %11069  ;;  %11089 = vrcp.f32 %v4677_v4 }
 0x845   :  { %v11072_v13 = vpop.eup %11071  ;;  %11091 = vrcp.f32 %v4678_v48  ;;  %v4797_v52 = vsub.f32 1.0, %v11070_v62  ;;  %v4813_v34 = vmul.f32 %v11070_v62, %v13354_v41 }
 0x846   :  { %v11074_v22 = vpop.eup %11073  ;;  %11093 = vrcp.f32 %v4679_v57 }
 0x847   :  { %v11076_v46 = vpop.eup %11075  ;;  %11095 = vrcp.f32 %v4680_v44  ;;  %v4805_v1 = vmul.f32 %v11068_v36, %v4797_v52 }
 0x848   :  { %v11078_v17 = vpop.eup %11077  ;;  %11097 = vrcp.f32 %v4681_v19 }
 0x849   :  { %v11080_v43 = vpop.eup %11079  ;;  %v13535_v29 = vadd.f32 %v4813_v34, %v4805_v1 }
 0x84a   :  { %v11082_v32 = vpop.eup %11081 }
 0x84b   :  { %v11084_v5 = vpop.eup %11083  ;;  %4829 = vst [vmem:[%s15179_s6 + $0x7] sm:$0x1] %v13535_v29  ;;  %v4853_v18 = vpack.c.bf16 %v13535_v29, %v13535_v29 }
 0x84c   :  { %v11086_v63 = vpop.eup %11085 }
 0x84d   :  { %v11088_v27 = vpop.eup %11087  ;;  %v4798_v40 = vsub.f32 1.0, %v11086_v63  ;;  %v4814_v35 = vmul.f32 %v11086_v63, %v13366_v6  ;;  %v4869_v58 = vunpack.c.l.b16 %v4853_v18  ;;  %v13619_v18 = vld [vmem:[#allocation4 + $0x1c] ss:$12 sps:$4 sm:$0xff]  }
 0x84e   :  { %v11090_v61 = vpop.eup %11089  ;;  %v4799_v42 = vsub.f32 1.0, %v11088_v27  ;;  %v4815_v25 = vmul.f32 %v11088_v27, %v13368_v26 }
 0x84f   :  { %v11092_v21 = vpop.eup %11091  ;;  %v4800_v12 = vsub.f32 1.0, %v11090_v61  ;;  %v4806_v41 = vmul.f32 %v11072_v13, %v4798_v40  ;;  %v4816_v20 = vmul.f32 %v11090_v61, %v13376_v33 }
 0x850   :  { %v11094_v14 = vpop.eup %11093  ;;  %v4801_v38 = vsub.f32 1.0, %v11092_v21  ;;  %v4807_v23 = vmul.f32 %v11074_v22, %v4799_v42  ;;  %v4817_v39 = vmul.f32 %v11092_v21, %v13382_v60 }
 0x851   :  { %v11096_v0 = vpop.eup %11095  ;;  %v4802_v50 = vsub.f32 1.0, %v11094_v14  ;;  %v4808_v28 = vmul.f32 %v11076_v46, %v4800_v12  ;;  %v13547_v55 = vadd.f32 %v4814_v35, %v4806_v41  ;;  %v4818_v31 = vmul.f32 %v11094_v14, %v13389_v2  ;;  %v13613_v41 = vld [vmem:[#allocation4] ss:$12 sps:$4 sm:$0xff]   ;;  %v13616_v35 = vld [vmem:[#allocation4 + $0x8] ss:$12 sps:$4 sm:$0xff]  }
 0x852   :  { %v11098_v37 = vpop.eup %11097  ;;  %v4809_v30 = vmul.f32 %v11078_v17, %v4801_v38  ;;  %v13549_v6 = vadd.f32 %v4815_v25, %v4807_v23  ;;  %v4803_v9 = vsub.f32 1.0, %v11096_v0  ;;  %v4819_v3 = vmul.f32 %v11096_v0, %v13397_v49  ;;  %v13626_v14 = vld [vmem:[#allocation4 + $0x18] ss:$12 sps:$4 sm:$0xff]   ;;  %v13629_v38 = vld [vmem:[#allocation4 + $0x20] ss:$12 sps:$4 sm:$0xff]  }
 0x853   :  { %4830 = vst [vmem:[%s15179_s6 + $0x17] sm:$0x1] %v13547_v55  ;;  %v4804_v26 = vsub.f32 1.0, %v11098_v37  ;;  %v4810_v33 = vmul.f32 %v11080_v43, %v4802_v50  ;;  %v13557_v10 = vadd.f32 %v4816_v20, %v4808_v28  ;;  %v4854_v2 = vpack.c.bf16 %v13547_v55, %v13547_v55  ;;  %v13632_v23 = vld [vmem:[#allocation4 + $0x34] ss:$12 sps:$4 sm:$0xff]  }
 0x854   :  { %4831 = vst [vmem:[%s15179_s6 + $0x27] sm:$0x1] %v13549_v6  ;;  %v4811_v60 = vmul.f32 %v11082_v32, %v4803_v9  ;;  %v13563_v8 = vadd.f32 %v4817_v39, %v4809_v30  ;;  %v4855_v7 = vpack.c.bf16 %v13549_v6, %v13549_v6  ;;  %v4820_v45 = vmul.f32 %v11098_v37, %v13405_v59  ;;  %v13636_v25 = vld [vmem:[#allocation4 + $0x30] ss:$12 sps:$4 sm:$0xff]   ;;  %v13639_v20 = vld [vmem:[#allocation4 + $0x38] ss:$12 sps:$4 sm:$0xff]  }
 0x855   :  { %v4812_v56 = vmul.f32 %v11084_v5, %v4804_v26  ;;  %v13570_v49 = vadd.f32 %v4818_v31, %v4810_v33  ;;  %4832 = vst [vmem:[%s15179_s6 + $0x37] sm:$0x1] %v13557_v10  ;;  %v4856_v53 = vpack.c.bf16 %v13557_v10, %v13557_v10  ;;  %v4870_v47 = vunpack.c.l.b16 %v4854_v2  ;;  %v13642_v0 = vld [vmem:[#allocation4 + $0x4c] ss:$12 sps:$4 sm:$0xff]   ;;  %v13646_v50 = vld [vmem:[#allocation4 + $0x48] ss:$12 sps:$4 sm:$0xff]  }
 0x856   :  { %v13578_v54 = vadd.f32 %v4819_v3, %v4811_v60  ;;  %4833 = vst [vmem:[%s15179_s6 + $0x47] sm:$0x1] %v13563_v8  ;;  %v4857_v59 = vpack.c.bf16 %v13563_v8, %v13563_v8  ;;  %v4871_v4 = vunpack.c.l.b16 %v4855_v7  ;;  %v13649_v28 = vld [vmem:[#allocation4 + $0x50] ss:$12 sps:$4 sm:$0xff]   ;;  %v13656_v37 = vld [vmem:[#allocation4 + $0x60] ss:$12 sps:$4 sm:$0xff]  }
 0x857   :  { %v13586_v51 = vadd.f32 %v4820_v45, %v4812_v56  ;;  %4834 = vst [vmem:[%s15179_s6 + $0x57] sm:$0x1] %v13570_v49  ;;  %v4858_v48 = vpack.c.bf16 %v13570_v49, %v13570_v49  ;;  %v4872_v57 = vunpack.c.l.b16 %v4856_v53  ;;  %v4877_v62 = vrot.slane %v4870_v47, 7  ;;  %v13652_v39 = vld [vmem:[#allocation4 + $0x64] ss:$12 sps:$4 sm:$0xff]  }
 0x858   :  { %4835 = vst [vmem:[%s15179_s6 + $0x67] sm:$0x1] %v13578_v54  ;;  %v4859_v36 = vpack.c.bf16 %v13578_v54, %v13578_v54  ;;  %v4873_v44 = vunpack.c.l.b16 %v4857_v59  ;;  %v4879_v19 = vrot.slane %v4871_v4, 6  ;;  %v13659_v30 = vld [vmem:[#allocation4 + $0x68] ss:$12 sps:$4 sm:$0xff]  }
 0x859   :  { %4836 = vst [vmem:[%s15179_s6 + $0x77] sm:$0x1] %v13586_v51  ;;  %v4860_v13 = vpack.c.bf16 %v13586_v51, %v13586_v51  ;;  %v4874_v52 = vunpack.c.l.b16 %v4858_v48  ;;  %v4881_v22 = vrot.slane %v4872_v57, 5  ;;  %v4878_v1 = vsel %vm1703_vm3, %v4877_v62, %v4869_v58  ;;  %15322 = vst [vmem:[#allocation7_spill] sm:$0xff] %v13659_v30  ;;  %v13662_v9 = vld [vmem:[#allocation4 + $0x7c] ss:$12 sps:$4 sm:$0xff]  }
 0x85a   :  { %v4875_v46 = vunpack.c.l.b16 %v4859_v36  ;;  %v4880_v17 = vsel %vm1706_vm4, %v4879_v19, %v4878_v1  ;;  %v4883_v43 = vrot.slane %v4873_v44, 4  ;;  %15323 = vst [vmem:[#allocation8_spill] sm:$0xff] %v13662_v9  ;;  %v13666_v31 = vld [vmem:[#allocation4 + $0x78] ss:$12 sps:$4 sm:$0xff]   ;;  %v13669_v26 = vld [vmem:[#allocation4 + $0x80] ss:$12 sps:$4 sm:$0xff]  }
 0x85b   :  { %v4876_v34 = vunpack.c.l.b16 %v4860_v13  ;;  %v4882_v32 = vsel %vm1709_vm5, %v4881_v22, %v4880_v17  ;;  %v4885_v5 = vrot.slane %v4874_v52, 3  ;;  %15324 = vst [vmem:[#allocation9_spill] sm:$0xff] %v13666_v31  ;;  %15325 = vst [vmem:[#allocation10_spill] sm:$0xff] %v13669_v26  ;;  %v13672_v33 = vld [vmem:[#allocation4 + $0x94] ss:$12 sps:$4 sm:$0xff]  }
 0x85c   :  { %v4884_v63 = vsel %vm1712_vm6, %v4883_v43, %v4882_v32  ;;  %v4887_v27 = vrot.slane %v4875_v46, 2  ;;  %15326 = vst [vmem:[#allocation11_spill] sm:$0xff] %v13672_v33  ;;  %v13676_v3 = vld [vmem:[#allocation4 + $0x90] ss:$12 sps:$4 sm:$0xff]   ;;  %v13679_v60 = vld [vmem:[#allocation4 + $0x98] ss:$12 sps:$4 sm:$0xff]  }
 0x85d   :  { %v4886_v40 = vsel %vm1715_vm7, %v4885_v5, %v4884_v63  ;;  %v4889_v61 = vrot.slane %v4876_v34, 1  ;;  %15327 = vst [vmem:[#allocation12_spill] sm:$0xff] %v13676_v3  ;;  %15328 = vst [vmem:[#allocation13_spill] sm:$0xff] %v13679_v60  ;;  %v13682_v2 = vld [vmem:[#allocation4 + $0xac] ss:$12 sps:$4 sm:$0xff]  }
 0x85e   :  { %v4888_v42 = vsel %vm1718_vm8, %v4887_v27, %v4886_v40  ;;  %15329 = vst [vmem:[#allocation14_spill] sm:$0xff] %v13682_v2  ;;  %v13686_v7 = vld [vmem:[#allocation4 + $0xa8] ss:$12 sps:$4 sm:$0xff]   ;;  %v13689_v56 = vld [vmem:[#allocation4 + $0xb0] ss:$12 sps:$4 sm:$0xff]  }
 0x85f   :  { %v4890_v21 = vsel %vm1721_vm9, %v4889_v61, %v4888_v42  ;;  %15330 = vst [vmem:[#allocation15_spill] sm:$0xff] %v13686_v7  ;;  %15331 = vst [vmem:[#allocation16_spill] sm:$0xff] %v13689_v56  ;;  %v13692_v45 = vld [vmem:[#allocation4 + $0x4] ss:$12 sps:$4 sm:$0xff]  }
 0x860   :  { %v4891_v12 = vpack.c.b16 %v4890_v21, %v4890_v21  ;;  %15332 = vst [vmem:[#allocation17_spill] sm:$0xff] %v13692_v45  ;;  %v13699_v22 = vld [vmem:[#allocation2 + $0x7] ss:$8 sm:$0x7] }
 0x861   :  { %v13701_v46 = vld [vmem:[#allocation2 + $0x37] ss:$8 sm:$0x7] }
 0x862   :  { %4926 = vmatmul.mubr.bf16.vlgmr.msra.gmra.mrb[60].mxu0 %v4891_v12  ;;  %10334 = vmatmul.mubr.bf16.vlgmr.msra.gmra.mrb[60].mxu1 %v4891_v12  ;;  %v13705_v32 = vld [vmem:[#allocation2 + $0x67] ss:$8 sm:$0x7] }
 0x863   :  { %5422 = vmatpush1.bf16.msra.mxu0 %v13613_v41  ;;  %10338 = vmatpush3.bf16.msra.mxu1 %v13616_v35  ;;  %v13707_v5 = vld [vmem:[#allocation2 + $0x97] ss:$8 sm:$0x7] }
 0x864   :  { %5423 = vmatprep.subr.bf16.mxu0 %v13619_v18  ;;  %10339 = vmatprep.subr.bf16.mxu1 %v15267_v16  ;;  %v13711_v40 = vld [vmem:[#allocation2 + $0xc7] ss:$8 sm:$0x7] }
 0x865   :  { %5453 = vmatprep.mubr.bf16.mxu0 %v15268_v15  ;;  %10353 = vmatprep.mubr.msk.bf16.mxu1 %vm11945_vm0, %v15267_v16  ;;  %v13713_v61 = vld [vmem:[#allocation2 + $0xf7] ss:$8 sm:$0x7] }
 0x867   :  { %5424 = vmatpush1.bf16.msra.mxu0 %v13626_v14  ;;  %10340 = vmatpush3.bf16.msra.mxu1 %v13629_v38 }
 0x868   :  { %5425 = vmatprep.subr.bf16.mxu0 %v13632_v23  ;;  %10341 = vmatprep.subr.bf16.mxu1 %v15267_v16 }
 0x86b   :  { %5426 = vmatpush1.bf16.msra.mxu0 %v13636_v25  ;;  %10342 = vmatpush3.bf16.msra.mxu1 %v13639_v20 }
 0x86c   :  { %5427 = vmatprep.subr.bf16.mxu0 %v13642_v0  ;;  %10343 = vmatprep.subr.bf16.mxu1 %v15267_v16 }
 0x86f   :  { %5428 = vmatpush1.bf16.msra.mxu0 %v13646_v50  ;;  %10344 = vmatpush3.bf16.msra.mxu1 %v13649_v28 }
 0x870   :  { %5429 = vmatprep.subr.bf16.mxu0 %v13652_v39  ;;  %10345 = vmatprep.subr.bf16.mxu1 %v15267_v16 }
 0x873   :  { %5430 = vmatpush1.bf16.msra.mxu0 %v13656_v37  ;;  %10346 = vmatpush3.bf16.msra.mxu1 %v13659_v30 }
 0x874   :  { %5431 = vmatprep.subr.bf16.mxu0 %v13662_v9  ;;  %10347 = vmatprep.subr.bf16.mxu1 %v15267_v16 }
 0x877   :  { %5432 = vmatpush1.bf16.msra.mxu0 %v13666_v31  ;;  %10348 = vmatpush3.bf16.msra.mxu1 %v13669_v26 }
 0x878   :  { %5433 = vmatprep.subr.bf16.mxu0 %v13672_v33  ;;  %10349 = vmatprep.subr.bf16.mxu1 %v15267_v16 }
 0x87b   :  { %5434 = vmatpush1.bf16.msra.mxu0 %v13676_v3  ;;  %10350 = vmatpush3.bf16.msra.mxu1 %v13679_v60 }
 0x87c   :  { %5435 = vmatprep.subr.bf16.mxu0 %v13682_v2  ;;  %10351 = vmatprep.subr.bf16.mxu1 %v15267_v16 }
 0x87f   :  { %5436 = vmatpush1.bf16.msra.mxu0 %v13686_v7  ;;  %10352 = vmatpush3.bf16.msra.mxu1 %v13689_v56 }
 0x880   :  { %5949 = vmatprep.subr.bf16.mxu0 %v13692_v45  ;;  %10357 = vmatprep.subr.bf16.mxu1 %v15267_v16 }
 0x935   :  { %v4927_v53 = vpop.f32.mrb[60].mxu0  ;;  %v4968_v59 = vpop.f32.mrb[60].mxu1 }
 0x936   :  { %v4975_v47 = vcombine.high %v4927_v53, %v4927_v53  ;;  %v4982_v4 = vrot.slane %v4927_v53, %v12002_v11  ;;  %v4929_v48 = vpop.f32.mrb[61].mxu0  ;;  %v10335_v58 = vpop.f32.mrb[61].mxu1 }
 0x937   :  { %v4931_v57 = vpop.f32.mrb[62].mxu0  ;;  %v4971_v36 = vpop.f32.mrb[62].mxu1  ;;  %v5120_v27 = vrot.slane %v4929_v48, %v12002_v11 }
 0x938   :  { %v4989_v44 = vrot.slane %v4975_v47, %v12002_v11  ;;  %v4990_v62 = vcombine.high %v4982_v4, %v4982_v4  ;;  %v4998_v19 = vrot.slane %v4982_v4, %v12002_v11  ;;  %v4932_v13 = vpop.f32.mrb[63].mxu0  ;;  %v10336_v52 = vpop.f32.mrb[63].mxu1  ;;  %v13717_v47 = vld [vmem:[#allocation2 + $0x127] ss:$8 sm:$0x7]  ;;  %v5113_v36 = vcombine.high %v4929_v48, %v4929_v48 }
 0x939   :  { %v5128_v7 = vcombine.high %v5120_v27, %v5120_v27  ;;  %v5136_v48 = vrot.slane %v5120_v27, %v12002_v11  ;;  %v5226_v27 = vadd.f32 %v13508_v24, %v4968_v59  ;;  %v5101_v24 = vrot.slane %v13713_v61, 1 }
 0x93a   :  { %v4991_v1 = vcombine.high %v4989_v44, %v4989_v44  ;;  %v5005_v34 = vrot.slane %v4989_v44, %v12002_v11  ;;  %v5012_v17 = vrot.slane %v4990_v62, %v12002_v11  ;;  %v5020_v43 = vcombine.high %v4998_v19, %v4998_v19  ;;  %v13721_v44 = vld [vmem:[#allocation2 + $0x157] ss:$8 sm:$0x7] }
 0x93b   :  { %v5032_v63 = vadd.f32 %v4998_v19, %v13699_v22  ;;  %v5102_v59 = vrot.slane %v13717_v47, 1 }
 0x93c   :  { %v5019_v42 = vrot.slane %v4991_v1, %v12002_v11  ;;  %v5021_v21 = vcombine.high %v5005_v34, %v5005_v34  ;;  %v5022_v12 = vcombine.high %v5012_v17, %v5012_v17  ;;  %v5033_v53 = vadd.f32 %v5012_v17, %v13701_v46 }
 0x93d   :  { %v5034_v4 = vadd.f32 %v5020_v43, %v13705_v32  ;;  %v5036_v58 = vadd.f32 %v5005_v34, %v13711_v40  ;;  %v9825_v57 = vmul.f32 -1.442695, %v5032_v63 }
 0x93e   :  { %v5023_v62 = vcombine.high %v5019_v42, %v5019_v42  ;;  %v5035_v19 = vadd.f32 %v5022_v12, %v13707_v5  ;;  %v5037_v13 = vadd.f32 %v5019_v42, %v13713_v61  ;;  %v5038_v52 = vadd.f32 %v5021_v21, %v13717_v47 }
 0x93f   :  { %11099 = vpow2.f32 %v9825_v57  ;;  %v9826_v1 = vmul.f32 -1.442695, %v5033_v53  ;;  %v9827_v17 = vmul.f32 -1.442695, %v5034_v4  ;;  %v9829_v43 = vmul.f32 -1.442695, %v5036_v58 }
 0x940   :  { %v5039_v45 = vadd.f32 %v5023_v62, %v13721_v44  ;;  %v9828_v56 = vmul.f32 -1.442695, %v5035_v19  ;;  %v9830_v34 = vmul.f32 -1.442695, %v5037_v13  ;;  %v9831_v63 = vmul.f32 -1.442695, %v5038_v52 }
 0x941   :  { %11101 = vpow2.f32 %v9826_v1  ;;  %v5127_v12 = vrot.slane %v5113_v36, %v12002_v11  ;;  %v5096_v21 = vrot.slane %v13699_v22, 1  ;;  %v5150_v53 = vrot.slane %v5128_v7, %v12002_v11 }
 0x942   :  { %11103 = vpow2.f32 %v9827_v17  ;;  %v9832_v42 = vmul.f32 -1.442695, %v5039_v45  ;;  %v5097_v4 = vrot.slane %v13701_v46, 1  ;;  %v5098_v19 = vrot.slane %v13705_v32, 1 }
 0x943   :  { %11105 = vpow2.f32 %v9828_v56  ;;  %v5170_v58 = vadd.f32 %v5136_v48, %v5096_v21  ;;  %v5129_v57 = vcombine.high %v5127_v12, %v5127_v12  ;;  %v5099_v56 = vrot.slane %v13707_v5, 1 }
 0x944   :  { %11107 = vpow2.f32 %v9829_v43  ;;  %v5171_v62 = vadd.f32 %v5150_v53, %v5097_v4  ;;  %v5143_v36 = vrot.slane %v5127_v12, %v12002_v11  ;;  %v5158_v13 = vcombine.high %v5136_v48, %v5136_v48 }
 0x945   :  { %11109 = vpow2.f32 %v9830_v34  ;;  %v9833_v52 = vmul.f32 -1.442695, %v5170_v58  ;;  %v5100_v17 = vrot.slane %v13711_v40, 1  ;;  %v5157_v43 = vrot.slane %v5129_v57, %v12002_v11 }
 0x946   :  { %11111 = vpow2.f32 %v9831_v63  ;;  %v9834_v7 = vmul.f32 -1.442695, %v5171_v62  ;;  %v5160_v34 = vcombine.high %v5150_v53, %v5150_v53  ;;  %v5235_v48 = vrot.slane %v5226_v27, %v12002_v11 }
 0x947   :  { %11113 = vpow2.f32 %v9832_v42  ;;  %v5228_v42 = vcombine.high %v5226_v27, %v5226_v27  ;;  %v5103_v12 = vrot.slane %v13721_v44, 1  ;;  %v5172_v2 = vadd.f32 %v5158_v13, %v5098_v19 }
 0x948   :  { %11115 = vpow2.f32 %v9833_v52  ;;  %v5161_v60 = vcombine.high %v5157_v43, %v5157_v43  ;;  %v5173_v3 = vadd.f32 %v5160_v34, %v5099_v56  ;;  %v5243_v31 = vcombine.high %v5235_v48, %v5235_v48 }
 0x949   :  { %v11100_v45 = vpop.eup %11099  ;;  %v5242_v52 = vrot.slane %v5228_v42, %v12002_v11  ;;  %v5175_v9 = vadd.f32 %v5157_v43, %v5101_v24  ;;  %v9835_v13 = vmul.f32 -1.442695, %v5172_v2  ;;  %v5294_v2 = vrot.slane %v13701_v46, 2 }
 0x94a   :  { %v5064_v1 = vadd.f32 1.0, %v11100_v45  ;;  %v5159_v45 = vcombine.high %v5143_v36, %v5143_v36  ;;  %v9836_v56 = vmul.f32 -1.442695, %v5173_v3  ;;  %v5265_v42 = vrot.slane %v5243_v31, %v12002_v11 }
 0x94b   :  { %v11102_v63 = vpop.eup %11101 }
 0x94c   :  { %v11104_v21 = vpop.eup %11103  ;;  %v5065_v4 = vadd.f32 1.0, %v11102_v63  ;;  %11117 = vrcp.f32 %v5064_v1  ;;  %v5174_v1 = vadd.f32 %v5143_v36, %v5100_v17  ;;  %v5176_v19 = vadd.f32 %v5159_v45, %v5102_v59 }
 0x94d   :  { %v11106_v58 = vpop.eup %11105  ;;  %v5066_v62 = vadd.f32 1.0, %v11104_v21  ;;  %11119 = vpow2.f32 %v9834_v7  ;;  %v5251_v36 = vrot.slane %v5235_v48, %v12002_v11  ;;  %v9838_v17 = vmul.f32 -1.442695, %v5175_v9 }
 0x94e   :  { %v11108_v53 = vpop.eup %11107  ;;  %v5067_v57 = vadd.f32 1.0, %v11106_v58  ;;  %11121 = vrcp.f32 %v5065_v4  ;;  %v5177_v4 = vadd.f32 %v5161_v60, %v5103_v12  ;;  %v9837_v34 = vmul.f32 -1.442695, %v5174_v1 }
 0x94f   :  { %v11110_v33 = vpop.eup %11109  ;;  %v5068_v26 = vadd.f32 1.0, %v11108_v53  ;;  %11123 = vrcp.f32 %v5066_v62  ;;  %v5244_v58 = vcombine.high %v5242_v52, %v5242_v52  ;;  %v9839_v43 = vmul.f32 -1.442695, %v5176_v19 }
 0x950   :  { %v11112_v63 = vpop.eup %11111  ;;  %v5069_v27 = vadd.f32 1.0, %v11110_v33  ;;  %11125 = vrcp.f32 %v5067_v57  ;;  %v9840_v60 = vmul.f32 -1.442695, %v5177_v4  ;;  %v5258_v59 = vrot.slane %v5242_v52, %v12002_v11 }
 0x951   :  { %v11114_v21 = vpop.eup %11113  ;;  %v5070_v30 = vadd.f32 1.0, %v11112_v63  ;;  %11127 = vrcp.f32 %v5068_v26  ;;  %v5293_v26 = vrot.slane %v13699_v22, 2  ;;  %v5272_v48 = vrot.slane %v5244_v58, %v12002_v11 }
 0x952   :  { %v5071_v7 = vadd.f32 1.0, %v11114_v21  ;;  %11129 = vrcp.f32 %v5069_v27  ;;  %v11116_v33 = vpop.eup %11115  ;;  %v5273_v31 = vcombine.high %v5251_v36, %v5251_v36  ;;  %v5275_v53 = vcombine.high %v5265_v42, %v5265_v42 }
 0x953   :  { %11131 = vrcp.f32 %v5070_v30  ;;  %v5295_v30 = vrot.slane %v13705_v32, 2  ;;  %v5202_v62 = vadd.f32 1.0, %v11116_v33  ;;  %v5296_v1 = vrot.slane %v13707_v5, 2 }
 0x954   :  { %11133 = vrcp.f32 %v5071_v7  ;;  %v5297_v32 = vrot.slane %v13711_v40, 2  ;;  %v5298_v27 = vrot.slane %v13713_v61, 2  ;;  %v5274_v7 = vcombine.high %v5258_v59, %v5258_v59 }
 0x955   :  { %11135 = vpow2.f32 %v9835_v13  ;;  %v5276_v58 = vcombine.high %v5272_v48, %v5272_v48  ;;  %v5299_v40 = vrot.slane %v13717_v47, 2 }
 0x956   :  { %v11118_v24 = vpop.eup %11117  ;;  %11137 = vpow2.f32 %v9836_v56 }
 0x957   :  { %v11120_v3 = vpop.eup %11119  ;;  %v5285_v12 = vmul.f32 %v11118_v24, %v5251_v36  ;;  %11139 = vpow2.f32 %v9837_v34 }
 0x958   :  { %v11122_v9 = vpop.eup %11121  ;;  %11141 = vpow2.f32 %v9838_v17 }
 0x959   :  { %v11124_v45 = vpop.eup %11123  ;;  %v5286_v22 = vmul.f32 %v11122_v9, %v5265_v42  ;;  %v5309_v57 = vadd.f32 %v5293_v26, %v5285_v12  ;;  %11143 = vpow2.f32 %v9839_v43  ;;  %v5300_v43 = vrot.slane %v13721_v44, 2 }
 0x95a   :  { %v11126_v46 = vpop.eup %11125  ;;  %v5287_v63 = vmul.f32 %v11124_v45, %v5273_v31  ;;  %11145 = vpow2.f32 %v9840_v60 }
 0x95b   :  { %v11128_v52 = vpop.eup %11127  ;;  %v5288_v21 = vmul.f32 %v11126_v46, %v5275_v53  ;;  %v5310_v19 = vadd.f32 %v5294_v2, %v5286_v22  ;;  %11147 = vtanh.f32 %v5309_v57 }
 0x95c   :  { %v11130_v13 = vpop.eup %11129  ;;  %v5289_v4 = vmul.f32 %v11128_v52, %v5258_v59  ;;  %v5311_v56 = vadd.f32 %v5295_v30, %v5287_v63  ;;  %11149 = vrcp.f32 %v5202_v62  ;;  %v5203_v30 = vadd.f32 1.0, %v11120_v3 }
 0x95d   :  { %v11132_v34 = vpop.eup %11131  ;;  %v5290_v36 = vmul.f32 %v11130_v13, %v5272_v48  ;;  %v5312_v17 = vadd.f32 %v5296_v1, %v5288_v21  ;;  %11151 = vtanh.f32 %v5310_v19 }
 0x95e   :  { %v11134_v5 = vpop.eup %11133  ;;  %v5291_v33 = vmul.f32 %v11132_v34, %v5274_v7  ;;  %v5313_v42 = vadd.f32 %v5297_v32, %v5289_v4  ;;  %11153 = vtanh.f32 %v5311_v56 }
 0x95f   :  { %v11136_v61 = vpop.eup %11135  ;;  %v5292_v24 = vmul.f32 %v11134_v5, %v5276_v58  ;;  %v5314_v26 = vadd.f32 %v5298_v27, %v5290_v36  ;;  %11155 = vtanh.f32 %v5312_v17 }
 0x960   :  { %v11138_v2 = vpop.eup %11137  ;;  %v5315_v60 = vadd.f32 %v5299_v40, %v5291_v33  ;;  %11157 = vtanh.f32 %v5313_v42  ;;  %v5204_v9 = vadd.f32 1.0, %v11136_v61 }
 0x961   :  { %v11140_v59 = vpop.eup %11139  ;;  %v5316_v12 = vadd.f32 %v5300_v43, %v5292_v24  ;;  %11159 = vtanh.f32 %v5314_v26  ;;  %v5205_v47 = vadd.f32 1.0, %v11138_v2 }
 0x962   :  { %v11142_v48 = vpop.eup %11141  ;;  %11161 = vtanh.f32 %v5315_v60  ;;  %v5206_v62 = vadd.f32 1.0, %v11140_v59 }
 0x963   :  { %v11144_v31 = vpop.eup %11143  ;;  %11163 = vtanh.f32 %v5316_v12  ;;  %v5207_v53 = vadd.f32 1.0, %v11142_v48 }
 0x964   :  { %v11146_v45 = vpop.eup %11145  ;;  %11165 = vrcp.f32 %v5203_v30  ;;  %v5208_v22 = vadd.f32 1.0, %v11144_v31 }
 0x965   :  { %v11148_v44 = vpop.eup %11147  ;;  %11167 = vrcp.f32 %v5204_v9  ;;  %v5209_v46 = vadd.f32 1.0, %v11146_v45 }
 0x966   :  { %v11150_v57 = vpop.eup %11149  ;;  %11169 = vrcp.f32 %v5205_v47 }
 0x967   :  { %v11152_v3 = vpop.eup %11151  ;;  %11171 = vrcp.f32 %v5206_v62  ;;  %v5325_v1 = vsub.f32 1.0, %v11150_v57  ;;  %v5341_v27 = vmul.f32 %v11150_v57, %v13535_v29 }
 0x968   :  { %v11154_v32 = vpop.eup %11153  ;;  %11173 = vrcp.f32 %v5207_v53 }
 0x969   :  { %v11156_v63 = vpop.eup %11155  ;;  %11175 = vrcp.f32 %v5208_v22  ;;  %v5333_v52 = vmul.f32 %v11148_v44, %v5325_v1 }
 0x96a   :  { %v11158_v21 = vpop.eup %11157  ;;  %11177 = vrcp.f32 %v5209_v46 }
 0x96b   :  { %v11160_v19 = vpop.eup %11159  ;;  %v13756_v13 = vadd.f32 %v5341_v27, %v5333_v52 }
 0x96c   :  { %v11162_v7 = vpop.eup %11161 }
 0x96d   :  { %v11164_v4 = vpop.eup %11163  ;;  %5357 = vst [vmem:[%s15179_s6 + $0x8] sm:$0x1] %v13756_v13  ;;  %v5381_v42 = vpack.c.bf16 %v13756_v13, %v13756_v13 }
 0x96e   :  { %v11166_v56 = vpop.eup %11165 }
 0x96f   :  { %v11168_v34 = vpop.eup %11167  ;;  %v5326_v58 = vsub.f32 1.0, %v11166_v56  ;;  %v5342_v33 = vmul.f32 %v11166_v56, %v13547_v55 }
 0x970   :  { %v11170_v36 = vpop.eup %11169  ;;  %v5327_v17 = vsub.f32 1.0, %v11168_v34  ;;  %v5343_v26 = vmul.f32 %v11168_v34, %v13549_v6 }
 0x971   :  { %v11172_v5 = vpop.eup %11171  ;;  %v5328_v40 = vsub.f32 1.0, %v11170_v36  ;;  %v5334_v29 = vmul.f32 %v11152_v3, %v5326_v58  ;;  %v5344_v2 = vmul.f32 %v11170_v36, %v13557_v10 }
 0x972   :  { %v11174_v61 = vpop.eup %11173  ;;  %v5329_v43 = vsub.f32 1.0, %v11172_v5  ;;  %v5335_v24 = vmul.f32 %v11154_v32, %v5327_v17  ;;  %v5345_v12 = vmul.f32 %v11172_v5, %v13563_v8 }
 0x973   :  { %v11176_v60 = vpop.eup %11175  ;;  %v5330_v30 = vsub.f32 1.0, %v11174_v61  ;;  %v5336_v59 = vmul.f32 %v11156_v63, %v5328_v40  ;;  %v13768_v9 = vadd.f32 %v5342_v33, %v5334_v29  ;;  %v5346_v62 = vmul.f32 %v11174_v61, %v13570_v49 }
 0x974   :  { %v11178_v48 = vpop.eup %11177  ;;  %v5337_v47 = vmul.f32 %v11158_v21, %v5329_v43  ;;  %v13770_v55 = vadd.f32 %v5343_v26, %v5335_v24  ;;  %v5331_v31 = vsub.f32 1.0, %v11176_v60  ;;  %v5347_v45 = vmul.f32 %v11176_v60, %v13578_v54 }
 0x975   :  { %5358 = vst [vmem:[%s15179_s6 + $0x18] sm:$0x1] %v13768_v9  ;;  %v5332_v6 = vsub.f32 1.0, %v11178_v48  ;;  %v5338_v10 = vmul.f32 %v11160_v19, %v5330_v30  ;;  %v13778_v53 = vadd.f32 %v5344_v2, %v5336_v59  ;;  %v5382_v49 = vpack.c.bf16 %v13768_v9, %v13768_v9 }
 0x976   :  { %5359 = vst [vmem:[%s15179_s6 + $0x28] sm:$0x1] %v13770_v55  ;;  %v5339_v8 = vmul.f32 %v11162_v7, %v5331_v31  ;;  %v13784_v44 = vadd.f32 %v5345_v12, %v5337_v47  ;;  %v5383_v22 = vpack.c.bf16 %v13770_v55, %v13770_v55  ;;  %v5348_v46 = vmul.f32 %v11178_v48, %v13586_v51 }
 0x977   :  { %v5340_v57 = vmul.f32 %v11164_v4, %v5332_v6  ;;  %v13791_v54 = vadd.f32 %v5346_v62, %v5338_v10  ;;  %5360 = vst [vmem:[%s15179_s6 + $0x38] sm:$0x1] %v13778_v53  ;;  %v5384_v3 = vpack.c.bf16 %v13778_v53, %v13778_v53  ;;  %v5398_v32 = vunpack.c.l.b16 %v5382_v49 }
 0x978   :  { %v13799_v1 = vadd.f32 %v5347_v45, %v5339_v8  ;;  %5361 = vst [vmem:[%s15179_s6 + $0x48] sm:$0x1] %v13784_v44  ;;  %v5385_v51 = vpack.c.bf16 %v13784_v44, %v13784_v44  ;;  %v5399_v63 = vunpack.c.l.b16 %v5383_v22  ;;  %v5397_v21 = vunpack.c.l.b16 %v5381_v42 }
 0x979   :  { %v13807_v52 = vadd.f32 %v5348_v46, %v5340_v57  ;;  %5362 = vst [vmem:[%s15179_s6 + $0x58] sm:$0x1] %v13791_v54  ;;  %v5386_v27 = vpack.c.bf16 %v13791_v54, %v13791_v54  ;;  %v5400_v19 = vunpack.c.l.b16 %v5384_v3  ;;  %v5405_v56 = vrot.slane %v5398_v32, 7  ;;  %v13874_v46 = vld [vmem:[#allocation2 + $0x18] ss:$8 sm:$0x7] }
 0x97a   :  { %5363 = vst [vmem:[%s15179_s6 + $0x68] sm:$0x1] %v13799_v1  ;;  %v5387_v7 = vpack.c.bf16 %v13799_v1, %v13799_v1  ;;  %v5401_v4 = vunpack.c.l.b16 %v5385_v51  ;;  %v5407_v34 = vrot.slane %v5399_v63, 6  ;;  %v13876_v3 = vld [vmem:[#allocation2 + $0x48] ss:$8 sm:$0x7] }
 0x97b   :  { %5364 = vst [vmem:[%s15179_s6 + $0x78] sm:$0x1] %v13807_v52  ;;  %v5388_v58 = vpack.c.bf16 %v13807_v52, %v13807_v52  ;;  %v5402_v36 = vunpack.c.l.b16 %v5386_v27  ;;  %v5409_v17 = vrot.slane %v5400_v19, 5  ;;  %v5406_v40 = vsel %vm1703_vm3, %v5405_v56, %v5397_v21  ;;  %v13880_v21 = vld [vmem:[#allocation2 + $0x78] ss:$8 sm:$0x7] }
 0x97c   :  { %v5403_v5 = vunpack.c.l.b16 %v5387_v7  ;;  %v5408_v33 = vsel %vm1706_vm4, %v5407_v34, %v5406_v40  ;;  %v5411_v42 = vrot.slane %v5401_v4, 4  ;;  %v13882_v19 = vld [vmem:[#allocation2 + $0xa8] ss:$8 sm:$0x7] }
 0x97d   :  { %v5404_v29 = vunpack.c.l.b16 %v5388_v58  ;;  %v5410_v61 = vsel %vm1709_vm5, %v5409_v17, %v5408_v33  ;;  %v5413_v43 = vrot.slane %v5402_v36, 3  ;;  %v13886_v56 = vld [vmem:[#allocation2 + $0xd8] ss:$8 sm:$0x7] }
 0x97e   :  { %v5412_v24 = vsel %vm1712_vm6, %v5411_v42, %v5410_v61  ;;  %v5415_v26 = vrot.slane %v5403_v5, 2  ;;  %v13888_v34 = vld [vmem:[#allocation2 + $0x108] ss:$8 sm:$0x7] }
 0x97f   :  { %v5414_v2 = vsel %vm1715_vm7, %v5413_v43, %v5412_v24  ;;  %v5417_v60 = vrot.slane %v5404_v29, 1  ;;  %v13892_v40 = vld [vmem:[#allocation2 + $0x138] ss:$8 sm:$0x7] }
 0x980   :  { %v5416_v30 = vsel %vm1718_vm8, %v5415_v26, %v5414_v2  ;;  %v13896_v43 = vld [vmem:[#allocation2 + $0x168] ss:$8 sm:$0x7] }
 0x981   :  { %v5418_v59 = vsel %vm1721_vm9, %v5417_v60, %v5416_v30 }
 0x982   :  { %v5419_v12 = vpack.c.b16 %v5418_v59, %v5418_v59 }
 0x984   :  { %5454 = vmatmul.mubr.bf16.vlgmr.msra.gmra.mrb[64].mxu0 %v5419_v12  ;;  %10354 = vmatmul.mubr.bf16.vlgmr.msra.gmra.mrb[64].mxu1 %v5419_v12 }
 0x985   :  { %5950 = vmatpush1.bf16.msra.mxu0 %v13613_v41  ;;  %10358 = vmatpush3.bf16.msra.mxu1 %v13616_v35  ;;  %v15333_v41 = vld [vmem:[#allocation7_spill] sm:$0xff]  ;;  %v15334_v35 = vld [vmem:[#allocation8_spill] sm:$0xff] }
 0x986   :  { %5951 = vmatprep.subr.bf16.mxu0 %v13619_v18  ;;  %10359 = vmatprep.subr.bf16.mxu1 %v15267_v16  ;;  %v15335_v18 = vld [vmem:[#allocation9_spill] sm:$0xff] }
 0x987   :  { %5981 = vmatprep.mubr.bf16.mxu0 %v15268_v15  ;;  %10373 = vmatprep.mubr.msk.bf16.mxu1 %vm11945_vm0, %v15267_v16 }
 0x989   :  { %5952 = vmatpush1.bf16.msra.mxu0 %v13626_v14  ;;  %10360 = vmatpush3.bf16.msra.mxu1 %v13629_v38  ;;  %v15336_v14 = vld [vmem:[#allocation10_spill] sm:$0xff]  ;;  %v15337_v38 = vld [vmem:[#allocation11_spill] sm:$0xff] }
 0x98a   :  { %5953 = vmatprep.subr.bf16.mxu0 %v13632_v23  ;;  %10361 = vmatprep.subr.bf16.mxu1 %v15267_v16  ;;  %v15338_v23 = vld [vmem:[#allocation12_spill] sm:$0xff] }
 0x98d   :  { %5954 = vmatpush1.bf16.msra.mxu0 %v13636_v25  ;;  %10362 = vmatpush3.bf16.msra.mxu1 %v13639_v20  ;;  %v15339_v25 = vld [vmem:[#allocation13_spill] sm:$0xff]  ;;  %v15340_v20 = vld [vmem:[#allocation14_spill] sm:$0xff] }
 0x98e   :  { %5955 = vmatprep.subr.bf16.mxu0 %v13642_v0  ;;  %10363 = vmatprep.subr.bf16.mxu1 %v15267_v16  ;;  %v15341_v0 = vld [vmem:[#allocation15_spill] sm:$0xff] }
 0x991   :  { %5956 = vmatpush1.bf16.msra.mxu0 %v13646_v50  ;;  %10364 = vmatpush3.bf16.msra.mxu1 %v13649_v28  ;;  %v15342_v50 = vld [vmem:[#allocation16_spill] sm:$0xff]  ;;  %v15343_v28 = vld [vmem:[#allocation17_spill] sm:$0xff] }
 0x992   :  { %5957 = vmatprep.subr.bf16.mxu0 %v13652_v39  ;;  %10365 = vmatprep.subr.bf16.mxu1 %v15267_v16 }
 0x995   :  { %5958 = vmatpush1.bf16.msra.mxu0 %v13656_v37  ;;  %10366 = vmatpush3.bf16.msra.mxu1 %v15333_v41 }
 0x996   :  { %5959 = vmatprep.subr.bf16.mxu0 %v15334_v35  ;;  %10367 = vmatprep.subr.bf16.mxu1 %v15267_v16 }
 0x999   :  { %5960 = vmatpush1.bf16.msra.mxu0 %v15335_v18  ;;  %10368 = vmatpush3.bf16.msra.mxu1 %v15336_v14 }
 0x99a   :  { %5961 = vmatprep.subr.bf16.mxu0 %v15337_v38  ;;  %10369 = vmatprep.subr.bf16.mxu1 %v15267_v16 }
 0x99d   :  { %5962 = vmatpush1.bf16.msra.mxu0 %v15338_v23  ;;  %10370 = vmatpush3.bf16.msra.mxu1 %v15339_v25 }
 0x99e   :  { %5963 = vmatprep.subr.bf16.mxu0 %v15340_v20  ;;  %10371 = vmatprep.subr.bf16.mxu1 %v15267_v16 }
 0x9a1   :  { %5964 = vmatpush1.bf16.msra.mxu0 %v15341_v0  ;;  %10372 = vmatpush3.bf16.msra.mxu1 %v15342_v50  ;;  %v5624_v0 = vrot.slane %v13874_v46, 1 }
 0x9a2   :  { %6477 = vmatprep.subr.bf16.mxu0 %v15343_v28  ;;  %10377 = vmatprep.subr.bf16.mxu1 %v15267_v16  ;;  %v5625_v28 = vrot.slane %v13876_v3, 1 }
 0xa57   :  { %v5455_v39 = vpop.f32.mrb[64].mxu0  ;;  %v13869_v37 = vpop.f32.mrb[64].mxu1 }
 0xa58   :  { %v5503_v48 = vcombine.high %v5455_v39, %v5455_v39  ;;  %v5510_v47 = vrot.slane %v5455_v39, %v12002_v11  ;;  %v5457_v31 = vpop.f32.mrb[65].mxu0  ;;  %v10355_v62 = vpop.f32.mrb[65].mxu1 }
 0xa59   :  { %v5459_v6 = vpop.f32.mrb[66].mxu0  ;;  %v5499_v10 = vpop.f32.mrb[66].mxu1  ;;  %v5648_v4 = vrot.slane %v5457_v31, %v12002_v11  ;;  %v5641_v61 = vcombine.high %v5457_v31, %v5457_v31 }
 0xa5a   :  { %v5517_v45 = vrot.slane %v5503_v48, %v12002_v11  ;;  %v5518_v8 = vcombine.high %v5510_v47, %v5510_v47  ;;  %v5526_v49 = vrot.slane %v5510_v47, %v12002_v11  ;;  %v5460_v22 = vpop.f32.mrb[67].mxu0  ;;  %v10356_v57 = vpop.f32.mrb[67].mxu1  ;;  %v13910_v47 = vld [vmem:[%s15177_s4] ss:$0 sm:$0xff]  ;;  %v5626_v6 = vrot.slane %v13880_v21, 1 }
 0xa5b   :  { %v5656_v18 = vcombine.high %v5648_v4, %v5648_v4  ;;  %v5664_v38 = vrot.slane %v5648_v4, %v12002_v11  ;;  %v5655_v25 = vrot.slane %v5641_v61, %v12002_v11  ;;  %v5754_v31 = vadd.f32 %v13910_v47, %v13869_v37 }
 0xa5c   :  { %v5519_v51 = vcombine.high %v5517_v45, %v5517_v45  ;;  %v5533_v32 = vrot.slane %v5517_v45, %v12002_v11  ;;  %v5540_v63 = vrot.slane %v5518_v8, %v12002_v11  ;;  %v5548_v27 = vcombine.high %v5526_v49, %v5526_v49 }
 0xa5d   :  { %v5560_v7 = vadd.f32 %v5526_v49, %v13874_v46  ;;  %v5678_v50 = vrot.slane %v5656_v18, %v12002_v11  ;;  %v5698_v39 = vadd.f32 %v5664_v38, %v5624_v0  ;;  %v5657_v48 = vcombine.high %v5655_v25, %v5655_v25 }
 0xa5e   :  { %v5547_v58 = vrot.slane %v5519_v51, %v12002_v11  ;;  %v5549_v36 = vcombine.high %v5533_v32, %v5533_v32  ;;  %v5550_v17 = vcombine.high %v5540_v63, %v5540_v63  ;;  %v5561_v5 = vadd.f32 %v5540_v63, %v13876_v3 }
 0xa5f   :  { %v5562_v29 = vadd.f32 %v5548_v27, %v13880_v21  ;;  %v5564_v33 = vadd.f32 %v5533_v32, %v13886_v56  ;;  %v9841_v42 = vmul.f32 -1.442695, %v5560_v7  ;;  %v5699_v62 = vadd.f32 %v5678_v50, %v5625_v28 }
 0xa60   :  { %v5551_v24 = vcombine.high %v5547_v58, %v5547_v58  ;;  %v5563_v26 = vadd.f32 %v5550_v17, %v13882_v19  ;;  %v5565_v2 = vadd.f32 %v5547_v58, %v13888_v34  ;;  %v5566_v60 = vadd.f32 %v5549_v36, %v13892_v40 }
 0xa61   :  { %11179 = vpow2.f32 %v9841_v42  ;;  %v9842_v30 = vmul.f32 -1.442695, %v5561_v5  ;;  %v9843_v59 = vmul.f32 -1.442695, %v5562_v29  ;;  %v9845_v35 = vmul.f32 -1.442695, %v5564_v33 }
 0xa62   :  { %v5567_v12 = vadd.f32 %v5551_v24, %v13896_v43  ;;  %v9844_v41 = vmul.f32 -1.442695, %v5563_v26  ;;  %v9846_v14 = vmul.f32 -1.442695, %v5565_v2  ;;  %v9847_v23 = vmul.f32 -1.442695, %v5566_v60 }
 0xa63   :  { %11181 = vpow2.f32 %v9842_v30  ;;  %v5627_v10 = vrot.slane %v13882_v19, 1  ;;  %v5671_v8 = vrot.slane %v5655_v25, %v12002_v11  ;;  %v5686_v49 = vcombine.high %v5664_v38, %v5664_v38 }
 0xa64   :  { %11183 = vpow2.f32 %v9843_v59  ;;  %v9848_v20 = vmul.f32 -1.442695, %v5567_v12  ;;  %v9849_v22 = vmul.f32 -1.442695, %v5698_v39  ;;  %v9850_v57 = vmul.f32 -1.442695, %v5699_v62 }
 0xa65   :  { %11185 = vpow2.f32 %v9844_v41  ;;  %v5628_v32 = vrot.slane %v13886_v56, 1  ;;  %v5685_v63 = vrot.slane %v5657_v48, %v12002_v11  ;;  %v5688_v27 = vcombine.high %v5678_v50, %v5678_v50 }
 0xa66   :  { %11187 = vpow2.f32 %v9845_v35  ;;  %v5756_v4 = vcombine.high %v5754_v31, %v5754_v31  ;;  %v5629_v37 = vrot.slane %v13888_v34, 1  ;;  %v5630_v58 = vrot.slane %v13892_v40, 1 }
 0xa67   :  { %11189 = vpow2.f32 %v9846_v14  ;;  %v5763_v5 = vrot.slane %v5754_v31, %v12002_v11  ;;  %v5631_v29 = vrot.slane %v13896_v43, 1  ;;  %v5687_v61 = vcombine.high %v5671_v8, %v5671_v8 }
 0xa68   :  { %11191 = vpow2.f32 %v9847_v23  ;;  %v5700_v24 = vadd.f32 %v5686_v49, %v5626_v6  ;;  %v5689_v60 = vcombine.high %v5685_v63, %v5685_v63  ;;  %v5701_v30 = vadd.f32 %v5688_v27, %v5627_v10 }
 0xa69   :  { %11193 = vpow2.f32 %v9848_v20  ;;  %v5770_v41 = vrot.slane %v5756_v4, %v12002_v11  ;;  %v5702_v35 = vadd.f32 %v5671_v8, %v5628_v32  ;;  %v5771_v38 = vcombine.high %v5763_v5, %v5763_v5 }
 0xa6a   :  { %11195 = vpow2.f32 %v9849_v22  ;;  %v5703_v23 = vadd.f32 %v5685_v63, %v5629_v37  ;;  %v5704_v0 = vadd.f32 %v5687_v61, %v5630_v58  ;;  %v9851_v50 = vmul.f32 -1.442695, %v5700_v24 }
 0xa6b   :  { %v11180_v45 = vpop.eup %11179  ;;  %v5705_v39 = vadd.f32 %v5689_v60, %v5631_v29  ;;  %v9852_v48 = vmul.f32 -1.442695, %v5701_v30  ;;  %v9853_v31 = vmul.f32 -1.442695, %v5702_v35  ;;  %v5772_v62 = vcombine.high %v5770_v41, %v5770_v41 }
 0xa6c   :  { %v5592_v51 = vadd.f32 1.0, %v11180_v45  ;;  %v5779_v6 = vrot.slane %v5763_v5, %v12002_v11  ;;  %v9854_v10 = vmul.f32 -1.442695, %v5703_v23  ;;  %v5793_v8 = vrot.slane %v5771_v38, %v12002_v11 }
 0xa6d   :  { %v11182_v7 = vpop.eup %11181  ;;  %v9855_v49 = vmul.f32 -1.442695, %v5704_v0  ;;  %v9856_v32 = vmul.f32 -1.442695, %v5705_v39  ;;  %v5823_v27 = vrot.slane %v13880_v21, 2  ;;  %v5800_v58 = vrot.slane %v5772_v62, %v12002_v11 }
 0xa6e   :  { %v11184_v36 = vpop.eup %11183  ;;  %v5593_v17 = vadd.f32 1.0, %v11182_v7  ;;  %11197 = vrcp.f32 %v5592_v51  ;;  %v5822_v51 = vrot.slane %v13876_v3, 2  ;;  %v5786_v7 = vrot.slane %v5770_v41, %v12002_v11 }
 0xa6f   :  { %v11186_v33 = vpop.eup %11185  ;;  %v5594_v42 = vadd.f32 1.0, %v11184_v36  ;;  %11199 = vpow2.f32 %v9850_v57  ;;  %v5821_v57 = vrot.slane %v13874_v46, 2  ;;  %v5801_v36 = vcombine.high %v5779_v6, %v5779_v6 }
 0xa70   :  { %v11188_v26 = vpop.eup %11187  ;;  %v5595_v2 = vadd.f32 1.0, %v11186_v33  ;;  %11201 = vrcp.f32 %v5593_v17  ;;  %v5803_v29 = vcombine.high %v5793_v8, %v5793_v8  ;;  %v5825_v21 = vrot.slane %v13886_v56, 2 }
 0xa71   :  { %v11190_v59 = vpop.eup %11189  ;;  %v5596_v12 = vadd.f32 1.0, %v11188_v26  ;;  %11203 = vrcp.f32 %v5594_v42  ;;  %v5824_v42 = vrot.slane %v13882_v19, 2  ;;  %v5826_v26 = vrot.slane %v13888_v34, 2 }
 0xa72   :  { %v11192_v18 = vpop.eup %11191  ;;  %v5597_v14 = vadd.f32 1.0, %v11190_v59  ;;  %11205 = vrcp.f32 %v5595_v2  ;;  %v5802_v59 = vcombine.high %v5786_v7, %v5786_v7  ;;  %v5827_v56 = vrot.slane %v13892_v40, 2 }
 0xa73   :  { %v11194_v25 = vpop.eup %11193  ;;  %v5598_v20 = vadd.f32 1.0, %v11192_v18  ;;  %11207 = vrcp.f32 %v5596_v12  ;;  %v5804_v18 = vcombine.high %v5800_v58, %v5800_v58 }
 0xa74   :  { %v5599_v28 = vadd.f32 1.0, %v11194_v25  ;;  %11209 = vrcp.f32 %v5597_v14  ;;  %v11196_v45 = vpop.eup %11195 }
 0xa75   :  { %11211 = vrcp.f32 %v5598_v20  ;;  %v5730_v17 = vadd.f32 1.0, %v11196_v45  ;;  %v5828_v20 = vrot.slane %v13896_v43, 2 }
 0xa76   :  { %11213 = vrcp.f32 %v5599_v28 }
 0xa77   :  { %11215 = vpow2.f32 %v9851_v50 }
 0xa78   :  { %v11198_v22 = vpop.eup %11197  ;;  %11217 = vpow2.f32 %v9852_v48 }
 0xa79   :  { %v11200_v63 = vpop.eup %11199  ;;  %v5813_v4 = vmul.f32 %v11198_v22, %v5779_v6  ;;  %11219 = vpow2.f32 %v9853_v31 }
 0xa7a   :  { %v11202_v37 = vpop.eup %11201  ;;  %11221 = vpow2.f32 %v9854_v10  ;;  %v5731_v48 = vadd.f32 1.0, %v11200_v63 }
 0xa7b   :  { %v11204_v5 = vpop.eup %11203  ;;  %v5814_v46 = vmul.f32 %v11202_v37, %v5793_v8  ;;  %v5837_v33 = vadd.f32 %v5821_v57, %v5813_v4  ;;  %11223 = vpow2.f32 %v9855_v49 }
 0xa7c   :  { %v11206_v3 = vpop.eup %11205  ;;  %v5815_v61 = vmul.f32 %v11204_v5, %v5801_v36  ;;  %11225 = vpow2.f32 %v9856_v32 }
 0xa7d   :  { %v11208_v24 = vpop.eup %11207  ;;  %v5816_v2 = vmul.f32 %v11206_v3, %v5803_v29  ;;  %v5838_v60 = vadd.f32 %v5822_v51, %v5814_v46  ;;  %11227 = vtanh.f32 %v5837_v33 }
 0xa7e   :  { %v11210_v30 = vpop.eup %11209  ;;  %v5817_v12 = vmul.f32 %v11208_v24, %v5786_v7  ;;  %v5839_v41 = vadd.f32 %v5823_v27, %v5815_v61  ;;  %11229 = vrcp.f32 %v5730_v17 }
 0xa7f   :  { %v11212_v35 = vpop.eup %11211  ;;  %v5818_v14 = vmul.f32 %v11210_v30, %v5800_v58  ;;  %v5840_v38 = vadd.f32 %v5824_v42, %v5816_v2  ;;  %11231 = vtanh.f32 %v5838_v60 }
 0xa80   :  { %v11214_v19 = vpop.eup %11213  ;;  %v5819_v23 = vmul.f32 %v11212_v35, %v5802_v59  ;;  %v5841_v25 = vadd.f32 %v5825_v21, %v5817_v12  ;;  %11233 = vtanh.f32 %v5839_v41 }
 0xa81   :  { %v11216_v34 = vpop.eup %11215  ;;  %v5820_v0 = vmul.f32 %v11214_v19, %v5804_v18  ;;  %v5842_v50 = vadd.f32 %v5826_v26, %v5818_v14  ;;  %11235 = vtanh.f32 %v5840_v38 }
 0xa82   :  { %v11218_v28 = vpop.eup %11217  ;;  %v5843_v39 = vadd.f32 %v5827_v56, %v5819_v23  ;;  %11237 = vtanh.f32 %v5841_v25  ;;  %v5732_v6 = vadd.f32 1.0, %v11216_v34 }
 0xa83   :  { %v11220_v31 = vpop.eup %11219  ;;  %v5844_v62 = vadd.f32 %v5828_v20, %v5820_v0  ;;  %11239 = vtanh.f32 %v5842_v50  ;;  %v5733_v40 = vadd.f32 1.0, %v11218_v28 }
 0xa84   :  { %v11222_v10 = vpop.eup %11221  ;;  %11241 = vtanh.f32 %v5843_v39  ;;  %v5734_v8 = vadd.f32 1.0, %v11220_v31 }
 0xa85   :  { %v11224_v45 = vpop.eup %11223  ;;  %11243 = vtanh.f32 %v5844_v62  ;;  %v5735_v22 = vadd.f32 1.0, %v11222_v10 }
 0xa86   :  { %v11226_v49 = vpop.eup %11225  ;;  %11245 = vrcp.f32 %v5731_v48  ;;  %v5736_v57 = vadd.f32 1.0, %v11224_v45 }
 0xa87   :  { %v11228_v43 = vpop.eup %11227  ;;  %11247 = vrcp.f32 %v5732_v6  ;;  %v5737_v32 = vadd.f32 1.0, %v11226_v49 }
 0xa88   :  { %v11230_v51 = vpop.eup %11229  ;;  %11249 = vrcp.f32 %v5733_v40 }
 0xa89   :  { %v11232_v63 = vpop.eup %11231  ;;  %11251 = vrcp.f32 %v5734_v8  ;;  %v5853_v27 = vsub.f32 1.0, %v11230_v51  ;;  %v5869_v58 = vmul.f32 %v11230_v51, %v13756_v13 }
 0xa8a   :  { %v11234_v7 = vpop.eup %11233  ;;  %11253 = vrcp.f32 %v5735_v22 }
 0xa8b   :  { %v11236_v4 = vpop.eup %11235  ;;  %11255 = vrcp.f32 %v5736_v57  ;;  %v5861_v37 = vmul.f32 %v11228_v43, %v5853_v27 }
 0xa8c   :  { %v11238_v36 = vpop.eup %11237  ;;  %11257 = vrcp.f32 %v5737_v32 }
 0xa8d   :  { %v11240_v17 = vpop.eup %11239  ;;  %v13937_v5 = vadd.f32 %v5869_v58, %v5861_v37 }
 0xa8e   :  { %v11242_v29 = vpop.eup %11241 }
 0xa8f   :  { %v11244_v46 = vpop.eup %11243  ;;  %5885 = vst [vmem:[%s15179_s6 + $0x9] sm:$0x1] %v13937_v5  ;;  %v5909_v60 = vpack.c.bf16 %v13937_v5, %v13937_v5 }
 0xa90   :  { %v11246_v33 = vpop.eup %11245 }
 0xa91   :  { %v11248_v3 = vpop.eup %11247  ;;  %v5854_v42 = vsub.f32 1.0, %v11246_v33  ;;  %v5870_v2 = vmul.f32 %v11246_v33, %v13768_v9  ;;  %v5925_v49 = vunpack.c.l.b16 %v5909_v60  ;;  %v14021_v60 = vld [vmem:[#allocation4 + $0x1c] ss:$12 sps:$4 sm:$0xff]  }
 0xa92   :  { %v11250_v21 = vpop.eup %11249  ;;  %v5855_v61 = vsub.f32 1.0, %v11248_v3  ;;  %v5871_v41 = vmul.f32 %v11248_v3, %v13770_v55 }
 0xa93   :  { %v11252_v24 = vpop.eup %11251  ;;  %v5856_v26 = vsub.f32 1.0, %v11250_v21  ;;  %v5862_v13 = vmul.f32 %v11232_v63, %v5854_v42  ;;  %v5872_v35 = vmul.f32 %v11250_v21, %v13778_v53 }
 0xa94   :  { %v11254_v30 = vpop.eup %11253  ;;  %v5857_v59 = vsub.f32 1.0, %v11252_v24  ;;  %v5863_v12 = vmul.f32 %v11234_v7, %v5855_v61  ;;  %v5873_v19 = vmul.f32 %v11252_v24, %v13784_v44 }
 0xa95   :  { %v11256_v18 = vpop.eup %11255  ;;  %v5858_v14 = vsub.f32 1.0, %v11254_v30  ;;  %v5864_v38 = vmul.f32 %v11236_v4, %v5856_v26  ;;  %v13949_v56 = vadd.f32 %v5870_v2, %v5862_v13  ;;  %v5874_v20 = vmul.f32 %v11254_v30, %v13791_v54  ;;  %v14015_v13 = vld [vmem:[#allocation4] ss:$12 sps:$4 sm:$0xff]   ;;  %v14018_v2 = vld [vmem:[#allocation4 + $0x8] ss:$12 sps:$4 sm:$0xff]  }
 0xa96   :  { %v11258_v23 = vpop.eup %11257  ;;  %v5865_v25 = vmul.f32 %v11238_v36, %v5857_v59  ;;  %v13951_v9 = vadd.f32 %v5871_v41, %v5863_v12  ;;  %v5859_v34 = vsub.f32 1.0, %v11256_v18  ;;  %v5875_v0 = vmul.f32 %v11256_v18, %v13799_v1  ;;  %v14028_v30 = vld [vmem:[#allocation4 + $0x18] ss:$12 sps:$4 sm:$0xff]   ;;  %v14031_v59 = vld [vmem:[#allocation4 + $0x20] ss:$12 sps:$4 sm:$0xff]  }
 0xa97   :  { %5886 = vst [vmem:[%s15179_s6 + $0x19] sm:$0x1] %v13949_v56  ;;  %v5860_v55 = vsub.f32 1.0, %v11258_v23  ;;  %v5866_v53 = vmul.f32 %v11240_v17, %v5858_v14  ;;  %v13959_v50 = vadd.f32 %v5872_v35, %v5864_v38  ;;  %v5910_v54 = vpack.c.bf16 %v13949_v56, %v13949_v56  ;;  %v14034_v12 = vld [vmem:[#allocation4 + $0x34] ss:$12 sps:$4 sm:$0xff]  }
 0xa98   :  { %5887 = vst [vmem:[%s15179_s6 + $0x29] sm:$0x1] %v13951_v9  ;;  %v5867_v44 = vmul.f32 %v11242_v29, %v5859_v34  ;;  %v13965_v28 = vadd.f32 %v5873_v19, %v5865_v25  ;;  %v5911_v39 = vpack.c.bf16 %v13951_v9, %v13951_v9  ;;  %v5876_v31 = vmul.f32 %v11258_v23, %v13807_v52  ;;  %v14038_v41 = vld [vmem:[#allocation4 + $0x30] ss:$12 sps:$4 sm:$0xff]   ;;  %v14041_v35 = vld [vmem:[#allocation4 + $0x38] ss:$12 sps:$4 sm:$0xff]  }
 0xa99   :  { %v5868_v48 = vmul.f32 %v11244_v46, %v5860_v55  ;;  %v13972_v1 = vadd.f32 %v5874_v20, %v5866_v53  ;;  %5888 = vst [vmem:[%s15179_s6 + $0x39] sm:$0x1] %v13959_v50  ;;  %v5912_v62 = vpack.c.bf16 %v13959_v50, %v13959_v50  ;;  %v5926_v10 = vunpack.c.l.b16 %v5910_v54  ;;  %v14044_v18 = vld [vmem:[#allocation4 + $0x4c] ss:$12 sps:$4 sm:$0xff]   ;;  %v14048_v14 = vld [vmem:[#allocation4 + $0x48] ss:$12 sps:$4 sm:$0xff]  }
 0xa9a   :  { %v13980_v6 = vadd.f32 %v5875_v0, %v5867_v44  ;;  %5889 = vst [vmem:[%s15179_s6 + $0x49] sm:$0x1] %v13965_v28  ;;  %v5913_v52 = vpack.c.bf16 %v13965_v28, %v13965_v28  ;;  %v5927_v40 = vunpack.c.l.b16 %v5911_v39  ;;  %v14051_v38 = vld [vmem:[#allocation4 + $0x50] ss:$12 sps:$4 sm:$0xff]   ;;  %v14058_v23 = vld [vmem:[#allocation4 + $0x60] ss:$12 sps:$4 sm:$0xff]  }
 0xa9b   :  { %v13988_v45 = vadd.f32 %v5876_v31, %v5868_v48  ;;  %5890 = vst [vmem:[%s15179_s6 + $0x59] sm:$0x1] %v13972_v1  ;;  %v5914_v8 = vpack.c.bf16 %v13972_v1, %v13972_v1  ;;  %v5928_v22 = vunpack.c.l.b16 %v5912_v62  ;;  %v5933_v51 = vrot.slane %v5926_v10, 7  ;;  %v14054_v19 = vld [vmem:[#allocation4 + $0x64] ss:$12 sps:$4 sm:$0xff]  }
 0xa9c   :  { %5891 = vst [vmem:[%s15179_s6 + $0x69] sm:$0x1] %v13980_v6  ;;  %v5915_v43 = vpack.c.bf16 %v13980_v6, %v13980_v6  ;;  %v5929_v57 = vunpack.c.l.b16 %v5913_v52  ;;  %v5935_v32 = vrot.slane %v5927_v40, 6  ;;  %v14061_v25 = vld [vmem:[#allocation4 + $0x68] ss:$12 sps:$4 sm:$0xff]  }
 0xa9d   :  { %5892 = vst [vmem:[%s15179_s6 + $0x79] sm:$0x1] %v13988_v45  ;;  %v5916_v63 = vpack.c.bf16 %v13988_v45, %v13988_v45  ;;  %v5930_v27 = vunpack.c.l.b16 %v5914_v8  ;;  %v5937_v7 = vrot.slane %v5928_v22, 5  ;;  %v5934_v37 = vsel %vm1703_vm3, %v5933_v51, %v5925_v49  ;;  %15344 = vst [vmem:[#allocation7_spill] sm:$0xff] %v14061_v25  ;;  %v14064_v34 = vld [vmem:[#allocation4 + $0x7c] ss:$12 sps:$4 sm:$0xff]  }
 0xa9e   :  { %v5931_v4 = vunpack.c.l.b16 %v5915_v43  ;;  %v5936_v36 = vsel %vm1706_vm4, %v5935_v32, %v5934_v37  ;;  %v5939_v17 = vrot.slane %v5929_v57, 4  ;;  %15345 = vst [vmem:[#allocation8_spill] sm:$0xff] %v14064_v34  ;;  %v14068_v20 = vld [vmem:[#allocation4 + $0x78] ss:$12 sps:$4 sm:$0xff]   ;;  %v14071_v55 = vld [vmem:[#allocation4 + $0x80] ss:$12 sps:$4 sm:$0xff]  }
 0xa9f   :  { %v5932_v58 = vunpack.c.l.b16 %v5916_v63  ;;  %v5938_v29 = vsel %vm1709_vm5, %v5937_v7, %v5936_v36  ;;  %v5941_v46 = vrot.slane %v5930_v27, 3  ;;  %15346 = vst [vmem:[#allocation9_spill] sm:$0xff] %v14068_v20  ;;  %15347 = vst [vmem:[#allocation10_spill] sm:$0xff] %v14071_v55  ;;  %v14074_v53 = vld [vmem:[#allocation4 + $0x94] ss:$12 sps:$4 sm:$0xff]  }
 0xaa0   :  { %v5940_v33 = vsel %vm1712_vm6, %v5939_v17, %v5938_v29  ;;  %v5943_v3 = vrot.slane %v5931_v4, 2  ;;  %15348 = vst [vmem:[#allocation11_spill] sm:$0xff] %v14074_v53  ;;  %v14078_v0 = vld [vmem:[#allocation4 + $0x90] ss:$12 sps:$4 sm:$0xff]   ;;  %v14081_v44 = vld [vmem:[#allocation4 + $0x98] ss:$12 sps:$4 sm:$0xff]  }
 0xaa1   :  { %v5942_v42 = vsel %vm1715_vm7, %v5941_v46, %v5940_v33  ;;  %v5945_v21 = vrot.slane %v5932_v58, 1  ;;  %15349 = vst [vmem:[#allocation12_spill] sm:$0xff] %v14078_v0  ;;  %15350 = vst [vmem:[#allocation13_spill] sm:$0xff] %v14081_v44  ;;  %v14084_v54 = vld [vmem:[#allocation4 + $0xac] ss:$12 sps:$4 sm:$0xff]  }
 0xaa2   :  { %v5944_v61 = vsel %vm1718_vm8, %v5943_v3, %v5942_v42  ;;  %15351 = vst [vmem:[#allocation14_spill] sm:$0xff] %v14084_v54  ;;  %v14088_v39 = vld [vmem:[#allocation4 + $0xa8] ss:$12 sps:$4 sm:$0xff]   ;;  %v14091_v48 = vld [vmem:[#allocation4 + $0xb0] ss:$12 sps:$4 sm:$0xff]  }
 0xaa3   :  { %v5946_v24 = vsel %vm1721_vm9, %v5945_v21, %v5944_v61  ;;  %15352 = vst [vmem:[#allocation15_spill] sm:$0xff] %v14088_v39  ;;  %15353 = vst [vmem:[#allocation16_spill] sm:$0xff] %v14091_v48  ;;  %v14094_v31 = vld [vmem:[#allocation4 + $0x4] ss:$12 sps:$4 sm:$0xff]  }
 0xaa4   :  { %v5947_v26 = vpack.c.b16 %v5946_v24, %v5946_v24  ;;  %15354 = vst [vmem:[#allocation17_spill] sm:$0xff] %v14094_v31  ;;  %v14101_v7 = vld [vmem:[#allocation2 + $0x19] ss:$8 sm:$0x7] }
 0xaa5   :  { %v14103_v4 = vld [vmem:[#allocation2 + $0x49] ss:$8 sm:$0x7] }
 0xaa6   :  { %5982 = vmatmul.mubr.bf16.vlgmr.msra.gmra.mrb[68].mxu0 %v5947_v26  ;;  %10374 = vmatmul.mubr.bf16.vlgmr.msra.gmra.mrb[68].mxu1 %v5947_v26  ;;  %v14107_v29 = vld [vmem:[#allocation2 + $0x79] ss:$8 sm:$0x7] }
 0xaa7   :  { %6478 = vmatpush1.bf16.msra.mxu0 %v14015_v13  ;;  %10378 = vmatpush3.bf16.msra.mxu1 %v14018_v2  ;;  %v14109_v46 = vld [vmem:[#allocation2 + $0xa9] ss:$8 sm:$0x7] }
 0xaa8   :  { %6479 = vmatprep.subr.bf16.mxu0 %v14021_v60  ;;  %10379 = vmatprep.subr.bf16.mxu1 %v15267_v16  ;;  %v14113_v42 = vld [vmem:[#allocation2 + $0xd9] ss:$8 sm:$0x7] }
 0xaa9   :  { %6509 = vmatprep.mubr.bf16.mxu0 %v15268_v15  ;;  %10393 = vmatprep.mubr.msk.bf16.mxu1 %vm11945_vm0, %v15267_v16  ;;  %v14115_v21 = vld [vmem:[#allocation2 + $0x109] ss:$8 sm:$0x7] }
 0xaab   :  { %6480 = vmatpush1.bf16.msra.mxu0 %v14028_v30  ;;  %10380 = vmatpush3.bf16.msra.mxu1 %v14031_v59 }
 0xaac   :  { %6481 = vmatprep.subr.bf16.mxu0 %v14034_v12  ;;  %10381 = vmatprep.subr.bf16.mxu1 %v15267_v16 }
 0xaaf   :  { %6482 = vmatpush1.bf16.msra.mxu0 %v14038_v41  ;;  %10382 = vmatpush3.bf16.msra.mxu1 %v14041_v35 }
 0xab0   :  { %6483 = vmatprep.subr.bf16.mxu0 %v14044_v18  ;;  %10383 = vmatprep.subr.bf16.mxu1 %v15267_v16 }
 0xab3   :  { %6484 = vmatpush1.bf16.msra.mxu0 %v14048_v14  ;;  %10384 = vmatpush3.bf16.msra.mxu1 %v14051_v38 }
 0xab4   :  { %6485 = vmatprep.subr.bf16.mxu0 %v14054_v19  ;;  %10385 = vmatprep.subr.bf16.mxu1 %v15267_v16 }
 0xab7   :  { %6486 = vmatpush1.bf16.msra.mxu0 %v14058_v23  ;;  %10386 = vmatpush3.bf16.msra.mxu1 %v14061_v25 }
 0xab8   :  { %6487 = vmatprep.subr.bf16.mxu0 %v14064_v34  ;;  %10387 = vmatprep.subr.bf16.mxu1 %v15267_v16 }
 0xabb   :  { %6488 = vmatpush1.bf16.msra.mxu0 %v14068_v20  ;;  %10388 = vmatpush3.bf16.msra.mxu1 %v14071_v55 }
 0xabc   :  { %6489 = vmatprep.subr.bf16.mxu0 %v14074_v53  ;;  %10389 = vmatprep.subr.bf16.mxu1 %v15267_v16 }
 0xabf   :  { %6490 = vmatpush1.bf16.msra.mxu0 %v14078_v0  ;;  %10390 = vmatpush3.bf16.msra.mxu1 %v14081_v44 }
 0xac0   :  { %6491 = vmatprep.subr.bf16.mxu0 %v14084_v54  ;;  %10391 = vmatprep.subr.bf16.mxu1 %v15267_v16 }
 0xac3   :  { %6492 = vmatpush1.bf16.msra.mxu0 %v14088_v39  ;;  %10392 = vmatpush3.bf16.msra.mxu1 %v14091_v48 }
 0xac4   :  { %7005 = vmatprep.subr.bf16.mxu0 %v14094_v31  ;;  %10397 = vmatprep.subr.bf16.mxu1 %v15267_v16 }
 0xb79   :  { %v5983_v62 = vpop.f32.mrb[68].mxu0  ;;  %v6024_v52 = vpop.f32.mrb[68].mxu1 }
 0xb7a   :  { %v6031_v10 = vcombine.high %v5983_v62, %v5983_v62  ;;  %v6038_v40 = vrot.slane %v5983_v62, %v12002_v11  ;;  %v5985_v8 = vpop.f32.mrb[69].mxu0  ;;  %v10375_v49 = vpop.f32.mrb[69].mxu1 }
 0xb7b   :  { %v5987_v22 = vpop.f32.mrb[70].mxu0  ;;  %v6027_v43 = vpop.f32.mrb[70].mxu1  ;;  %v6176_v3 = vrot.slane %v5985_v8, %v12002_v11 }
 0xb7c   :  { %v6045_v57 = vrot.slane %v6031_v10, %v12002_v11  ;;  %v6046_v51 = vcombine.high %v6038_v40, %v6038_v40  ;;  %v6054_v32 = vrot.slane %v6038_v40, %v12002_v11  ;;  %v5988_v63 = vpop.f32.mrb[71].mxu0  ;;  %v10376_v27 = vpop.f32.mrb[71].mxu1  ;;  %v14119_v10 = vld [vmem:[#allocation2 + $0x139] ss:$8 sm:$0x7]  ;;  %v6169_v43 = vcombine.high %v5985_v8, %v5985_v8 }
 0xb7d   :  { %v6184_v39 = vcombine.high %v6176_v3, %v6176_v3  ;;  %v6192_v8 = vrot.slane %v6176_v3, %v12002_v11  ;;  %v6282_v3 = vadd.f32 %v13910_v47, %v6024_v52  ;;  %v6157_v47 = vrot.slane %v14115_v21, 1 }
 0xb7e   :  { %v6047_v37 = vcombine.high %v6045_v57, %v6045_v57  ;;  %v6061_v58 = vrot.slane %v6045_v57, %v12002_v11  ;;  %v6068_v36 = vrot.slane %v6046_v51, %v12002_v11  ;;  %v6076_v17 = vcombine.high %v6054_v32, %v6054_v32  ;;  %v14123_v57 = vld [vmem:[#allocation2 + $0x169] ss:$8 sm:$0x7] }
 0xb7f   :  { %v6088_v33 = vadd.f32 %v6054_v32, %v14101_v7  ;;  %v6158_v52 = vrot.slane %v14119_v10, 1 }
 0xb80   :  { %v6075_v61 = vrot.slane %v6047_v37, %v12002_v11  ;;  %v6077_v24 = vcombine.high %v6061_v58, %v6061_v58  ;;  %v6078_v26 = vcombine.high %v6068_v36, %v6068_v36  ;;  %v6089_v62 = vadd.f32 %v6068_v36, %v14103_v4 }
 0xb81   :  { %v6090_v40 = vadd.f32 %v6076_v17, %v14107_v29  ;;  %v6092_v49 = vadd.f32 %v6061_v58, %v14113_v42  ;;  %v9857_v22 = vmul.f32 -1.442695, %v6088_v33 }
 0xb82   :  { %v6079_v51 = vcombine.high %v6075_v61, %v6075_v61  ;;  %v6091_v32 = vadd.f32 %v6078_v26, %v14109_v46  ;;  %v6093_v63 = vadd.f32 %v6075_v61, %v14115_v21  ;;  %v6094_v27 = vadd.f32 %v6077_v24, %v14119_v10 }
 0xb83   :  { %11259 = vpow2.f32 %v9857_v22  ;;  %v9858_v37 = vmul.f32 -1.442695, %v6089_v62  ;;  %v9859_v36 = vmul.f32 -1.442695, %v6090_v40  ;;  %v9861_v17 = vmul.f32 -1.442695, %v6092_v49 }
 0xb84   :  { %v6095_v31 = vadd.f32 %v6079_v51, %v14123_v57  ;;  %v9860_v48 = vmul.f32 -1.442695, %v6091_v32  ;;  %v9862_v58 = vmul.f32 -1.442695, %v6093_v63  ;;  %v9863_v33 = vmul.f32 -1.442695, %v6094_v27 }
 0xb85   :  { %11261 = vpow2.f32 %v9858_v37  ;;  %v6183_v26 = vrot.slane %v6169_v43, %v12002_v11  ;;  %v6152_v24 = vrot.slane %v14101_v7, 1  ;;  %v6206_v62 = vrot.slane %v6184_v39, %v12002_v11 }
 0xb86   :  { %11263 = vpow2.f32 %v9859_v36  ;;  %v9864_v61 = vmul.f32 -1.442695, %v6095_v31  ;;  %v6153_v40 = vrot.slane %v14103_v4, 1  ;;  %v6154_v32 = vrot.slane %v14107_v29, 1 }
 0xb87   :  { %11265 = vpow2.f32 %v9860_v48  ;;  %v6226_v49 = vadd.f32 %v6192_v8, %v6152_v24  ;;  %v6185_v22 = vcombine.high %v6183_v26, %v6183_v26  ;;  %v6155_v48 = vrot.slane %v14109_v46, 1 }
 0xb88   :  { %11267 = vpow2.f32 %v9861_v17  ;;  %v6227_v51 = vadd.f32 %v6206_v62, %v6153_v40  ;;  %v6199_v43 = vrot.slane %v6183_v26, %v12002_v11  ;;  %v6214_v63 = vcombine.high %v6192_v8, %v6192_v8 }
 0xb89   :  { %11269 = vpow2.f32 %v9862_v58  ;;  %v9865_v27 = vmul.f32 -1.442695, %v6226_v49  ;;  %v6156_v36 = vrot.slane %v14113_v42, 1  ;;  %v6213_v17 = vrot.slane %v6185_v22, %v12002_v11 }
 0xb8a   :  { %11271 = vpow2.f32 %v9863_v33  ;;  %v9866_v39 = vmul.f32 -1.442695, %v6227_v51  ;;  %v6216_v58 = vcombine.high %v6206_v62, %v6206_v62  ;;  %v6291_v8 = vrot.slane %v6282_v3, %v12002_v11 }
 0xb8b   :  { %11273 = vpow2.f32 %v9864_v61  ;;  %v6284_v61 = vcombine.high %v6282_v3, %v6282_v3  ;;  %v6159_v26 = vrot.slane %v14123_v57, 1  ;;  %v6228_v54 = vadd.f32 %v6214_v63, %v6154_v32 }
 0xb8c   :  { %11275 = vpow2.f32 %v9865_v27  ;;  %v6217_v44 = vcombine.high %v6213_v17, %v6213_v17  ;;  %v6229_v0 = vadd.f32 %v6216_v58, %v6155_v48  ;;  %v6299_v20 = vcombine.high %v6291_v8, %v6291_v8 }
 0xb8d   :  { %v11260_v31 = vpop.eup %11259  ;;  %v6298_v27 = vrot.slane %v6284_v61, %v12002_v11  ;;  %v6231_v34 = vadd.f32 %v6213_v17, %v6157_v47  ;;  %v9867_v63 = vmul.f32 -1.442695, %v6228_v54  ;;  %v6350_v54 = vrot.slane %v14103_v4, 2 }
 0xb8e   :  { %v6120_v37 = vadd.f32 1.0, %v11260_v31  ;;  %v6215_v31 = vcombine.high %v6199_v43, %v6199_v43  ;;  %v9868_v48 = vmul.f32 -1.442695, %v6229_v0  ;;  %v6321_v61 = vrot.slane %v6299_v20, %v12002_v11 }
 0xb8f   :  { %v11262_v33 = vpop.eup %11261 }
 0xb90   :  { %v11264_v24 = vpop.eup %11263  ;;  %v6121_v40 = vadd.f32 1.0, %v11262_v33  ;;  %11277 = vrcp.f32 %v6120_v37  ;;  %v6230_v37 = vadd.f32 %v6199_v43, %v6156_v36  ;;  %v6232_v32 = vadd.f32 %v6215_v31, %v6158_v52 }
 0xb91   :  { %v11266_v49 = vpop.eup %11265  ;;  %v6122_v51 = vadd.f32 1.0, %v11264_v24  ;;  %11279 = vpow2.f32 %v9866_v39  ;;  %v6307_v43 = vrot.slane %v6291_v8, %v12002_v11  ;;  %v9870_v36 = vmul.f32 -1.442695, %v6231_v34 }
 0xb92   :  { %v11268_v62 = vpop.eup %11267  ;;  %v6123_v22 = vadd.f32 1.0, %v11266_v49  ;;  %11281 = vrcp.f32 %v6121_v40  ;;  %v6233_v40 = vadd.f32 %v6217_v44, %v6159_v26  ;;  %v9869_v58 = vmul.f32 -1.442695, %v6230_v37 }
 0xb93   :  { %v11270_v53 = vpop.eup %11269  ;;  %v6124_v55 = vadd.f32 1.0, %v11268_v62  ;;  %11283 = vrcp.f32 %v6122_v51  ;;  %v6300_v49 = vcombine.high %v6298_v27, %v6298_v27  ;;  %v9871_v17 = vmul.f32 -1.442695, %v6232_v32 }
 0xb94   :  { %v11272_v33 = vpop.eup %11271  ;;  %v6125_v3 = vadd.f32 1.0, %v11270_v53  ;;  %11285 = vrcp.f32 %v6123_v22  ;;  %v9872_v44 = vmul.f32 -1.442695, %v6233_v40  ;;  %v6314_v52 = vrot.slane %v6298_v27, %v12002_v11 }
 0xb95   :  { %v11274_v24 = vpop.eup %11273  ;;  %v6126_v25 = vadd.f32 1.0, %v11272_v33  ;;  %11287 = vrcp.f32 %v6124_v55  ;;  %v6349_v55 = vrot.slane %v14101_v7, 2  ;;  %v6328_v8 = vrot.slane %v6300_v49, %v12002_v11 }
 0xb96   :  { %v6127_v39 = vadd.f32 1.0, %v11274_v24  ;;  %11289 = vrcp.f32 %v6125_v3  ;;  %v11276_v53 = vpop.eup %11275  ;;  %v6329_v20 = vcombine.high %v6307_v43, %v6307_v43  ;;  %v6331_v62 = vcombine.high %v6321_v61, %v6321_v61 }
 0xb97   :  { %11291 = vrcp.f32 %v6126_v25  ;;  %v6351_v25 = vrot.slane %v14107_v29, 2  ;;  %v6258_v51 = vadd.f32 1.0, %v11276_v53  ;;  %v6352_v37 = vrot.slane %v14109_v46, 2 }
 0xb98   :  { %11293 = vrcp.f32 %v6127_v39  ;;  %v6353_v29 = vrot.slane %v14113_v42, 2  ;;  %v6354_v3 = vrot.slane %v14115_v21, 2  ;;  %v6330_v39 = vcombine.high %v6314_v52, %v6314_v52 }
 0xb99   :  { %11295 = vpow2.f32 %v9867_v63  ;;  %v6332_v49 = vcombine.high %v6328_v8, %v6328_v8  ;;  %v6355_v42 = vrot.slane %v14119_v10, 2 }
 0xb9a   :  { %v11278_v47 = vpop.eup %11277  ;;  %11297 = vpow2.f32 %v9868_v48 }
 0xb9b   :  { %v11280_v0 = vpop.eup %11279  ;;  %v6341_v26 = vmul.f32 %v11278_v47, %v6307_v43  ;;  %11299 = vpow2.f32 %v9869_v58 }
 0xb9c   :  { %v11282_v34 = vpop.eup %11281  ;;  %11301 = vpow2.f32 %v9870_v36 }
 0xb9d   :  { %v11284_v31 = vpop.eup %11283  ;;  %v6342_v7 = vmul.f32 %v11282_v34, %v6321_v61  ;;  %v6365_v22 = vadd.f32 %v6349_v55, %v6341_v26  ;;  %11303 = vpow2.f32 %v9871_v17  ;;  %v6356_v17 = vrot.slane %v14123_v57, 2 }
 0xb9e   :  { %v11286_v4 = vpop.eup %11285  ;;  %v6343_v33 = vmul.f32 %v11284_v31, %v6329_v20  ;;  %11305 = vpow2.f32 %v9872_v44 }
 0xb9f   :  { %v11288_v27 = vpop.eup %11287  ;;  %v6344_v24 = vmul.f32 %v11286_v4, %v6331_v62  ;;  %v6366_v32 = vadd.f32 %v6350_v54, %v6342_v7  ;;  %11307 = vtanh.f32 %v6365_v22 }
 0xba0   :  { %v11290_v63 = vpop.eup %11289  ;;  %v6345_v40 = vmul.f32 %v11288_v27, %v6314_v52  ;;  %v6367_v48 = vadd.f32 %v6351_v25, %v6343_v33  ;;  %11309 = vrcp.f32 %v6258_v51  ;;  %v6259_v25 = vadd.f32 1.0, %v11280_v0 }
 0xba1   :  { %v11292_v58 = vpop.eup %11291  ;;  %v6346_v43 = vmul.f32 %v11290_v63, %v6328_v8  ;;  %v6368_v36 = vadd.f32 %v6352_v37, %v6344_v24  ;;  %11311 = vtanh.f32 %v6366_v32 }
 0xba2   :  { %v11294_v46 = vpop.eup %11293  ;;  %v6347_v53 = vmul.f32 %v11292_v58, %v6330_v39  ;;  %v6369_v61 = vadd.f32 %v6353_v29, %v6345_v40  ;;  %11313 = vtanh.f32 %v6367_v48 }
 0xba3   :  { %v11296_v21 = vpop.eup %11295  ;;  %v6348_v47 = vmul.f32 %v11294_v46, %v6332_v49  ;;  %v6370_v55 = vadd.f32 %v6354_v3, %v6346_v43  ;;  %11315 = vtanh.f32 %v6368_v36 }
 0xba4   :  { %v11298_v54 = vpop.eup %11297  ;;  %v6371_v44 = vadd.f32 %v6355_v42, %v6347_v53  ;;  %11317 = vtanh.f32 %v6369_v61  ;;  %v6260_v34 = vadd.f32 1.0, %v11296_v21 }
 0xba5   :  { %v11300_v52 = vpop.eup %11299  ;;  %v6372_v26 = vadd.f32 %v6356_v17, %v6348_v47  ;;  %11319 = vtanh.f32 %v6370_v55  ;;  %v6261_v10 = vadd.f32 1.0, %v11298_v54 }
 0xba6   :  { %v11302_v8 = vpop.eup %11301  ;;  %11321 = vtanh.f32 %v6371_v44  ;;  %v6262_v51 = vadd.f32 1.0, %v11300_v52 }
 0xba7   :  { %v11304_v20 = vpop.eup %11303  ;;  %11323 = vtanh.f32 %v6372_v26  ;;  %v6263_v62 = vadd.f32 1.0, %v11302_v8 }
 0xba8   :  { %v11306_v31 = vpop.eup %11305  ;;  %11325 = vrcp.f32 %v6259_v25  ;;  %v6264_v7 = vadd.f32 1.0, %v11304_v20 }
 0xba9   :  { %v11308_v57 = vpop.eup %11307  ;;  %11327 = vrcp.f32 %v6260_v34  ;;  %v6265_v4 = vadd.f32 1.0, %v11306_v31 }
 0xbaa   :  { %v11310_v22 = vpop.eup %11309  ;;  %11329 = vrcp.f32 %v6261_v10 }
 0xbab   :  { %v11312_v0 = vpop.eup %11311  ;;  %11331 = vrcp.f32 %v6262_v51  ;;  %v6381_v37 = vsub.f32 1.0, %v11310_v22  ;;  %v6397_v3 = vmul.f32 %v11310_v22, %v13937_v5 }
 0xbac   :  { %v11314_v29 = vpop.eup %11313  ;;  %11333 = vrcp.f32 %v6263_v62 }
 0xbad   :  { %v11316_v33 = vpop.eup %11315  ;;  %11335 = vrcp.f32 %v6264_v7  ;;  %v6389_v27 = vmul.f32 %v11308_v57, %v6381_v37 }
 0xbae   :  { %v11318_v24 = vpop.eup %11317  ;;  %11337 = vrcp.f32 %v6265_v4 }
 0xbaf   :  { %v11320_v32 = vpop.eup %11319  ;;  %v14158_v63 = vadd.f32 %v6397_v3, %v6389_v27 }
 0xbb0   :  { %v11322_v39 = vpop.eup %11321 }
 0xbb1   :  { %v11324_v40 = vpop.eup %11323  ;;  %6413 = vst [vmem:[%s15179_s6 + $0xa] sm:$0x1] %v14158_v63  ;;  %v6437_v61 = vpack.c.bf16 %v14158_v63, %v14158_v63 }
 0xbb2   :  { %v11326_v48 = vpop.eup %11325 }
 0xbb3   :  { %v11328_v58 = vpop.eup %11327  ;;  %v6382_v49 = vsub.f32 1.0, %v11326_v48  ;;  %v6398_v53 = vmul.f32 %v11326_v48, %v13949_v56 }
 0xbb4   :  { %v11330_v43 = vpop.eup %11329  ;;  %v6383_v36 = vsub.f32 1.0, %v11328_v58  ;;  %v6399_v55 = vmul.f32 %v11328_v58, %v13951_v9 }
 0xbb5   :  { %v11332_v46 = vpop.eup %11331  ;;  %v6384_v42 = vsub.f32 1.0, %v11330_v43  ;;  %v6390_v5 = vmul.f32 %v11312_v0, %v6382_v49  ;;  %v6400_v54 = vmul.f32 %v11330_v43, %v13959_v50 }
 0xbb6   :  { %v11334_v21 = vpop.eup %11333  ;;  %v6385_v17 = vsub.f32 1.0, %v11332_v46  ;;  %v6391_v47 = vmul.f32 %v11314_v29, %v6383_v36  ;;  %v6401_v26 = vmul.f32 %v11332_v46, %v13965_v28 }
 0xbb7   :  { %v11336_v44 = vpop.eup %11335  ;;  %v6386_v25 = vsub.f32 1.0, %v11334_v21  ;;  %v6392_v52 = vmul.f32 %v11316_v33, %v6384_v42  ;;  %v14170_v34 = vadd.f32 %v6398_v53, %v6390_v5  ;;  %v6402_v51 = vmul.f32 %v11334_v21, %v13972_v1 }
 0xbb8   :  { %v11338_v8 = vpop.eup %11337  ;;  %v6393_v10 = vmul.f32 %v11318_v24, %v6385_v17  ;;  %v14172_v56 = vadd.f32 %v6399_v55, %v6391_v47  ;;  %v6387_v20 = vsub.f32 1.0, %v11336_v44  ;;  %v6403_v31 = vmul.f32 %v11336_v44, %v13980_v6 }
 0xbb9   :  { %6414 = vst [vmem:[%s15179_s6 + $0x1a] sm:$0x1] %v14170_v34  ;;  %v6388_v9 = vsub.f32 1.0, %v11338_v8  ;;  %v6394_v50 = vmul.f32 %v11320_v32, %v6386_v25  ;;  %v14180_v62 = vadd.f32 %v6400_v54, %v6392_v52  ;;  %v6438_v1 = vpack.c.bf16 %v14170_v34, %v14170_v34 }
 0xbba   :  { %6415 = vst [vmem:[%s15179_s6 + $0x2a] sm:$0x1] %v14172_v56  ;;  %v6395_v28 = vmul.f32 %v11322_v39, %v6387_v20  ;;  %v14186_v57 = vadd.f32 %v6401_v26, %v6393_v10  ;;  %v6439_v7 = vpack.c.bf16 %v14172_v56, %v14172_v56  ;;  %v6404_v4 = vmul.f32 %v11338_v8, %v13988_v45 }
 0xbbb   :  { %v6396_v22 = vmul.f32 %v11324_v40, %v6388_v9  ;;  %v14193_v6 = vadd.f32 %v6402_v51, %v6394_v50  ;;  %6416 = vst [vmem:[%s15179_s6 + $0x3a] sm:$0x1] %v14180_v62  ;;  %v6440_v0 = vpack.c.bf16 %v14180_v62, %v14180_v62  ;;  %v6454_v29 = vunpack.c.l.b16 %v6438_v1 }
 0xbbc   :  { %v14201_v37 = vadd.f32 %v6403_v31, %v6395_v28  ;;  %6417 = vst [vmem:[%s15179_s6 + $0x4a] sm:$0x1] %v14186_v57  ;;  %v6441_v45 = vpack.c.bf16 %v14186_v57, %v14186_v57  ;;  %v6455_v33 = vunpack.c.l.b16 %v6439_v7  ;;  %v6453_v24 = vunpack.c.l.b16 %v6437_v61 }
 0xbbd   :  { %v14209_v27 = vadd.f32 %v6404_v4, %v6396_v22  ;;  %6418 = vst [vmem:[%s15179_s6 + $0x5a] sm:$0x1] %v14193_v6  ;;  %v6442_v3 = vpack.c.bf16 %v14193_v6, %v14193_v6  ;;  %v6456_v32 = vunpack.c.l.b16 %v6440_v0  ;;  %v6461_v48 = vrot.slane %v6454_v29, 7  ;;  %v14276_v4 = vld [vmem:[#allocation2 + $0x1a] ss:$8 sm:$0x7] }
 0xbbe   :  { %6419 = vst [vmem:[%s15179_s6 + $0x6a] sm:$0x1] %v14201_v37  ;;  %v6443_v39 = vpack.c.bf16 %v14201_v37, %v14201_v37  ;;  %v6457_v40 = vunpack.c.l.b16 %v6441_v45  ;;  %v6463_v58 = vrot.slane %v6455_v33, 6  ;;  %v14278_v0 = vld [vmem:[#allocation2 + $0x4a] ss:$8 sm:$0x7] }
 0xbbf   :  { %6420 = vst [vmem:[%s15179_s6 + $0x7a] sm:$0x1] %v14209_v27  ;;  %v6444_v49 = vpack.c.bf16 %v14209_v27, %v14209_v27  ;;  %v6458_v43 = vunpack.c.l.b16 %v6442_v3  ;;  %v6465_v36 = vrot.slane %v6456_v32, 5  ;;  %v6462_v42 = vsel %vm1703_vm3, %v6461_v48, %v6453_v24  ;;  %v14282_v24 = vld [vmem:[#allocation2 + $0x7a] ss:$8 sm:$0x7] }
 0xbc0   :  { %v6459_v46 = vunpack.c.l.b16 %v6443_v39  ;;  %v6464_v53 = vsel %vm1706_vm4, %v6463_v58, %v6462_v42  ;;  %v6467_v61 = vrot.slane %v6457_v40, 4  ;;  %v14284_v32 = vld [vmem:[#allocation2 + $0xaa] ss:$8 sm:$0x7] }
 0xbc1   :  { %v6460_v5 = vunpack.c.l.b16 %v6444_v49  ;;  %v6466_v21 = vsel %vm1709_vm5, %v6465_v36, %v6464_v53  ;;  %v6469_v17 = vrot.slane %v6458_v43, 3  ;;  %v14288_v48 = vld [vmem:[#allocation2 + $0xda] ss:$8 sm:$0x7] }
 0xbc2   :  { %v6468_v47 = vsel %vm1712_vm6, %v6467_v61, %v6466_v21  ;;  %v6471_v55 = vrot.slane %v6459_v46, 2  ;;  %v14290_v58 = vld [vmem:[#allocation2 + $0x10a] ss:$8 sm:$0x7] }
 0xbc3   :  { %v6470_v54 = vsel %vm1715_vm7, %v6469_v17, %v6468_v47  ;;  %v6473_v44 = vrot.slane %v6460_v5, 1  ;;  %v14294_v42 = vld [vmem:[#allocation2 + $0x13a] ss:$8 sm:$0x7] }
 0xbc4   :  { %v6472_v25 = vsel %vm1718_vm8, %v6471_v55, %v6470_v54  ;;  %v14298_v17 = vld [vmem:[#allocation2 + $0x16a] ss:$8 sm:$0x7] }
 0xbc5   :  { %v6474_v52 = vsel %vm1721_vm9, %v6473_v44, %v6472_v25 }
 0xbc6   :  { %v6475_v26 = vpack.c.b16 %v6474_v52, %v6474_v52 }
 0xbc8   :  { %6510 = vmatmul.mubr.bf16.vlgmr.msra.gmra.mrb[72].mxu0 %v6475_v26  ;;  %10394 = vmatmul.mubr.bf16.vlgmr.msra.gmra.mrb[72].mxu1 %v6475_v26 }
 0xbc9   :  { %7006 = vmatpush1.bf16.msra.mxu0 %v14015_v13  ;;  %10398 = vmatpush3.bf16.msra.mxu1 %v14018_v2  ;;  %v15355_v13 = vld [vmem:[#allocation7_spill] sm:$0xff]  ;;  %v15356_v2 = vld [vmem:[#allocation8_spill] sm:$0xff] }
 0xbca   :  { %7007 = vmatprep.subr.bf16.mxu0 %v14021_v60  ;;  %10399 = vmatprep.subr.bf16.mxu1 %v15267_v16  ;;  %v15357_v60 = vld [vmem:[#allocation9_spill] sm:$0xff] }
 0xbcb   :  { %7037 = vmatprep.mubr.bf16.mxu0 %v15268_v15  ;;  %10413 = vmatprep.mubr.msk.bf16.mxu1 %vm11945_vm0, %v15267_v16 }
 0xbcd   :  { %7008 = vmatpush1.bf16.msra.mxu0 %v14028_v30  ;;  %10400 = vmatpush3.bf16.msra.mxu1 %v14031_v59  ;;  %v15358_v30 = vld [vmem:[#allocation10_spill] sm:$0xff]  ;;  %v15359_v59 = vld [vmem:[#allocation11_spill] sm:$0xff] }
 0xbce   :  { %7009 = vmatprep.subr.bf16.mxu0 %v14034_v12  ;;  %10401 = vmatprep.subr.bf16.mxu1 %v15267_v16  ;;  %v15360_v12 = vld [vmem:[#allocation12_spill] sm:$0xff] }
 0xbd1   :  { %7010 = vmatpush1.bf16.msra.mxu0 %v14038_v41  ;;  %10402 = vmatpush3.bf16.msra.mxu1 %v14041_v35  ;;  %v15361_v41 = vld [vmem:[#allocation13_spill] sm:$0xff]  ;;  %v15362_v35 = vld [vmem:[#allocation14_spill] sm:$0xff] }
 0xbd2   :  { %7011 = vmatprep.subr.bf16.mxu0 %v14044_v18  ;;  %10403 = vmatprep.subr.bf16.mxu1 %v15267_v16  ;;  %v15363_v18 = vld [vmem:[#allocation15_spill] sm:$0xff] }
 0xbd5   :  { %7012 = vmatpush1.bf16.msra.mxu0 %v14048_v14  ;;  %10404 = vmatpush3.bf16.msra.mxu1 %v14051_v38  ;;  %v15364_v14 = vld [vmem:[#allocation16_spill] sm:$0xff]  ;;  %v15365_v38 = vld [vmem:[#allocation17_spill] sm:$0xff] }
 0xbd6   :  { %7013 = vmatprep.subr.bf16.mxu0 %v14054_v19  ;;  %10405 = vmatprep.subr.bf16.mxu1 %v15267_v16 }
 0xbd9   :  { %7014 = vmatpush1.bf16.msra.mxu0 %v14058_v23  ;;  %10406 = vmatpush3.bf16.msra.mxu1 %v15355_v13 }
 0xbda   :  { %7015 = vmatprep.subr.bf16.mxu0 %v15356_v2  ;;  %10407 = vmatprep.subr.bf16.mxu1 %v15267_v16 }
 0xbdd   :  { %7016 = vmatpush1.bf16.msra.mxu0 %v15357_v60  ;;  %10408 = vmatpush3.bf16.msra.mxu1 %v15358_v30 }
 0xbde   :  { %7017 = vmatprep.subr.bf16.mxu0 %v15359_v59  ;;  %10409 = vmatprep.subr.bf16.mxu1 %v15267_v16 }
 0xbe1   :  { %7018 = vmatpush1.bf16.msra.mxu0 %v15360_v12  ;;  %10410 = vmatpush3.bf16.msra.mxu1 %v15361_v41 }
 0xbe2   :  { %7019 = vmatprep.subr.bf16.mxu0 %v15362_v35  ;;  %10411 = vmatprep.subr.bf16.mxu1 %v15267_v16 }
 0xbe5   :  { %7020 = vmatpush1.bf16.msra.mxu0 %v15363_v18  ;;  %10412 = vmatpush3.bf16.msra.mxu1 %v15364_v14  ;;  %v6680_v18 = vrot.slane %v14276_v4, 1 }
 0xbe6   :  { %7533 = vmatprep.subr.bf16.mxu0 %v15365_v38  ;;  %10417 = vmatprep.subr.bf16.mxu1 %v15267_v16  ;;  %v6681_v38 = vrot.slane %v14278_v0, 1 }
 0xc9b   :  { %v6511_v19 = vpop.f32.mrb[72].mxu0  ;;  %v14271_v23 = vpop.f32.mrb[72].mxu1 }
 0xc9c   :  { %v6559_v8 = vcombine.high %v6511_v19, %v6511_v19  ;;  %v6566_v10 = vrot.slane %v6511_v19, %v12002_v11  ;;  %v6513_v20 = vpop.f32.mrb[73].mxu0  ;;  %v10395_v51 = vpop.f32.mrb[73].mxu1 }
 0xc9d   :  { %v6515_v9 = vpop.f32.mrb[74].mxu0  ;;  %v6555_v50 = vpop.f32.mrb[74].mxu1  ;;  %v6704_v40 = vrot.slane %v6513_v20, %v12002_v11  ;;  %v6697_v21 = vcombine.high %v6513_v20, %v6513_v20 }
 0xc9e   :  { %v6573_v31 = vrot.slane %v6559_v8, %v12002_v11  ;;  %v6574_v28 = vcombine.high %v6566_v10, %v6566_v10  ;;  %v6582_v1 = vrot.slane %v6566_v10, %v12002_v11  ;;  %v6516_v7 = vpop.f32.mrb[75].mxu0  ;;  %v10396_v22 = vpop.f32.mrb[75].mxu1  ;;  %v14312_v10 = vld [vmem:[%s15177_s4] ss:$0 sm:$0xff]  ;;  %v6682_v9 = vrot.slane %v14282_v24, 1 }
 0xc9f   :  { %v6712_v60 = vcombine.high %v6704_v40, %v6704_v40  ;;  %v6720_v59 = vrot.slane %v6704_v40, %v12002_v11  ;;  %v6711_v41 = vrot.slane %v6697_v21, %v12002_v11  ;;  %v6810_v20 = vadd.f32 %v14312_v10, %v14271_v23 }
 0xca0   :  { %v6575_v45 = vcombine.high %v6573_v31, %v6573_v31  ;;  %v6589_v29 = vrot.slane %v6573_v31, %v12002_v11  ;;  %v6596_v33 = vrot.slane %v6574_v28, %v12002_v11  ;;  %v6604_v3 = vcombine.high %v6582_v1, %v6582_v1 }
 0xca1   :  { %v6616_v39 = vadd.f32 %v6582_v1, %v14276_v4  ;;  %v6734_v14 = vrot.slane %v6712_v60, %v12002_v11  ;;  %v6754_v19 = vadd.f32 %v6720_v59, %v6680_v18  ;;  %v6713_v8 = vcombine.high %v6711_v41, %v6711_v41 }
 0xca2   :  { %v6603_v49 = vrot.slane %v6575_v45, %v12002_v11  ;;  %v6605_v43 = vcombine.high %v6589_v29, %v6589_v29  ;;  %v6606_v36 = vcombine.high %v6596_v33, %v6596_v33  ;;  %v6617_v46 = vadd.f32 %v6596_v33, %v14278_v0 }
 0xca3   :  { %v6618_v5 = vadd.f32 %v6604_v3, %v14282_v24  ;;  %v6620_v53 = vadd.f32 %v6589_v29, %v14288_v48  ;;  %v9873_v61 = vmul.f32 -1.442695, %v6616_v39  ;;  %v6755_v51 = vadd.f32 %v6734_v14, %v6681_v38 }
 0xca4   :  { %v6607_v47 = vcombine.high %v6603_v49, %v6603_v49  ;;  %v6619_v55 = vadd.f32 %v6606_v36, %v14284_v32  ;;  %v6621_v54 = vadd.f32 %v6603_v49, %v14290_v58  ;;  %v6622_v44 = vadd.f32 %v6605_v43, %v14294_v42 }
 0xca5   :  { %11339 = vpow2.f32 %v9873_v61  ;;  %v9874_v25 = vmul.f32 -1.442695, %v6617_v46  ;;  %v9875_v52 = vmul.f32 -1.442695, %v6618_v5  ;;  %v9877_v2 = vmul.f32 -1.442695, %v6620_v53 }
 0xca6   :  { %v6623_v26 = vadd.f32 %v6607_v47, %v14298_v17  ;;  %v9876_v13 = vmul.f32 -1.442695, %v6619_v55  ;;  %v9878_v30 = vmul.f32 -1.442695, %v6621_v54  ;;  %v9879_v12 = vmul.f32 -1.442695, %v6622_v44 }
 0xca7   :  { %11341 = vpow2.f32 %v9874_v25  ;;  %v6683_v50 = vrot.slane %v14284_v32, 1  ;;  %v6727_v28 = vrot.slane %v6711_v41, %v12002_v11  ;;  %v6742_v1 = vcombine.high %v6720_v59, %v6720_v59 }
 0xca8   :  { %11343 = vpow2.f32 %v9875_v52  ;;  %v9880_v35 = vmul.f32 -1.442695, %v6623_v26  ;;  %v9881_v7 = vmul.f32 -1.442695, %v6754_v19  ;;  %v9882_v22 = vmul.f32 -1.442695, %v6755_v51 }
 0xca9   :  { %11345 = vpow2.f32 %v9876_v13  ;;  %v6684_v29 = vrot.slane %v14288_v48, 1  ;;  %v6741_v33 = vrot.slane %v6713_v8, %v12002_v11  ;;  %v6744_v3 = vcombine.high %v6734_v14, %v6734_v14 }
 0xcaa   :  { %11347 = vpow2.f32 %v9877_v2  ;;  %v6812_v40 = vcombine.high %v6810_v20, %v6810_v20  ;;  %v6685_v23 = vrot.slane %v14290_v58, 1  ;;  %v6686_v49 = vrot.slane %v14294_v42, 1 }
 0xcab   :  { %11349 = vpow2.f32 %v9878_v30  ;;  %v6819_v46 = vrot.slane %v6810_v20, %v12002_v11  ;;  %v6687_v5 = vrot.slane %v14298_v17, 1  ;;  %v6743_v21 = vcombine.high %v6727_v28, %v6727_v28 }
 0xcac   :  { %11351 = vpow2.f32 %v9879_v12  ;;  %v6756_v47 = vadd.f32 %v6742_v1, %v6682_v9  ;;  %v6745_v44 = vcombine.high %v6741_v33, %v6741_v33  ;;  %v6757_v25 = vadd.f32 %v6744_v3, %v6683_v50 }
 0xcad   :  { %11353 = vpow2.f32 %v9880_v35  ;;  %v6826_v13 = vrot.slane %v6812_v40, %v12002_v11  ;;  %v6758_v2 = vadd.f32 %v6727_v28, %v6684_v29  ;;  %v6827_v59 = vcombine.high %v6819_v46, %v6819_v46 }
 0xcae   :  { %11355 = vpow2.f32 %v9881_v7  ;;  %v6759_v12 = vadd.f32 %v6741_v33, %v6685_v23  ;;  %v6760_v18 = vadd.f32 %v6743_v21, %v6686_v49  ;;  %v9883_v14 = vmul.f32 -1.442695, %v6756_v47 }
 0xcaf   :  { %v11340_v31 = vpop.eup %11339  ;;  %v6761_v19 = vadd.f32 %v6745_v44, %v6687_v5  ;;  %v9884_v8 = vmul.f32 -1.442695, %v6757_v25  ;;  %v9885_v20 = vmul.f32 -1.442695, %v6758_v2  ;;  %v6828_v51 = vcombine.high %v6826_v13, %v6826_v13 }
 0xcb0   :  { %v6648_v45 = vadd.f32 1.0, %v11340_v31  ;;  %v6835_v9 = vrot.slane %v6819_v46, %v12002_v11  ;;  %v9886_v50 = vmul.f32 -1.442695, %v6759_v12  ;;  %v6849_v28 = vrot.slane %v6827_v59, %v12002_v11 }
 0xcb1   :  { %v11342_v39 = vpop.eup %11341  ;;  %v9887_v1 = vmul.f32 -1.442695, %v6760_v18  ;;  %v9888_v29 = vmul.f32 -1.442695, %v6761_v19  ;;  %v6879_v3 = vrot.slane %v14282_v24, 2  ;;  %v6856_v49 = vrot.slane %v6828_v51, %v12002_v11 }
 0xcb2   :  { %v11344_v43 = vpop.eup %11343  ;;  %v6649_v36 = vadd.f32 1.0, %v11342_v39  ;;  %11357 = vrcp.f32 %v6648_v45  ;;  %v6878_v45 = vrot.slane %v14278_v0, 2  ;;  %v6842_v39 = vrot.slane %v6826_v13, %v12002_v11 }
 0xcb3   :  { %v11346_v53 = vpop.eup %11345  ;;  %v6650_v61 = vadd.f32 1.0, %v11344_v43  ;;  %11359 = vpow2.f32 %v9882_v22  ;;  %v6877_v22 = vrot.slane %v14276_v4, 2  ;;  %v6857_v43 = vcombine.high %v6835_v9, %v6835_v9 }
 0xcb4   :  { %v11348_v55 = vpop.eup %11347  ;;  %v6651_v54 = vadd.f32 1.0, %v11346_v53  ;;  %11361 = vrcp.f32 %v6649_v36  ;;  %v6859_v5 = vcombine.high %v6849_v28, %v6849_v28  ;;  %v6881_v24 = vrot.slane %v14288_v48, 2 }
 0xcb5   :  { %v11350_v52 = vpop.eup %11349  ;;  %v6652_v26 = vadd.f32 1.0, %v11348_v55  ;;  %11363 = vrcp.f32 %v6650_v61  ;;  %v6880_v61 = vrot.slane %v14284_v32, 2  ;;  %v6882_v55 = vrot.slane %v14290_v58, 2 }
 0xcb6   :  { %v11352_v60 = vpop.eup %11351  ;;  %v6653_v30 = vadd.f32 1.0, %v11350_v52  ;;  %11365 = vrcp.f32 %v6651_v54  ;;  %v6858_v52 = vcombine.high %v6842_v39, %v6842_v39  ;;  %v6883_v48 = vrot.slane %v14294_v42, 2 }
 0xcb7   :  { %v11354_v41 = vpop.eup %11353  ;;  %v6654_v35 = vadd.f32 1.0, %v11352_v60  ;;  %11367 = vrcp.f32 %v6652_v26  ;;  %v6860_v60 = vcombine.high %v6856_v49, %v6856_v49 }
 0xcb8   :  { %v6655_v38 = vadd.f32 1.0, %v11354_v41  ;;  %11369 = vrcp.f32 %v6653_v30  ;;  %v11356_v31 = vpop.eup %11355 }
 0xcb9   :  { %11371 = vrcp.f32 %v6654_v35  ;;  %v6786_v36 = vadd.f32 1.0, %v11356_v31  ;;  %v6884_v35 = vrot.slane %v14298_v17, 2 }
 0xcba   :  { %11373 = vrcp.f32 %v6655_v38 }
 0xcbb   :  { %11375 = vpow2.f32 %v9883_v14 }
 0xcbc   :  { %v11358_v7 = vpop.eup %11357  ;;  %11377 = vpow2.f32 %v9884_v8 }
 0xcbd   :  { %v11360_v33 = vpop.eup %11359  ;;  %v6869_v40 = vmul.f32 %v11358_v7, %v6835_v9  ;;  %11379 = vpow2.f32 %v9885_v20 }
 0xcbe   :  { %v11362_v23 = vpop.eup %11361  ;;  %11381 = vpow2.f32 %v9886_v50  ;;  %v6787_v8 = vadd.f32 1.0, %v11360_v33 }
 0xcbf   :  { %v11364_v46 = vpop.eup %11363  ;;  %v6870_v4 = vmul.f32 %v11362_v23, %v6849_v28  ;;  %v6893_v53 = vadd.f32 %v6877_v22, %v6869_v40  ;;  %11383 = vpow2.f32 %v9887_v1 }
 0xcc0   :  { %v11366_v0 = vpop.eup %11365  ;;  %v6871_v21 = vmul.f32 %v11364_v46, %v6857_v43  ;;  %11385 = vpow2.f32 %v9888_v29 }
 0xcc1   :  { %v11368_v47 = vpop.eup %11367  ;;  %v6872_v54 = vmul.f32 %v11366_v0, %v6859_v5  ;;  %v6894_v44 = vadd.f32 %v6878_v45, %v6870_v4  ;;  %11387 = vtanh.f32 %v6893_v53 }
 0xcc2   :  { %v11370_v25 = vpop.eup %11369  ;;  %v6873_v26 = vmul.f32 %v11368_v47, %v6842_v39  ;;  %v6895_v13 = vadd.f32 %v6879_v3, %v6871_v21  ;;  %11389 = vrcp.f32 %v6786_v36 }
 0xcc3   :  { %v11372_v2 = vpop.eup %11371  ;;  %v6874_v30 = vmul.f32 %v11370_v25, %v6856_v49  ;;  %v6896_v59 = vadd.f32 %v6880_v61, %v6872_v54  ;;  %11391 = vtanh.f32 %v6894_v44 }
 0xcc4   :  { %v11374_v32 = vpop.eup %11373  ;;  %v6875_v12 = vmul.f32 %v11372_v2, %v6858_v52  ;;  %v6897_v41 = vadd.f32 %v6881_v24, %v6873_v26  ;;  %11393 = vtanh.f32 %v6895_v13 }
 0xcc5   :  { %v11376_v58 = vpop.eup %11375  ;;  %v6876_v18 = vmul.f32 %v11374_v32, %v6860_v60  ;;  %v6898_v14 = vadd.f32 %v6882_v55, %v6874_v30  ;;  %11395 = vtanh.f32 %v6896_v59 }
 0xcc6   :  { %v11378_v38 = vpop.eup %11377  ;;  %v6899_v19 = vadd.f32 %v6883_v48, %v6875_v12  ;;  %11397 = vtanh.f32 %v6897_v41  ;;  %v6788_v9 = vadd.f32 1.0, %v11376_v58 }
 0xcc7   :  { %v11380_v20 = vpop.eup %11379  ;;  %v6900_v51 = vadd.f32 %v6884_v35, %v6876_v18  ;;  %11399 = vtanh.f32 %v6898_v14  ;;  %v6789_v42 = vadd.f32 1.0, %v11378_v38 }
 0xcc8   :  { %v11382_v50 = vpop.eup %11381  ;;  %11401 = vtanh.f32 %v6899_v19  ;;  %v6790_v28 = vadd.f32 1.0, %v11380_v20 }
 0xcc9   :  { %v11384_v31 = vpop.eup %11383  ;;  %11403 = vtanh.f32 %v6900_v51  ;;  %v6791_v7 = vadd.f32 1.0, %v11382_v50 }
 0xcca   :  { %v11386_v1 = vpop.eup %11385  ;;  %11405 = vrcp.f32 %v6787_v8  ;;  %v6792_v22 = vadd.f32 1.0, %v11384_v31 }
 0xccb   :  { %v11388_v17 = vpop.eup %11387  ;;  %11407 = vrcp.f32 %v6788_v9  ;;  %v6793_v29 = vadd.f32 1.0, %v11386_v1 }
 0xccc   :  { %v11390_v45 = vpop.eup %11389  ;;  %11409 = vrcp.f32 %v6789_v42 }
 0xccd   :  { %v11392_v33 = vpop.eup %11391  ;;  %11411 = vrcp.f32 %v6790_v28  ;;  %v6909_v3 = vsub.f32 1.0, %v11390_v45  ;;  %v6925_v49 = vmul.f32 %v11390_v45, %v14158_v63 }
 0xcce   :  { %v11394_v39 = vpop.eup %11393  ;;  %11413 = vrcp.f32 %v6791_v7 }
 0xccf   :  { %v11396_v40 = vpop.eup %11395  ;;  %11415 = vrcp.f32 %v6792_v22  ;;  %v6917_v23 = vmul.f32 %v11388_v17, %v6909_v3 }
 0xcd0   :  { %v11398_v43 = vpop.eup %11397  ;;  %11417 = vrcp.f32 %v6793_v29 }
 0xcd1   :  { %v11400_v36 = vpop.eup %11399  ;;  %v14339_v46 = vadd.f32 %v6925_v49, %v6917_v23 }
 0xcd2   :  { %v11402_v5 = vpop.eup %11401 }
 0xcd3   :  { %v11404_v4 = vpop.eup %11403  ;;  %6941 = vst [vmem:[%s15179_s6 + $0xb] sm:$0x1] %v14339_v46  ;;  %v6965_v44 = vpack.c.bf16 %v14339_v46, %v14339_v46 }
 0xcd4   :  { %v11406_v53 = vpop.eup %11405 }
 0xcd5   :  { %v11408_v0 = vpop.eup %11407  ;;  %v6910_v61 = vsub.f32 1.0, %v11406_v53  ;;  %v6926_v54 = vmul.f32 %v11406_v53, %v14170_v34  ;;  %v6981_v1 = vunpack.c.l.b16 %v6965_v44  ;;  %v14423_v44 = vld [vmem:[#allocation4 + $0x1c] ss:$12 sps:$4 sm:$0xff]  }
 0xcd6   :  { %v11410_v24 = vpop.eup %11409  ;;  %v6911_v21 = vsub.f32 1.0, %v11408_v0  ;;  %v6927_v13 = vmul.f32 %v11408_v0, %v14172_v56 }
 0xcd7   :  { %v11412_v47 = vpop.eup %11411  ;;  %v6912_v55 = vsub.f32 1.0, %v11410_v24  ;;  %v6918_v63 = vmul.f32 %v11392_v33, %v6910_v61  ;;  %v6928_v2 = vmul.f32 %v11410_v24, %v14180_v62 }
 0xcd8   :  { %v11414_v25 = vpop.eup %11413  ;;  %v6913_v52 = vsub.f32 1.0, %v11412_v47  ;;  %v6919_v26 = vmul.f32 %v11394_v39, %v6911_v21  ;;  %v6929_v32 = vmul.f32 %v11412_v47, %v14186_v57 }
 0xcd9   :  { %v11416_v60 = vpop.eup %11415  ;;  %v6914_v30 = vsub.f32 1.0, %v11414_v25  ;;  %v6920_v59 = vmul.f32 %v11396_v40, %v6912_v55  ;;  %v14351_v48 = vadd.f32 %v6926_v54, %v6918_v63  ;;  %v6930_v35 = vmul.f32 %v11414_v25, %v14193_v6  ;;  %v14417_v63 = vld [vmem:[#allocation4] ss:$12 sps:$4 sm:$0xff]   ;;  %v14420_v54 = vld [vmem:[#allocation4 + $0x8] ss:$12 sps:$4 sm:$0xff]  }
 0xcda   :  { %v11418_v12 = vpop.eup %11417  ;;  %v6921_v41 = vmul.f32 %v11398_v43, %v6913_v52  ;;  %v14353_v34 = vadd.f32 %v6927_v13, %v6919_v26  ;;  %v6915_v58 = vsub.f32 1.0, %v11416_v60  ;;  %v6931_v18 = vmul.f32 %v11416_v60, %v14201_v37  ;;  %v14430_v25 = vld [vmem:[#allocation4 + $0x18] ss:$12 sps:$4 sm:$0xff]   ;;  %v14433_v52 = vld [vmem:[#allocation4 + $0x20] ss:$12 sps:$4 sm:$0xff]  }
 0xcdb   :  { %6942 = vst [vmem:[%s15179_s6 + $0x1b] sm:$0x1] %v14351_v48  ;;  %v6916_v56 = vsub.f32 1.0, %v11418_v12  ;;  %v6922_v62 = vmul.f32 %v11400_v36, %v6914_v30  ;;  %v14361_v14 = vadd.f32 %v6928_v2, %v6920_v59  ;;  %v6966_v6 = vpack.c.bf16 %v14351_v48, %v14351_v48  ;;  %v14436_v26 = vld [vmem:[#allocation4 + $0x34] ss:$12 sps:$4 sm:$0xff]  }
 0xcdc   :  { %6943 = vst [vmem:[%s15179_s6 + $0x2b] sm:$0x1] %v14353_v34  ;;  %v6923_v57 = vmul.f32 %v11402_v5, %v6915_v58  ;;  %v14367_v38 = vadd.f32 %v6929_v32, %v6921_v41  ;;  %v6967_v19 = vpack.c.bf16 %v14353_v34, %v14353_v34  ;;  %v6932_v20 = vmul.f32 %v11418_v12, %v14209_v27  ;;  %v14440_v13 = vld [vmem:[#allocation4 + $0x30] ss:$12 sps:$4 sm:$0xff]   ;;  %v14443_v2 = vld [vmem:[#allocation4 + $0x38] ss:$12 sps:$4 sm:$0xff]  }
 0xcdd   :  { %v6924_v8 = vmul.f32 %v11404_v4, %v6916_v56  ;;  %v14374_v37 = vadd.f32 %v6930_v35, %v6922_v62  ;;  %6944 = vst [vmem:[%s15179_s6 + $0x3b] sm:$0x1] %v14361_v14  ;;  %v6968_v51 = vpack.c.bf16 %v14361_v14, %v14361_v14  ;;  %v6982_v50 = vunpack.c.l.b16 %v6966_v6  ;;  %v14446_v60 = vld [vmem:[#allocation4 + $0x4c] ss:$12 sps:$4 sm:$0xff]   ;;  %v14450_v30 = vld [vmem:[#allocation4 + $0x48] ss:$12 sps:$4 sm:$0xff]  }
 0xcde   :  { %v14382_v9 = vadd.f32 %v6931_v18, %v6923_v57  ;;  %6945 = vst [vmem:[%s15179_s6 + $0x4b] sm:$0x1] %v14367_v38  ;;  %v6969_v27 = vpack.c.bf16 %v14367_v38, %v14367_v38  ;;  %v6983_v42 = vunpack.c.l.b16 %v6967_v19  ;;  %v14453_v59 = vld [vmem:[#allocation4 + $0x50] ss:$12 sps:$4 sm:$0xff]   ;;  %v14460_v12 = vld [vmem:[#allocation4 + $0x60] ss:$12 sps:$4 sm:$0xff]  }
 0xcdf   :  { %v14390_v31 = vadd.f32 %v6932_v20, %v6924_v8  ;;  %6946 = vst [vmem:[%s15179_s6 + $0x5b] sm:$0x1] %v14374_v37  ;;  %v6970_v28 = vpack.c.bf16 %v14374_v37, %v14374_v37  ;;  %v6984_v7 = vunpack.c.l.b16 %v6968_v51  ;;  %v6989_v45 = vrot.slane %v6982_v50, 7  ;;  %v14456_v32 = vld [vmem:[#allocation4 + $0x64] ss:$12 sps:$4 sm:$0xff]  }
 0xce0   :  { %6947 = vst [vmem:[%s15179_s6 + $0x6b] sm:$0x1] %v14382_v9  ;;  %v6971_v17 = vpack.c.bf16 %v14382_v9, %v14382_v9  ;;  %v6985_v22 = vunpack.c.l.b16 %v6969_v27  ;;  %v6991_v29 = vrot.slane %v6983_v42, 6  ;;  %v14463_v41 = vld [vmem:[#allocation4 + $0x68] ss:$12 sps:$4 sm:$0xff]  }
 0xce1   :  { %6948 = vst [vmem:[%s15179_s6 + $0x7b] sm:$0x1] %v14390_v31  ;;  %v6972_v33 = vpack.c.bf16 %v14390_v31, %v14390_v31  ;;  %v6986_v3 = vunpack.c.l.b16 %v6970_v28  ;;  %v6993_v39 = vrot.slane %v6984_v7, 5  ;;  %v6990_v23 = vsel %vm1703_vm3, %v6989_v45, %v6981_v1  ;;  %15366 = vst [vmem:[#allocation7_spill] sm:$0xff] %v14463_v41  ;;  %v14466_v58 = vld [vmem:[#allocation4 + $0x7c] ss:$12 sps:$4 sm:$0xff]  }
 0xce2   :  { %v6987_v40 = vunpack.c.l.b16 %v6971_v17  ;;  %v6992_v43 = vsel %vm1706_vm4, %v6991_v29, %v6990_v23  ;;  %v6995_v36 = vrot.slane %v6985_v22, 4  ;;  %15367 = vst [vmem:[#allocation8_spill] sm:$0xff] %v14466_v58  ;;  %v14470_v35 = vld [vmem:[#allocation4 + $0x78] ss:$12 sps:$4 sm:$0xff]   ;;  %v14473_v56 = vld [vmem:[#allocation4 + $0x80] ss:$12 sps:$4 sm:$0xff]  }
 0xce3   :  { %v6988_v49 = vunpack.c.l.b16 %v6972_v33  ;;  %v6994_v5 = vsel %vm1709_vm5, %v6993_v39, %v6992_v43  ;;  %v6997_v4 = vrot.slane %v6986_v3, 3  ;;  %15368 = vst [vmem:[#allocation9_spill] sm:$0xff] %v14470_v35  ;;  %15369 = vst [vmem:[#allocation10_spill] sm:$0xff] %v14473_v56  ;;  %v14476_v62 = vld [vmem:[#allocation4 + $0x94] ss:$12 sps:$4 sm:$0xff]  }
 0xce4   :  { %v6996_v53 = vsel %vm1712_vm6, %v6995_v36, %v6994_v5  ;;  %v6999_v0 = vrot.slane %v6987_v40, 2  ;;  %15370 = vst [vmem:[#allocation11_spill] sm:$0xff] %v14476_v62  ;;  %v14480_v18 = vld [vmem:[#allocation4 + $0x90] ss:$12 sps:$4 sm:$0xff]   ;;  %v14483_v57 = vld [vmem:[#allocation4 + $0x98] ss:$12 sps:$4 sm:$0xff]  }
 0xce5   :  { %v6998_v61 = vsel %vm1715_vm7, %v6997_v4, %v6996_v53  ;;  %v7001_v24 = vrot.slane %v6988_v49, 1  ;;  %15371 = vst [vmem:[#allocation12_spill] sm:$0xff] %v14480_v18  ;;  %15372 = vst [vmem:[#allocation13_spill] sm:$0xff] %v14483_v57  ;;  %v14486_v6 = vld [vmem:[#allocation4 + $0xac] ss:$12 sps:$4 sm:$0xff]  }
 0xce6   :  { %v7000_v21 = vsel %vm1718_vm8, %v6999_v0, %v6998_v61  ;;  %15373 = vst [vmem:[#allocation14_spill] sm:$0xff] %v14486_v6  ;;  %v14490_v19 = vld [vmem:[#allocation4 + $0xa8] ss:$12 sps:$4 sm:$0xff]   ;;  %v14493_v8 = vld [vmem:[#allocation4 + $0xb0] ss:$12 sps:$4 sm:$0xff]  }
 0xce7   :  { %v7002_v47 = vsel %vm1721_vm9, %v7001_v24, %v7000_v21  ;;  %15374 = vst [vmem:[#allocation15_spill] sm:$0xff] %v14490_v19  ;;  %15375 = vst [vmem:[#allocation16_spill] sm:$0xff] %v14493_v8  ;;  %v14496_v20 = vld [vmem:[#allocation4 + $0x4] ss:$12 sps:$4 sm:$0xff]  }
 0xce8   :  { %v7003_v55 = vpack.c.b16 %v7002_v47, %v7002_v47  ;;  %15376 = vst [vmem:[#allocation17_spill] sm:$0xff] %v14496_v20  ;;  %v14503_v39 = vld [vmem:[#allocation2 + $0x1b] ss:$8 sm:$0x7] }
 0xce9   :  { %v14505_v40 = vld [vmem:[#allocation2 + $0x4b] ss:$8 sm:$0x7] }
 0xcea   :  { %7038 = vmatmul.mubr.bf16.vlgmr.msra.gmra.mrb[76].mxu0 %v7003_v55  ;;  %10414 = vmatmul.mubr.bf16.vlgmr.msra.gmra.mrb[76].mxu1 %v7003_v55  ;;  %v14509_v5 = vld [vmem:[#allocation2 + $0x7b] ss:$8 sm:$0x7] }
 0xceb   :  { %7534 = vmatpush1.bf16.msra.mxu0 %v14417_v63  ;;  %10418 = vmatpush3.bf16.msra.mxu1 %v14420_v54  ;;  %v14511_v4 = vld [vmem:[#allocation2 + $0xab] ss:$8 sm:$0x7] }
 0xcec   :  { %7535 = vmatprep.subr.bf16.mxu0 %v14423_v44  ;;  %10419 = vmatprep.subr.bf16.mxu1 %v15267_v16  ;;  %v14515_v61 = vld [vmem:[#allocation2 + $0xdb] ss:$8 sm:$0x7] }
 0xced   :  { %7565 = vmatprep.mubr.bf16.mxu0 %v15268_v15  ;;  %10433 = vmatprep.mubr.msk.bf16.mxu1 %vm11945_vm0, %v15267_v16  ;;  %v14517_v24 = vld [vmem:[#allocation2 + $0x10b] ss:$8 sm:$0x7] }
 0xcef   :  { %7536 = vmatpush1.bf16.msra.mxu0 %v14430_v25  ;;  %10420 = vmatpush3.bf16.msra.mxu1 %v14433_v52 }
 0xcf0   :  { %7537 = vmatprep.subr.bf16.mxu0 %v14436_v26  ;;  %10421 = vmatprep.subr.bf16.mxu1 %v15267_v16 }
 0xcf3   :  { %7538 = vmatpush1.bf16.msra.mxu0 %v14440_v13  ;;  %10422 = vmatpush3.bf16.msra.mxu1 %v14443_v2 }
 0xcf4   :  { %7539 = vmatprep.subr.bf16.mxu0 %v14446_v60  ;;  %10423 = vmatprep.subr.bf16.mxu1 %v15267_v16 }
 0xcf7   :  { %7540 = vmatpush1.bf16.msra.mxu0 %v14450_v30  ;;  %10424 = vmatpush3.bf16.msra.mxu1 %v14453_v59 }
 0xcf8   :  { %7541 = vmatprep.subr.bf16.mxu0 %v14456_v32  ;;  %10425 = vmatprep.subr.bf16.mxu1 %v15267_v16 }
 0xcfb   :  { %7542 = vmatpush1.bf16.msra.mxu0 %v14460_v12  ;;  %10426 = vmatpush3.bf16.msra.mxu1 %v14463_v41 }
 0xcfc   :  { %7543 = vmatprep.subr.bf16.mxu0 %v14466_v58  ;;  %10427 = vmatprep.subr.bf16.mxu1 %v15267_v16 }
 0xcff   :  { %7544 = vmatpush1.bf16.msra.mxu0 %v14470_v35  ;;  %10428 = vmatpush3.bf16.msra.mxu1 %v14473_v56 }
 0xd00   :  { %7545 = vmatprep.subr.bf16.mxu0 %v14476_v62  ;;  %10429 = vmatprep.subr.bf16.mxu1 %v15267_v16 }
 0xd03   :  { %7546 = vmatpush1.bf16.msra.mxu0 %v14480_v18  ;;  %10430 = vmatpush3.bf16.msra.mxu1 %v14483_v57 }
 0xd04   :  { %7547 = vmatprep.subr.bf16.mxu0 %v14486_v6  ;;  %10431 = vmatprep.subr.bf16.mxu1 %v15267_v16 }
 0xd07   :  { %7548 = vmatpush1.bf16.msra.mxu0 %v14490_v19  ;;  %10432 = vmatpush3.bf16.msra.mxu1 %v14493_v8 }
 0xd08   :  { %8061 = vmatprep.subr.bf16.mxu0 %v14496_v20  ;;  %10437 = vmatprep.subr.bf16.mxu1 %v15267_v16 }
 0xdbd   :  { %v7039_v51 = vpop.f32.mrb[76].mxu0  ;;  %v7080_v27 = vpop.f32.mrb[76].mxu1 }
 0xdbe   :  { %v7087_v50 = vcombine.high %v7039_v51, %v7039_v51  ;;  %v7094_v42 = vrot.slane %v7039_v51, %v12002_v11  ;;  %v7041_v28 = vpop.f32.mrb[77].mxu0  ;;  %v10415_v1 = vpop.f32.mrb[77].mxu1 }
 0xdbf   :  { %v7043_v7 = vpop.f32.mrb[78].mxu0  ;;  %v7083_v17 = vpop.f32.mrb[78].mxu1  ;;  %v7232_v0 = vrot.slane %v7041_v28, %v12002_v11 }
 0xdc0   :  { %v7101_v22 = vrot.slane %v7087_v50, %v12002_v11  ;;  %v7102_v45 = vcombine.high %v7094_v42, %v7094_v42  ;;  %v7110_v29 = vrot.slane %v7094_v42, %v12002_v11  ;;  %v7044_v33 = vpop.f32.mrb[79].mxu0  ;;  %v10416_v3 = vpop.f32.mrb[79].mxu1  ;;  %v14521_v50 = vld [vmem:[#allocation2 + $0x13b] ss:$8 sm:$0x7]  ;;  %v7225_v17 = vcombine.high %v7041_v28, %v7041_v28 }
 0xdc1   :  { %v7240_v19 = vcombine.high %v7232_v0, %v7232_v0  ;;  %v7248_v28 = vrot.slane %v7232_v0, %v12002_v11  ;;  %v7338_v0 = vadd.f32 %v14312_v10, %v7080_v27  ;;  %v7213_v10 = vrot.slane %v14517_v24, 1 }
 0xdc2   :  { %v7103_v23 = vcombine.high %v7101_v22, %v7101_v22  ;;  %v7117_v49 = vrot.slane %v7101_v22, %v12002_v11  ;;  %v7124_v43 = vrot.slane %v7102_v45, %v12002_v11  ;;  %v7132_v36 = vcombine.high %v7110_v29, %v7110_v29  ;;  %v14525_v22 = vld [vmem:[#allocation2 + $0x16b] ss:$8 sm:$0x7] }
 0xdc3   :  { %v7144_v53 = vadd.f32 %v7110_v29, %v14503_v39  ;;  %v7214_v27 = vrot.slane %v14521_v50, 1 }
 0xdc4   :  { %v7131_v21 = vrot.slane %v7103_v23, %v12002_v11  ;;  %v7133_v47 = vcombine.high %v7117_v49, %v7117_v49  ;;  %v7134_v55 = vcombine.high %v7124_v43, %v7124_v43  ;;  %v7145_v51 = vadd.f32 %v7124_v43, %v14505_v40 }
 0xdc5   :  { %v7146_v42 = vadd.f32 %v7132_v36, %v14509_v5  ;;  %v7148_v1 = vadd.f32 %v7117_v49, %v14515_v61  ;;  %v9889_v7 = vmul.f32 -1.442695, %v7144_v53 }
 0xdc6   :  { %v7135_v45 = vcombine.high %v7131_v21, %v7131_v21  ;;  %v7147_v29 = vadd.f32 %v7134_v55, %v14511_v4  ;;  %v7149_v33 = vadd.f32 %v7131_v21, %v14517_v24  ;;  %v7150_v3 = vadd.f32 %v7133_v47, %v14521_v50 }
 0xdc7   :  { %11419 = vpow2.f32 %v9889_v7  ;;  %v9890_v23 = vmul.f32 -1.442695, %v7145_v51  ;;  %v9891_v43 = vmul.f32 -1.442695, %v7146_v42  ;;  %v9893_v36 = vmul.f32 -1.442695, %v7148_v1 }
 0xdc8   :  { %v7151_v20 = vadd.f32 %v7135_v45, %v14525_v22  ;;  %v9892_v8 = vmul.f32 -1.442695, %v7147_v29  ;;  %v9894_v49 = vmul.f32 -1.442695, %v7149_v33  ;;  %v9895_v53 = vmul.f32 -1.442695, %v7150_v3 }
 0xdc9   :  { %11421 = vpow2.f32 %v9890_v23  ;;  %v7239_v55 = vrot.slane %v7225_v17, %v12002_v11  ;;  %v7208_v47 = vrot.slane %v14503_v39, 1  ;;  %v7262_v51 = vrot.slane %v7240_v19, %v12002_v11 }
 0xdca   :  { %11423 = vpow2.f32 %v9891_v43  ;;  %v9896_v21 = vmul.f32 -1.442695, %v7151_v20  ;;  %v7209_v42 = vrot.slane %v14505_v40, 1  ;;  %v7210_v29 = vrot.slane %v14509_v5, 1 }
 0xdcb   :  { %11425 = vpow2.f32 %v9892_v8  ;;  %v7282_v1 = vadd.f32 %v7248_v28, %v7208_v47  ;;  %v7241_v7 = vcombine.high %v7239_v55, %v7239_v55  ;;  %v7211_v8 = vrot.slane %v14511_v4, 1 }
 0xdcc   :  { %11427 = vpow2.f32 %v9893_v36  ;;  %v7283_v45 = vadd.f32 %v7262_v51, %v7209_v42  ;;  %v7255_v17 = vrot.slane %v7239_v55, %v12002_v11  ;;  %v7270_v33 = vcombine.high %v7248_v28, %v7248_v28 }
 0xdcd   :  { %11429 = vpow2.f32 %v9894_v49  ;;  %v9897_v3 = vmul.f32 -1.442695, %v7282_v1  ;;  %v7212_v43 = vrot.slane %v14515_v61, 1  ;;  %v7269_v36 = vrot.slane %v7241_v7, %v12002_v11 }
 0xdce   :  { %11431 = vpow2.f32 %v9895_v53  ;;  %v9898_v19 = vmul.f32 -1.442695, %v7283_v45  ;;  %v7272_v49 = vcombine.high %v7262_v51, %v7262_v51  ;;  %v7347_v28 = vrot.slane %v7338_v0, %v12002_v11 }
 0xdcf   :  { %11433 = vpow2.f32 %v9896_v21  ;;  %v7340_v21 = vcombine.high %v7338_v0, %v7338_v0  ;;  %v7215_v55 = vrot.slane %v14525_v22, 1  ;;  %v7284_v6 = vadd.f32 %v7270_v33, %v7210_v29 }
 0xdd0   :  { %11435 = vpow2.f32 %v9897_v3  ;;  %v7273_v57 = vcombine.high %v7269_v36, %v7269_v36  ;;  %v7285_v18 = vadd.f32 %v7272_v49, %v7211_v8  ;;  %v7355_v35 = vcombine.high %v7347_v28, %v7347_v28 }
 0xdd1   :  { %v11420_v20 = vpop.eup %11419  ;;  %v7354_v3 = vrot.slane %v7340_v21, %v12002_v11  ;;  %v7287_v58 = vadd.f32 %v7269_v36, %v7213_v10  ;;  %v9899_v33 = vmul.f32 -1.442695, %v7284_v6  ;;  %v7406_v6 = vrot.slane %v14505_v40, 2 }
 0xdd2   :  { %v7176_v23 = vadd.f32 1.0, %v11420_v20  ;;  %v7271_v20 = vcombine.high %v7255_v17, %v7255_v17  ;;  %v9900_v8 = vmul.f32 -1.442695, %v7285_v18  ;;  %v7377_v21 = vrot.slane %v7355_v35, %v12002_v11 }
 0xdd3   :  { %v11422_v53 = vpop.eup %11421 }
 0xdd4   :  { %v11424_v47 = vpop.eup %11423  ;;  %v7177_v42 = vadd.f32 1.0, %v11422_v53  ;;  %11437 = vrcp.f32 %v7176_v23  ;;  %v7286_v23 = vadd.f32 %v7255_v17, %v7212_v43  ;;  %v7288_v29 = vadd.f32 %v7271_v20, %v7214_v27 }
 0xdd5   :  { %v11426_v1 = vpop.eup %11425  ;;  %v7178_v45 = vadd.f32 1.0, %v11424_v47  ;;  %11439 = vpow2.f32 %v9898_v19  ;;  %v7363_v17 = vrot.slane %v7347_v28, %v12002_v11  ;;  %v9902_v43 = vmul.f32 -1.442695, %v7287_v58 }
 0xdd6   :  { %v11428_v51 = vpop.eup %11427  ;;  %v7179_v7 = vadd.f32 1.0, %v11426_v1  ;;  %11441 = vrcp.f32 %v7177_v42  ;;  %v7289_v42 = vadd.f32 %v7273_v57, %v7215_v55  ;;  %v9901_v49 = vmul.f32 -1.442695, %v7286_v23 }
 0xdd7   :  { %v11430_v62 = vpop.eup %11429  ;;  %v7180_v56 = vadd.f32 1.0, %v11428_v51  ;;  %11443 = vrcp.f32 %v7178_v45  ;;  %v7356_v1 = vcombine.high %v7354_v3, %v7354_v3  ;;  %v9903_v36 = vmul.f32 -1.442695, %v7288_v29 }
 0xdd8   :  { %v11432_v53 = vpop.eup %11431  ;;  %v7181_v0 = vadd.f32 1.0, %v11430_v62  ;;  %11445 = vrcp.f32 %v7179_v7  ;;  %v9904_v57 = vmul.f32 -1.442695, %v7289_v42  ;;  %v7370_v27 = vrot.slane %v7354_v3, %v12002_v11 }
 0xdd9   :  { %v11434_v47 = vpop.eup %11433  ;;  %v7182_v41 = vadd.f32 1.0, %v11432_v53  ;;  %11447 = vrcp.f32 %v7180_v56  ;;  %v7405_v56 = vrot.slane %v14503_v39, 2  ;;  %v7384_v28 = vrot.slane %v7356_v1, %v12002_v11 }
 0xdda   :  { %v7183_v19 = vadd.f32 1.0, %v11434_v47  ;;  %11449 = vrcp.f32 %v7181_v0  ;;  %v11436_v62 = vpop.eup %11435  ;;  %v7385_v35 = vcombine.high %v7363_v17, %v7363_v17  ;;  %v7387_v51 = vcombine.high %v7377_v21, %v7377_v21 }
 0xddb   :  { %11451 = vrcp.f32 %v7182_v41  ;;  %v7407_v41 = vrot.slane %v14509_v5, 2  ;;  %v7314_v45 = vadd.f32 1.0, %v11436_v62  ;;  %v7408_v23 = vrot.slane %v14511_v4, 2 }
 0xddc   :  { %11453 = vrcp.f32 %v7183_v19  ;;  %v7409_v5 = vrot.slane %v14515_v61, 2  ;;  %v7410_v0 = vrot.slane %v14517_v24, 2  ;;  %v7386_v19 = vcombine.high %v7370_v27, %v7370_v27 }
 0xddd   :  { %11455 = vpow2.f32 %v9899_v33  ;;  %v7388_v1 = vcombine.high %v7384_v28, %v7384_v28  ;;  %v7411_v61 = vrot.slane %v14521_v50, 2 }
 0xdde   :  { %v11438_v10 = vpop.eup %11437  ;;  %11457 = vpow2.f32 %v9900_v8 }
 0xddf   :  { %v11440_v18 = vpop.eup %11439  ;;  %v7397_v55 = vmul.f32 %v11438_v10, %v7363_v17  ;;  %11459 = vpow2.f32 %v9901_v49 }
 0xde0   :  { %v11442_v58 = vpop.eup %11441  ;;  %11461 = vpow2.f32 %v9902_v43 }
 0xde1   :  { %v11444_v20 = vpop.eup %11443  ;;  %v7398_v39 = vmul.f32 %v11442_v58, %v7377_v21  ;;  %v7421_v7 = vadd.f32 %v7405_v56, %v7397_v55  ;;  %11463 = vpow2.f32 %v9903_v36  ;;  %v7412_v36 = vrot.slane %v14525_v22, 2 }
 0xde2   :  { %v11446_v40 = vpop.eup %11445  ;;  %v7399_v53 = vmul.f32 %v11444_v20, %v7385_v35  ;;  %11465 = vpow2.f32 %v9904_v57 }
 0xde3   :  { %v11448_v3 = vpop.eup %11447  ;;  %v7400_v47 = vmul.f32 %v11446_v40, %v7387_v51  ;;  %v7422_v29 = vadd.f32 %v7406_v6, %v7398_v39  ;;  %11467 = vtanh.f32 %v7421_v7 }
 0xde4   :  { %v11450_v33 = vpop.eup %11449  ;;  %v7401_v42 = vmul.f32 %v11448_v3, %v7370_v27  ;;  %v7423_v8 = vadd.f32 %v7407_v41, %v7399_v53  ;;  %11469 = vrcp.f32 %v7314_v45  ;;  %v7315_v41 = vadd.f32 1.0, %v11440_v18 }
 0xde5   :  { %v11452_v49 = vpop.eup %11451  ;;  %v7402_v17 = vmul.f32 %v11450_v33, %v7384_v28  ;;  %v7424_v43 = vadd.f32 %v7408_v23, %v7400_v47  ;;  %11471 = vtanh.f32 %v7422_v29 }
 0xde6   :  { %v11454_v4 = vpop.eup %11453  ;;  %v7403_v62 = vmul.f32 %v11452_v49, %v7386_v19  ;;  %v7425_v21 = vadd.f32 %v7409_v5, %v7401_v42  ;;  %11473 = vtanh.f32 %v7423_v8 }
 0xde7   :  { %v11456_v24 = vpop.eup %11455  ;;  %v7404_v10 = vmul.f32 %v11454_v4, %v7388_v1  ;;  %v7426_v56 = vadd.f32 %v7410_v0, %v7402_v17  ;;  %11475 = vtanh.f32 %v7424_v43 }
 0xde8   :  { %v11458_v6 = vpop.eup %11457  ;;  %v7427_v57 = vadd.f32 %v7411_v61, %v7403_v62  ;;  %11477 = vtanh.f32 %v7425_v21  ;;  %v7316_v58 = vadd.f32 1.0, %v11456_v24 }
 0xde9   :  { %v11460_v27 = vpop.eup %11459  ;;  %v7428_v55 = vadd.f32 %v7412_v36, %v7404_v10  ;;  %11479 = vtanh.f32 %v7426_v56  ;;  %v7317_v50 = vadd.f32 1.0, %v11458_v6 }
 0xdea   :  { %v11462_v28 = vpop.eup %11461  ;;  %11481 = vtanh.f32 %v7427_v57  ;;  %v7318_v45 = vadd.f32 1.0, %v11460_v27 }
 0xdeb   :  { %v11464_v35 = vpop.eup %11463  ;;  %11483 = vtanh.f32 %v7428_v55  ;;  %v7319_v51 = vadd.f32 1.0, %v11462_v28 }
 0xdec   :  { %v11466_v20 = vpop.eup %11465  ;;  %11485 = vrcp.f32 %v7315_v41  ;;  %v7320_v39 = vadd.f32 1.0, %v11464_v35 }
 0xded   :  { %v11468_v22 = vpop.eup %11467  ;;  %11487 = vrcp.f32 %v7316_v58  ;;  %v7321_v40 = vadd.f32 1.0, %v11466_v20 }
 0xdee   :  { %v11470_v7 = vpop.eup %11469  ;;  %11489 = vrcp.f32 %v7317_v50 }
 0xdef   :  { %v11472_v18 = vpop.eup %11471  ;;  %11491 = vrcp.f32 %v7318_v45  ;;  %v7437_v23 = vsub.f32 1.0, %v11470_v7  ;;  %v7453_v0 = vmul.f32 %v11470_v7, %v14339_v46 }
 0xdf0   :  { %v11474_v5 = vpop.eup %11473  ;;  %11493 = vrcp.f32 %v7319_v51 }
 0xdf1   :  { %v11476_v53 = vpop.eup %11475  ;;  %11495 = vrcp.f32 %v7320_v39  ;;  %v7445_v3 = vmul.f32 %v11468_v22, %v7437_v23 }
 0xdf2   :  { %v11478_v47 = vpop.eup %11477  ;;  %11497 = vrcp.f32 %v7321_v40 }
 0xdf3   :  { %v11480_v29 = vpop.eup %11479  ;;  %v14560_v33 = vadd.f32 %v7453_v0, %v7445_v3 }
 0xdf4   :  { %v11482_v19 = vpop.eup %11481 }
 0xdf5   :  { %v11484_v42 = vpop.eup %11483  ;;  %7469 = vst [vmem:[%s15179_s6 + $0xc] sm:$0x1] %v14560_v33  ;;  %v7493_v21 = vpack.c.bf16 %v14560_v33, %v14560_v33 }
 0xdf6   :  { %v11486_v8 = vpop.eup %11485 }
 0xdf7   :  { %v11488_v49 = vpop.eup %11487  ;;  %v7438_v1 = vsub.f32 1.0, %v11486_v8  ;;  %v7454_v62 = vmul.f32 %v11486_v8, %v14351_v48 }
 0xdf8   :  { %v11490_v17 = vpop.eup %11489  ;;  %v7439_v43 = vsub.f32 1.0, %v11488_v49  ;;  %v7455_v56 = vmul.f32 %v11488_v49, %v14353_v34 }
 0xdf9   :  { %v11492_v4 = vpop.eup %11491  ;;  %v7440_v61 = vsub.f32 1.0, %v11490_v17  ;;  %v7446_v46 = vmul.f32 %v11472_v18, %v7438_v1  ;;  %v7456_v6 = vmul.f32 %v11490_v17, %v14361_v14 }
 0xdfa   :  { %v11494_v24 = vpop.eup %11493  ;;  %v7441_v36 = vsub.f32 1.0, %v11492_v4  ;;  %v7447_v10 = vmul.f32 %v11474_v5, %v7439_v43  ;;  %v7457_v55 = vmul.f32 %v11492_v4, %v14367_v38 }
 0xdfb   :  { %v11496_v57 = vpop.eup %11495  ;;  %v7442_v41 = vsub.f32 1.0, %v11494_v24  ;;  %v7448_v27 = vmul.f32 %v11476_v53, %v7440_v61  ;;  %v14572_v58 = vadd.f32 %v7454_v62, %v7446_v46  ;;  %v7458_v45 = vmul.f32 %v11494_v24, %v14374_v37 }
 0xdfc   :  { %v11498_v28 = vpop.eup %11497  ;;  %v7449_v50 = vmul.f32 %v11478_v47, %v7441_v36  ;;  %v14574_v48 = vadd.f32 %v7455_v56, %v7447_v10  ;;  %v7443_v35 = vsub.f32 1.0, %v11496_v57  ;;  %v7459_v20 = vmul.f32 %v11496_v57, %v14382_v9 }
 0xdfd   :  { %7470 = vst [vmem:[%s15179_s6 + $0x1c] sm:$0x1] %v14572_v58  ;;  %v7444_v34 = vsub.f32 1.0, %v11498_v28  ;;  %v7450_v14 = vmul.f32 %v11480_v29, %v7442_v41  ;;  %v14582_v51 = vadd.f32 %v7456_v6, %v7448_v27  ;;  %v7494_v37 = vpack.c.bf16 %v14572_v58, %v14572_v58 }
 0xdfe   :  { %7471 = vst [vmem:[%s15179_s6 + $0x2c] sm:$0x1] %v14574_v48  ;;  %v7451_v38 = vmul.f32 %v11482_v19, %v7443_v35  ;;  %v14588_v22 = vadd.f32 %v7457_v55, %v7449_v50  ;;  %v7495_v39 = vpack.c.bf16 %v14574_v48, %v14574_v48  ;;  %v7460_v40 = vmul.f32 %v11498_v28, %v14390_v31 }
 0xdff   :  { %v7452_v7 = vmul.f32 %v11484_v42, %v7444_v34  ;;  %v14595_v9 = vadd.f32 %v7458_v45, %v7450_v14  ;;  %7472 = vst [vmem:[%s15179_s6 + $0x3c] sm:$0x1] %v14582_v51  ;;  %v7496_v18 = vpack.c.bf16 %v14582_v51, %v14582_v51  ;;  %v7510_v5 = vunpack.c.l.b16 %v7494_v37 }
 0xe00   :  { %v14603_v23 = vadd.f32 %v7459_v20, %v7451_v38  ;;  %7473 = vst [vmem:[%s15179_s6 + $0x4c] sm:$0x1] %v14588_v22  ;;  %v7497_v31 = vpack.c.bf16 %v14588_v22, %v14588_v22  ;;  %v7511_v53 = vunpack.c.l.b16 %v7495_v39  ;;  %v7509_v47 = vunpack.c.l.b16 %v7493_v21 }
 0xe01   :  { %v14611_v3 = vadd.f32 %v7460_v40, %v7452_v7  ;;  %7474 = vst [vmem:[%s15179_s6 + $0x5c] sm:$0x1] %v14595_v9  ;;  %v7498_v0 = vpack.c.bf16 %v14595_v9, %v14595_v9  ;;  %v7512_v29 = vunpack.c.l.b16 %v7496_v18  ;;  %v7517_v8 = vrot.slane %v7510_v5, 7  ;;  %v14678_v40 = vld [vmem:[#allocation2 + $0x1c] ss:$8 sm:$0x7] }
 0xe02   :  { %7475 = vst [vmem:[%s15179_s6 + $0x6c] sm:$0x1] %v14603_v23  ;;  %v7499_v19 = vpack.c.bf16 %v14603_v23, %v14603_v23  ;;  %v7513_v42 = vunpack.c.l.b16 %v7497_v31  ;;  %v7519_v49 = vrot.slane %v7511_v53, 6  ;;  %v14680_v18 = vld [vmem:[#allocation2 + $0x4c] ss:$8 sm:$0x7] }
 0xe03   :  { %7476 = vst [vmem:[%s15179_s6 + $0x7c] sm:$0x1] %v14611_v3  ;;  %v7500_v1 = vpack.c.bf16 %v14611_v3, %v14611_v3  ;;  %v7514_v17 = vunpack.c.l.b16 %v7498_v0  ;;  %v7521_v43 = vrot.slane %v7512_v29, 5  ;;  %v7518_v61 = vsel %vm1703_vm3, %v7517_v8, %v7509_v47  ;;  %v14684_v47 = vld [vmem:[#allocation2 + $0x7c] ss:$8 sm:$0x7] }
 0xe04   :  { %v7515_v4 = vunpack.c.l.b16 %v7499_v19  ;;  %v7520_v62 = vsel %vm1706_vm4, %v7519_v49, %v7518_v61  ;;  %v7523_v21 = vrot.slane %v7513_v42, 4  ;;  %v14686_v29 = vld [vmem:[#allocation2 + $0xac] ss:$8 sm:$0x7] }
 0xe05   :  { %v7516_v46 = vunpack.c.l.b16 %v7500_v1  ;;  %v7522_v24 = vsel %vm1709_vm5, %v7521_v43, %v7520_v62  ;;  %v7525_v36 = vrot.slane %v7514_v17, 3  ;;  %v14690_v8 = vld [vmem:[#allocation2 + $0xdc] ss:$8 sm:$0x7] }
 0xe06   :  { %v7524_v10 = vsel %vm1712_vm6, %v7523_v21, %v7522_v24  ;;  %v7527_v56 = vrot.slane %v7515_v4, 2  ;;  %v14692_v49 = vld [vmem:[#allocation2 + $0x10c] ss:$8 sm:$0x7] }
 0xe07   :  { %v7526_v6 = vsel %vm1715_vm7, %v7525_v36, %v7524_v10  ;;  %v7529_v57 = vrot.slane %v7516_v46, 1  ;;  %v14696_v61 = vld [vmem:[#allocation2 + $0x13c] ss:$8 sm:$0x7] }
 0xe08   :  { %v7528_v41 = vsel %vm1718_vm8, %v7527_v56, %v7526_v6  ;;  %v14700_v36 = vld [vmem:[#allocation2 + $0x16c] ss:$8 sm:$0x7] }
 0xe09   :  { %v7530_v27 = vsel %vm1721_vm9, %v7529_v57, %v7528_v41 }
 0xe0a   :  { %v7531_v55 = vpack.c.b16 %v7530_v27, %v7530_v27 }
 0xe0c   :  { %7566 = vmatmul.mubr.bf16.vlgmr.msra.gmra.mrb[80].mxu0 %v7531_v55  ;;  %10434 = vmatmul.mubr.bf16.vlgmr.msra.gmra.mrb[80].mxu1 %v7531_v55 }
 0xe0d   :  { %8062 = vmatpush1.bf16.msra.mxu0 %v14417_v63  ;;  %10438 = vmatpush3.bf16.msra.mxu1 %v14420_v54  ;;  %v15377_v63 = vld [vmem:[#allocation7_spill] sm:$0xff]  ;;  %v15378_v54 = vld [vmem:[#allocation8_spill] sm:$0xff] }
 0xe0e   :  { %8063 = vmatprep.subr.bf16.mxu0 %v14423_v44  ;;  %10439 = vmatprep.subr.bf16.mxu1 %v15267_v16  ;;  %v15379_v44 = vld [vmem:[#allocation9_spill] sm:$0xff] }
 0xe0f   :  { %8093 = vmatprep.mubr.bf16.mxu0 %v15268_v15  ;;  %10453 = vmatprep.mubr.msk.bf16.mxu1 %vm11945_vm0, %v15267_v16 }
 0xe11   :  { %8064 = vmatpush1.bf16.msra.mxu0 %v14430_v25  ;;  %10440 = vmatpush3.bf16.msra.mxu1 %v14433_v52  ;;  %v15380_v25 = vld [vmem:[#allocation10_spill] sm:$0xff]  ;;  %v15381_v52 = vld [vmem:[#allocation11_spill] sm:$0xff] }
 0xe12   :  { %8065 = vmatprep.subr.bf16.mxu0 %v14436_v26  ;;  %10441 = vmatprep.subr.bf16.mxu1 %v15267_v16  ;;  %v15382_v26 = vld [vmem:[#allocation12_spill] sm:$0xff] }
 0xe15   :  { %8066 = vmatpush1.bf16.msra.mxu0 %v14440_v13  ;;  %10442 = vmatpush3.bf16.msra.mxu1 %v14443_v2  ;;  %v15383_v13 = vld [vmem:[#allocation13_spill] sm:$0xff]  ;;  %v15384_v2 = vld [vmem:[#allocation14_spill] sm:$0xff] }
 0xe16   :  { %8067 = vmatprep.subr.bf16.mxu0 %v14446_v60  ;;  %10443 = vmatprep.subr.bf16.mxu1 %v15267_v16  ;;  %v15385_v60 = vld [vmem:[#allocation15_spill] sm:$0xff] }
 0xe19   :  { %8068 = vmatpush1.bf16.msra.mxu0 %v14450_v30  ;;  %10444 = vmatpush3.bf16.msra.mxu1 %v14453_v59  ;;  %v15386_v30 = vld [vmem:[#allocation16_spill] sm:$0xff]  ;;  %v15387_v59 = vld [vmem:[#allocation17_spill] sm:$0xff] }
 0xe1a   :  { %8069 = vmatprep.subr.bf16.mxu0 %v14456_v32  ;;  %10445 = vmatprep.subr.bf16.mxu1 %v15267_v16 }
 0xe1d   :  { %8070 = vmatpush1.bf16.msra.mxu0 %v14460_v12  ;;  %10446 = vmatpush3.bf16.msra.mxu1 %v15377_v63 }
 0xe1e   :  { %8071 = vmatprep.subr.bf16.mxu0 %v15378_v54  ;;  %10447 = vmatprep.subr.bf16.mxu1 %v15267_v16 }
 0xe21   :  { %8072 = vmatpush1.bf16.msra.mxu0 %v15379_v44  ;;  %10448 = vmatpush3.bf16.msra.mxu1 %v15380_v25 }
 0xe22   :  { %8073 = vmatprep.subr.bf16.mxu0 %v15381_v52  ;;  %10449 = vmatprep.subr.bf16.mxu1 %v15267_v16 }
 0xe25   :  { %8074 = vmatpush1.bf16.msra.mxu0 %v15382_v26  ;;  %10450 = vmatpush3.bf16.msra.mxu1 %v15383_v13 }
 0xe26   :  { %8075 = vmatprep.subr.bf16.mxu0 %v15384_v2  ;;  %10451 = vmatprep.subr.bf16.mxu1 %v15267_v16 }
 0xe29   :  { %8076 = vmatpush1.bf16.msra.mxu0 %v15385_v60  ;;  %10452 = vmatpush3.bf16.msra.mxu1 %v15386_v30  ;;  %v7736_v60 = vrot.slane %v14678_v40, 1 }
 0xe2a   :  { %8589 = vmatprep.subr.bf16.mxu0 %v15387_v59  ;;  %10457 = vmatprep.subr.bf16.mxu1 %v15267_v16  ;;  %v7737_v59 = vrot.slane %v14680_v18, 1 }
 0xedf   :  { %v7567_v32 = vpop.f32.mrb[80].mxu0  ;;  %v14673_v12 = vpop.f32.mrb[80].mxu1 }
 0xee0   :  { %v7615_v28 = vcombine.high %v7567_v32, %v7567_v32  ;;  %v7622_v50 = vrot.slane %v7567_v32, %v12002_v11  ;;  %v7569_v35 = vpop.f32.mrb[81].mxu0  ;;  %v10435_v45 = vpop.f32.mrb[81].mxu1 }
 0xee1   :  { %v7571_v34 = vpop.f32.mrb[82].mxu0  ;;  %v7611_v14 = vpop.f32.mrb[82].mxu1  ;;  %v7760_v42 = vrot.slane %v7569_v35, %v12002_v11  ;;  %v7753_v24 = vcombine.high %v7569_v35, %v7569_v35 }
 0xee2   :  { %v7629_v20 = vrot.slane %v7615_v28, %v12002_v11  ;;  %v7630_v38 = vcombine.high %v7622_v50, %v7622_v50  ;;  %v7638_v37 = vrot.slane %v7622_v50, %v12002_v11  ;;  %v7572_v39 = vpop.f32.mrb[83].mxu0  ;;  %v10436_v7 = vpop.f32.mrb[83].mxu1  ;;  %v14714_v50 = vld [vmem:[%s15177_s4] ss:$0 sm:$0xff]  ;;  %v7738_v34 = vrot.slane %v14684_v47, 1 }
 0xee3   :  { %v7768_v44 = vcombine.high %v7760_v42, %v7760_v42  ;;  %v7776_v52 = vrot.slane %v7760_v42, %v12002_v11  ;;  %v7767_v13 = vrot.slane %v7753_v24, %v12002_v11  ;;  %v7866_v35 = vadd.f32 %v14714_v50, %v14673_v12 }
 0xee4   :  { %v7631_v31 = vcombine.high %v7629_v20, %v7629_v20  ;;  %v7645_v5 = vrot.slane %v7629_v20, %v12002_v11  ;;  %v7652_v53 = vrot.slane %v7630_v38, %v12002_v11  ;;  %v7660_v0 = vcombine.high %v7638_v37, %v7638_v37 }
 0xee5   :  { %v7672_v19 = vadd.f32 %v7638_v37, %v14678_v40  ;;  %v7790_v30 = vrot.slane %v7768_v44, %v12002_v11  ;;  %v7810_v32 = vadd.f32 %v7776_v52, %v7736_v60  ;;  %v7769_v28 = vcombine.high %v7767_v13, %v7767_v13 }
 0xee6   :  { %v7659_v1 = vrot.slane %v7631_v31, %v12002_v11  ;;  %v7661_v17 = vcombine.high %v7645_v5, %v7645_v5  ;;  %v7662_v43 = vcombine.high %v7652_v53, %v7652_v53  ;;  %v7673_v4 = vadd.f32 %v7652_v53, %v14680_v18 }
 0xee7   :  { %v7674_v46 = vadd.f32 %v7660_v0, %v14684_v47  ;;  %v7676_v62 = vadd.f32 %v7645_v5, %v14690_v8  ;;  %v9905_v21 = vmul.f32 -1.442695, %v7672_v19  ;;  %v7811_v45 = vadd.f32 %v7790_v30, %v7737_v59 }
 0xee8   :  { %v7663_v10 = vcombine.high %v7659_v1, %v7659_v1  ;;  %v7675_v56 = vadd.f32 %v7662_v43, %v14686_v29  ;;  %v7677_v6 = vadd.f32 %v7659_v1, %v14692_v49  ;;  %v7678_v57 = vadd.f32 %v7661_v17, %v14696_v61 }
 0xee9   :  { %11499 = vpow2.f32 %v9905_v21  ;;  %v9906_v41 = vmul.f32 -1.442695, %v7673_v4  ;;  %v9907_v27 = vmul.f32 -1.442695, %v7674_v46  ;;  %v9909_v54 = vmul.f32 -1.442695, %v7676_v62 }
 0xeea   :  { %v7679_v55 = vadd.f32 %v7663_v10, %v14700_v36  ;;  %v9908_v63 = vmul.f32 -1.442695, %v7675_v56  ;;  %v9910_v25 = vmul.f32 -1.442695, %v7677_v6  ;;  %v9911_v26 = vmul.f32 -1.442695, %v7678_v57 }
 0xeeb   :  { %11501 = vpow2.f32 %v9906_v41  ;;  %v7739_v14 = vrot.slane %v14686_v29, 1  ;;  %v7783_v38 = vrot.slane %v7767_v13, %v12002_v11  ;;  %v7798_v37 = vcombine.high %v7776_v52, %v7776_v52 }
 0xeec   :  { %11503 = vpow2.f32 %v9907_v27  ;;  %v9912_v2 = vmul.f32 -1.442695, %v7679_v55  ;;  %v9913_v39 = vmul.f32 -1.442695, %v7810_v32  ;;  %v9914_v7 = vmul.f32 -1.442695, %v7811_v45 }
 0xeed   :  { %11505 = vpow2.f32 %v9908_v63  ;;  %v7740_v5 = vrot.slane %v14690_v8, 1  ;;  %v7797_v53 = vrot.slane %v7769_v28, %v12002_v11  ;;  %v7800_v0 = vcombine.high %v7790_v30, %v7790_v30 }
 0xeee   :  { %11507 = vpow2.f32 %v9909_v54  ;;  %v7868_v42 = vcombine.high %v7866_v35, %v7866_v35  ;;  %v7741_v12 = vrot.slane %v14692_v49, 1  ;;  %v7742_v1 = vrot.slane %v14696_v61, 1 }
 0xeef   :  { %11509 = vpow2.f32 %v9910_v25  ;;  %v7875_v4 = vrot.slane %v7866_v35, %v12002_v11  ;;  %v7743_v46 = vrot.slane %v14700_v36, 1  ;;  %v7799_v24 = vcombine.high %v7783_v38, %v7783_v38 }
 0xef0   :  { %11511 = vpow2.f32 %v9911_v26  ;;  %v7812_v10 = vadd.f32 %v7798_v37, %v7738_v34  ;;  %v7801_v57 = vcombine.high %v7797_v53, %v7797_v53  ;;  %v7813_v41 = vadd.f32 %v7800_v0, %v7739_v14 }
 0xef1   :  { %11513 = vpow2.f32 %v9912_v2  ;;  %v7882_v63 = vrot.slane %v7868_v42, %v12002_v11  ;;  %v7814_v54 = vadd.f32 %v7783_v38, %v7740_v5  ;;  %v7883_v52 = vcombine.high %v7875_v4, %v7875_v4 }
 0xef2   :  { %11515 = vpow2.f32 %v9913_v39  ;;  %v7815_v26 = vadd.f32 %v7797_v53, %v7741_v12  ;;  %v7816_v60 = vadd.f32 %v7799_v24, %v7742_v1  ;;  %v9915_v30 = vmul.f32 -1.442695, %v7812_v10 }
 0xef3   :  { %v11500_v20 = vpop.eup %11499  ;;  %v7817_v32 = vadd.f32 %v7801_v57, %v7743_v46  ;;  %v9916_v28 = vmul.f32 -1.442695, %v7813_v41  ;;  %v9917_v35 = vmul.f32 -1.442695, %v7814_v54  ;;  %v7884_v45 = vcombine.high %v7882_v63, %v7882_v63 }
 0xef4   :  { %v7704_v31 = vadd.f32 1.0, %v11500_v20  ;;  %v7891_v34 = vrot.slane %v7875_v4, %v12002_v11  ;;  %v9918_v14 = vmul.f32 -1.442695, %v7815_v26  ;;  %v7905_v38 = vrot.slane %v7883_v52, %v12002_v11 }
 0xef5   :  { %v11502_v19 = vpop.eup %11501  ;;  %v9919_v37 = vmul.f32 -1.442695, %v7816_v60  ;;  %v9920_v5 = vmul.f32 -1.442695, %v7817_v32  ;;  %v7935_v0 = vrot.slane %v14684_v47, 2  ;;  %v7912_v1 = vrot.slane %v7884_v45, %v12002_v11 }
 0xef6   :  { %v11504_v17 = vpop.eup %11503  ;;  %v7705_v43 = vadd.f32 1.0, %v11502_v19  ;;  %11517 = vrcp.f32 %v7704_v31  ;;  %v7934_v31 = vrot.slane %v14680_v18, 2  ;;  %v7898_v19 = vrot.slane %v7882_v63, %v12002_v11 }
 0xef7   :  { %v11506_v62 = vpop.eup %11505  ;;  %v7706_v21 = vadd.f32 1.0, %v11504_v17  ;;  %11519 = vpow2.f32 %v9914_v7  ;;  %v7933_v7 = vrot.slane %v14678_v40, 2  ;;  %v7913_v17 = vcombine.high %v7891_v34, %v7891_v34 }
 0xef8   :  { %v11508_v56 = vpop.eup %11507  ;;  %v7707_v6 = vadd.f32 1.0, %v11506_v62  ;;  %11521 = vrcp.f32 %v7705_v43  ;;  %v7915_v46 = vcombine.high %v7905_v38, %v7905_v38  ;;  %v7937_v47 = vrot.slane %v14690_v8, 2 }
 0xef9   :  { %v11510_v27 = vpop.eup %11509  ;;  %v7708_v55 = vadd.f32 1.0, %v11508_v56  ;;  %11523 = vrcp.f32 %v7706_v21  ;;  %v7936_v21 = vrot.slane %v14686_v29, 2  ;;  %v7938_v56 = vrot.slane %v14692_v49, 2 }
 0xefa   :  { %v11512_v44 = vpop.eup %11511  ;;  %v7709_v25 = vadd.f32 1.0, %v11510_v27  ;;  %11525 = vrcp.f32 %v7707_v6  ;;  %v7914_v27 = vcombine.high %v7898_v19, %v7898_v19  ;;  %v7939_v8 = vrot.slane %v14696_v61, 2 }
 0xefb   :  { %v11514_v13 = vpop.eup %11513  ;;  %v7710_v2 = vadd.f32 1.0, %v11512_v44  ;;  %11527 = vrcp.f32 %v7708_v55  ;;  %v7916_v44 = vcombine.high %v7912_v1, %v7912_v1 }
 0xefc   :  { %v7711_v59 = vadd.f32 1.0, %v11514_v13  ;;  %11529 = vrcp.f32 %v7709_v25  ;;  %v11516_v20 = vpop.eup %11515 }
 0xefd   :  { %11531 = vrcp.f32 %v7710_v2  ;;  %v7842_v43 = vadd.f32 1.0, %v11516_v20  ;;  %v7940_v2 = vrot.slane %v14700_v36, 2 }
 0xefe   :  { %11533 = vrcp.f32 %v7711_v59 }
 0xeff   :  { %11535 = vpow2.f32 %v9915_v30 }
 0xf00   :  { %v11518_v39 = vpop.eup %11517  ;;  %11537 = vpow2.f32 %v9916_v28 }
 0xf01   :  { %v11520_v53 = vpop.eup %11519  ;;  %v7925_v42 = vmul.f32 %v11518_v39, %v7891_v34  ;;  %11539 = vpow2.f32 %v9917_v35 }
 0xf02   :  { %v11522_v12 = vpop.eup %11521  ;;  %11541 = vpow2.f32 %v9918_v14  ;;  %v7843_v28 = vadd.f32 1.0, %v11520_v53 }
 0xf03   :  { %v11524_v4 = vpop.eup %11523  ;;  %v7926_v40 = vmul.f32 %v11522_v12, %v7905_v38  ;;  %v7949_v62 = vadd.f32 %v7933_v7, %v7925_v42  ;;  %11543 = vpow2.f32 %v9919_v37 }
 0xf04   :  { %v11526_v18 = vpop.eup %11525  ;;  %v7927_v24 = vmul.f32 %v11524_v4, %v7913_v17  ;;  %11545 = vpow2.f32 %v9920_v5 }
 0xf05   :  { %v11528_v10 = vpop.eup %11527  ;;  %v7928_v6 = vmul.f32 %v11526_v18, %v7915_v46  ;;  %v7950_v57 = vadd.f32 %v7934_v31, %v7926_v40  ;;  %11547 = vtanh.f32 %v7949_v62 }
 0xf06   :  { %v11530_v41 = vpop.eup %11529  ;;  %v7929_v55 = vmul.f32 %v11528_v10, %v7898_v19  ;;  %v7951_v63 = vadd.f32 %v7935_v0, %v7927_v24  ;;  %11549 = vrcp.f32 %v7842_v43 }
 0xf07   :  { %v11532_v54 = vpop.eup %11531  ;;  %v7930_v25 = vmul.f32 %v11530_v41, %v7912_v1  ;;  %v7952_v52 = vadd.f32 %v7936_v21, %v7928_v6  ;;  %11551 = vtanh.f32 %v7950_v57 }
 0xf08   :  { %v11534_v29 = vpop.eup %11533  ;;  %v7931_v26 = vmul.f32 %v11532_v54, %v7914_v27  ;;  %v7953_v13 = vadd.f32 %v7937_v47, %v7929_v55  ;;  %11553 = vtanh.f32 %v7951_v63 }
 0xf09   :  { %v11536_v49 = vpop.eup %11535  ;;  %v7932_v60 = vmul.f32 %v11534_v29, %v7916_v44  ;;  %v7954_v30 = vadd.f32 %v7938_v56, %v7930_v25  ;;  %11555 = vtanh.f32 %v7952_v52 }
 0xf0a   :  { %v11538_v59 = vpop.eup %11537  ;;  %v7955_v32 = vadd.f32 %v7939_v8, %v7931_v26  ;;  %11557 = vtanh.f32 %v7953_v13  ;;  %v7844_v34 = vadd.f32 1.0, %v11536_v49 }
 0xf0b   :  { %v11540_v35 = vpop.eup %11539  ;;  %v7956_v45 = vadd.f32 %v7940_v2, %v7932_v60  ;;  %11559 = vtanh.f32 %v7954_v30  ;;  %v7845_v61 = vadd.f32 1.0, %v11538_v59 }
 0xf0c   :  { %v11542_v14 = vpop.eup %11541  ;;  %11561 = vtanh.f32 %v7955_v32  ;;  %v7846_v38 = vadd.f32 1.0, %v11540_v35 }
 0xf0d   :  { %v11544_v20 = vpop.eup %11543  ;;  %11563 = vtanh.f32 %v7956_v45  ;;  %v7847_v39 = vadd.f32 1.0, %v11542_v14 }
 0xf0e   :  { %v11546_v37 = vpop.eup %11545  ;;  %11565 = vrcp.f32 %v7843_v28  ;;  %v7848_v7 = vadd.f32 1.0, %v11544_v20 }
 0xf0f   :  { %v11548_v36 = vpop.eup %11547  ;;  %11567 = vrcp.f32 %v7844_v34  ;;  %v7849_v5 = vadd.f32 1.0, %v11546_v37 }
 0xf10   :  { %v11550_v31 = vpop.eup %11549  ;;  %11569 = vrcp.f32 %v7845_v61 }
 0xf11   :  { %v11552_v53 = vpop.eup %11551  ;;  %11571 = vrcp.f32 %v7846_v38  ;;  %v7965_v0 = vsub.f32 1.0, %v11550_v31  ;;  %v7981_v1 = vmul.f32 %v11550_v31, %v14560_v33 }
 0xf12   :  { %v11554_v19 = vpop.eup %11553  ;;  %11573 = vrcp.f32 %v7847_v39 }
 0xf13   :  { %v11556_v42 = vpop.eup %11555  ;;  %11575 = vrcp.f32 %v7848_v7  ;;  %v7973_v12 = vmul.f32 %v11548_v36, %v7965_v0 }
 0xf14   :  { %v11558_v17 = vpop.eup %11557  ;;  %11577 = vrcp.f32 %v7849_v5 }
 0xf15   :  { %v11560_v43 = vpop.eup %11559  ;;  %v14741_v4 = vadd.f32 %v7981_v1, %v7973_v12 }
 0xf16   :  { %v11562_v46 = vpop.eup %11561 }
 0xf17   :  { %v11564_v40 = vpop.eup %11563  ;;  %7997 = vst [vmem:[%s15179_s6 + $0xd] sm:$0x1] %v14741_v4  ;;  %v8021_v57 = vpack.c.bf16 %v14741_v4, %v14741_v4 }
 0xf18   :  { %v11566_v62 = vpop.eup %11565 }
 0xf19   :  { %v11568_v18 = vpop.eup %11567  ;;  %v7966_v21 = vsub.f32 1.0, %v11566_v62  ;;  %v7982_v6 = vmul.f32 %v11566_v62, %v14572_v58  ;;  %v8037_v37 = vunpack.c.l.b16 %v8021_v57  ;;  %v14825_v57 = vld [vmem:[#allocation4 + $0x1c] ss:$12 sps:$4 sm:$0xff]  }
 0xf1a   :  { %v11570_v47 = vpop.eup %11569  ;;  %v7967_v24 = vsub.f32 1.0, %v11568_v18  ;;  %v7983_v63 = vmul.f32 %v11568_v18, %v14574_v48 }
 0xf1b   :  { %v11572_v10 = vpop.eup %11571  ;;  %v7968_v56 = vsub.f32 1.0, %v11570_v47  ;;  %v7974_v33 = vmul.f32 %v11552_v53, %v7966_v21  ;;  %v7984_v54 = vmul.f32 %v11570_v47, %v14582_v51 }
 0xf1c   :  { %v11574_v41 = vpop.eup %11573  ;;  %v7969_v27 = vsub.f32 1.0, %v11572_v10  ;;  %v7975_v55 = vmul.f32 %v11554_v19, %v7967_v24  ;;  %v7985_v29 = vmul.f32 %v11572_v10, %v14588_v22 }
 0xf1d   :  { %v11576_v44 = vpop.eup %11575  ;;  %v7970_v25 = vsub.f32 1.0, %v11574_v41  ;;  %v7976_v52 = vmul.f32 %v11556_v42, %v7968_v56  ;;  %v14753_v8 = vadd.f32 %v7982_v6, %v7974_v33  ;;  %v7986_v2 = vmul.f32 %v11574_v41, %v14595_v9  ;;  %v14819_v33 = vld [vmem:[#allocation4] ss:$12 sps:$4 sm:$0xff]   ;;  %v14822_v6 = vld [vmem:[#allocation4 + $0x8] ss:$12 sps:$4 sm:$0xff]  }
 0xf1e   :  { %v11578_v26 = vpop.eup %11577  ;;  %v7977_v13 = vmul.f32 %v11558_v17, %v7969_v27  ;;  %v14755_v58 = vadd.f32 %v7983_v63, %v7975_v55  ;;  %v7971_v49 = vsub.f32 1.0, %v11576_v44  ;;  %v7987_v60 = vmul.f32 %v11576_v44, %v14603_v23  ;;  %v14832_v41 = vld [vmem:[#allocation4 + $0x18] ss:$12 sps:$4 sm:$0xff]   ;;  %v14835_v27 = vld [vmem:[#allocation4 + $0x20] ss:$12 sps:$4 sm:$0xff]  }
 0xf1f   :  { %7998 = vst [vmem:[%s15179_s6 + $0x1d] sm:$0x1] %v14753_v8  ;;  %v7972_v48 = vsub.f32 1.0, %v11578_v26  ;;  %v7978_v51 = vmul.f32 %v11560_v43, %v7970_v25  ;;  %v14763_v30 = vadd.f32 %v7984_v54, %v7976_v52  ;;  %v8022_v9 = vpack.c.bf16 %v14753_v8, %v14753_v8  ;;  %v14838_v55 = vld [vmem:[#allocation4 + $0x34] ss:$12 sps:$4 sm:$0xff]  }
 0xf20   :  { %7999 = vst [vmem:[%s15179_s6 + $0x2d] sm:$0x1] %v14755_v58  ;;  %v7979_v22 = vmul.f32 %v11562_v46, %v7971_v49  ;;  %v14769_v59 = vadd.f32 %v7985_v29, %v7977_v13  ;;  %v8023_v32 = vpack.c.bf16 %v14755_v58, %v14755_v58  ;;  %v7988_v35 = vmul.f32 %v11578_v26, %v14611_v3  ;;  %v14842_v63 = vld [vmem:[#allocation4 + $0x30] ss:$12 sps:$4 sm:$0xff]   ;;  %v14845_v54 = vld [vmem:[#allocation4 + $0x38] ss:$12 sps:$4 sm:$0xff]  }
 0xf21   :  { %v7980_v28 = vmul.f32 %v11564_v40, %v7972_v48  ;;  %v14776_v23 = vadd.f32 %v7986_v2, %v7978_v51  ;;  %8000 = vst [vmem:[%s15179_s6 + $0x3d] sm:$0x1] %v14763_v30  ;;  %v8024_v45 = vpack.c.bf16 %v14763_v30, %v14763_v30  ;;  %v8038_v14 = vunpack.c.l.b16 %v8022_v9  ;;  %v14848_v44 = vld [vmem:[#allocation4 + $0x4c] ss:$12 sps:$4 sm:$0xff]   ;;  %v14852_v25 = vld [vmem:[#allocation4 + $0x48] ss:$12 sps:$4 sm:$0xff]  }
 0xf22   :  { %v14784_v34 = vadd.f32 %v7987_v60, %v7979_v22  ;;  %8001 = vst [vmem:[%s15179_s6 + $0x4d] sm:$0x1] %v14769_v59  ;;  %v8025_v3 = vpack.c.bf16 %v14769_v59, %v14769_v59  ;;  %v8039_v61 = vunpack.c.l.b16 %v8023_v32  ;;  %v14855_v52 = vld [vmem:[#allocation4 + $0x50] ss:$12 sps:$4 sm:$0xff]   ;;  %v14862_v26 = vld [vmem:[#allocation4 + $0x60] ss:$12 sps:$4 sm:$0xff]  }
 0xf23   :  { %v14792_v20 = vadd.f32 %v7988_v35, %v7980_v28  ;;  %8002 = vst [vmem:[%s15179_s6 + $0x5d] sm:$0x1] %v14776_v23  ;;  %v8026_v38 = vpack.c.bf16 %v14776_v23, %v14776_v23  ;;  %v8040_v39 = vunpack.c.l.b16 %v8024_v45  ;;  %v8045_v31 = vrot.slane %v8038_v14, 7  ;;  %v14858_v29 = vld [vmem:[#allocation4 + $0x64] ss:$12 sps:$4 sm:$0xff]  }
 0xf24   :  { %8003 = vst [vmem:[%s15179_s6 + $0x6d] sm:$0x1] %v14784_v34  ;;  %v8027_v36 = vpack.c.bf16 %v14784_v34, %v14784_v34  ;;  %v8041_v7 = vunpack.c.l.b16 %v8025_v3  ;;  %v8047_v5 = vrot.slane %v8039_v61, 6  ;;  %v14865_v13 = vld [vmem:[#allocation4 + $0x68] ss:$12 sps:$4 sm:$0xff]  }
 0xf25   :  { %8004 = vst [vmem:[%s15179_s6 + $0x7d] sm:$0x1] %v14792_v20  ;;  %v8028_v53 = vpack.c.bf16 %v14792_v20, %v14792_v20  ;;  %v8042_v0 = vunpack.c.l.b16 %v8026_v38  ;;  %v8049_v19 = vrot.slane %v8040_v39, 5  ;;  %v8046_v12 = vsel %vm1703_vm3, %v8045_v31, %v8037_v37  ;;  %15388 = vst [vmem:[#allocation7_spill] sm:$0xff] %v14865_v13  ;;  %v14868_v49 = vld [vmem:[#allocation4 + $0x7c] ss:$12 sps:$4 sm:$0xff]  }
 0xf26   :  { %v8043_v42 = vunpack.c.l.b16 %v8027_v36  ;;  %v8048_v17 = vsel %vm1706_vm4, %v8047_v5, %v8046_v12  ;;  %v8051_v43 = vrot.slane %v8041_v7, 4  ;;  %15389 = vst [vmem:[#allocation8_spill] sm:$0xff] %v14868_v49  ;;  %v14872_v2 = vld [vmem:[#allocation4 + $0x78] ss:$12 sps:$4 sm:$0xff]   ;;  %v14875_v48 = vld [vmem:[#allocation4 + $0x80] ss:$12 sps:$4 sm:$0xff]  }
 0xf27   :  { %v8044_v1 = vunpack.c.l.b16 %v8028_v53  ;;  %v8050_v46 = vsel %vm1709_vm5, %v8049_v19, %v8048_v17  ;;  %v8053_v40 = vrot.slane %v8042_v0, 3  ;;  %15390 = vst [vmem:[#allocation9_spill] sm:$0xff] %v14872_v2  ;;  %15391 = vst [vmem:[#allocation10_spill] sm:$0xff] %v14875_v48  ;;  %v14878_v51 = vld [vmem:[#allocation4 + $0x94] ss:$12 sps:$4 sm:$0xff]  }
 0xf28   :  { %v8052_v62 = vsel %vm1712_vm6, %v8051_v43, %v8050_v46  ;;  %v8055_v18 = vrot.slane %v8043_v42, 2  ;;  %15392 = vst [vmem:[#allocation11_spill] sm:$0xff] %v14878_v51  ;;  %v14882_v60 = vld [vmem:[#allocation4 + $0x90] ss:$12 sps:$4 sm:$0xff]   ;;  %v14885_v22 = vld [vmem:[#allocation4 + $0x98] ss:$12 sps:$4 sm:$0xff]  }
 0xf29   :  { %v8054_v21 = vsel %vm1715_vm7, %v8053_v40, %v8052_v62  ;;  %v8057_v47 = vrot.slane %v8044_v1, 1  ;;  %15393 = vst [vmem:[#allocation12_spill] sm:$0xff] %v14882_v60  ;;  %15394 = vst [vmem:[#allocation13_spill] sm:$0xff] %v14885_v22  ;;  %v14888_v9 = vld [vmem:[#allocation4 + $0xac] ss:$12 sps:$4 sm:$0xff]  }
 0xf2a   :  { %v8056_v24 = vsel %vm1718_vm8, %v8055_v18, %v8054_v21  ;;  %15395 = vst [vmem:[#allocation14_spill] sm:$0xff] %v14888_v9  ;;  %v14892_v32 = vld [vmem:[#allocation4 + $0xa8] ss:$12 sps:$4 sm:$0xff]   ;;  %v14895_v28 = vld [vmem:[#allocation4 + $0xb0] ss:$12 sps:$4 sm:$0xff]  }
 0xf2b   :  { %v8058_v10 = vsel %vm1721_vm9, %v8057_v47, %v8056_v24  ;;  %15396 = vst [vmem:[#allocation15_spill] sm:$0xff] %v14892_v32  ;;  %15397 = vst [vmem:[#allocation16_spill] sm:$0xff] %v14895_v28  ;;  %v11912_v35 = vld [vmem:[#allocation4 + $0x4] ss:$12 sps:$4 sm:$0xff]  }
 0xf2c   :  { %v8059_v56 = vpack.c.b16 %v8058_v10, %v8058_v10  ;;  %v14902_v19 = vld [vmem:[#allocation2 + $0x1d] ss:$8 sm:$0x7] }
 0xf2d   :  { %v14904_v42 = vld [vmem:[#allocation2 + $0x4d] ss:$8 sm:$0x7] }
 0xf2e   :  { %8094 = vmatmul.mubr.bf16.vlgmr.msra.gmra.mrb[84].mxu0 %v8059_v56  ;;  %10454 = vmatmul.mubr.bf16.vlgmr.msra.gmra.mrb[84].mxu1 %v8059_v56  ;;  %v14908_v46 = vld [vmem:[#allocation2 + $0x7d] ss:$8 sm:$0x7] }
 0xf2f   :  { %8590 = vmatpush1.bf16.msra.mxu0 %v14819_v33  ;;  %10458 = vmatpush3.bf16.msra.mxu1 %v14822_v6  ;;  %v14910_v40 = vld [vmem:[#allocation2 + $0xad] ss:$8 sm:$0x7] }
 0xf30   :  { %8591 = vmatprep.subr.bf16.mxu0 %v14825_v57  ;;  %10459 = vmatprep.subr.bf16.mxu1 %v15267_v16  ;;  %v14914_v21 = vld [vmem:[#allocation2 + $0xdd] ss:$8 sm:$0x7] }
 0xf31   :  { %8621 = vmatprep.mubr.bf16.mxu0 %v15268_v15  ;;  %10473 = vmatprep.mubr.msk.bf16.mxu1 %vm11945_vm0, %v15267_v16  ;;  %v14916_v47 = vld [vmem:[#allocation2 + $0x10d] ss:$8 sm:$0x7] }
 0xf33   :  { %8592 = vmatpush1.bf16.msra.mxu0 %v14832_v41  ;;  %10460 = vmatpush3.bf16.msra.mxu1 %v14835_v27 }
 0xf34   :  { %8593 = vmatprep.subr.bf16.mxu0 %v14838_v55  ;;  %10461 = vmatprep.subr.bf16.mxu1 %v15267_v16 }
 0xf37   :  { %8594 = vmatpush1.bf16.msra.mxu0 %v14842_v63  ;;  %10462 = vmatpush3.bf16.msra.mxu1 %v14845_v54 }
 0xf38   :  { %8595 = vmatprep.subr.bf16.mxu0 %v14848_v44  ;;  %10463 = vmatprep.subr.bf16.mxu1 %v15267_v16 }
 0xf3b   :  { %8596 = vmatpush1.bf16.msra.mxu0 %v14852_v25  ;;  %10464 = vmatpush3.bf16.msra.mxu1 %v14855_v52 }
 0xf3c   :  { %8597 = vmatprep.subr.bf16.mxu0 %v14858_v29  ;;  %10465 = vmatprep.subr.bf16.mxu1 %v15267_v16 }
 0xf3f   :  { %8598 = vmatpush1.bf16.msra.mxu0 %v14862_v26  ;;  %10466 = vmatpush3.bf16.msra.mxu1 %v14865_v13 }
 0xf40   :  { %8599 = vmatprep.subr.bf16.mxu0 %v14868_v49  ;;  %10467 = vmatprep.subr.bf16.mxu1 %v15267_v16 }
 0xf43   :  { %8600 = vmatpush1.bf16.msra.mxu0 %v14872_v2  ;;  %10468 = vmatpush3.bf16.msra.mxu1 %v14875_v48 }
 0xf44   :  { %8601 = vmatprep.subr.bf16.mxu0 %v14878_v51  ;;  %10469 = vmatprep.subr.bf16.mxu1 %v15267_v16 }
 0xf47   :  { %8602 = vmatpush1.bf16.msra.mxu0 %v14882_v60  ;;  %10470 = vmatpush3.bf16.msra.mxu1 %v14885_v22 }
 0xf48   :  { %8603 = vmatprep.subr.bf16.mxu0 %v14888_v9  ;;  %10471 = vmatprep.subr.bf16.mxu1 %v15267_v16 }
 0xf4b   :  { %8604 = vmatpush1.bf16.msra.mxu0 %v14892_v32  ;;  %10472 = vmatpush3.bf16.msra.mxu1 %v14895_v28 }
 0xf4c   :  { %9117 = vmatprep.subr.bf16.mxu0 %v11912_v35  ;;  %10477 = vmatprep.subr.bf16.mxu1 %v15267_v16 }
0x1001   :  { %v8095_v45 = vpop.f32.mrb[84].mxu0  ;;  %v8136_v3 = vpop.f32.mrb[84].mxu1 }
0x1002   :  { %v8143_v14 = vcombine.high %v8095_v45, %v8095_v45  ;;  %v8150_v61 = vrot.slane %v8095_v45, %v12002_v11  ;;  %v8097_v38 = vpop.f32.mrb[85].mxu0  ;;  %v10455_v37 = vpop.f32.mrb[85].mxu1  ;;  %v14920_v45 = vld [vmem:[#allocation2 + $0x13d] ss:$8 sm:$0x7] }
0x1003   :  { %v8099_v39 = vpop.f32.mrb[86].mxu0  ;;  %v8139_v36 = vpop.f32.mrb[86].mxu1  ;;  %v8288_v18 = vrot.slane %v8097_v38, %v12002_v11 }
0x1004   :  { %v8157_v7 = vrot.slane %v8143_v14, %v12002_v11  ;;  %v8158_v31 = vcombine.high %v8150_v61, %v8150_v61  ;;  %v8166_v5 = vrot.slane %v8150_v61, %v12002_v11  ;;  %v8100_v53 = vpop.f32.mrb[87].mxu0  ;;  %v10456_v0 = vpop.f32.mrb[87].mxu1  ;;  %v8281_v39 = vcombine.high %v8097_v38, %v8097_v38  ;;  %v14924_v36 = vld [vmem:[#allocation2 + $0x16d] ss:$8 sm:$0x7] }
0x1005   :  { %v8296_v32 = vcombine.high %v8288_v18, %v8288_v18  ;;  %v8304_v38 = vrot.slane %v8288_v18, %v12002_v11  ;;  %v8394_v18 = vadd.f32 %v14714_v50, %v8136_v3  ;;  %v8269_v50 = vrot.slane %v14916_v47, 1 }
0x1006   :  { %v8159_v12 = vcombine.high %v8157_v7, %v8157_v7  ;;  %v8173_v1 = vrot.slane %v8157_v7, %v12002_v11  ;;  %v8180_v17 = vrot.slane %v8158_v31, %v12002_v11  ;;  %v8188_v43 = vcombine.high %v8166_v5, %v8166_v5 }
0x1007   :  { %v8200_v62 = vadd.f32 %v8166_v5, %v14902_v19  ;;  %v8270_v3 = vrot.slane %v14920_v45, 1 }
0x1008   :  { %v8187_v24 = vrot.slane %v8159_v12, %v12002_v11  ;;  %v8189_v10 = vcombine.high %v8173_v1, %v8173_v1  ;;  %v8190_v56 = vcombine.high %v8180_v17, %v8180_v17  ;;  %v8201_v35 = vadd.f32 %v8180_v17, %v14904_v42 }
0x1009   :  { %v8202_v14 = vadd.f32 %v8188_v43, %v14908_v46  ;;  %v8204_v61 = vadd.f32 %v8173_v1, %v14914_v21  ;;  %v9921_v37 = vmul.f32 -1.442695, %v8200_v62 }
0x100a   :  { %v8191_v7 = vcombine.high %v8187_v24, %v8187_v24  ;;  %v8203_v31 = vadd.f32 %v8190_v56, %v14910_v40  ;;  %v8205_v5 = vadd.f32 %v8187_v24, %v14916_v47  ;;  %v8206_v53 = vadd.f32 %v8189_v10, %v14920_v45 }
0x100b   :  { %11579 = vpow2.f32 %v9921_v37  ;;  %v9922_v0 = vmul.f32 -1.442695, %v8201_v35  ;;  %v9923_v12 = vmul.f32 -1.442695, %v8202_v14  ;;  %v9925_v43 = vmul.f32 -1.442695, %v8204_v61 }
0x100c   :  { %v8207_v17 = vadd.f32 %v8191_v7, %v14924_v36  ;;  %v9924_v28 = vmul.f32 -1.442695, %v8203_v31  ;;  %v9926_v1 = vmul.f32 -1.442695, %v8205_v5  ;;  %v9927_v62 = vmul.f32 -1.442695, %v8206_v53 }
0x100d   :  { %11581 = vpow2.f32 %v9922_v0  ;;  %v8295_v56 = vrot.slane %v8281_v39, %v12002_v11  ;;  %v8264_v10 = vrot.slane %v14902_v19, 1  ;;  %v8318_v35 = vrot.slane %v8296_v32, %v12002_v11 }
0x100e   :  { %11583 = vpow2.f32 %v9923_v12  ;;  %v9928_v24 = vmul.f32 -1.442695, %v8207_v17  ;;  %v8265_v14 = vrot.slane %v14904_v42, 1  ;;  %v8266_v31 = vrot.slane %v14908_v46, 1 }
0x100f   :  { %11585 = vpow2.f32 %v9924_v28  ;;  %v8338_v61 = vadd.f32 %v8304_v38, %v8264_v10  ;;  %v8297_v37 = vcombine.high %v8295_v56, %v8295_v56  ;;  %v8267_v28 = vrot.slane %v14910_v40, 1 }
0x1010   :  { %11587 = vpow2.f32 %v9925_v43  ;;  %v8339_v7 = vadd.f32 %v8318_v35, %v8265_v14  ;;  %v8311_v5 = vrot.slane %v8295_v56, %v12002_v11  ;;  %v8326_v53 = vcombine.high %v8304_v38, %v8304_v38 }
0x1011   :  { %11589 = vpow2.f32 %v9926_v1  ;;  %v9929_v0 = vmul.f32 -1.442695, %v8338_v61  ;;  %v8268_v17 = vrot.slane %v14914_v21, 1  ;;  %v8325_v43 = vrot.slane %v8297_v37, %v12002_v11 }
0x1012   :  { %11591 = vpow2.f32 %v9927_v62  ;;  %v9930_v32 = vmul.f32 -1.442695, %v8339_v7  ;;  %v8328_v1 = vcombine.high %v8318_v35, %v8318_v35  ;;  %v8403_v38 = vrot.slane %v8394_v18, %v12002_v11 }
0x1013   :  { %11593 = vpow2.f32 %v9928_v24  ;;  %v8396_v24 = vcombine.high %v8394_v18, %v8394_v18  ;;  %v8271_v56 = vrot.slane %v14924_v36, 1  ;;  %v8340_v9 = vadd.f32 %v8326_v53, %v8266_v31 }
0x1014   :  { %11595 = vpow2.f32 %v9929_v0  ;;  %v8329_v22 = vcombine.high %v8325_v43, %v8325_v43  ;;  %v8341_v60 = vadd.f32 %v8328_v1, %v8267_v28  ;;  %v8411_v2 = vcombine.high %v8403_v38, %v8403_v38 }
0x1015   :  { %v11580_v39 = vpop.eup %11579  ;;  %v8410_v0 = vrot.slane %v8396_v24, %v12002_v11  ;;  %v8343_v49 = vadd.f32 %v8325_v43, %v8269_v50  ;;  %v9931_v53 = vmul.f32 -1.442695, %v8340_v9  ;;  %v8462_v9 = vrot.slane %v14904_v42, 2 }
0x1016   :  { %v8232_v12 = vadd.f32 1.0, %v11580_v39  ;;  %v8327_v39 = vcombine.high %v8311_v5, %v8311_v5  ;;  %v9932_v28 = vmul.f32 -1.442695, %v8341_v60  ;;  %v8433_v24 = vrot.slane %v8411_v2, %v12002_v11 }
0x1017   :  { %v11582_v62 = vpop.eup %11581 }
0x1018   :  { %v11584_v10 = vpop.eup %11583  ;;  %v8233_v14 = vadd.f32 1.0, %v11582_v62  ;;  %11597 = vrcp.f32 %v8232_v12  ;;  %v8342_v12 = vadd.f32 %v8311_v5, %v8268_v17  ;;  %v8344_v31 = vadd.f32 %v8327_v39, %v8270_v3 }
0x1019   :  { %v11586_v61 = vpop.eup %11585  ;;  %v8234_v7 = vadd.f32 1.0, %v11584_v10  ;;  %11599 = vpow2.f32 %v9930_v32  ;;  %v8419_v5 = vrot.slane %v8403_v38, %v12002_v11  ;;  %v9934_v17 = vmul.f32 -1.442695, %v8343_v49 }
0x101a   :  { %v11588_v35 = vpop.eup %11587  ;;  %v8235_v37 = vadd.f32 1.0, %v11586_v61  ;;  %11601 = vrcp.f32 %v8233_v14  ;;  %v8345_v14 = vadd.f32 %v8329_v22, %v8271_v56  ;;  %v9933_v1 = vmul.f32 -1.442695, %v8342_v12 }
0x101b   :  { %v11590_v51 = vpop.eup %11589  ;;  %v8236_v48 = vadd.f32 1.0, %v11588_v35  ;;  %11603 = vrcp.f32 %v8234_v7  ;;  %v8412_v61 = vcombine.high %v8410_v0, %v8410_v0  ;;  %v9935_v43 = vmul.f32 -1.442695, %v8344_v31 }
0x101c   :  { %v11592_v62 = vpop.eup %11591  ;;  %v8237_v18 = vadd.f32 1.0, %v11590_v51  ;;  %11605 = vrcp.f32 %v8235_v37  ;;  %v9936_v22 = vmul.f32 -1.442695, %v8345_v14  ;;  %v8426_v3 = vrot.slane %v8410_v0, %v12002_v11 }
0x101d   :  { %v11594_v10 = vpop.eup %11593  ;;  %v8238_v13 = vadd.f32 1.0, %v11592_v62  ;;  %11607 = vrcp.f32 %v8236_v48  ;;  %v8461_v48 = vrot.slane %v14902_v19, 2  ;;  %v8440_v38 = vrot.slane %v8412_v61, %v12002_v11 }
0x101e   :  { %v8239_v32 = vadd.f32 1.0, %v11594_v10  ;;  %11609 = vrcp.f32 %v8237_v18  ;;  %v11596_v51 = vpop.eup %11595  ;;  %v8441_v2 = vcombine.high %v8419_v5, %v8419_v5  ;;  %v8443_v35 = vcombine.high %v8433_v24, %v8433_v24 }
0x101f   :  { %11611 = vrcp.f32 %v8238_v13  ;;  %v8463_v13 = vrot.slane %v14908_v46, 2  ;;  %v8370_v7 = vadd.f32 1.0, %v11596_v51  ;;  %v8464_v12 = vrot.slane %v14910_v40, 2 }
0x1020   :  { %11613 = vrcp.f32 %v8239_v32  ;;  %v8465_v46 = vrot.slane %v14914_v21, 2  ;;  %v8466_v18 = vrot.slane %v14916_v47, 2  ;;  %v8442_v32 = vcombine.high %v8426_v3, %v8426_v3 }
0x1021   :  { %11615 = vpow2.f32 %v9931_v53  ;;  %v8444_v61 = vcombine.high %v8440_v38, %v8440_v38  ;;  %v8467_v21 = vrot.slane %v14920_v45, 2 }
0x1022   :  { %v11598_v50 = vpop.eup %11597  ;;  %11617 = vpow2.f32 %v9932_v28 }
0x1023   :  { %v11600_v60 = vpop.eup %11599  ;;  %v8453_v56 = vmul.f32 %v11598_v50, %v8419_v5  ;;  %11619 = vpow2.f32 %v9933_v1 }
0x1024   :  { %v11602_v49 = vpop.eup %11601  ;;  %11621 = vpow2.f32 %v9934_v17 }
0x1025   :  { %v11604_v39 = vpop.eup %11603  ;;  %v8454_v19 = vmul.f32 %v11602_v49, %v8433_v24  ;;  %v8477_v37 = vadd.f32 %v8461_v48, %v8453_v56  ;;  %11623 = vpow2.f32 %v9935_v43  ;;  %v8468_v43 = vrot.slane %v14924_v36, 2 }
0x1026   :  { %v11606_v42 = vpop.eup %11605  ;;  %v8455_v62 = vmul.f32 %v11604_v39, %v8441_v2  ;;  %11625 = vpow2.f32 %v9936_v22 }
0x1027   :  { %v11608_v0 = vpop.eup %11607  ;;  %v8456_v10 = vmul.f32 %v11606_v42, %v8443_v35  ;;  %v8478_v31 = vadd.f32 %v8462_v9, %v8454_v19  ;;  %11627 = vtanh.f32 %v8477_v37 }
0x1028   :  { %v11610_v53 = vpop.eup %11609  ;;  %v8457_v14 = vmul.f32 %v11608_v0, %v8426_v3  ;;  %v8479_v28 = vadd.f32 %v8463_v13, %v8455_v62  ;;  %11629 = vrcp.f32 %v8370_v7  ;;  %v8371_v13 = vadd.f32 1.0, %v11600_v60 }
0x1029   :  { %v11612_v1 = vpop.eup %11611  ;;  %v8458_v5 = vmul.f32 %v11610_v53, %v8440_v38  ;;  %v8480_v17 = vadd.f32 %v8464_v12, %v8456_v10  ;;  %11631 = vtanh.f32 %v8478_v31 }
0x102a   :  { %v11614_v40 = vpop.eup %11613  ;;  %v8459_v51 = vmul.f32 %v11612_v1, %v8442_v32  ;;  %v8481_v24 = vadd.f32 %v8465_v46, %v8457_v14  ;;  %11633 = vtanh.f32 %v8479_v28 }
0x102b   :  { %v11616_v47 = vpop.eup %11615  ;;  %v8460_v50 = vmul.f32 %v11614_v40, %v8444_v61  ;;  %v8482_v48 = vadd.f32 %v8466_v18, %v8458_v5  ;;  %11635 = vtanh.f32 %v8480_v17 }
0x102c   :  { %v11618_v9 = vpop.eup %11617  ;;  %v8483_v22 = vadd.f32 %v8467_v21, %v8459_v51  ;;  %11637 = vtanh.f32 %v8481_v24  ;;  %v8372_v49 = vadd.f32 1.0, %v11616_v47 }
0x102d   :  { %v11620_v3 = vpop.eup %11619  ;;  %v8484_v56 = vadd.f32 %v8468_v43, %v8460_v50  ;;  %11639 = vtanh.f32 %v8482_v48  ;;  %v8373_v45 = vadd.f32 1.0, %v11618_v9 }
0x102e   :  { %v11622_v38 = vpop.eup %11621  ;;  %11641 = vtanh.f32 %v8483_v22  ;;  %v8374_v7 = vadd.f32 1.0, %v11620_v3 }
0x102f   :  { %v11624_v2 = vpop.eup %11623  ;;  %11643 = vtanh.f32 %v8484_v56  ;;  %v8375_v35 = vadd.f32 1.0, %v11622_v38 }
0x1030   :  { %v11626_v39 = vpop.eup %11625  ;;  %11645 = vrcp.f32 %v8371_v13  ;;  %v8376_v19 = vadd.f32 1.0, %v11624_v2 }
0x1031   :  { %v11628_v36 = vpop.eup %11627  ;;  %11647 = vrcp.f32 %v8372_v49  ;;  %v8377_v42 = vadd.f32 1.0, %v11626_v39 }
0x1032   :  { %v11630_v37 = vpop.eup %11629  ;;  %11649 = vrcp.f32 %v8373_v45 }
0x1033   :  { %v11632_v60 = vpop.eup %11631  ;;  %11651 = vrcp.f32 %v8374_v7  ;;  %v8493_v12 = vsub.f32 1.0, %v11630_v37  ;;  %v8509_v18 = vmul.f32 %v11630_v37, %v14741_v4 }
0x1034   :  { %v11634_v46 = vpop.eup %11633  ;;  %11653 = vrcp.f32 %v8375_v35 }
0x1035   :  { %v11636_v62 = vpop.eup %11635  ;;  %11655 = vrcp.f32 %v8376_v19  ;;  %v8501_v0 = vmul.f32 %v11628_v36, %v8493_v12 }
0x1036   :  { %v11638_v10 = vpop.eup %11637  ;;  %11657 = vrcp.f32 %v8377_v42 }
0x1037   :  { %v11640_v31 = vpop.eup %11639  ;;  %v14959_v53 = vadd.f32 %v8509_v18, %v8501_v0 }
0x1038   :  { %v11642_v32 = vpop.eup %11641 }
0x1039   :  { %v11644_v14 = vpop.eup %11643  ;;  %8525 = vst [vmem:[%s15179_s6 + $0xe] sm:$0x1] %v14959_v53  ;;  %v8549_v24 = vpack.c.bf16 %v14959_v53, %v14959_v53 }
0x103a   :  { %v11646_v28 = vpop.eup %11645 }
0x103b   :  { %v11648_v1 = vpop.eup %11647  ;;  %v8494_v61 = vsub.f32 1.0, %v11646_v28  ;;  %v8510_v51 = vmul.f32 %v11646_v28, %v14753_v8 }
0x103c   :  { %v11650_v5 = vpop.eup %11649  ;;  %v8495_v17 = vsub.f32 1.0, %v11648_v1  ;;  %v8511_v48 = vmul.f32 %v11648_v1, %v14755_v58 }
0x103d   :  { %v11652_v40 = vpop.eup %11651  ;;  %v8496_v21 = vsub.f32 1.0, %v11650_v5  ;;  %v8502_v4 = vmul.f32 %v11632_v60, %v8494_v61  ;;  %v8512_v9 = vmul.f32 %v11650_v5, %v14763_v30 }
0x103e   :  { %v11654_v47 = vpop.eup %11653  ;;  %v8497_v43 = vsub.f32 1.0, %v11652_v40  ;;  %v8503_v50 = vmul.f32 %v11634_v46, %v8495_v17  ;;  %v8513_v56 = vmul.f32 %v11652_v40, %v14769_v59 }
0x103f   :  { %v11656_v22 = vpop.eup %11655  ;;  %v8498_v13 = vsub.f32 1.0, %v11654_v47  ;;  %v8504_v3 = vmul.f32 %v11636_v62, %v8496_v21  ;;  %v14971_v49 = vadd.f32 %v8510_v51, %v8502_v4  ;;  %v8514_v7 = vmul.f32 %v11654_v47, %v14776_v23 }
0x1040   :  { %v11658_v38 = vpop.eup %11657  ;;  %v8505_v45 = vmul.f32 %v11638_v10, %v8497_v43  ;;  %v14973_v8 = vadd.f32 %v8511_v48, %v8503_v50  ;;  %v8499_v2 = vsub.f32 1.0, %v11656_v22  ;;  %v8515_v39 = vmul.f32 %v11656_v22, %v14784_v34 }
0x1041   :  { %8526 = vst [vmem:[%s15179_s6 + $0x1e] sm:$0x1] %v14971_v49  ;;  %v8500_v58 = vsub.f32 1.0, %v11658_v38  ;;  %v8506_v30 = vmul.f32 %v11640_v31, %v8498_v13  ;;  %v14981_v35 = vadd.f32 %v8512_v9, %v8504_v3  ;;  %v8550_v23 = vpack.c.bf16 %v14971_v49, %v14971_v49 }
0x1042   :  { %8527 = vst [vmem:[%s15179_s6 + $0x2e] sm:$0x1] %v14973_v8  ;;  %v8507_v59 = vmul.f32 %v11642_v32, %v8499_v2  ;;  %v14987_v36 = vadd.f32 %v8513_v56, %v8505_v45  ;;  %v8551_v19 = vpack.c.bf16 %v14973_v8, %v14973_v8  ;;  %v8516_v42 = vmul.f32 %v11658_v38, %v14792_v20 }
0x1043   :  { %v8508_v37 = vmul.f32 %v11644_v14, %v8500_v58  ;;  %v14994_v34 = vadd.f32 %v8514_v7, %v8506_v30  ;;  %8528 = vst [vmem:[%s15179_s6 + $0x3e] sm:$0x1] %v14981_v35  ;;  %v8552_v60 = vpack.c.bf16 %v14981_v35, %v14981_v35  ;;  %v8566_v46 = vunpack.c.l.b16 %v8550_v23  ;;  %v15075_v23 = vld [vmem:[#allocation2 + $0x1e] ss:$8 sm:$0x7] }
0x1044   :  { %v15002_v12 = vadd.f32 %v8515_v39, %v8507_v59  ;;  %8529 = vst [vmem:[%s15179_s6 + $0x4e] sm:$0x1] %v14987_v36  ;;  %v8553_v20 = vpack.c.bf16 %v14987_v36, %v14987_v36  ;;  %v8567_v62 = vunpack.c.l.b16 %v8551_v19  ;;  %v8565_v10 = vunpack.c.l.b16 %v8549_v24  ;;  %v15077_v19 = vld [vmem:[#allocation2 + $0x4e] ss:$8 sm:$0x7] }
0x1045   :  { %v15010_v0 = vadd.f32 %v8516_v42, %v8508_v37  ;;  %8530 = vst [vmem:[%s15179_s6 + $0x5e] sm:$0x1] %v14994_v34  ;;  %v8554_v18 = vpack.c.bf16 %v14994_v34, %v14994_v34  ;;  %v8568_v31 = vunpack.c.l.b16 %v8552_v60  ;;  %v8573_v28 = vrot.slane %v8566_v46, 7  ;;  %v15081_v46 = vld [vmem:[#allocation2 + $0x7e] ss:$8 sm:$0x7] }
0x1046   :  { %8531 = vst [vmem:[%s15179_s6 + $0x6e] sm:$0x1] %v15002_v12  ;;  %v8555_v32 = vpack.c.bf16 %v15002_v12, %v15002_v12  ;;  %v8569_v14 = vunpack.c.l.b16 %v8553_v20  ;;  %v8575_v1 = vrot.slane %v8567_v62, 6  ;;  %v15083_v62 = vld [vmem:[#allocation2 + $0xae] ss:$8 sm:$0x7] }
0x1047   :  { %8532 = vst [vmem:[%s15179_s6 + $0x7e] sm:$0x1] %v15010_v0  ;;  %v8556_v61 = vpack.c.bf16 %v15010_v0, %v15010_v0  ;;  %v8570_v5 = vunpack.c.l.b16 %v8554_v18  ;;  %v8577_v17 = vrot.slane %v8568_v31, 5  ;;  %v8574_v21 = vsel %vm1703_vm3, %v8573_v28, %v8565_v10  ;;  %v15087_v31 = vld [vmem:[#allocation2 + $0xde] ss:$8 sm:$0x7] }
0x1048   :  { %v8571_v40 = vunpack.c.l.b16 %v8555_v32  ;;  %v8576_v51 = vsel %vm1706_vm4, %v8575_v1, %v8574_v21  ;;  %v8579_v24 = vrot.slane %v8569_v14, 4  ;;  %v15089_v32 = vld [vmem:[#allocation2 + $0x10e] ss:$8 sm:$0x7] }
0x1049   :  { %v8572_v4 = vunpack.c.l.b16 %v8556_v61  ;;  %v8578_v47 = vsel %vm1709_vm5, %v8577_v17, %v8576_v51  ;;  %v8581_v43 = vrot.slane %v8570_v5, 3  ;;  %v15093_v5 = vld [vmem:[#allocation2 + $0x13e] ss:$8 sm:$0x7] }
0x104a   :  { %v8580_v50 = vsel %vm1712_vm6, %v8579_v24, %v8578_v47  ;;  %v8583_v48 = vrot.slane %v8571_v40, 2  ;;  %v15097_v51 = vld [vmem:[#allocation2 + $0x16e] ss:$8 sm:$0x7] }
0x104b   :  { %v8582_v9 = vsel %vm1715_vm7, %v8581_v43, %v8580_v50  ;;  %v8585_v22 = vrot.slane %v8572_v4, 1 }
0x104c   :  { %v8584_v13 = vsel %vm1718_vm8, %v8583_v48, %v8582_v9 }
0x104d   :  { %v8586_v3 = vsel %vm1721_vm9, %v8585_v22, %v8584_v13 }
0x104e   :  { %v8587_v56 = vpack.c.b16 %v8586_v3, %v8586_v3 }
0x1050   :  { %8622 = vmatmul.mubr.bf16.vlgmr.msra.gmra.mrb[88].mxu0 %v8587_v56  ;;  %10474 = vmatmul.mubr.bf16.vlgmr.msra.gmra.mrb[88].mxu1 %v8587_v56 }
0x1051   :  { %9118 = vmatpush1.bf16.msra.mxu0 %v14819_v33  ;;  %10478 = vmatpush3.bf16.msra.mxu1 %v14822_v6  ;;  %v15399_v33 = vld [vmem:[#allocation8_spill] sm:$0xff]  ;;  %v15400_v6 = vld [vmem:[#allocation9_spill] sm:$0xff] }
0x1052   :  { %9119 = vmatprep.subr.bf16.mxu0 %v14825_v57  ;;  %10479 = vmatprep.subr.bf16.mxu1 %v15267_v16  ;;  %v15401_v57 = vld [vmem:[#allocation10_spill] sm:$0xff] }
0x1053   :  { %9149 = vmatprep.mubr.bf16.mxu0 %v15268_v15  ;;  %10493 = vmatprep.mubr.msk.bf16.mxu1 %vm11945_vm0, %v15267_v16  ;;  %v15398_v15 = vld [vmem:[#allocation7_spill] sm:$0xff] }
0x1055   :  { %9120 = vmatpush1.bf16.msra.mxu0 %v14832_v41  ;;  %10480 = vmatpush3.bf16.msra.mxu1 %v14835_v27  ;;  %v15402_v41 = vld [vmem:[#allocation11_spill] sm:$0xff]  ;;  %v15403_v27 = vld [vmem:[#allocation12_spill] sm:$0xff] }
0x1056   :  { %9121 = vmatprep.subr.bf16.mxu0 %v14838_v55  ;;  %10481 = vmatprep.subr.bf16.mxu1 %v15267_v16  ;;  %v15404_v55 = vld [vmem:[#allocation13_spill] sm:$0xff] }
0x1059   :  { %9122 = vmatpush1.bf16.msra.mxu0 %v14842_v63  ;;  %10482 = vmatpush3.bf16.msra.mxu1 %v14845_v54  ;;  %v15405_v63 = vld [vmem:[#allocation14_spill] sm:$0xff]  ;;  %v15406_v54 = vld [vmem:[#allocation15_spill] sm:$0xff] }
0x105a   :  { %9123 = vmatprep.subr.bf16.mxu0 %v14848_v44  ;;  %10483 = vmatprep.subr.bf16.mxu1 %v15267_v16  ;;  %v15407_v44 = vld [vmem:[#allocation16_spill] sm:$0xff] }
0x105d   :  { %9124 = vmatpush1.bf16.msra.mxu0 %v14852_v25  ;;  %10484 = vmatpush3.bf16.msra.mxu1 %v14855_v52 }
0x105e   :  { %9125 = vmatprep.subr.bf16.mxu0 %v14858_v29  ;;  %10485 = vmatprep.subr.bf16.mxu1 %v15267_v16 }
0x1061   :  { %9126 = vmatpush1.bf16.msra.mxu0 %v14862_v26  ;;  %10486 = vmatpush3.bf16.msra.mxu1 %v15398_v15 }
0x1062   :  { %9127 = vmatprep.subr.bf16.mxu0 %v15399_v33  ;;  %10487 = vmatprep.subr.bf16.mxu1 %v15267_v16 }
0x1065   :  { %9128 = vmatpush1.bf16.msra.mxu0 %v15400_v6  ;;  %10488 = vmatpush3.bf16.msra.mxu1 %v15401_v57 }
0x1066   :  { %9129 = vmatprep.subr.bf16.mxu0 %v15402_v41  ;;  %10489 = vmatprep.subr.bf16.mxu1 %v15267_v16 }
0x1069   :  { %9130 = vmatpush1.bf16.msra.mxu0 %v15403_v27  ;;  %10490 = vmatpush3.bf16.msra.mxu1 %v15404_v55  ;;  %v8792_v27 = vrot.slane %v15075_v23, 1 }
0x106a   :  { %9131 = vmatprep.subr.bf16.mxu0 %v15405_v63  ;;  %10491 = vmatprep.subr.bf16.mxu1 %v15267_v16  ;;  %v8793_v63 = vrot.slane %v15077_v19, 1 }
0x106d   :  { %9132 = vmatpush1.bf16.msra.mxu0 %v15406_v54  ;;  %10492 = vmatpush3.bf16.msra.mxu1 %v15407_v44 }
0x1123   :  { %v8623_v25 = vpop.f32.mrb[88].mxu0  ;;  %v15070_v52 = vpop.f32.mrb[88].mxu1 }
0x1124   :  { %v8671_v29 = vcombine.high %v8623_v25, %v8623_v25  ;;  %v8678_v26 = vrot.slane %v8623_v25, %v12002_v11  ;;  %v8625_v38 = vpop.f32.mrb[89].mxu0  ;;  %v10475_v45 = vpop.f32.mrb[89].mxu1  ;;  %v11913_v25 = vld [vmem:[%s15177_s4] ss:$0 sm:$0xff] }
0x1125   :  { %v8627_v2 = vpop.f32.mrb[90].mxu0  ;;  %v8667_v7 = vpop.f32.mrb[90].mxu1  ;;  %v8816_v10 = vrot.slane %v8625_v38, %v12002_v11  ;;  %v8809_v4 = vcombine.high %v8625_v38, %v8625_v38  ;;  %v8794_v38 = vrot.slane %v15081_v46, 1  ;;  %v8795_v45 = vrot.slane %v15083_v62, 1 }
0x1126   :  { %v8685_v58 = vrot.slane %v8671_v29, %v12002_v11  ;;  %v8686_v30 = vcombine.high %v8678_v26, %v8678_v26  ;;  %v8694_v39 = vrot.slane %v8678_v26, %v12002_v11  ;;  %v8628_v16 = vpop.f32.mrb[91].mxu0  ;;  %v10476_v59 = vpop.f32.mrb[91].mxu1  ;;  %v8922_v29 = vadd.f32 %v11913_v25, %v15070_v52 }
0x1127   :  { %v8824_v56 = vcombine.high %v8816_v10, %v8816_v10  ;;  %v8832_v33 = vrot.slane %v8816_v10, %v12002_v11  ;;  %v8823_v57 = vrot.slane %v8809_v4, %v12002_v11  ;;  %v8796_v59 = vrot.slane %v15087_v31, 1 }
0x1128   :  { %v8687_v37 = vcombine.high %v8685_v58, %v8685_v58  ;;  %v8701_v42 = vrot.slane %v8685_v58, %v12002_v11  ;;  %v8708_v60 = vrot.slane %v8686_v30, %v12002_v11  ;;  %v8716_v20 = vcombine.high %v8694_v39, %v8694_v39 }
0x1129   :  { %v8728_v18 = vadd.f32 %v8694_v39, %v15075_v23  ;;  %v8846_v55 = vrot.slane %v8824_v56, %v12002_v11  ;;  %v8866_v54 = vadd.f32 %v8832_v33, %v8792_v27  ;;  %v8825_v44 = vcombine.high %v8823_v57, %v8823_v57 }
0x112a   :  { %v8715_v14 = vrot.slane %v8687_v37, %v12002_v11  ;;  %v8717_v28 = vcombine.high %v8701_v42, %v8701_v42  ;;  %v8718_v1 = vcombine.high %v8708_v60, %v8708_v60  ;;  %v8729_v61 = vadd.f32 %v8708_v60, %v15077_v19 }
0x112b   :  { %v8730_v17 = vadd.f32 %v8716_v20, %v15081_v46  ;;  %v8732_v40 = vadd.f32 %v8701_v42, %v15087_v31  ;;  %v9937_v21 = vmul.f32 -1.442695, %v8728_v18  ;;  %v8867_v26 = vadd.f32 %v8846_v55, %v8793_v63 }
0x112c   :  { %v8719_v24 = vcombine.high %v8715_v14, %v8715_v14  ;;  %v8731_v47 = vadd.f32 %v8718_v1, %v15083_v62  ;;  %v8733_v43 = vadd.f32 %v8715_v14, %v15089_v32  ;;  %v8734_v50 = vadd.f32 %v8717_v28, %v15093_v5 }
0x112d   :  { %11659 = vpow2.f32 %v9937_v21  ;;  %v9938_v48 = vmul.f32 -1.442695, %v8729_v61  ;;  %v9939_v9 = vmul.f32 -1.442695, %v8730_v17  ;;  %v9941_v3 = vmul.f32 -1.442695, %v8732_v40 }
0x112e   :  { %v8735_v22 = vadd.f32 %v8719_v24, %v15097_v51  ;;  %v9940_v13 = vmul.f32 -1.442695, %v8731_v47  ;;  %v9942_v15 = vmul.f32 -1.442695, %v8733_v43  ;;  %v9943_v6 = vmul.f32 -1.442695, %v8734_v50 }
0x112f   :  { %11661 = vpow2.f32 %v9938_v48  ;;  %v8839_v7 = vrot.slane %v8823_v57, %v12002_v11  ;;  %v8854_v58 = vcombine.high %v8832_v33, %v8832_v33  ;;  %v9945_v30 = vmul.f32 -1.442695, %v8866_v54 }
0x1130   :  { %11663 = vpow2.f32 %v9939_v9  ;;  %v9944_v41 = vmul.f32 -1.442695, %v8735_v22  ;;  %v9946_v39 = vmul.f32 -1.442695, %v8867_v26  ;;  %v8853_v37 = vrot.slane %v8825_v44, %v12002_v11 }
0x1131   :  { %11665 = vpow2.f32 %v9940_v13  ;;  %v8856_v42 = vcombine.high %v8846_v55, %v8846_v55  ;;  %v8924_v20 = vcombine.high %v8922_v29, %v8922_v29  ;;  %v8797_v52 = vrot.slane %v15089_v32, 1 }
0x1132   :  { %11667 = vpow2.f32 %v9941_v3  ;;  %v8798_v18 = vrot.slane %v15093_v5, 1  ;;  %v8931_v28 = vrot.slane %v8922_v29, %v12002_v11  ;;  %v8799_v1 = vrot.slane %v15097_v51, 1 }
0x1133   :  { %11669 = vpow2.f32 %v9942_v15  ;;  %v8855_v40 = vcombine.high %v8839_v7, %v8839_v7  ;;  %v8868_v21 = vadd.f32 %v8854_v58, %v8794_v38  ;;  %v8857_v47 = vcombine.high %v8853_v37, %v8853_v37 }
0x1134   :  { %11671 = vpow2.f32 %v9943_v6  ;;  %v8869_v43 = vadd.f32 %v8856_v42, %v8795_v45  ;;  %v8938_v9 = vrot.slane %v8924_v20, %v12002_v11  ;;  %v8870_v22 = vadd.f32 %v8839_v7, %v8796_v59 }
0x1135   :  { %11673 = vpow2.f32 %v9944_v41  ;;  %v8939_v56 = vcombine.high %v8931_v28, %v8931_v28  ;;  %v8871_v15 = vadd.f32 %v8853_v37, %v8797_v52  ;;  %v8872_v57 = vadd.f32 %v8855_v40, %v8798_v18 }
0x1136   :  { %11675 = vpow2.f32 %v9945_v30  ;;  %v9947_v41 = vmul.f32 -1.442695, %v8868_v21  ;;  %v8873_v55 = vadd.f32 %v8857_v47, %v8799_v1  ;;  %v9948_v63 = vmul.f32 -1.442695, %v8869_v43 }
0x1137   :  { %v11660_v2 = vpop.eup %11659  ;;  %v9949_v54 = vmul.f32 -1.442695, %v8870_v22  ;;  %v8940_v44 = vcombine.high %v8938_v9, %v8938_v9  ;;  %v8947_v25 = vrot.slane %v8931_v28, %v12002_v11  ;;  %v9950_v29 = vmul.f32 -1.442695, %v8871_v15 }
0x1138   :  { %v8760_v16 = vadd.f32 1.0, %v11660_v2  ;;  %v8961_v38 = vrot.slane %v8939_v56, %v12002_v11  ;;  %v9951_v45 = vmul.f32 -1.442695, %v8872_v57  ;;  %v8989_v7 = vrot.slane %v15075_v23, 2 }
0x1139   :  { %v11662_v60 = vpop.eup %11661  ;;  %v8990_v58 = vrot.slane %v15077_v19, 2  ;;  %v9952_v30 = vmul.f32 -1.442695, %v8873_v55  ;;  %v8954_v59 = vrot.slane %v8938_v9, %v12002_v11  ;;  %v8969_v20 = vcombine.high %v8947_v25, %v8947_v25 }
0x113a   :  { %v11664_v10 = vpop.eup %11663  ;;  %v8761_v14 = vadd.f32 1.0, %v11662_v60  ;;  %11677 = vrcp.f32 %v8760_v16  ;;  %v8991_v16 = vrot.slane %v15081_v46, 2  ;;  %v8968_v60 = vrot.slane %v8940_v44, %v12002_v11 }
0x113b   :  { %v11666_v61 = vpop.eup %11665  ;;  %v8762_v17 = vadd.f32 1.0, %v11664_v10  ;;  %11679 = vpow2.f32 %v9946_v39  ;;  %v8971_v10 = vcombine.high %v8961_v38, %v8961_v38  ;;  %v8992_v28 = vrot.slane %v15083_v62, 2 }
0x113c   :  { %v11668_v4 = vpop.eup %11667  ;;  %v8763_v24 = vadd.f32 1.0, %v11666_v61  ;;  %11681 = vrcp.f32 %v8761_v14  ;;  %v8993_v46 = vrot.slane %v15087_v31, 2  ;;  %v8995_v31 = vrot.slane %v15093_v5, 2 }
0x113d   :  { %v11670_v50 = vpop.eup %11669  ;;  %v8764_v48 = vadd.f32 1.0, %v11668_v4  ;;  %11683 = vrcp.f32 %v8762_v17  ;;  %v8994_v17 = vrot.slane %v15089_v32, 2  ;;  %v8970_v4 = vcombine.high %v8954_v59, %v8954_v59 }
0x113e   :  { %v11672_v13 = vpop.eup %11671  ;;  %v8765_v3 = vadd.f32 1.0, %v11670_v50  ;;  %11685 = vrcp.f32 %v8763_v24  ;;  %v8972_v50 = vcombine.high %v8968_v60, %v8968_v60 }
0x113f   :  { %v11674_v33 = vpop.eup %11673  ;;  %v8766_v6 = vadd.f32 1.0, %v11672_v13  ;;  %11687 = vrcp.f32 %v8764_v48 }
0x1140   :  { %v8767_v27 = vadd.f32 1.0, %v11674_v33  ;;  %11689 = vrcp.f32 %v8765_v3  ;;  %v11676_v26 = vpop.eup %11675  ;;  %v8996_v3 = vrot.slane %v15097_v51, 2 }
0x1141   :  { %11691 = vrcp.f32 %v8766_v6  ;;  %v8898_v52 = vadd.f32 1.0, %v11676_v26 }
0x1142   :  { %11693 = vrcp.f32 %v8767_v27 }
0x1143   :  { %11695 = vpow2.f32 %v9947_v41 }
0x1144   :  { %v11678_v2 = vpop.eup %11677  ;;  %11697 = vpow2.f32 %v9948_v63 }
0x1145   :  { %v11680_v39 = vpop.eup %11679  ;;  %v8981_v37 = vmul.f32 %v11678_v2, %v8947_v25  ;;  %11699 = vpow2.f32 %v9949_v54 }
0x1146   :  { %v11682_v42 = vpop.eup %11681  ;;  %11701 = vpow2.f32 %v9950_v29  ;;  %v8899_v57 = vadd.f32 1.0, %v11680_v39 }
0x1147   :  { %v11684_v18 = vpop.eup %11683  ;;  %v8982_v23 = vmul.f32 %v11682_v42, %v8961_v38  ;;  %v9005_v14 = vadd.f32 %v8989_v7, %v8981_v37  ;;  %11703 = vpow2.f32 %v9951_v45 }
0x1148   :  { %v11686_v19 = vpop.eup %11685  ;;  %v8983_v1 = vmul.f32 %v11684_v18, %v8969_v20  ;;  %11705 = vpow2.f32 %v9952_v30 }
0x1149   :  { %v11688_v61 = vpop.eup %11687  ;;  %v8984_v40 = vmul.f32 %v11686_v19, %v8971_v10  ;;  %v9006_v11 = vadd.f32 %v8990_v58, %v8982_v23  ;;  %11707 = vtanh.f32 %v9005_v14 }
0x114a   :  { %v11690_v21 = vpop.eup %11689  ;;  %v8985_v24 = vmul.f32 %v11688_v61, %v8954_v59  ;;  %v9007_v47 = vadd.f32 %v8991_v16, %v8983_v1  ;;  %11709 = vrcp.f32 %v8898_v52 }
0x114b   :  { %v11692_v43 = vpop.eup %11691  ;;  %v8986_v48 = vmul.f32 %v11690_v21, %v8968_v60  ;;  %v9008_v9 = vadd.f32 %v8992_v28, %v8984_v40  ;;  %11711 = vtanh.f32 %v9006_v11 }
0x114c   :  { %v11694_v62 = vpop.eup %11693  ;;  %v8987_v22 = vmul.f32 %v11692_v43, %v8970_v4  ;;  %v9009_v13 = vadd.f32 %v8993_v46, %v8985_v24  ;;  %11713 = vtanh.f32 %v9007_v47 }
0x114d   :  { %v11696_v32 = vpop.eup %11695  ;;  %v8988_v56 = vmul.f32 %v11694_v62, %v8972_v50  ;;  %v9010_v15 = vadd.f32 %v8994_v17, %v8986_v48  ;;  %11715 = vtanh.f32 %v9008_v9 }
0x114e   :  { %v11698_v33 = vpop.eup %11697  ;;  %v9011_v6 = vadd.f32 %v8995_v31, %v8987_v22  ;;  %11717 = vtanh.f32 %v9009_v13  ;;  %v8900_v55 = vadd.f32 1.0, %v11696_v32 }
0x114f   :  { %v11700_v41 = vpop.eup %11699  ;;  %v9012_v27 = vadd.f32 %v8996_v3, %v8988_v56  ;;  %11719 = vtanh.f32 %v9010_v15  ;;  %v8901_v5 = vadd.f32 1.0, %v11698_v33 }
0x1150   :  { %v11702_v63 = vpop.eup %11701  ;;  %11721 = vtanh.f32 %v9011_v6  ;;  %v8902_v44 = vadd.f32 1.0, %v11700_v41 }
0x1151   :  { %v11704_v54 = vpop.eup %11703  ;;  %11723 = vtanh.f32 %v9012_v27  ;;  %v8903_v29 = vadd.f32 1.0, %v11702_v63 }
0x1152   :  { %v11706_v25 = vpop.eup %11705  ;;  %11725 = vrcp.f32 %v8899_v57  ;;  %v8904_v26 = vadd.f32 1.0, %v11704_v54 }
0x1153   :  { %v11708_v51 = vpop.eup %11707  ;;  %11727 = vrcp.f32 %v8900_v55  ;;  %v8905_v45 = vadd.f32 1.0, %v11706_v25 }
0x1154   :  { %v11710_v38 = vpop.eup %11709  ;;  %11729 = vrcp.f32 %v8901_v5 }
0x1155   :  { %v11712_v2 = vpop.eup %11711  ;;  %11731 = vrcp.f32 %v8902_v44  ;;  %v9021_v7 = vsub.f32 1.0, %v11710_v38  ;;  %v9037_v16 = vmul.f32 %v11710_v38, %v14959_v53 }
0x1156   :  { %v11714_v58 = vpop.eup %11713  ;;  %11733 = vrcp.f32 %v8903_v29 }
0x1157   :  { %v11716_v30 = vpop.eup %11715  ;;  %11735 = vrcp.f32 %v8904_v26  ;;  %v9029_v39 = vmul.f32 %v11708_v51, %v9021_v7 }
0x1158   :  { %v11718_v59 = vpop.eup %11717  ;;  %11737 = vrcp.f32 %v8905_v45 }
0x1159   :  { %v11720_v37 = vpop.eup %11719  ;;  %v9045_v42 = vadd.f32 %v9037_v16, %v9029_v39 }
0x115a   :  { %v11722_v60 = vpop.eup %11721 }
0x115b   :  { %v11724_v20 = vpop.eup %11723  ;;  %9053 = vst [vmem:[%s15179_s6 + $0xf] sm:$0x1] %v9045_v42  ;;  %v9077_v1 = vpack.c.bf16 %v9045_v42, %v9045_v42 }
0x115c   :  { %v11726_v52 = vpop.eup %11725 }
0x115d   :  { %v11728_v18 = vpop.eup %11727  ;;  %v9022_v10 = vsub.f32 1.0, %v11726_v52  ;;  %v9038_v53 = vmul.f32 %v11726_v52, %v14971_v49  ;;  %v9093_v55 = vunpack.c.l.b16 %v9077_v1 }
0x115e   :  { %v11730_v23 = vpop.eup %11729  ;;  %v9023_v14 = vsub.f32 1.0, %v11728_v18  ;;  %v9039_v11 = vmul.f32 %v11728_v18, %v14973_v8 }
0x115f   :  { %v11732_v19 = vpop.eup %11731  ;;  %v9024_v28 = vsub.f32 1.0, %v11730_v23  ;;  %v9030_v46 = vmul.f32 %v11712_v2, %v9022_v10  ;;  %v9040_v21 = vmul.f32 %v11730_v23, %v14981_v35 }
0x1160   :  { %v11734_v61 = vpop.eup %11733  ;;  %v9025_v17 = vsub.f32 1.0, %v11732_v19  ;;  %v9031_v40 = vmul.f32 %v11714_v58, %v9023_v14  ;;  %v9041_v24 = vmul.f32 %v11732_v19, %v14987_v36 }
0x1161   :  { %v11736_v4 = vpop.eup %11735  ;;  %v9046_v47 = vadd.f32 %v9038_v53, %v9030_v46  ;;  %v9026_v43 = vsub.f32 1.0, %v11734_v61  ;;  %v9032_v50 = vmul.f32 %v11716_v30, %v9024_v28  ;;  %v9042_v49 = vmul.f32 %v11734_v61, %v14994_v34 }
0x1162   :  { %v11738_v48 = vpop.eup %11737  ;;  %v9047_v9 = vadd.f32 %v9039_v11, %v9031_v40  ;;  %v9027_v62 = vsub.f32 1.0, %v11736_v4  ;;  %v9033_v31 = vmul.f32 %v11718_v59, %v9025_v17  ;;  %v9043_v35 = vmul.f32 %v11736_v4, %v15002_v12 }
0x1163   :  { %9054 = vst [vmem:[%s15179_s6 + $0x1f] sm:$0x1] %v9046_v47  ;;  %v9028_v22 = vsub.f32 1.0, %v11738_v48  ;;  %v9034_v8 = vmul.f32 %v11720_v37, %v9026_v43  ;;  %v9048_v13 = vadd.f32 %v9040_v21, %v9032_v50  ;;  %v9078_v3 = vpack.c.bf16 %v9046_v47, %v9046_v47 }
0x1164   :  { %9055 = vst [vmem:[%s15179_s6 + $0x2f] sm:$0x1] %v9047_v9  ;;  %v9035_v36 = vmul.f32 %v11722_v60, %v9027_v62  ;;  %v9049_v32 = vadd.f32 %v9041_v24, %v9033_v31  ;;  %v9079_v56 = vpack.c.bf16 %v9047_v9, %v9047_v9  ;;  %v9044_v34 = vmul.f32 %v11738_v48, %v15010_v0 }
0x1165   :  { %v9036_v15 = vmul.f32 %v11724_v20, %v9028_v22  ;;  %v9050_v33 = vadd.f32 %v9042_v49, %v9034_v8  ;;  %9056 = vst [vmem:[%s15179_s6 + $0x3f] sm:$0x1] %v9048_v13  ;;  %v9080_v6 = vpack.c.bf16 %v9048_v13, %v9048_v13  ;;  %v9094_v41 = vunpack.c.l.b16 %v9078_v3 }
0x1166   :  { %v9051_v57 = vadd.f32 %v9043_v35, %v9035_v36  ;;  %9057 = vst [vmem:[%s15179_s6 + $0x4f] sm:$0x1] %v9049_v32  ;;  %v9081_v12 = vpack.c.bf16 %v9049_v32, %v9049_v32  ;;  %v9095_v27 = vunpack.c.l.b16 %v9079_v56 }
0x1167   :  { %v9052_v63 = vadd.f32 %v9044_v34, %v9036_v15  ;;  %9058 = vst [vmem:[%s15179_s6 + $0x5f] sm:$0x1] %v9050_v33  ;;  %v9082_v0 = vpack.c.bf16 %v9050_v33, %v9050_v33  ;;  %v9096_v5 = vunpack.c.l.b16 %v9080_v6  ;;  %v9101_v25 = vrot.slane %v9094_v41, 7 }
0x1168   :  { %9059 = vst [vmem:[%s15179_s6 + $0x6f] sm:$0x1] %v9051_v57  ;;  %v9083_v54 = vpack.c.bf16 %v9051_v57, %v9051_v57  ;;  %v9097_v44 = vunpack.c.l.b16 %v9081_v12  ;;  %v9103_v29 = vrot.slane %v9095_v27, 6 }
0x1169   :  { %9060 = vst [vmem:[%s15179_s6 + $0x7f] sm:$0x1] %v9052_v63  ;;  %v9084_v51 = vpack.c.bf16 %v9052_v63, %v9052_v63  ;;  %v9098_v26 = vunpack.c.l.b16 %v9082_v0  ;;  %v9105_v38 = vrot.slane %v9096_v5, 5  ;;  %v9102_v2 = vsel %vm1703_vm3, %v9101_v25, %v9093_v55 }
0x116a   :  { %v9099_v45 = vunpack.c.l.b16 %v9083_v54  ;;  %v9104_v58 = vsel %vm1706_vm4, %v9103_v29, %v9102_v2  ;;  %v9107_v30 = vrot.slane %v9097_v44, 4 }
0x116b   :  { %v9100_v7 = vunpack.c.l.b16 %v9084_v51  ;;  %v9106_v39 = vsel %vm1709_vm5, %v9105_v38, %v9104_v58  ;;  %v9109_v16 = vrot.slane %v9098_v26, 3 }
0x116c   :  { %v9108_v59 = vsel %vm1712_vm6, %v9107_v30, %v9106_v39  ;;  %v9111_v37 = vrot.slane %v9099_v45, 2 }
0x116d   :  { %v9110_v42 = vsel %vm1715_vm7, %v9109_v16, %v9108_v59  ;;  %v9113_v60 = vrot.slane %v9100_v7, 1 }
0x116e   :  { %v9112_v20 = vsel %vm1718_vm8, %v9111_v37, %v9110_v42 }
0x116f   :  { %v9114_v52 = vsel %vm1721_vm9, %v9113_v60, %v9112_v20 }
0x1170   :  { %v9115_v18 = vpack.c.b16 %v9114_v52, %v9114_v52 }
0x1172   :  { %9150 = vmatmul.mubr.bf16.vlgmr.msra.gmra.mrb[92].mxu0 %v9115_v18  ;;  %10494 = vmatmul.mubr.bf16.vlgmr.msra.gmra.mrb[92].mxu1 %v9115_v18 }
0x1245   :  { %v9151_v10 = vpop.f32.mrb[92].mxu0  ;;  %v9192_v23 = vpop.f32.mrb[92].mxu1 }
0x1246   :  { %v9153_v14 = vpop.f32.mrb[93].mxu0  ;;  %v10495_v19 = vpop.f32.mrb[93].mxu1 }
0x1247   :  { %v9155_v28 = vpop.f32.mrb[94].mxu0  ;;  %v9195_v46 = vpop.f32.mrb[94].mxu1 }
0x1248   :  { %v9156_v53 = vpop.f32.mrb[95].mxu0  ;;  %v10496_v1 = vpop.f32.mrb[95].mxu1 }
0x1249   :  { %9644 = vsyncpa [#allocation5], 1 }

</bundles_post_ra>
